<compile_context>
chip_gen: v7x
topology: tpu7x:2x2x1
jax: 0.10.0
libtpu: 0.0.40
codegen_flags: <defaults>
</compile_context>

<pallas_src>
import math
import jax
import jax.numpy as jnp
from jax import lax
from jax.experimental import pallas as pl
from jax.experimental.pallas import tpu as pltpu

BN_EPS = 1e-5      # PyTorch BatchNorm2d default eps
L2_EPS = 1e-12     # F.normalize default eps
DENSENET121_BLOCK_CONFIG = (6, 12, 24, 16)

# Scoped-VMEM limit: far above the ~5-8 MiB working sets here, below v7x's 64 MiB physical,
# and a raise over the 16/32 MiB scoped defaults on v5e / v6e-v7x.
_VMEM_LIMIT = 48 * 1024 * 1024


def _round_up(x, m):
    return ((x + m - 1) // m) * m


def _pick_m_tile(M, pref=512, max_tile=1024):
    """Choose (tm, Mp): tm multiple of 8, prefers 512-1024, divides the (lightly) padded M."""
    Mp = _round_up(M, 8)
    if Mp <= max_tile:
        return Mp, Mp
    for t in range(max_tile, 255, -8):          # prefer an existing divisor -> no M padding
        if Mp % t == 0:
            return t, Mp
    return pref, _round_up(M, pref)             # rare fallback: pad M to a 512 multiple


# ----------------------------------------------------------------------------
# Resident-weight matmul kernels (full-K / full-N blocks, M streamed)
# ----------------------------------------------------------------------------
def _mm_kernel(a_ref, w_ref, o_ref):
    o_ref[...] = jnp.dot(a_ref[...], w_ref[...],
                         preferred_element_type=jnp.float32).astype(o_ref.dtype)


def _mm_bn_pre_kernel(a_ref, s_ref, t_ref, w_ref, o_ref):
    """relu(a * scale_k + shift_k) @ W — eval-mode BN+ReLU fused on the streamed A tile."""
    a = jnp.maximum(a_ref[...].astype(jnp.float32) * s_ref[...] + t_ref[...], 0.0)
    o_ref[...] = jnp.dot(a.astype(jnp.bfloat16), w_ref[...],
                         preferred_element_type=jnp.float32).astype(o_ref.dtype)


def _mm_bn_post_kernel(a_ref, w_ref, s_ref, t_ref, o_ref):
    """relu((a @ W) * scale_n + shift_n) — BN+ReLU fused at writeback (stem conv0 / norm0)."""
    acc = jnp.dot(a_ref[...], w_ref[...], preferred_element_type=jnp.float32)
    o_ref[...] = jnp.maximum(acc * s_ref[...] + t_ref[...], 0.0).astype(o_ref.dtype)


def conv_matmul(a, w, *, bn_in=None, bn_out=None, out_dtype=jnp.bfloat16):
    """(M, K) @ (K, N).  Weight (and BN vectors) are resident full-dim VMEM blocks; only the
    M axis is tiled/streamed (grid=(Mp//tm,)), so A / W / out each cross HBM exactly once."""
    M, K = a.shape
    K2, N = w.shape
    assert K == K2
    tm, Mp = _pick_m_tile(M)

    a_p = a.astype(jnp.bfloat16)
    if Mp != M:
        a_p = jnp.pad(a_p, ((0, Mp - M), (0, 0)))
    w_p = w.astype(jnp.bfloat16)

    if bn_in is not None:
        scale, shift = bn_in
        operands = (a_p, scale.reshape(1, K).astype(jnp.float32),
                    shift.reshape(1, K).astype(jnp.float32), w_p)
        kernel = _mm_bn_pre_kernel
        in_specs = [pl.BlockSpec((tm, K), lambda i: (i, 0)),
                    pl.BlockSpec((1, K), lambda i: (0, 0)),
                    pl.BlockSpec((1, K), lambda i: (0, 0)),
                    pl.BlockSpec((K, N), lambda i: (0, 0))]
    elif bn_out is not None:
        scale, shift = bn_out
        operands = (a_p, w_p, scale.reshape(1, N).astype(jnp.float32),
                    shift.reshape(1, N).astype(jnp.float32))
        kernel = _mm_bn_post_kernel
        in_specs = [pl.BlockSpec((tm, K), lambda i: (i, 0)),
                    pl.BlockSpec((K, N), lambda i: (0, 0)),
                    pl.BlockSpec((1, N), lambda i: (0, 0)),
                    pl.BlockSpec((1, N), lambda i: (0, 0))]
    else:
        operands = (a_p, w_p)
        kernel = _mm_kernel
        in_specs = [pl.BlockSpec((tm, K), lambda i: (i, 0)),
                    pl.BlockSpec((K, N), lambda i: (0, 0))]

    out = pl.pallas_call(
        kernel,
        out_shape=jax.ShapeDtypeStruct((Mp, N), out_dtype),
        grid_spec=pltpu.PrefetchScalarGridSpec(
            num_scalar_prefetch=0,
            grid=(Mp // tm,),
            in_specs=in_specs,
            out_specs=pl.BlockSpec((tm, N), lambda i: (i, 0)),
        ),
        compiler_params=pltpu.CompilerParams(
            dimension_semantics=("parallel",),
            vmem_limit_bytes=_VMEM_LIMIT),
    )(*operands)
    return out[:M] if Mp != M else out


# ----------------------------------------------------------------------------
# 3x3 conv (stride 1, pad 1) with in-kernel tap reduction — no HBM im2col
# ----------------------------------------------------------------------------
def _conv3x3_kernel(x_ref, s_ref, t_ref, w_ref, o_ref):
    """Per-image 3x3 conv with fused BN+ReLU prologue.  The padded NHWC tile is loaded once;
    the 9 taps are sliced in VMEM and accumulated, so no patch tensor ever hits HBM."""
    _, H, Wo, O = o_ref.shape
    C = x_ref.shape[3]
    x = jnp.maximum(x_ref[0].astype(jnp.float32) * s_ref[...] + t_ref[...], 0.0)
    acc = jnp.zeros((H * Wo, O), jnp.float32)
    for tap in range(9):
        di, dj = tap // 3, tap % 3
        patch = x[di:di + H, dj:dj + Wo, :].reshape(H * Wo, C)
        acc = acc + jnp.dot(patch.astype(jnp.bfloat16), w_ref[tap],
                            preferred_element_type=jnp.float32)
    o_ref[...] = acc.reshape(1, H, Wo, O).astype(o_ref.dtype)


def conv3x3_bn(x_nhwc, w_oihw, bn_pre, out_dtype=jnp.bfloat16):
    """Dense-layer conv2: 3x3 / stride 1 / pad 1, BN+ReLU fused on the input."""
    B, H, W, C = x_nhwc.shape
    O = w_oihw.shape[0]
    Wo = max(_round_up(W, 8), 8)          # sublane-aligned output width; extra cols sliced off
    Hp, Wp = H + 2, Wo + 2
    xp = jnp.pad(x_nhwc, ((0, 0), (1, 1), (1, Wo + 1 - W), (0, 0)))
    wt = jnp.transpose(w_oihw, (2, 3, 1, 0)).reshape(9, C, O).astype(jnp.bfloat16)
    scale, shift = bn_pre

    out = pl.pallas_call(
        _conv3x3_kernel,
        out_shape=jax.ShapeDtypeStruct((B, H, Wo, O), out_dtype),
        grid_spec=pltpu.PrefetchScalarGridSpec(
            num_scalar_prefetch=0,
            grid=(B,),
            in_specs=[pl.BlockSpec((1, Hp, Wp, C), lambda b: (b, 0, 0, 0)),
                      pl.BlockSpec((1, 1, C), lambda b: (0, 0, 0)),
                      pl.BlockSpec((1, 1, C), lambda b: (0, 0, 0)),
                      pl.BlockSpec((9, C, O), lambda b: (0, 0, 0))],
            out_specs=pl.BlockSpec((1, H, Wo, O), lambda b: (b, 0, 0, 0)),
        ),
        compiler_params=pltpu.CompilerParams(
            dimension_semantics=("parallel",),
            vmem_limit_bytes=_VMEM_LIMIT),
    )(xp, scale.reshape(1, 1, C).astype(jnp.float32),
      shift.reshape(1, 1, C).astype(jnp.float32), wt)
    return out[:, :, :W, :] if Wo != W else out


# ----------------------------------------------------------------------------
# Fused head kernel: norm5 BN+ReLU + global avg-pool + Linear + F.normalize (batch tiled)
# ----------------------------------------------------------------------------
def _head_kernel(f_ref, s_ref, t_ref, w_ref, b_ref, o_ref):
    f = jnp.maximum(f_ref[...].astype(jnp.float32) * s_ref[...] + t_ref[...], 0.0)
    pooled = jnp.mean(f, axis=1)                                           # (bt, C)
    emb = jnp.dot(pooled.astype(jnp.bfloat16), w_ref[...],
                  preferred_element_type=jnp.float32) + b_ref[...]
    inv = lax.rsqrt(jnp.maximum(jnp.sum(emb * emb, axis=1, keepdims=True),
                                L2_EPS * L2_EPS))                          # EUP rsqrt
    o_ref[...] = emb * inv                                                 # F.normalize(p=2,dim=1)


def _pick_b_tile(B):
    for t in (32, 16, 8):
        if B % t == 0:
            return t
    return B


def embedding_head(feats_nhwc, scale, shift, w_t, bias):
    B, H, W, C = feats_nhwc.shape
    E = w_t.shape[1]
    bt = _pick_b_tile(B)
    f = feats_nhwc.reshape(B, H * W, C)
    return pl.pallas_call(
        _head_kernel,
        out_shape=jax.ShapeDtypeStruct((B, E), jnp.float32),
        grid_spec=pltpu.PrefetchScalarGridSpec(
            num_scalar_prefetch=0,
            grid=(B // bt,),
            in_specs=[pl.BlockSpec((bt, H * W, C), lambda i: (i, 0, 0)),
                      pl.BlockSpec((1, 1, C), lambda i: (0, 0, 0)),
                      pl.BlockSpec((1, 1, C), lambda i: (0, 0, 0)),
                      pl.BlockSpec((C, E), lambda i: (0, 0)),
                      pl.BlockSpec((1, E), lambda i: (0, 0))],
            out_specs=pl.BlockSpec((bt, E), lambda i: (i, 0)),
        ),
        compiler_params=pltpu.CompilerParams(
            dimension_semantics=("parallel",),
            vmem_limit_bytes=_VMEM_LIMIT),
    )(f, scale.reshape(1, 1, C).astype(jnp.float32),
      shift.reshape(1, 1, C).astype(jnp.float32),
      w_t.astype(jnp.bfloat16), bias.reshape(1, E).astype(jnp.float32))


# ----------------------------------------------------------------------------
# Generic conv wrapper (1x1 direct; im2col kept only for the 7x7 stem conv0, C=3)
# ----------------------------------------------------------------------------
def bn_fold(bn):
    """Eval-mode BN running-stat folding -> per-channel (scale, shift) in f32."""
    scale = bn["gamma"] * lax.rsqrt(bn["var"] + BN_EPS)
    shift = bn["beta"] - bn["mean"] * scale
    return scale, shift


def conv2d(x_nhwc, w_oihw, *, stride=1, padding=0, bn_pre=None, bn_post=None,
           out_dtype=jnp.bfloat16):
    """torch.nn.Conv2d(bias=False) with NCHW weight (O,I,kh,kw); optional fused BN+ReLU on
    the conv input (bn_pre) or output (bn_post)."""
    B, H, W, C = x_nhwc.shape
    O, I, kh, kw = w_oihw.shape
    assert I == C
    Ho = (H + 2 * padding - kh) // stride + 1
    Wo = (W + 2 * padding - kw) // stride + 1
    if kh == 1 and kw == 1 and stride == 1 and padding == 0:
        patches = x_nhwc.reshape(B * H * W, C)
    else:
        # TODO(synk): only the 7x7/stride-2 stem conv0 (C=3) still goes through materialized
        # im2col; fold its 49 taps into the kernel like conv3x3_bn for a further traffic cut.
        xp = jnp.pad(x_nhwc, ((0, 0), (padding, padding), (padding, padding), (0, 0)))
        cols = [xp[:, i:i + stride * Ho:stride, j:j + stride * Wo:stride, :]
                for i in range(kh) for j in range(kw)]
        patches = jnp.concatenate(cols, axis=-1).reshape(B * Ho * Wo, kh * kw * C)
    wmat = jnp.transpose(w_oihw, (2, 3, 1, 0)).reshape(kh * kw * I, O)

    bn_in = None
    if bn_pre is not None:
        scale, shift = bn_pre
        bn_in = (jnp.tile(scale, kh * kw), jnp.tile(shift, kh * kw))  # per im2col column

    out = conv_matmul(patches, wmat, bn_in=bn_in, bn_out=bn_post, out_dtype=out_dtype)
    return out.reshape(B, Ho, Wo, O)


def maxpool_3x3_s2_p1(x):
    # TODO(synk): pooling windows stay in XLA reduce_window (memory-bound glue).
    init = jnp.array(-jnp.inf, dtype=x.dtype)
    return lax.reduce_window(x, init, lax.max, (1, 3, 3, 1), (1, 2, 2, 1),
                             ((0, 0), (1, 1), (1, 1), (0, 0)))


def avgpool_2x2_s2(x):
    init = jnp.array(0, dtype=x.dtype)
    s = lax.reduce_window(x, init, lax.add, (1, 2, 2, 1), (1, 2, 2, 1),
                          ((0, 0), (0, 0), (0, 0), (0, 0)))
    return (s * jnp.array(0.25, dtype=x.dtype)).astype(x.dtype)


# ----------------------------------------------------------------------------
# Deterministic parameter construction (synthetic weights, no checkpoint)
# ----------------------------------------------------------------------------
class _Keys:
    def __init__(self, key):
        self._key = key

    def __call__(self):
        self._key, k = jax.random.split(self._key)
        return k


def _bn_init(kg, c):
    return {
        "gamma": 1.0 + 0.1 * jax.random.normal(kg(), (c,), jnp.float32),
        "beta": 0.1 * jax.random.normal(kg(), (c,), jnp.float32),
        "mean": 0.1 * jax.random.normal(kg(), (c,), jnp.float32),
        "var": jax.random.uniform(kg(), (c,), jnp.float32, 0.5, 1.5),
    }


def _conv_init(kg, out_c, in_c, kh, kw):
    fan_in = in_c * kh * kw
    return jax.random.normal(kg(), (out_c, in_c, kh, kw), jnp.float32) * math.sqrt(2.0 / fan_in)


def init_params(key, block_config=DENSENET121_BLOCK_CONFIG, growth_rate=32,
                num_init_features=64, bn_size=4, embedding_size=128):
    kg = _Keys(key)
    params = {
        "conv0": _conv_init(kg, num_init_features, 3, 7, 7),
        "norm0": _bn_init(kg, num_init_features),
        "blocks": [],
        "transitions": [],
    }
    num_features = num_init_features
    for b, n_layers in enumerate(block_config):
        layers = []
        for i in range(n_layers):
            c_in = num_features + i * growth_rate
            layers.append({
                "norm1": _bn_init(kg, c_in),
                "conv1": _conv_init(kg, bn_size * growth_rate, c_in, 1, 1),
                "norm2": _bn_init(kg, bn_size * growth_rate),
                "conv2": _conv_init(kg, growth_rate, bn_size * growth_rate, 3, 3),
            })
        params["blocks"].append(layers)
        num_features = num_features + n_layers * growth_rate
        if b != len(block_config) - 1:
            params["transitions"].append({
                "norm": _bn_init(kg, num_features),
                "conv": _conv_init(kg, num_features // 2, num_features, 1, 1),
            })
            num_features = num_features // 2
    params["norm5"] = _bn_init(kg, num_features)
    # nn.Linear(num_features, embedding_size): weight (E, num_features), bias (E,)
    params["embedding_w"] = jax.random.normal(kg(), (embedding_size, num_features),
                                              jnp.float32) / math.sqrt(num_features)
    params["embedding_b"] = 0.01 * jax.random.normal(kg(), (embedding_size,), jnp.float32)
    return params


# ----------------------------------------------------------------------------
# EmbeddingNet forward
# ----------------------------------------------------------------------------
def _dense_layer(x, lp):
    # norm1+ReLU fused into the 1x1 bottleneck matmul; norm2+ReLU fused into the 3x3 tap kernel.
    y = conv2d(x, lp["conv1"], bn_pre=bn_fold(lp["norm1"]))
    y = conv3x3_bn(y, lp["conv2"], bn_fold(lp["norm2"]))
    return y


def embedding_net_forward(x_nchw, params):
    # layout: NCHW (PyTorch) -> NHWC bf16 for the kernels (channels on the lane axis).
    x = jnp.transpose(x_nchw, (0, 2, 3, 1)).astype(jnp.bfloat16)
    # stem: conv0 with norm0+ReLU fused as the matmul epilogue, then maxpool.
    x = conv2d(x, params["conv0"], stride=2, padding=3, bn_post=bn_fold(params["norm0"]))
    x = maxpool_3x3_s2_p1(x)
    n_blocks = len(params["blocks"])
    for b, layers in enumerate(params["blocks"]):
        for lp in layers:
            new_f = _dense_layer(x, lp)
            # TODO(synk): write new_f into a preallocated per-block channel slab via
            # input_output_aliases (128-channel groups) instead of re-copying the growing map.
            x = jnp.concatenate([x, new_f], axis=-1)      # dense connectivity
        if b != n_blocks - 1:
            t = params["transitions"][b]
            x = conv2d(x, t["conv"], bn_pre=bn_fold(t["norm"]))   # BN+ReLU fused into 1x1 conv
            x = avgpool_2x2_s2(x)
    # head: norm5 BN+ReLU + global-avg-pool + Linear + F.normalize, batch-tiled kernel.
    s5, t5 = bn_fold(params["norm5"])
    w_t = jnp.transpose(params["embedding_w"])            # (num_features, E)
    return embedding_head(x, s5, t5, w_t, params["embedding_b"])


if __name__ == "__main__":
    key = jax.random.PRNGKey(0)
    kp, kx = jax.random.split(key)

    # TODO(synk): densenet121 uses block_config=(6,12,24,16); a reduced config with the
    # identical per-layer ops/structure keeps demo compile time small.
    block_config = (2, 2, 2, 2)
    params = init_params(kp, block_config=block_config, embedding_size=128)

    x = jax.random.normal(kx, (2, 3, 32, 32), dtype=jnp.float32)   # NCHW, like PyTorch

    fwd = jax.jit(lambda inp: embedding_net_forward(inp, params))
    out = jax.block_until_ready(fwd(x))

    assert out.shape == (2, 128), out.shape
    assert bool(jnp.all(jnp.isfinite(out)))
    norms = jnp.linalg.norm(out, axis=1)
    assert bool(jnp.allclose(norms, 1.0, atol=1e-3)), norms   # F.normalize => unit rows
    print("KERNEL_OK")
</pallas_src>

<mosaic_0001>
module attributes {stable_mosaic.version = 11 : i64} {
  func.func @_mm_bn_post_kernel(%arg0: i32, %arg1: memref<512x147xbf16, #tpu.memory_space<vmem>>, %arg2: memref<147x64xbf16, #tpu.memory_space<vmem>>, %arg3: memref<1x64xf32, #tpu.memory_space<vmem>>, %arg4: memref<1x64xf32, #tpu.memory_space<vmem>>, %arg5: memref<512x64xbf16, #tpu.memory_space<vmem>>) attributes {dimension_semantics = [#tpu.dimension_semantics<parallel>], iteration_bounds = array<i64: 1>, scalar_prefetch = 0 : i64, scratch_operands = 0 : i64, tpu.core_type = #tpu.core_type<tc>, window_params = [{transform_indices = @transform_0, window_bounds = array<i64: 512, 147>}, {pipeline_mode = #tpu.pipeline_mode<synchronous>, transform_indices = @transform_1, window_bounds = array<i64: 147, 64>}, {pipeline_mode = #tpu.pipeline_mode<synchronous>, transform_indices = @transform_2, window_bounds = array<i64: 1, 64>}, {pipeline_mode = #tpu.pipeline_mode<synchronous>, transform_indices = @transform_3, window_bounds = array<i64: 1, 64>}, {transform_indices = @transform_4, window_bounds = array<i64: 512, 64>}]} {
    %c0 = arith.constant 0 : index
    %c0_0 = arith.constant 0 : index
    %0 = vector.load %arg1[%c0, %c0_0] : memref<512x147xbf16, #tpu.memory_space<vmem>>, vector<512x147xbf16>
    %c0_1 = arith.constant 0 : index
    %c0_2 = arith.constant 0 : index
    %1 = vector.load %arg2[%c0_1, %c0_2] : memref<147x64xbf16, #tpu.memory_space<vmem>>, vector<147x64xbf16>
    %cst = arith.constant dense<0.000000e+00> : vector<512x64xf32>
    %2 = tpu.matmul %0, %1, %cst {dimension_numbers = #tpu.dot_dimension_numbers<[1], [0], [0], [1], [0, 0, 1, 1], [], []>} : vector<512x147xbf16>, vector<147x64xbf16>, vector<512x64xf32> -> vector<512x64xf32>
    %c0_3 = arith.constant 0 : index
    %c0_4 = arith.constant 0 : index
    %3 = vector.load %arg3[%c0_3, %c0_4] : memref<1x64xf32, #tpu.memory_space<vmem>>, vector<1x64xf32>
    %4 = vector.broadcast %3 : vector<1x64xf32> to vector<512x64xf32>
    %5 = arith.mulf %2, %4 : vector<512x64xf32>
    %c0_5 = arith.constant 0 : index
    %c0_6 = arith.constant 0 : index
    %6 = vector.load %arg4[%c0_5, %c0_6] : memref<1x64xf32, #tpu.memory_space<vmem>>, vector<1x64xf32>
    %7 = vector.broadcast %6 : vector<1x64xf32> to vector<512x64xf32>
    %8 = arith.addf %5, %7 : vector<512x64xf32>
    %cst_7 = arith.constant 0.000000e+00 : f32
    %9 = vector.broadcast %cst_7 : f32 to vector<512x64xf32>
    %10 = arith.maximumf %8, %9 : vector<512x64xf32>
    %11 = arith.truncf %10 : vector<512x64xf32> to vector<512x64xbf16>
    %c0_8 = arith.constant 0 : index
    %c0_9 = arith.constant 0 : index
    %12 = vector.load %arg5[%c0_8, %c0_9] : memref<512x64xbf16, #tpu.memory_space<vmem>>, vector<512x64xbf16>
    tpu.vector_store %arg5[%c0_8, %c0_9], %11 {strides = array<i32>} : memref<512x64xbf16, #tpu.memory_space<vmem>>, vector<512x64xbf16>,
    return
  }
  func.func @transform_0(%arg0: i32) -> (i32, i32) {
    %c0_i32 = arith.constant 0 : i32
    %c0_i32_0 = arith.constant 0 : i32
    return %arg0, %c0_i32 : i32, i32
  }
  func.func @transform_1(%arg0: i32) -> (i32, i32) {
    %c0_i32 = arith.constant 0 : i32
    %c0_i32_0 = arith.constant 0 : i32
    %c0_i32_1 = arith.constant 0 : i32
    return %c0_i32, %c0_i32_0 : i32, i32
  }
  func.func @transform_2(%arg0: i32) -> (i32, i32) {
    %c0_i32 = arith.constant 0 : i32
    %c0_i32_0 = arith.constant 0 : i32
    %c0_i32_1 = arith.constant 0 : i32
    return %c0_i32, %c0_i32_0 : i32, i32
  }
  func.func @transform_3(%arg0: i32) -> (i32, i32) {
    %c0_i32 = arith.constant 0 : i32
    %c0_i32_0 = arith.constant 0 : i32
    %c0_i32_1 = arith.constant 0 : i32
    return %c0_i32, %c0_i32_0 : i32, i32
  }
  func.func @transform_4(%arg0: i32) -> (i32, i32) {
    %c0_i32 = arith.constant 0 : i32
    %c0_i32_0 = arith.constant 0 : i32
    return %arg0, %c0_i32 : i32, i32
  }
}

module attributes {stable_mosaic.version = 11 : i64} {
  func.func @_mm_bn_pre_kernel(%arg0: i32, %arg1: memref<128x64xbf16, #tpu.memory_space<vmem>>, %arg2: memref<1x64xf32, #tpu.memory_space<vmem>>, %arg3: memref<1x64xf32, #tpu.memory_space<vmem>>, %arg4: memref<64x128xbf16, #tpu.memory_space<vmem>>, %arg5: memref<128x128xbf16, #tpu.memory_space<vmem>>) attributes {dimension_semantics = [#tpu.dimension_semantics<parallel>], iteration_bounds = array<i64: 1>, scalar_prefetch = 0 : i64, scratch_operands = 0 : i64, tpu.core_type = #tpu.core_type<tc>, window_params = [{transform_indices = @transform_0, window_bounds = array<i64: 128, 64>}, {pipeline_mode = #tpu.pipeline_mode<synchronous>, transform_indices = @transform_1, window_bounds = array<i64: 1, 64>}, {pipeline_mode = #tpu.pipeline_mode<synchronous>, transform_indices = @transform_2, window_bounds = array<i64: 1, 64>}, {pipeline_mode = #tpu.pipeline_mode<synchronous>, transform_indices = @transform_3, window_bounds = array<i64: 64, 128>}, {transform_indices = @transform_4, window_bounds = array<i64: 128, 128>}]} {
    %c0 = arith.constant 0 : index
    %c0_0 = arith.constant 0 : index
    %0 = vector.load %arg1[%c0, %c0_0] : memref<128x64xbf16, #tpu.memory_space<vmem>>, vector<128x64xbf16>
    %1 = arith.extf %0 : vector<128x64xbf16> to vector<128x64xf32>
    %c0_1 = arith.constant 0 : index
    %c0_2 = arith.constant 0 : index
    %2 = vector.load %arg2[%c0_1, %c0_2] : memref<1x64xf32, #tpu.memory_space<vmem>>, vector<1x64xf32>
    %3 = vector.broadcast %2 : vector<1x64xf32> to vector<128x64xf32>
    %4 = arith.mulf %1, %3 : vector<128x64xf32>
    %c0_3 = arith.constant 0 : index
    %c0_4 = arith.constant 0 : index
    %5 = vector.load %arg3[%c0_3, %c0_4] : memref<1x64xf32, #tpu.memory_space<vmem>>, vector<1x64xf32>
    %6 = vector.broadcast %5 : vector<1x64xf32> to vector<128x64xf32>
    %7 = arith.addf %4, %6 : vector<128x64xf32>
    %cst = arith.constant 0.000000e+00 : f32
    %8 = vector.broadcast %cst : f32 to vector<128x64xf32>
    %9 = arith.maximumf %7, %8 : vector<128x64xf32>
    %10 = arith.truncf %9 : vector<128x64xf32> to vector<128x64xbf16>
    %c0_5 = arith.constant 0 : index
    %c0_6 = arith.constant 0 : index
    %11 = vector.load %arg4[%c0_5, %c0_6] : memref<64x128xbf16, #tpu.memory_space<vmem>>, vector<64x128xbf16>
    %cst_7 = arith.constant dense<0.000000e+00> : vector<128x128xf32>
    %12 = tpu.matmul %10, %11, %cst_7 {dimension_numbers = #tpu.dot_dimension_numbers<[1], [0], [0], [1], [0, 0, 1, 1], [], []>} : vector<128x64xbf16>, vector<64x128xbf16>, vector<128x128xf32> -> vector<128x128xf32>
    %13 = arith.truncf %12 : vector<128x128xf32> to vector<128x128xbf16>
    %c0_8 = arith.constant 0 : index
    %c0_9 = arith.constant 0 : index
    %14 = vector.load %arg5[%c0_8, %c0_9] : memref<128x128xbf16, #tpu.memory_space<vmem>>, vector<128x128xbf16>
    tpu.vector_store %arg5[%c0_8, %c0_9], %13 {strides = array<i32>} : memref<128x128xbf16, #tpu.memory_space<vmem>>, vector<128x128xbf16>,
    return
  }
  func.func @transform_0(%arg0: i32) -> (i32, i32) {
    %c0_i32 = arith.constant 0 : i32
    %c0_i32_0 = arith.constant 0 : i32
    return %arg0, %c0_i32 : i32, i32
  }
  func.func @transform_1(%arg0: i32) -> (i32, i32) {
    %c0_i32 = arith.constant 0 : i32
    %c0_i32_0 = arith.constant 0 : i32
    %c0_i32_1 = arith.constant 0 : i32
    return %c0_i32, %c0_i32_0 : i32, i32
  }
  func.func @transform_2(%arg0: i32) -> (i32, i32) {
    %c0_i32 = arith.constant 0 : i32
    %c0_i32_0 = arith.constant 0 : i32
    %c0_i32_1 = arith.constant 0 : i32
    return %c0_i32, %c0_i32_0 : i32, i32
  }
  func.func @transform_3(%arg0: i32) -> (i32, i32) {
    %c0_i32 = arith.constant 0 : i32
    %c0_i32_0 = arith.constant 0 : i32
    %c0_i32_1 = arith.constant 0 : i32
    return %c0_i32, %c0_i32_0 : i32, i32
  }
  func.func @transform_4(%arg0: i32) -> (i32, i32) {
    %c0_i32 = arith.constant 0 : i32
    %c0_i32_0 = arith.constant 0 : i32
    return %arg0, %c0_i32 : i32, i32
  }
}

module attributes {stable_mosaic.version = 11 : i64} {
  func.func @_conv3x3_kernel(%arg0: i32, %arg1: memref<1x10x10x128xbf16, #tpu.memory_space<vmem>>, %arg2: memref<1x1x128xf32, #tpu.memory_space<vmem>>, %arg3: memref<1x1x128xf32, #tpu.memory_space<vmem>>, %arg4: memref<9x128x32xbf16, #tpu.memory_space<vmem>>, %arg5: memref<1x8x8x32xbf16, #tpu.memory_space<vmem>>) attributes {dimension_semantics = [#tpu.dimension_semantics<parallel>], iteration_bounds = array<i64: 2>, scalar_prefetch = 0 : i64, scratch_operands = 0 : i64, tpu.core_type = #tpu.core_type<tc>, window_params = [{transform_indices = @transform_0, window_bounds = array<i64: 1, 10, 10, 128>}, {pipeline_mode = #tpu.pipeline_mode<synchronous>, transform_indices = @transform_1, window_bounds = array<i64: 1, 1, 128>}, {pipeline_mode = #tpu.pipeline_mode<synchronous>, transform_indices = @transform_2, window_bounds = array<i64: 1, 1, 128>}, {pipeline_mode = #tpu.pipeline_mode<synchronous>, transform_indices = @transform_3, window_bounds = array<i64: 9, 128, 32>}, {transform_indices = @transform_4, window_bounds = array<i64: 1, 8, 8, 32>}]} {
    %c0 = arith.constant 0 : index
    %c0_0 = arith.constant 0 : index
    %c0_1 = arith.constant 0 : index
    %c0_2 = arith.constant 0 : index
    %0 = vector.load %arg1[%c0, %c0_0, %c0_1, %c0_2] : memref<1x10x10x128xbf16, #tpu.memory_space<vmem>>, vector<1x10x10x128xbf16>
    %1 = vector.shape_cast %0 : vector<1x10x10x128xbf16> to vector<10x10x128xbf16>
    %2 = arith.extf %1 : vector<10x10x128xbf16> to vector<10x10x128xf32>
    %c0_3 = arith.constant 0 : index
    %c0_4 = arith.constant 0 : index
    %c0_5 = arith.constant 0 : index
    %3 = vector.load %arg2[%c0_3, %c0_4, %c0_5] : memref<1x1x128xf32, #tpu.memory_space<vmem>>, vector<1x1x128xf32>
    %4 = vector.broadcast %3 : vector<1x1x128xf32> to vector<10x10x128xf32>
    %5 = arith.mulf %2, %4 : vector<10x10x128xf32>
    %c0_6 = arith.constant 0 : index
    %c0_7 = arith.constant 0 : index
    %c0_8 = arith.constant 0 : index
    %6 = vector.load %arg3[%c0_6, %c0_7, %c0_8] : memref<1x1x128xf32, #tpu.memory_space<vmem>>, vector<1x1x128xf32>
    %7 = vector.broadcast %6 : vector<1x1x128xf32> to vector<10x10x128xf32>
    %8 = arith.addf %5, %7 : vector<10x10x128xf32>
    %cst = arith.constant 0.000000e+00 : f32
    %9 = vector.broadcast %cst : f32 to vector<10x10x128xf32>
    %10 = arith.maximumf %8, %9 : vector<10x10x128xf32>
    %cst_9 = arith.constant 0.000000e+00 : f32
    %11 = vector.broadcast %cst_9 : f32 to vector<64x32xf32>
    %12 = vector.extract_strided_slice %10 {offsets = [0, 0, 0], sizes = [8, 8, 128], strides = [1, 1, 1]} : vector<10x10x128xf32> to vector<8x8x128xf32>
    %13 = vector.shape_cast %12 : vector<8x8x128xf32> to vector<64x128xf32>
    %14 = arith.truncf %13 : vector<64x128xf32> to vector<64x128xbf16>
    %c0_10 = arith.constant 0 : index
    %c0_11 = arith.constant 0 : index
    %c0_12 = arith.constant 0 : index
    %15 = vector.load %arg4[%c0_10, %c0_11, %c0_12] : memref<9x128x32xbf16, #tpu.memory_space<vmem>>, vector<1x128x32xbf16>
    %16 = vector.shape_cast %15 : vector<1x128x32xbf16> to vector<128x32xbf16>
    %cst_13 = arith.constant dense<0.000000e+00> : vector<64x32xf32>
    %17 = tpu.matmul %14, %16, %cst_13 {dimension_numbers = #tpu.dot_dimension_numbers<[1], [0], [0], [1], [0, 0, 1, 1], [], []>} : vector<64x128xbf16>, vector<128x32xbf16>, vector<64x32xf32> -> vector<64x32xf32>
    %18 = arith.addf %11, %17 : vector<64x32xf32>
    %19 = vector.extract_strided_slice %10 {offsets = [0, 1, 0], sizes = [8, 8, 128], strides = [1, 1, 1]} : vector<10x10x128xf32> to vector<8x8x128xf32>
    %20 = vector.shape_cast %19 : vector<8x8x128xf32> to vector<64x128xf32>
    %21 = arith.truncf %20 : vector<64x128xf32> to vector<64x128xbf16>
    %c1 = arith.constant 1 : index
    %c0_14 = arith.constant 0 : index
    %c0_15 = arith.constant 0 : index
    %22 = vector.load %arg4[%c1, %c0_14, %c0_15] : memref<9x128x32xbf16, #tpu.memory_space<vmem>>, vector<1x128x32xbf16>
    %23 = vector.shape_cast %22 : vector<1x128x32xbf16> to vector<128x32xbf16>
    %cst_16 = arith.constant dense<0.000000e+00> : vector<64x32xf32>
    %24 = tpu.matmul %21, %23, %cst_16 {dimension_numbers = #tpu.dot_dimension_numbers<[1], [0], [0], [1], [0, 0, 1, 1], [], []>} : vector<64x128xbf16>, vector<128x32xbf16>, vector<64x32xf32> -> vector<64x32xf32>
    %25 = arith.addf %18, %24 : vector<64x32xf32>
    %26 = vector.extract_strided_slice %10 {offsets = [0, 2, 0], sizes = [8, 8, 128], strides = [1, 1, 1]} : vector<10x10x128xf32> to vector<8x8x128xf32>
    %27 = vector.shape_cast %26 : vector<8x8x128xf32> to vector<64x128xf32>
    %28 = arith.truncf %27 : vector<64x128xf32> to vector<64x128xbf16>
    %c2 = arith.constant 2 : index
    %c0_17 = arith.constant 0 : index
    %c0_18 = arith.constant 0 : index
    %29 = vector.load %arg4[%c2, %c0_17, %c0_18] : memref<9x128x32xbf16, #tpu.memory_space<vmem>>, vector<1x128x32xbf16>
    %30 = vector.shape_cast %29 : vector<1x128x32xbf16> to vector<128x32xbf16>
    %cst_19 = arith.constant dense<0.000000e+00> : vector<64x32xf32>
    %31 = tpu.matmul %28, %30, %cst_19 {dimension_numbers = #tpu.dot_dimension_numbers<[1], [0], [0], [1], [0, 0, 1, 1], [], []>} : vector<64x128xbf16>, vector<128x32xbf16>, vector<64x32xf32> -> vector<64x32xf32>
    %32 = arith.addf %25, %31 : vector<64x32xf32>
    %33 = vector.extract_strided_slice %10 {offsets = [1, 0, 0], sizes = [8, 8, 128], strides = [1, 1, 1]} : vector<10x10x128xf32> to vector<8x8x128xf32>
    %34 = vector.shape_cast %33 : vector<8x8x128xf32> to vector<64x128xf32>
    %35 = arith.truncf %34 : vector<64x128xf32> to vector<64x128xbf16>
    %c3 = arith.constant 3 : index
    %c0_20 = arith.constant 0 : index
    %c0_21 = arith.constant 0 : index
    %36 = vector.load %arg4[%c3, %c0_20, %c0_21] : memref<9x128x32xbf16, #tpu.memory_space<vmem>>, vector<1x128x32xbf16>
    %37 = vector.shape_cast %36 : vector<1x128x32xbf16> to vector<128x32xbf16>
    %cst_22 = arith.constant dense<0.000000e+00> : vector<64x32xf32>
    %38 = tpu.matmul %35, %37, %cst_22 {dimension_numbers = #tpu.dot_dimension_numbers<[1], [0], [0], [1], [0, 0, 1, 1], [], []>} : vector<64x128xbf16>, vector<128x32xbf16>, vector<64x32xf32> -> vector<64x32xf32>
    %39 = arith.addf %32, %38 : vector<64x32xf32>
    %40 = vector.extract_strided_slice %10 {offsets = [1, 1, 0], sizes = [8, 8, 128], strides = [1, 1, 1]} : vector<10x10x128xf32> to vector<8x8x128xf32>
    %41 = vector.shape_cast %40 : vector<8x8x128xf32> to vector<64x128xf32>
    %42 = arith.truncf %41 : vector<64x128xf32> to vector<64x128xbf16>
    %c4 = arith.constant 4 : index
    %c0_23 = arith.constant 0 : index
    %c0_24 = arith.constant 0 : index
    %43 = vector.load %arg4[%c4, %c0_23, %c0_24] : memref<9x128x32xbf16, #tpu.memory_space<vmem>>, vector<1x128x32xbf16>
    %44 = vector.shape_cast %43 : vector<1x128x32xbf16> to vector<128x32xbf16>
    %cst_25 = arith.constant dense<0.000000e+00> : vector<64x32xf32>
    %45 = tpu.matmul %42, %44, %cst_25 {dimension_numbers = #tpu.dot_dimension_numbers<[1], [0], [0], [1], [0, 0, 1, 1], [], []>} : vector<64x128xbf16>, vector<128x32xbf16>, vector<64x32xf32> -> vector<64x32xf32>
    %46 = arith.addf %39, %45 : vector<64x32xf32>
    %47 = vector.extract_strided_slice %10 {offsets = [1, 2, 0], sizes = [8, 8, 128], strides = [1, 1, 1]} : vector<10x10x128xf32> to vector<8x8x128xf32>
    %48 = vector.shape_cast %47 : vector<8x8x128xf32> to vector<64x128xf32>
    %49 = arith.truncf %48 : vector<64x128xf32> to vector<64x128xbf16>
    %c5 = arith.constant 5 : index
    %c0_26 = arith.constant 0 : index
    %c0_27 = arith.constant 0 : index
    %50 = vector.load %arg4[%c5, %c0_26, %c0_27] : memref<9x128x32xbf16, #tpu.memory_space<vmem>>, vector<1x128x32xbf16>
    %51 = vector.shape_cast %50 : vector<1x128x32xbf16> to vector<128x32xbf16>
    %cst_28 = arith.constant dense<0.000000e+00> : vector<64x32xf32>
    %52 = tpu.matmul %49, %51, %cst_28 {dimension_numbers = #tpu.dot_dimension_numbers<[1], [0], [0], [1], [0, 0, 1, 1], [], []>} : vector<64x128xbf16>, vector<128x32xbf16>, vector<64x32xf32> -> vector<64x32xf32>
    %53 = arith.addf %46, %52 : vector<64x32xf32>
    %54 = vector.extract_strided_slice %10 {offsets = [2, 0, 0], sizes = [8, 8, 128], strides = [1, 1, 1]} : vector<10x10x128xf32> to vector<8x8x128xf32>
    %55 = vector.shape_cast %54 : vector<8x8x128xf32> to vector<64x128xf32>
    %56 = arith.truncf %55 : vector<64x128xf32> to vector<64x128xbf16>
    %c6 = arith.constant 6 : index
    %c0_29 = arith.constant 0 : index
    %c0_30 = arith.constant 0 : index
    %57 = vector.load %arg4[%c6, %c0_29, %c0_30] : memref<9x128x32xbf16, #tpu.memory_space<vmem>>, vector<1x128x32xbf16>
    %58 = vector.shape_cast %57 : vector<1x128x32xbf16> to vector<128x32xbf16>
    %cst_31 = arith.constant dense<0.000000e+00> : vector<64x32xf32>
    %59 = tpu.matmul %56, %58, %cst_31 {dimension_numbers = #tpu.dot_dimension_numbers<[1], [0], [0], [1], [0, 0, 1, 1], [], []>} : vector<64x128xbf16>, vector<128x32xbf16>, vector<64x32xf32> -> vector<64x32xf32>
    %60 = arith.addf %53, %59 : vector<64x32xf32>
    %61 = vector.extract_strided_slice %10 {offsets = [2, 1, 0], sizes = [8, 8, 128], strides = [1, 1, 1]} : vector<10x10x128xf32> to vector<8x8x128xf32>
    %62 = vector.shape_cast %61 : vector<8x8x128xf32> to vector<64x128xf32>
    %63 = arith.truncf %62 : vector<64x128xf32> to vector<64x128xbf16>
    %c7 = arith.constant 7 : index
    %c0_32 = arith.constant 0 : index
    %c0_33 = arith.constant 0 : index
    %64 = vector.load %arg4[%c7, %c0_32, %c0_33] : memref<9x128x32xbf16, #tpu.memory_space<vmem>>, vector<1x128x32xbf16>
    %65 = vector.shape_cast %64 : vector<1x128x32xbf16> to vector<128x32xbf16>
    %cst_34 = arith.constant dense<0.000000e+00> : vector<64x32xf32>
    %66 = tpu.matmul %63, %65, %cst_34 {dimension_numbers = #tpu.dot_dimension_numbers<[1], [0], [0], [1], [0, 0, 1, 1], [], []>} : vector<64x128xbf16>, vector<128x32xbf16>, vector<64x32xf32> -> vector<64x32xf32>
    %67 = arith.addf %60, %66 : vector<64x32xf32>
    %68 = vector.extract_strided_slice %10 {offsets = [2, 2, 0], sizes = [8, 8, 128], strides = [1, 1, 1]} : vector<10x10x128xf32> to vector<8x8x128xf32>
    %69 = vector.shape_cast %68 : vector<8x8x128xf32> to vector<64x128xf32>
    %70 = arith.truncf %69 : vector<64x128xf32> to vector<64x128xbf16>
    %c8 = arith.constant 8 : index
    %c0_35 = arith.constant 0 : index
    %c0_36 = arith.constant 0 : index
    %71 = vector.load %arg4[%c8, %c0_35, %c0_36] : memref<9x128x32xbf16, #tpu.memory_space<vmem>>, vector<1x128x32xbf16>
    %72 = vector.shape_cast %71 : vector<1x128x32xbf16> to vector<128x32xbf16>
    %cst_37 = arith.constant dense<0.000000e+00> : vector<64x32xf32>
    %73 = tpu.matmul %70, %72, %cst_37 {dimension_numbers = #tpu.dot_dimension_numbers<[1], [0], [0], [1], [0, 0, 1, 1], [], []>} : vector<64x128xbf16>, vector<128x32xbf16>, vector<64x32xf32> -> vector<64x32xf32>
    %74 = arith.addf %67, %73 : vector<64x32xf32>
    %75 = vector.shape_cast %74 : vector<64x32xf32> to vector<1x8x8x32xf32>
    %76 = arith.truncf %75 : vector<1x8x8x32xf32> to vector<1x8x8x32xbf16>
    %c0_38 = arith.constant 0 : index
    %c0_39 = arith.constant 0 : index
    %c0_40 = arith.constant 0 : index
    %c0_41 = arith.constant 0 : index
    %77 = vector.load %arg5[%c0_38, %c0_39, %c0_40, %c0_41] : memref<1x8x8x32xbf16, #tpu.memory_space<vmem>>, vector<1x8x8x32xbf16>
    tpu.vector_store %arg5[%c0_38, %c0_39, %c0_40, %c0_41], %76 {strides = array<i32>} : memref<1x8x8x32xbf16, #tpu.memory_space<vmem>>, vector<1x8x8x32xbf16>,
    return
  }
  func.func @transform_0(%arg0: i32) -> (i32, i32, i32, i32) {
    %c0_i32 = arith.constant 0 : i32
    %c0_i32_0 = arith.constant 0 : i32
    %c0_i32_1 = arith.constant 0 : i32
    %c0_i32_2 = arith.constant 0 : i32
    return %arg0, %c0_i32, %c0_i32_0, %c0_i32_1 : i32, i32, i32, i32
  }
  func.func @transform_1(%arg0: i32) -> (i32, i32, i32) {
    %c0_i32 = arith.constant 0 : i32
    %c0_i32_0 = arith.constant 0 : i32
    %c0_i32_1 = arith.constant 0 : i32
    %c0_i32_2 = arith.constant 0 : i32
    return %c0_i32, %c0_i32_0, %c0_i32_1 : i32, i32, i32
  }
  func.func @transform_2(%arg0: i32) -> (i32, i32, i32) {
    %c0_i32 = arith.constant 0 : i32
    %c0_i32_0 = arith.constant 0 : i32
    %c0_i32_1 = arith.constant 0 : i32
    %c0_i32_2 = arith.constant 0 : i32
    return %c0_i32, %c0_i32_0, %c0_i32_1 : i32, i32, i32
  }
  func.func @transform_3(%arg0: i32) -> (i32, i32, i32) {
    %c0_i32 = arith.constant 0 : i32
    %c0_i32_0 = arith.constant 0 : i32
    %c0_i32_1 = arith.constant 0 : i32
    %c0_i32_2 = arith.constant 0 : i32
    return %c0_i32, %c0_i32_0, %c0_i32_1 : i32, i32, i32
  }
  func.func @transform_4(%arg0: i32) -> (i32, i32, i32, i32) {
    %c0_i32 = arith.constant 0 : i32
    %c0_i32_0 = arith.constant 0 : i32
    %c0_i32_1 = arith.constant 0 : i32
    %c0_i32_2 = arith.constant 0 : i32
    return %arg0, %c0_i32, %c0_i32_0, %c0_i32_1 : i32, i32, i32, i32
  }
}

module attributes {stable_mosaic.version = 11 : i64} {
  func.func @_mm_bn_pre_kernel(%arg0: i32, %arg1: memref<128x96xbf16, #tpu.memory_space<vmem>>, %arg2: memref<1x96xf32, #tpu.memory_space<vmem>>, %arg3: memref<1x96xf32, #tpu.memory_space<vmem>>, %arg4: memref<96x128xbf16, #tpu.memory_space<vmem>>, %arg5: memref<128x128xbf16, #tpu.memory_space<vmem>>) attributes {dimension_semantics = [#tpu.dimension_semantics<parallel>], iteration_bounds = array<i64: 1>, scalar_prefetch = 0 : i64, scratch_operands = 0 : i64, tpu.core_type = #tpu.core_type<tc>, window_params = [{transform_indices = @transform_0, window_bounds = array<i64: 128, 96>}, {pipeline_mode = #tpu.pipeline_mode<synchronous>, transform_indices = @transform_1, window_bounds = array<i64: 1, 96>}, {pipeline_mode = #tpu.pipeline_mode<synchronous>, transform_indices = @transform_2, window_bounds = array<i64: 1, 96>}, {pipeline_mode = #tpu.pipeline_mode<synchronous>, transform_indices = @transform_3, window_bounds = array<i64: 96, 128>}, {transform_indices = @transform_4, window_bounds = array<i64: 128, 128>}]} {
    %c0 = arith.constant 0 : index
    %c0_0 = arith.constant 0 : index
    %0 = vector.load %arg1[%c0, %c0_0] : memref<128x96xbf16, #tpu.memory_space<vmem>>, vector<128x96xbf16>
    %1 = arith.extf %0 : vector<128x96xbf16> to vector<128x96xf32>
    %c0_1 = arith.constant 0 : index
    %c0_2 = arith.constant 0 : index
    %2 = vector.load %arg2[%c0_1, %c0_2] : memref<1x96xf32, #tpu.memory_space<vmem>>, vector<1x96xf32>
    %3 = vector.broadcast %2 : vector<1x96xf32> to vector<128x96xf32>
    %4 = arith.mulf %1, %3 : vector<128x96xf32>
    %c0_3 = arith.constant 0 : index
    %c0_4 = arith.constant 0 : index
    %5 = vector.load %arg3[%c0_3, %c0_4] : memref<1x96xf32, #tpu.memory_space<vmem>>, vector<1x96xf32>
    %6 = vector.broadcast %5 : vector<1x96xf32> to vector<128x96xf32>
    %7 = arith.addf %4, %6 : vector<128x96xf32>
    %cst = arith.constant 0.000000e+00 : f32
    %8 = vector.broadcast %cst : f32 to vector<128x96xf32>
    %9 = arith.maximumf %7, %8 : vector<128x96xf32>
    %10 = arith.truncf %9 : vector<128x96xf32> to vector<128x96xbf16>
    %c0_5 = arith.constant 0 : index
    %c0_6 = arith.constant 0 : index
    %11 = vector.load %arg4[%c0_5, %c0_6] : memref<96x128xbf16, #tpu.memory_space<vmem>>, vector<96x128xbf16>
    %cst_7 = arith.constant dense<0.000000e+00> : vector<128x128xf32>
    %12 = tpu.matmul %10, %11, %cst_7 {dimension_numbers = #tpu.dot_dimension_numbers<[1], [0], [0], [1], [0, 0, 1, 1], [], []>} : vector<128x96xbf16>, vector<96x128xbf16>, vector<128x128xf32> -> vector<128x128xf32>
    %13 = arith.truncf %12 : vector<128x128xf32> to vector<128x128xbf16>
    %c0_8 = arith.constant 0 : index
    %c0_9 = arith.constant 0 : index
    %14 = vector.load %arg5[%c0_8, %c0_9] : memref<128x128xbf16, #tpu.memory_space<vmem>>, vector<128x128xbf16>
    tpu.vector_store %arg5[%c0_8, %c0_9], %13 {strides = array<i32>} : memref<128x128xbf16, #tpu.memory_space<vmem>>, vector<128x128xbf16>,
    return
  }
  func.func @transform_0(%arg0: i32) -> (i32, i32) {
    %c0_i32 = arith.constant 0 : i32
    %c0_i32_0 = arith.constant 0 : i32
    return %arg0, %c0_i32 : i32, i32
  }
  func.func @transform_1(%arg0: i32) -> (i32, i32) {
    %c0_i32 = arith.constant 0 : i32
    %c0_i32_0 = arith.constant 0 : i32
    %c0_i32_1 = arith.constant 0 : i32
    return %c0_i32, %c0_i32_0 : i32, i32
  }
  func.func @transform_2(%arg0: i32) -> (i32, i32) {
    %c0_i32 = arith.constant 0 : i32
    %c0_i32_0 = arith.constant 0 : i32
    %c0_i32_1 = arith.constant 0 : i32
    return %c0_i32, %c0_i32_0 : i32, i32
  }
  func.func @transform_3(%arg0: i32) -> (i32, i32) {
    %c0_i32 = arith.constant 0 : i32
    %c0_i32_0 = arith.constant 0 : i32
    %c0_i32_1 = arith.constant 0 : i32
    return %c0_i32, %c0_i32_0 : i32, i32
  }
  func.func @transform_4(%arg0: i32) -> (i32, i32) {
    %c0_i32 = arith.constant 0 : i32
    %c0_i32_0 = arith.constant 0 : i32
    return %arg0, %c0_i32 : i32, i32
  }
}

module attributes {stable_mosaic.version = 11 : i64} {
  func.func @_mm_bn_pre_kernel(%arg0: i32, %arg1: memref<128x128xbf16, #tpu.memory_space<vmem>>, %arg2: memref<1x128xf32, #tpu.memory_space<vmem>>, %arg3: memref<1x128xf32, #tpu.memory_space<vmem>>, %arg4: memref<128x64xbf16, #tpu.memory_space<vmem>>, %arg5: memref<128x64xbf16, #tpu.memory_space<vmem>>) attributes {dimension_semantics = [#tpu.dimension_semantics<parallel>], iteration_bounds = array<i64: 1>, scalar_prefetch = 0 : i64, scratch_operands = 0 : i64, tpu.core_type = #tpu.core_type<tc>, window_params = [{transform_indices = @transform_0, window_bounds = array<i64: 128, 128>}, {pipeline_mode = #tpu.pipeline_mode<synchronous>, transform_indices = @transform_1, window_bounds = array<i64: 1, 128>}, {pipeline_mode = #tpu.pipeline_mode<synchronous>, transform_indices = @transform_2, window_bounds = array<i64: 1, 128>}, {pipeline_mode = #tpu.pipeline_mode<synchronous>, transform_indices = @transform_3, window_bounds = array<i64: 128, 64>}, {transform_indices = @transform_4, window_bounds = array<i64: 128, 64>}]} {
    %c0 = arith.constant 0 : index
    %c0_0 = arith.constant 0 : index
    %0 = vector.load %arg1[%c0, %c0_0] : memref<128x128xbf16, #tpu.memory_space<vmem>>, vector<128x128xbf16>
    %1 = arith.extf %0 : vector<128x128xbf16> to vector<128x128xf32>
    %c0_1 = arith.constant 0 : index
    %c0_2 = arith.constant 0 : index
    %2 = vector.load %arg2[%c0_1, %c0_2] : memref<1x128xf32, #tpu.memory_space<vmem>>, vector<1x128xf32>
    %3 = vector.broadcast %2 : vector<1x128xf32> to vector<128x128xf32>
    %4 = arith.mulf %1, %3 : vector<128x128xf32>
    %c0_3 = arith.constant 0 : index
    %c0_4 = arith.constant 0 : index
    %5 = vector.load %arg3[%c0_3, %c0_4] : memref<1x128xf32, #tpu.memory_space<vmem>>, vector<1x128xf32>
    %6 = vector.broadcast %5 : vector<1x128xf32> to vector<128x128xf32>
    %7 = arith.addf %4, %6 : vector<128x128xf32>
    %cst = arith.constant 0.000000e+00 : f32
    %8 = vector.broadcast %cst : f32 to vector<128x128xf32>
    %9 = arith.maximumf %7, %8 : vector<128x128xf32>
    %10 = arith.truncf %9 : vector<128x128xf32> to vector<128x128xbf16>
    %c0_5 = arith.constant 0 : index
    %c0_6 = arith.constant 0 : index
    %11 = vector.load %arg4[%c0_5, %c0_6] : memref<128x64xbf16, #tpu.memory_space<vmem>>, vector<128x64xbf16>
    %cst_7 = arith.constant dense<0.000000e+00> : vector<128x64xf32>
    %12 = tpu.matmul %10, %11, %cst_7 {dimension_numbers = #tpu.dot_dimension_numbers<[1], [0], [0], [1], [0, 0, 1, 1], [], []>} : vector<128x128xbf16>, vector<128x64xbf16>, vector<128x64xf32> -> vector<128x64xf32>
    %13 = arith.truncf %12 : vector<128x64xf32> to vector<128x64xbf16>
    %c0_8 = arith.constant 0 : index
    %c0_9 = arith.constant 0 : index
    %14 = vector.load %arg5[%c0_8, %c0_9] : memref<128x64xbf16, #tpu.memory_space<vmem>>, vector<128x64xbf16>
    tpu.vector_store %arg5[%c0_8, %c0_9], %13 {strides = array<i32>} : memref<128x64xbf16, #tpu.memory_space<vmem>>, vector<128x64xbf16>,
    return
  }
  func.func @transform_0(%arg0: i32) -> (i32, i32) {
    %c0_i32 = arith.constant 0 : i32
    %c0_i32_0 = arith.constant 0 : i32
    return %arg0, %c0_i32 : i32, i32
  }
  func.func @transform_1(%arg0: i32) -> (i32, i32) {
    %c0_i32 = arith.constant 0 : i32
    %c0_i32_0 = arith.constant 0 : i32
    %c0_i32_1 = arith.constant 0 : i32
    return %c0_i32, %c0_i32_0 : i32, i32
  }
  func.func @transform_2(%arg0: i32) -> (i32, i32) {
    %c0_i32 = arith.constant 0 : i32
    %c0_i32_0 = arith.constant 0 : i32
    %c0_i32_1 = arith.constant 0 : i32
    return %c0_i32, %c0_i32_0 : i32, i32
  }
  func.func @transform_3(%arg0: i32) -> (i32, i32) {
    %c0_i32 = arith.constant 0 : i32
    %c0_i32_0 = arith.constant 0 : i32
    %c0_i32_1 = arith.constant 0 : i32
    return %c0_i32, %c0_i32_0 : i32, i32
  }
  func.func @transform_4(%arg0: i32) -> (i32, i32) {
    %c0_i32 = arith.constant 0 : i32
    %c0_i32_0 = arith.constant 0 : i32
    return %arg0, %c0_i32 : i32, i32
  }
}

module attributes {stable_mosaic.version = 11 : i64} {
  func.func @_mm_bn_pre_kernel(%arg0: i32, %arg1: memref<32x64xbf16, #tpu.memory_space<vmem>>, %arg2: memref<1x64xf32, #tpu.memory_space<vmem>>, %arg3: memref<1x64xf32, #tpu.memory_space<vmem>>, %arg4: memref<64x128xbf16, #tpu.memory_space<vmem>>, %arg5: memref<32x128xbf16, #tpu.memory_space<vmem>>) attributes {dimension_semantics = [#tpu.dimension_semantics<parallel>], iteration_bounds = array<i64: 1>, scalar_prefetch = 0 : i64, scratch_operands = 0 : i64, tpu.core_type = #tpu.core_type<tc>, window_params = [{transform_indices = @transform_0, window_bounds = array<i64: 32, 64>}, {pipeline_mode = #tpu.pipeline_mode<synchronous>, transform_indices = @transform_1, window_bounds = array<i64: 1, 64>}, {pipeline_mode = #tpu.pipeline_mode<synchronous>, transform_indices = @transform_2, window_bounds = array<i64: 1, 64>}, {pipeline_mode = #tpu.pipeline_mode<synchronous>, transform_indices = @transform_3, window_bounds = array<i64: 64, 128>}, {transform_indices = @transform_4, window_bounds = array<i64: 32, 128>}]} {
    %c0 = arith.constant 0 : index
    %c0_0 = arith.constant 0 : index
    %0 = vector.load %arg1[%c0, %c0_0] : memref<32x64xbf16, #tpu.memory_space<vmem>>, vector<32x64xbf16>
    %1 = arith.extf %0 : vector<32x64xbf16> to vector<32x64xf32>
    %c0_1 = arith.constant 0 : index
    %c0_2 = arith.constant 0 : index
    %2 = vector.load %arg2[%c0_1, %c0_2] : memref<1x64xf32, #tpu.memory_space<vmem>>, vector<1x64xf32>
    %3 = vector.broadcast %2 : vector<1x64xf32> to vector<32x64xf32>
    %4 = arith.mulf %1, %3 : vector<32x64xf32>
    %c0_3 = arith.constant 0 : index
    %c0_4 = arith.constant 0 : index
    %5 = vector.load %arg3[%c0_3, %c0_4] : memref<1x64xf32, #tpu.memory_space<vmem>>, vector<1x64xf32>
    %6 = vector.broadcast %5 : vector<1x64xf32> to vector<32x64xf32>
    %7 = arith.addf %4, %6 : vector<32x64xf32>
    %cst = arith.constant 0.000000e+00 : f32
    %8 = vector.broadcast %cst : f32 to vector<32x64xf32>
    %9 = arith.maximumf %7, %8 : vector<32x64xf32>
    %10 = arith.truncf %9 : vector<32x64xf32> to vector<32x64xbf16>
    %c0_5 = arith.constant 0 : index
    %c0_6 = arith.constant 0 : index
    %11 = vector.load %arg4[%c0_5, %c0_6] : memref<64x128xbf16, #tpu.memory_space<vmem>>, vector<64x128xbf16>
    %cst_7 = arith.constant dense<0.000000e+00> : vector<32x128xf32>
    %12 = tpu.matmul %10, %11, %cst_7 {dimension_numbers = #tpu.dot_dimension_numbers<[1], [0], [0], [1], [0, 0, 1, 1], [], []>} : vector<32x64xbf16>, vector<64x128xbf16>, vector<32x128xf32> -> vector<32x128xf32>
    %13 = arith.truncf %12 : vector<32x128xf32> to vector<32x128xbf16>
    %c0_8 = arith.constant 0 : index
    %c0_9 = arith.constant 0 : index
    %14 = vector.load %arg5[%c0_8, %c0_9] : memref<32x128xbf16, #tpu.memory_space<vmem>>, vector<32x128xbf16>
    tpu.vector_store %arg5[%c0_8, %c0_9], %13 {strides = array<i32>} : memref<32x128xbf16, #tpu.memory_space<vmem>>, vector<32x128xbf16>,
    return
  }
  func.func @transform_0(%arg0: i32) -> (i32, i32) {
    %c0_i32 = arith.constant 0 : i32
    %c0_i32_0 = arith.constant 0 : i32
    return %arg0, %c0_i32 : i32, i32
  }
  func.func @transform_1(%arg0: i32) -> (i32, i32) {
    %c0_i32 = arith.constant 0 : i32
    %c0_i32_0 = arith.constant 0 : i32
    %c0_i32_1 = arith.constant 0 : i32
    return %c0_i32, %c0_i32_0 : i32, i32
  }
  func.func @transform_2(%arg0: i32) -> (i32, i32) {
    %c0_i32 = arith.constant 0 : i32
    %c0_i32_0 = arith.constant 0 : i32
    %c0_i32_1 = arith.constant 0 : i32
    return %c0_i32, %c0_i32_0 : i32, i32
  }
  func.func @transform_3(%arg0: i32) -> (i32, i32) {
    %c0_i32 = arith.constant 0 : i32
    %c0_i32_0 = arith.constant 0 : i32
    %c0_i32_1 = arith.constant 0 : i32
    return %c0_i32, %c0_i32_0 : i32, i32
  }
  func.func @transform_4(%arg0: i32) -> (i32, i32) {
    %c0_i32 = arith.constant 0 : i32
    %c0_i32_0 = arith.constant 0 : i32
    return %arg0, %c0_i32 : i32, i32
  }
}

module attributes {stable_mosaic.version = 11 : i64} {
  func.func @_conv3x3_kernel(%arg0: i32, %arg1: memref<1x6x10x128xbf16, #tpu.memory_space<vmem>>, %arg2: memref<1x1x128xf32, #tpu.memory_space<vmem>>, %arg3: memref<1x1x128xf32, #tpu.memory_space<vmem>>, %arg4: memref<9x128x32xbf16, #tpu.memory_space<vmem>>, %arg5: memref<1x4x8x32xbf16, #tpu.memory_space<vmem>>) attributes {dimension_semantics = [#tpu.dimension_semantics<parallel>], iteration_bounds = array<i64: 2>, scalar_prefetch = 0 : i64, scratch_operands = 0 : i64, tpu.core_type = #tpu.core_type<tc>, window_params = [{transform_indices = @transform_0, window_bounds = array<i64: 1, 6, 10, 128>}, {pipeline_mode = #tpu.pipeline_mode<synchronous>, transform_indices = @transform_1, window_bounds = array<i64: 1, 1, 128>}, {pipeline_mode = #tpu.pipeline_mode<synchronous>, transform_indices = @transform_2, window_bounds = array<i64: 1, 1, 128>}, {pipeline_mode = #tpu.pipeline_mode<synchronous>, transform_indices = @transform_3, window_bounds = array<i64: 9, 128, 32>}, {transform_indices = @transform_4, window_bounds = array<i64: 1, 4, 8, 32>}]} {
    %c0 = arith.constant 0 : index
    %c0_0 = arith.constant 0 : index
    %c0_1 = arith.constant 0 : index
    %c0_2 = arith.constant 0 : index
    %0 = vector.load %arg1[%c0, %c0_0, %c0_1, %c0_2] : memref<1x6x10x128xbf16, #tpu.memory_space<vmem>>, vector<1x6x10x128xbf16>
    %1 = vector.shape_cast %0 : vector<1x6x10x128xbf16> to vector<6x10x128xbf16>
    %2 = arith.extf %1 : vector<6x10x128xbf16> to vector<6x10x128xf32>
    %c0_3 = arith.constant 0 : index
    %c0_4 = arith.constant 0 : index
    %c0_5 = arith.constant 0 : index
    %3 = vector.load %arg2[%c0_3, %c0_4, %c0_5] : memref<1x1x128xf32, #tpu.memory_space<vmem>>, vector<1x1x128xf32>
    %4 = vector.broadcast %3 : vector<1x1x128xf32> to vector<6x10x128xf32>
    %5 = arith.mulf %2, %4 : vector<6x10x128xf32>
    %c0_6 = arith.constant 0 : index
    %c0_7 = arith.constant 0 : index
    %c0_8 = arith.constant 0 : index
    %6 = vector.load %arg3[%c0_6, %c0_7, %c0_8] : memref<1x1x128xf32, #tpu.memory_space<vmem>>, vector<1x1x128xf32>
    %7 = vector.broadcast %6 : vector<1x1x128xf32> to vector<6x10x128xf32>
    %8 = arith.addf %5, %7 : vector<6x10x128xf32>
    %cst = arith.constant 0.000000e+00 : f32
    %9 = vector.broadcast %cst : f32 to vector<6x10x128xf32>
    %10 = arith.maximumf %8, %9 : vector<6x10x128xf32>
    %cst_9 = arith.constant 0.000000e+00 : f32
    %11 = vector.broadcast %cst_9 : f32 to vector<32x32xf32>
    %12 = vector.extract_strided_slice %10 {offsets = [0, 0, 0], sizes = [4, 8, 128], strides = [1, 1, 1]} : vector<6x10x128xf32> to vector<4x8x128xf32>
    %13 = vector.shape_cast %12 : vector<4x8x128xf32> to vector<32x128xf32>
    %14 = arith.truncf %13 : vector<32x128xf32> to vector<32x128xbf16>
    %c0_10 = arith.constant 0 : index
    %c0_11 = arith.constant 0 : index
    %c0_12 = arith.constant 0 : index
    %15 = vector.load %arg4[%c0_10, %c0_11, %c0_12] : memref<9x128x32xbf16, #tpu.memory_space<vmem>>, vector<1x128x32xbf16>
    %16 = vector.shape_cast %15 : vector<1x128x32xbf16> to vector<128x32xbf16>
    %cst_13 = arith.constant dense<0.000000e+00> : vector<32x32xf32>
    %17 = tpu.matmul %14, %16, %cst_13 {dimension_numbers = #tpu.dot_dimension_numbers<[1], [0], [0], [1], [0, 0, 1, 1], [], []>} : vector<32x128xbf16>, vector<128x32xbf16>, vector<32x32xf32> -> vector<32x32xf32>
    %18 = arith.addf %11, %17 : vector<32x32xf32>
    %19 = vector.extract_strided_slice %10 {offsets = [0, 1, 0], sizes = [4, 8, 128], strides = [1, 1, 1]} : vector<6x10x128xf32> to vector<4x8x128xf32>
    %20 = vector.shape_cast %19 : vector<4x8x128xf32> to vector<32x128xf32>
    %21 = arith.truncf %20 : vector<32x128xf32> to vector<32x128xbf16>
    %c1 = arith.constant 1 : index
    %c0_14 = arith.constant 0 : index
    %c0_15 = arith.constant 0 : index
    %22 = vector.load %arg4[%c1, %c0_14, %c0_15] : memref<9x128x32xbf16, #tpu.memory_space<vmem>>, vector<1x128x32xbf16>
    %23 = vector.shape_cast %22 : vector<1x128x32xbf16> to vector<128x32xbf16>
    %cst_16 = arith.constant dense<0.000000e+00> : vector<32x32xf32>
    %24 = tpu.matmul %21, %23, %cst_16 {dimension_numbers = #tpu.dot_dimension_numbers<[1], [0], [0], [1], [0, 0, 1, 1], [], []>} : vector<32x128xbf16>, vector<128x32xbf16>, vector<32x32xf32> -> vector<32x32xf32>
    %25 = arith.addf %18, %24 : vector<32x32xf32>
    %26 = vector.extract_strided_slice %10 {offsets = [0, 2, 0], sizes = [4, 8, 128], strides = [1, 1, 1]} : vector<6x10x128xf32> to vector<4x8x128xf32>
    %27 = vector.shape_cast %26 : vector<4x8x128xf32> to vector<32x128xf32>
    %28 = arith.truncf %27 : vector<32x128xf32> to vector<32x128xbf16>
    %c2 = arith.constant 2 : index
    %c0_17 = arith.constant 0 : index
    %c0_18 = arith.constant 0 : index
    %29 = vector.load %arg4[%c2, %c0_17, %c0_18] : memref<9x128x32xbf16, #tpu.memory_space<vmem>>, vector<1x128x32xbf16>
    %30 = vector.shape_cast %29 : vector<1x128x32xbf16> to vector<128x32xbf16>
    %cst_19 = arith.constant dense<0.000000e+00> : vector<32x32xf32>
    %31 = tpu.matmul %28, %30, %cst_19 {dimension_numbers = #tpu.dot_dimension_numbers<[1], [0], [0], [1], [0, 0, 1, 1], [], []>} : vector<32x128xbf16>, vector<128x32xbf16>, vector<32x32xf32> -> vector<32x32xf32>
    %32 = arith.addf %25, %31 : vector<32x32xf32>
    %33 = vector.extract_strided_slice %10 {offsets = [1, 0, 0], sizes = [4, 8, 128], strides = [1, 1, 1]} : vector<6x10x128xf32> to vector<4x8x128xf32>
    %34 = vector.shape_cast %33 : vector<4x8x128xf32> to vector<32x128xf32>
    %35 = arith.truncf %34 : vector<32x128xf32> to vector<32x128xbf16>
    %c3 = arith.constant 3 : index
    %c0_20 = arith.constant 0 : index
    %c0_21 = arith.constant 0 : index
    %36 = vector.load %arg4[%c3, %c0_20, %c0_21] : memref<9x128x32xbf16, #tpu.memory_space<vmem>>, vector<1x128x32xbf16>
    %37 = vector.shape_cast %36 : vector<1x128x32xbf16> to vector<128x32xbf16>
    %cst_22 = arith.constant dense<0.000000e+00> : vector<32x32xf32>
    %38 = tpu.matmul %35, %37, %cst_22 {dimension_numbers = #tpu.dot_dimension_numbers<[1], [0], [0], [1], [0, 0, 1, 1], [], []>} : vector<32x128xbf16>, vector<128x32xbf16>, vector<32x32xf32> -> vector<32x32xf32>
    %39 = arith.addf %32, %38 : vector<32x32xf32>
    %40 = vector.extract_strided_slice %10 {offsets = [1, 1, 0], sizes = [4, 8, 128], strides = [1, 1, 1]} : vector<6x10x128xf32> to vector<4x8x128xf32>
    %41 = vector.shape_cast %40 : vector<4x8x128xf32> to vector<32x128xf32>
    %42 = arith.truncf %41 : vector<32x128xf32> to vector<32x128xbf16>
    %c4 = arith.constant 4 : index
    %c0_23 = arith.constant 0 : index
    %c0_24 = arith.constant 0 : index
    %43 = vector.load %arg4[%c4, %c0_23, %c0_24] : memref<9x128x32xbf16, #tpu.memory_space<vmem>>, vector<1x128x32xbf16>
    %44 = vector.shape_cast %43 : vector<1x128x32xbf16> to vector<128x32xbf16>
    %cst_25 = arith.constant dense<0.000000e+00> : vector<32x32xf32>
    %45 = tpu.matmul %42, %44, %cst_25 {dimension_numbers = #tpu.dot_dimension_numbers<[1], [0], [0], [1], [0, 0, 1, 1], [], []>} : vector<32x128xbf16>, vector<128x32xbf16>, vector<32x32xf32> -> vector<32x32xf32>
    %46 = arith.addf %39, %45 : vector<32x32xf32>
    %47 = vector.extract_strided_slice %10 {offsets = [1, 2, 0], sizes = [4, 8, 128], strides = [1, 1, 1]} : vector<6x10x128xf32> to vector<4x8x128xf32>
    %48 = vector.shape_cast %47 : vector<4x8x128xf32> to vector<32x128xf32>
    %49 = arith.truncf %48 : vector<32x128xf32> to vector<32x128xbf16>
    %c5 = arith.constant 5 : index
    %c0_26 = arith.constant 0 : index
    %c0_27 = arith.constant 0 : index
    %50 = vector.load %arg4[%c5, %c0_26, %c0_27] : memref<9x128x32xbf16, #tpu.memory_space<vmem>>, vector<1x128x32xbf16>
    %51 = vector.shape_cast %50 : vector<1x128x32xbf16> to vector<128x32xbf16>
    %cst_28 = arith.constant dense<0.000000e+00> : vector<32x32xf32>
    %52 = tpu.matmul %49, %51, %cst_28 {dimension_numbers = #tpu.dot_dimension_numbers<[1], [0], [0], [1], [0, 0, 1, 1], [], []>} : vector<32x128xbf16>, vector<128x32xbf16>, vector<32x32xf32> -> vector<32x32xf32>
    %53 = arith.addf %46, %52 : vector<32x32xf32>
    %54 = vector.extract_strided_slice %10 {offsets = [2, 0, 0], sizes = [4, 8, 128], strides = [1, 1, 1]} : vector<6x10x128xf32> to vector<4x8x128xf32>
    %55 = vector.shape_cast %54 : vector<4x8x128xf32> to vector<32x128xf32>
    %56 = arith.truncf %55 : vector<32x128xf32> to vector<32x128xbf16>
    %c6 = arith.constant 6 : index
    %c0_29 = arith.constant 0 : index
    %c0_30 = arith.constant 0 : index
    %57 = vector.load %arg4[%c6, %c0_29, %c0_30] : memref<9x128x32xbf16, #tpu.memory_space<vmem>>, vector<1x128x32xbf16>
    %58 = vector.shape_cast %57 : vector<1x128x32xbf16> to vector<128x32xbf16>
    %cst_31 = arith.constant dense<0.000000e+00> : vector<32x32xf32>
    %59 = tpu.matmul %56, %58, %cst_31 {dimension_numbers = #tpu.dot_dimension_numbers<[1], [0], [0], [1], [0, 0, 1, 1], [], []>} : vector<32x128xbf16>, vector<128x32xbf16>, vector<32x32xf32> -> vector<32x32xf32>
    %60 = arith.addf %53, %59 : vector<32x32xf32>
    %61 = vector.extract_strided_slice %10 {offsets = [2, 1, 0], sizes = [4, 8, 128], strides = [1, 1, 1]} : vector<6x10x128xf32> to vector<4x8x128xf32>
    %62 = vector.shape_cast %61 : vector<4x8x128xf32> to vector<32x128xf32>
    %63 = arith.truncf %62 : vector<32x128xf32> to vector<32x128xbf16>
    %c7 = arith.constant 7 : index
    %c0_32 = arith.constant 0 : index
    %c0_33 = arith.constant 0 : index
    %64 = vector.load %arg4[%c7, %c0_32, %c0_33] : memref<9x128x32xbf16, #tpu.memory_space<vmem>>, vector<1x128x32xbf16>
    %65 = vector.shape_cast %64 : vector<1x128x32xbf16> to vector<128x32xbf16>
    %cst_34 = arith.constant dense<0.000000e+00> : vector<32x32xf32>
    %66 = tpu.matmul %63, %65, %cst_34 {dimension_numbers = #tpu.dot_dimension_numbers<[1], [0], [0], [1], [0, 0, 1, 1], [], []>} : vector<32x128xbf16>, vector<128x32xbf16>, vector<32x32xf32> -> vector<32x32xf32>
    %67 = arith.addf %60, %66 : vector<32x32xf32>
    %68 = vector.extract_strided_slice %10 {offsets = [2, 2, 0], sizes = [4, 8, 128], strides = [1, 1, 1]} : vector<6x10x128xf32> to vector<4x8x128xf32>
    %69 = vector.shape_cast %68 : vector<4x8x128xf32> to vector<32x128xf32>
    %70 = arith.truncf %69 : vector<32x128xf32> to vector<32x128xbf16>
    %c8 = arith.constant 8 : index
    %c0_35 = arith.constant 0 : index
    %c0_36 = arith.constant 0 : index
    %71 = vector.load %arg4[%c8, %c0_35, %c0_36] : memref<9x128x32xbf16, #tpu.memory_space<vmem>>, vector<1x128x32xbf16>
    %72 = vector.shape_cast %71 : vector<1x128x32xbf16> to vector<128x32xbf16>
    %cst_37 = arith.constant dense<0.000000e+00> : vector<32x32xf32>
    %73 = tpu.matmul %70, %72, %cst_37 {dimension_numbers = #tpu.dot_dimension_numbers<[1], [0], [0], [1], [0, 0, 1, 1], [], []>} : vector<32x128xbf16>, vector<128x32xbf16>, vector<32x32xf32> -> vector<32x32xf32>
    %74 = arith.addf %67, %73 : vector<32x32xf32>
    %75 = vector.shape_cast %74 : vector<32x32xf32> to vector<1x4x8x32xf32>
    %76 = arith.truncf %75 : vector<1x4x8x32xf32> to vector<1x4x8x32xbf16>
    %c0_38 = arith.constant 0 : index
    %c0_39 = arith.constant 0 : index
    %c0_40 = arith.constant 0 : index
    %c0_41 = arith.constant 0 : index
    %77 = vector.load %arg5[%c0_38, %c0_39, %c0_40, %c0_41] : memref<1x4x8x32xbf16, #tpu.memory_space<vmem>>, vector<1x4x8x32xbf16>
    tpu.vector_store %arg5[%c0_38, %c0_39, %c0_40, %c0_41], %76 {strides = array<i32>} : memref<1x4x8x32xbf16, #tpu.memory_space<vmem>>, vector<1x4x8x32xbf16>,
    return
  }
  func.func @transform_0(%arg0: i32) -> (i32, i32, i32, i32) {
    %c0_i32 = arith.constant 0 : i32
    %c0_i32_0 = arith.constant 0 : i32
    %c0_i32_1 = arith.constant 0 : i32
    %c0_i32_2 = arith.constant 0 : i32
    return %arg0, %c0_i32, %c0_i32_0, %c0_i32_1 : i32, i32, i32, i32
  }
  func.func @transform_1(%arg0: i32) -> (i32, i32, i32) {
    %c0_i32 = arith.constant 0 : i32
    %c0_i32_0 = arith.constant 0 : i32
    %c0_i32_1 = arith.constant 0 : i32
    %c0_i32_2 = arith.constant 0 : i32
    return %c0_i32, %c0_i32_0, %c0_i32_1 : i32, i32, i32
  }
  func.func @transform_2(%arg0: i32) -> (i32, i32, i32) {
    %c0_i32 = arith.constant 0 : i32
    %c0_i32_0 = arith.constant 0 : i32
    %c0_i32_1 = arith.constant 0 : i32
    %c0_i32_2 = arith.constant 0 : i32
    return %c0_i32, %c0_i32_0, %c0_i32_1 : i32, i32, i32
  }
  func.func @transform_3(%arg0: i32) -> (i32, i32, i32) {
    %c0_i32 = arith.constant 0 : i32
    %c0_i32_0 = arith.constant 0 : i32
    %c0_i32_1 = arith.constant 0 : i32
    %c0_i32_2 = arith.constant 0 : i32
    return %c0_i32, %c0_i32_0, %c0_i32_1 : i32, i32, i32
  }
  func.func @transform_4(%arg0: i32) -> (i32, i32, i32, i32) {
    %c0_i32 = arith.constant 0 : i32
    %c0_i32_0 = arith.constant 0 : i32
    %c0_i32_1 = arith.constant 0 : i32
    %c0_i32_2 = arith.constant 0 : i32
    return %arg0, %c0_i32, %c0_i32_0, %c0_i32_1 : i32, i32, i32, i32
  }
}

module attributes {stable_mosaic.version = 11 : i64} {
  func.func @_mm_bn_pre_kernel(%arg0: i32, %arg1: memref<32x96xbf16, #tpu.memory_space<vmem>>, %arg2: memref<1x96xf32, #tpu.memory_space<vmem>>, %arg3: memref<1x96xf32, #tpu.memory_space<vmem>>, %arg4: memref<96x128xbf16, #tpu.memory_space<vmem>>, %arg5: memref<32x128xbf16, #tpu.memory_space<vmem>>) attributes {dimension_semantics = [#tpu.dimension_semantics<parallel>], iteration_bounds = array<i64: 1>, scalar_prefetch = 0 : i64, scratch_operands = 0 : i64, tpu.core_type = #tpu.core_type<tc>, window_params = [{transform_indices = @transform_0, window_bounds = array<i64: 32, 96>}, {pipeline_mode = #tpu.pipeline_mode<synchronous>, transform_indices = @transform_1, window_bounds = array<i64: 1, 96>}, {pipeline_mode = #tpu.pipeline_mode<synchronous>, transform_indices = @transform_2, window_bounds = array<i64: 1, 96>}, {pipeline_mode = #tpu.pipeline_mode<synchronous>, transform_indices = @transform_3, window_bounds = array<i64: 96, 128>}, {transform_indices = @transform_4, window_bounds = array<i64: 32, 128>}]} {
    %c0 = arith.constant 0 : index
    %c0_0 = arith.constant 0 : index
    %0 = vector.load %arg1[%c0, %c0_0] : memref<32x96xbf16, #tpu.memory_space<vmem>>, vector<32x96xbf16>
    %1 = arith.extf %0 : vector<32x96xbf16> to vector<32x96xf32>
    %c0_1 = arith.constant 0 : index
    %c0_2 = arith.constant 0 : index
    %2 = vector.load %arg2[%c0_1, %c0_2] : memref<1x96xf32, #tpu.memory_space<vmem>>, vector<1x96xf32>
    %3 = vector.broadcast %2 : vector<1x96xf32> to vector<32x96xf32>
    %4 = arith.mulf %1, %3 : vector<32x96xf32>
    %c0_3 = arith.constant 0 : index
    %c0_4 = arith.constant 0 : index
    %5 = vector.load %arg3[%c0_3, %c0_4] : memref<1x96xf32, #tpu.memory_space<vmem>>, vector<1x96xf32>
    %6 = vector.broadcast %5 : vector<1x96xf32> to vector<32x96xf32>
    %7 = arith.addf %4, %6 : vector<32x96xf32>
    %cst = arith.constant 0.000000e+00 : f32
    %8 = vector.broadcast %cst : f32 to vector<32x96xf32>
    %9 = arith.maximumf %7, %8 : vector<32x96xf32>
    %10 = arith.truncf %9 : vector<32x96xf32> to vector<32x96xbf16>
    %c0_5 = arith.constant 0 : index
    %c0_6 = arith.constant 0 : index
    %11 = vector.load %arg4[%c0_5, %c0_6] : memref<96x128xbf16, #tpu.memory_space<vmem>>, vector<96x128xbf16>
    %cst_7 = arith.constant dense<0.000000e+00> : vector<32x128xf32>
    %12 = tpu.matmul %10, %11, %cst_7 {dimension_numbers = #tpu.dot_dimension_numbers<[1], [0], [0], [1], [0, 0, 1, 1], [], []>} : vector<32x96xbf16>, vector<96x128xbf16>, vector<32x128xf32> -> vector<32x128xf32>
    %13 = arith.truncf %12 : vector<32x128xf32> to vector<32x128xbf16>
    %c0_8 = arith.constant 0 : index
    %c0_9 = arith.constant 0 : index
    %14 = vector.load %arg5[%c0_8, %c0_9] : memref<32x128xbf16, #tpu.memory_space<vmem>>, vector<32x128xbf16>
    tpu.vector_store %arg5[%c0_8, %c0_9], %13 {strides = array<i32>} : memref<32x128xbf16, #tpu.memory_space<vmem>>, vector<32x128xbf16>,
    return
  }
  func.func @transform_0(%arg0: i32) -> (i32, i32) {
    %c0_i32 = arith.constant 0 : i32
    %c0_i32_0 = arith.constant 0 : i32
    return %arg0, %c0_i32 : i32, i32
  }
  func.func @transform_1(%arg0: i32) -> (i32, i32) {
    %c0_i32 = arith.constant 0 : i32
    %c0_i32_0 = arith.constant 0 : i32
    %c0_i32_1 = arith.constant 0 : i32
    return %c0_i32, %c0_i32_0 : i32, i32
  }
  func.func @transform_2(%arg0: i32) -> (i32, i32) {
    %c0_i32 = arith.constant 0 : i32
    %c0_i32_0 = arith.constant 0 : i32
    %c0_i32_1 = arith.constant 0 : i32
    return %c0_i32, %c0_i32_0 : i32, i32
  }
  func.func @transform_3(%arg0: i32) -> (i32, i32) {
    %c0_i32 = arith.constant 0 : i32
    %c0_i32_0 = arith.constant 0 : i32
    %c0_i32_1 = arith.constant 0 : i32
    return %c0_i32, %c0_i32_0 : i32, i32
  }
  func.func @transform_4(%arg0: i32) -> (i32, i32) {
    %c0_i32 = arith.constant 0 : i32
    %c0_i32_0 = arith.constant 0 : i32
    return %arg0, %c0_i32 : i32, i32
  }
}

module attributes {stable_mosaic.version = 11 : i64} {
  func.func @_mm_bn_pre_kernel(%arg0: i32, %arg1: memref<32x128xbf16, #tpu.memory_space<vmem>>, %arg2: memref<1x128xf32, #tpu.memory_space<vmem>>, %arg3: memref<1x128xf32, #tpu.memory_space<vmem>>, %arg4: memref<128x64xbf16, #tpu.memory_space<vmem>>, %arg5: memref<32x64xbf16, #tpu.memory_space<vmem>>) attributes {dimension_semantics = [#tpu.dimension_semantics<parallel>], iteration_bounds = array<i64: 1>, scalar_prefetch = 0 : i64, scratch_operands = 0 : i64, tpu.core_type = #tpu.core_type<tc>, window_params = [{transform_indices = @transform_0, window_bounds = array<i64: 32, 128>}, {pipeline_mode = #tpu.pipeline_mode<synchronous>, transform_indices = @transform_1, window_bounds = array<i64: 1, 128>}, {pipeline_mode = #tpu.pipeline_mode<synchronous>, transform_indices = @transform_2, window_bounds = array<i64: 1, 128>}, {pipeline_mode = #tpu.pipeline_mode<synchronous>, transform_indices = @transform_3, window_bounds = array<i64: 128, 64>}, {transform_indices = @transform_4, window_bounds = array<i64: 32, 64>}]} {
    %c0 = arith.constant 0 : index
    %c0_0 = arith.constant 0 : index
    %0 = vector.load %arg1[%c0, %c0_0] : memref<32x128xbf16, #tpu.memory_space<vmem>>, vector<32x128xbf16>
    %1 = arith.extf %0 : vector<32x128xbf16> to vector<32x128xf32>
    %c0_1 = arith.constant 0 : index
    %c0_2 = arith.constant 0 : index
    %2 = vector.load %arg2[%c0_1, %c0_2] : memref<1x128xf32, #tpu.memory_space<vmem>>, vector<1x128xf32>
    %3 = vector.broadcast %2 : vector<1x128xf32> to vector<32x128xf32>
    %4 = arith.mulf %1, %3 : vector<32x128xf32>
    %c0_3 = arith.constant 0 : index
    %c0_4 = arith.constant 0 : index
    %5 = vector.load %arg3[%c0_3, %c0_4] : memref<1x128xf32, #tpu.memory_space<vmem>>, vector<1x128xf32>
    %6 = vector.broadcast %5 : vector<1x128xf32> to vector<32x128xf32>
    %7 = arith.addf %4, %6 : vector<32x128xf32>
    %cst = arith.constant 0.000000e+00 : f32
    %8 = vector.broadcast %cst : f32 to vector<32x128xf32>
    %9 = arith.maximumf %7, %8 : vector<32x128xf32>
    %10 = arith.truncf %9 : vector<32x128xf32> to vector<32x128xbf16>
    %c0_5 = arith.constant 0 : index
    %c0_6 = arith.constant 0 : index
    %11 = vector.load %arg4[%c0_5, %c0_6] : memref<128x64xbf16, #tpu.memory_space<vmem>>, vector<128x64xbf16>
    %cst_7 = arith.constant dense<0.000000e+00> : vector<32x64xf32>
    %12 = tpu.matmul %10, %11, %cst_7 {dimension_numbers = #tpu.dot_dimension_numbers<[1], [0], [0], [1], [0, 0, 1, 1], [], []>} : vector<32x128xbf16>, vector<128x64xbf16>, vector<32x64xf32> -> vector<32x64xf32>
    %13 = arith.truncf %12 : vector<32x64xf32> to vector<32x64xbf16>
    %c0_8 = arith.constant 0 : index
    %c0_9 = arith.constant 0 : index
    %14 = vector.load %arg5[%c0_8, %c0_9] : memref<32x64xbf16, #tpu.memory_space<vmem>>, vector<32x64xbf16>
    tpu.vector_store %arg5[%c0_8, %c0_9], %13 {strides = array<i32>} : memref<32x64xbf16, #tpu.memory_space<vmem>>, vector<32x64xbf16>,
    return
  }
  func.func @transform_0(%arg0: i32) -> (i32, i32) {
    %c0_i32 = arith.constant 0 : i32
    %c0_i32_0 = arith.constant 0 : i32
    return %arg0, %c0_i32 : i32, i32
  }
  func.func @transform_1(%arg0: i32) -> (i32, i32) {
    %c0_i32 = arith.constant 0 : i32
    %c0_i32_0 = arith.constant 0 : i32
    %c0_i32_1 = arith.constant 0 : i32
    return %c0_i32, %c0_i32_0 : i32, i32
  }
  func.func @transform_2(%arg0: i32) -> (i32, i32) {
    %c0_i32 = arith.constant 0 : i32
    %c0_i32_0 = arith.constant 0 : i32
    %c0_i32_1 = arith.constant 0 : i32
    return %c0_i32, %c0_i32_0 : i32, i32
  }
  func.func @transform_3(%arg0: i32) -> (i32, i32) {
    %c0_i32 = arith.constant 0 : i32
    %c0_i32_0 = arith.constant 0 : i32
    %c0_i32_1 = arith.constant 0 : i32
    return %c0_i32, %c0_i32_0 : i32, i32
  }
  func.func @transform_4(%arg0: i32) -> (i32, i32) {
    %c0_i32 = arith.constant 0 : i32
    %c0_i32_0 = arith.constant 0 : i32
    return %arg0, %c0_i32 : i32, i32
  }
}

module attributes {stable_mosaic.version = 11 : i64} {
  func.func @_mm_bn_pre_kernel(%arg0: i32, %arg1: memref<8x64xbf16, #tpu.memory_space<vmem>>, %arg2: memref<1x64xf32, #tpu.memory_space<vmem>>, %arg3: memref<1x64xf32, #tpu.memory_space<vmem>>, %arg4: memref<64x128xbf16, #tpu.memory_space<vmem>>, %arg5: memref<8x128xbf16, #tpu.memory_space<vmem>>) attributes {dimension_semantics = [#tpu.dimension_semantics<parallel>], iteration_bounds = array<i64: 1>, scalar_prefetch = 0 : i64, scratch_operands = 0 : i64, tpu.core_type = #tpu.core_type<tc>, window_params = [{transform_indices = @transform_0, window_bounds = array<i64: 8, 64>}, {pipeline_mode = #tpu.pipeline_mode<synchronous>, transform_indices = @transform_1, window_bounds = array<i64: 1, 64>}, {pipeline_mode = #tpu.pipeline_mode<synchronous>, transform_indices = @transform_2, window_bounds = array<i64: 1, 64>}, {pipeline_mode = #tpu.pipeline_mode<synchronous>, transform_indices = @transform_3, window_bounds = array<i64: 64, 128>}, {transform_indices = @transform_4, window_bounds = array<i64: 8, 128>}]} {
    %c0 = arith.constant 0 : index
    %c0_0 = arith.constant 0 : index
    %0 = vector.load %arg1[%c0, %c0_0] : memref<8x64xbf16, #tpu.memory_space<vmem>>, vector<8x64xbf16>
    %1 = arith.extf %0 : vector<8x64xbf16> to vector<8x64xf32>
    %c0_1 = arith.constant 0 : index
    %c0_2 = arith.constant 0 : index
    %2 = vector.load %arg2[%c0_1, %c0_2] : memref<1x64xf32, #tpu.memory_space<vmem>>, vector<1x64xf32>
    %3 = vector.broadcast %2 : vector<1x64xf32> to vector<8x64xf32>
    %4 = arith.mulf %1, %3 : vector<8x64xf32>
    %c0_3 = arith.constant 0 : index
    %c0_4 = arith.constant 0 : index
    %5 = vector.load %arg3[%c0_3, %c0_4] : memref<1x64xf32, #tpu.memory_space<vmem>>, vector<1x64xf32>
    %6 = vector.broadcast %5 : vector<1x64xf32> to vector<8x64xf32>
    %7 = arith.addf %4, %6 : vector<8x64xf32>
    %cst = arith.constant 0.000000e+00 : f32
    %8 = vector.broadcast %cst : f32 to vector<8x64xf32>
    %9 = arith.maximumf %7, %8 : vector<8x64xf32>
    %10 = arith.truncf %9 : vector<8x64xf32> to vector<8x64xbf16>
    %c0_5 = arith.constant 0 : index
    %c0_6 = arith.constant 0 : index
    %11 = vector.load %arg4[%c0_5, %c0_6] : memref<64x128xbf16, #tpu.memory_space<vmem>>, vector<64x128xbf16>
    %cst_7 = arith.constant dense<0.000000e+00> : vector<8x128xf32>
    %12 = tpu.matmul %10, %11, %cst_7 {dimension_numbers = #tpu.dot_dimension_numbers<[1], [0], [0], [1], [0, 0, 1, 1], [], []>} : vector<8x64xbf16>, vector<64x128xbf16>, vector<8x128xf32> -> vector<8x128xf32>
    %13 = arith.truncf %12 : vector<8x128xf32> to vector<8x128xbf16>
    %c0_8 = arith.constant 0 : index
    %c0_9 = arith.constant 0 : index
    %14 = vector.load %arg5[%c0_8, %c0_9] : memref<8x128xbf16, #tpu.memory_space<vmem>>, vector<8x128xbf16>
    tpu.vector_store %arg5[%c0_8, %c0_9], %13 {strides = array<i32>} : memref<8x128xbf16, #tpu.memory_space<vmem>>, vector<8x128xbf16>,
    return
  }
  func.func @transform_0(%arg0: i32) -> (i32, i32) {
    %c0_i32 = arith.constant 0 : i32
    %c0_i32_0 = arith.constant 0 : i32
    return %arg0, %c0_i32 : i32, i32
  }
  func.func @transform_1(%arg0: i32) -> (i32, i32) {
    %c0_i32 = arith.constant 0 : i32
    %c0_i32_0 = arith.constant 0 : i32
    %c0_i32_1 = arith.constant 0 : i32
    return %c0_i32, %c0_i32_0 : i32, i32
  }
  func.func @transform_2(%arg0: i32) -> (i32, i32) {
    %c0_i32 = arith.constant 0 : i32
    %c0_i32_0 = arith.constant 0 : i32
    %c0_i32_1 = arith.constant 0 : i32
    return %c0_i32, %c0_i32_0 : i32, i32
  }
  func.func @transform_3(%arg0: i32) -> (i32, i32) {
    %c0_i32 = arith.constant 0 : i32
    %c0_i32_0 = arith.constant 0 : i32
    %c0_i32_1 = arith.constant 0 : i32
    return %c0_i32, %c0_i32_0 : i32, i32
  }
  func.func @transform_4(%arg0: i32) -> (i32, i32) {
    %c0_i32 = arith.constant 0 : i32
    %c0_i32_0 = arith.constant 0 : i32
    return %arg0, %c0_i32 : i32, i32
  }
}

module attributes {stable_mosaic.version = 11 : i64} {
  func.func @_conv3x3_kernel(%arg0: i32, %arg1: memref<1x4x10x128xbf16, #tpu.memory_space<vmem>>, %arg2: memref<1x1x128xf32, #tpu.memory_space<vmem>>, %arg3: memref<1x1x128xf32, #tpu.memory_space<vmem>>, %arg4: memref<9x128x32xbf16, #tpu.memory_space<vmem>>, %arg5: memref<1x2x8x32xbf16, #tpu.memory_space<vmem>>) attributes {dimension_semantics = [#tpu.dimension_semantics<parallel>], iteration_bounds = array<i64: 2>, scalar_prefetch = 0 : i64, scratch_operands = 0 : i64, tpu.core_type = #tpu.core_type<tc>, window_params = [{transform_indices = @transform_0, window_bounds = array<i64: 1, 4, 10, 128>}, {pipeline_mode = #tpu.pipeline_mode<synchronous>, transform_indices = @transform_1, window_bounds = array<i64: 1, 1, 128>}, {pipeline_mode = #tpu.pipeline_mode<synchronous>, transform_indices = @transform_2, window_bounds = array<i64: 1, 1, 128>}, {pipeline_mode = #tpu.pipeline_mode<synchronous>, transform_indices = @transform_3, window_bounds = array<i64: 9, 128, 32>}, {transform_indices = @transform_4, window_bounds = array<i64: 1, 2, 8, 32>}]} {
    %c0 = arith.constant 0 : index
    %c0_0 = arith.constant 0 : index
    %c0_1 = arith.constant 0 : index
    %c0_2 = arith.constant 0 : index
    %0 = vector.load %arg1[%c0, %c0_0, %c0_1, %c0_2] : memref<1x4x10x128xbf16, #tpu.memory_space<vmem>>, vector<1x4x10x128xbf16>
    %1 = vector.shape_cast %0 : vector<1x4x10x128xbf16> to vector<4x10x128xbf16>
    %2 = arith.extf %1 : vector<4x10x128xbf16> to vector<4x10x128xf32>
    %c0_3 = arith.constant 0 : index
    %c0_4 = arith.constant 0 : index
    %c0_5 = arith.constant 0 : index
    %3 = vector.load %arg2[%c0_3, %c0_4, %c0_5] : memref<1x1x128xf32, #tpu.memory_space<vmem>>, vector<1x1x128xf32>
    %4 = vector.broadcast %3 : vector<1x1x128xf32> to vector<4x10x128xf32>
    %5 = arith.mulf %2, %4 : vector<4x10x128xf32>
    %c0_6 = arith.constant 0 : index
    %c0_7 = arith.constant 0 : index
    %c0_8 = arith.constant 0 : index
    %6 = vector.load %arg3[%c0_6, %c0_7, %c0_8] : memref<1x1x128xf32, #tpu.memory_space<vmem>>, vector<1x1x128xf32>
    %7 = vector.broadcast %6 : vector<1x1x128xf32> to vector<4x10x128xf32>
    %8 = arith.addf %5, %7 : vector<4x10x128xf32>
    %cst = arith.constant 0.000000e+00 : f32
    %9 = vector.broadcast %cst : f32 to vector<4x10x128xf32>
    %10 = arith.maximumf %8, %9 : vector<4x10x128xf32>
    %cst_9 = arith.constant 0.000000e+00 : f32
    %11 = vector.broadcast %cst_9 : f32 to vector<16x32xf32>
    %12 = vector.extract_strided_slice %10 {offsets = [0, 0, 0], sizes = [2, 8, 128], strides = [1, 1, 1]} : vector<4x10x128xf32> to vector<2x8x128xf32>
    %13 = vector.shape_cast %12 : vector<2x8x128xf32> to vector<16x128xf32>
    %14 = arith.truncf %13 : vector<16x128xf32> to vector<16x128xbf16>
    %c0_10 = arith.constant 0 : index
    %c0_11 = arith.constant 0 : index
    %c0_12 = arith.constant 0 : index
    %15 = vector.load %arg4[%c0_10, %c0_11, %c0_12] : memref<9x128x32xbf16, #tpu.memory_space<vmem>>, vector<1x128x32xbf16>
    %16 = vector.shape_cast %15 : vector<1x128x32xbf16> to vector<128x32xbf16>
    %cst_13 = arith.constant dense<0.000000e+00> : vector<16x32xf32>
    %17 = tpu.matmul %14, %16, %cst_13 {dimension_numbers = #tpu.dot_dimension_numbers<[1], [0], [0], [1], [0, 0, 1, 1], [], []>} : vector<16x128xbf16>, vector<128x32xbf16>, vector<16x32xf32> -> vector<16x32xf32>
    %18 = arith.addf %11, %17 : vector<16x32xf32>
    %19 = vector.extract_strided_slice %10 {offsets = [0, 1, 0], sizes = [2, 8, 128], strides = [1, 1, 1]} : vector<4x10x128xf32> to vector<2x8x128xf32>
    %20 = vector.shape_cast %19 : vector<2x8x128xf32> to vector<16x128xf32>
    %21 = arith.truncf %20 : vector<16x128xf32> to vector<16x128xbf16>
    %c1 = arith.constant 1 : index
    %c0_14 = arith.constant 0 : index
    %c0_15 = arith.constant 0 : index
    %22 = vector.load %arg4[%c1, %c0_14, %c0_15] : memref<9x128x32xbf16, #tpu.memory_space<vmem>>, vector<1x128x32xbf16>
    %23 = vector.shape_cast %22 : vector<1x128x32xbf16> to vector<128x32xbf16>
    %cst_16 = arith.constant dense<0.000000e+00> : vector<16x32xf32>
    %24 = tpu.matmul %21, %23, %cst_16 {dimension_numbers = #tpu.dot_dimension_numbers<[1], [0], [0], [1], [0, 0, 1, 1], [], []>} : vector<16x128xbf16>, vector<128x32xbf16>, vector<16x32xf32> -> vector<16x32xf32>
    %25 = arith.addf %18, %24 : vector<16x32xf32>
    %26 = vector.extract_strided_slice %10 {offsets = [0, 2, 0], sizes = [2, 8, 128], strides = [1, 1, 1]} : vector<4x10x128xf32> to vector<2x8x128xf32>
    %27 = vector.shape_cast %26 : vector<2x8x128xf32> to vector<16x128xf32>
    %28 = arith.truncf %27 : vector<16x128xf32> to vector<16x128xbf16>
    %c2 = arith.constant 2 : index
    %c0_17 = arith.constant 0 : index
    %c0_18 = arith.constant 0 : index
    %29 = vector.load %arg4[%c2, %c0_17, %c0_18] : memref<9x128x32xbf16, #tpu.memory_space<vmem>>, vector<1x128x32xbf16>
    %30 = vector.shape_cast %29 : vector<1x128x32xbf16> to vector<128x32xbf16>
    %cst_19 = arith.constant dense<0.000000e+00> : vector<16x32xf32>
    %31 = tpu.matmul %28, %30, %cst_19 {dimension_numbers = #tpu.dot_dimension_numbers<[1], [0], [0], [1], [0, 0, 1, 1], [], []>} : vector<16x128xbf16>, vector<128x32xbf16>, vector<16x32xf32> -> vector<16x32xf32>
    %32 = arith.addf %25, %31 : vector<16x32xf32>
    %33 = vector.extract_strided_slice %10 {offsets = [1, 0, 0], sizes = [2, 8, 128], strides = [1, 1, 1]} : vector<4x10x128xf32> to vector<2x8x128xf32>
    %34 = vector.shape_cast %33 : vector<2x8x128xf32> to vector<16x128xf32>
    %35 = arith.truncf %34 : vector<16x128xf32> to vector<16x128xbf16>
    %c3 = arith.constant 3 : index
    %c0_20 = arith.constant 0 : index
    %c0_21 = arith.constant 0 : index
    %36 = vector.load %arg4[%c3, %c0_20, %c0_21] : memref<9x128x32xbf16, #tpu.memory_space<vmem>>, vector<1x128x32xbf16>
    %37 = vector.shape_cast %36 : vector<1x128x32xbf16> to vector<128x32xbf16>
    %cst_22 = arith.constant dense<0.000000e+00> : vector<16x32xf32>
    %38 = tpu.matmul %35, %37, %cst_22 {dimension_numbers = #tpu.dot_dimension_numbers<[1], [0], [0], [1], [0, 0, 1, 1], [], []>} : vector<16x128xbf16>, vector<128x32xbf16>, vector<16x32xf32> -> vector<16x32xf32>
    %39 = arith.addf %32, %38 : vector<16x32xf32>
    %40 = vector.extract_strided_slice %10 {offsets = [1, 1, 0], sizes = [2, 8, 128], strides = [1, 1, 1]} : vector<4x10x128xf32> to vector<2x8x128xf32>
    %41 = vector.shape_cast %40 : vector<2x8x128xf32> to vector<16x128xf32>
    %42 = arith.truncf %41 : vector<16x128xf32> to vector<16x128xbf16>
    %c4 = arith.constant 4 : index
    %c0_23 = arith.constant 0 : index
    %c0_24 = arith.constant 0 : index
    %43 = vector.load %arg4[%c4, %c0_23, %c0_24] : memref<9x128x32xbf16, #tpu.memory_space<vmem>>, vector<1x128x32xbf16>
    %44 = vector.shape_cast %43 : vector<1x128x32xbf16> to vector<128x32xbf16>
    %cst_25 = arith.constant dense<0.000000e+00> : vector<16x32xf32>
    %45 = tpu.matmul %42, %44, %cst_25 {dimension_numbers = #tpu.dot_dimension_numbers<[1], [0], [0], [1], [0, 0, 1, 1], [], []>} : vector<16x128xbf16>, vector<128x32xbf16>, vector<16x32xf32> -> vector<16x32xf32>
    %46 = arith.addf %39, %45 : vector<16x32xf32>
    %47 = vector.extract_strided_slice %10 {offsets = [1, 2, 0], sizes = [2, 8, 128], strides = [1, 1, 1]} : vector<4x10x128xf32> to vector<2x8x128xf32>
    %48 = vector.shape_cast %47 : vector<2x8x128xf32> to vector<16x128xf32>
    %49 = arith.truncf %48 : vector<16x128xf32> to vector<16x128xbf16>
    %c5 = arith.constant 5 : index
    %c0_26 = arith.constant 0 : index
    %c0_27 = arith.constant 0 : index
    %50 = vector.load %arg4[%c5, %c0_26, %c0_27] : memref<9x128x32xbf16, #tpu.memory_space<vmem>>, vector<1x128x32xbf16>
    %51 = vector.shape_cast %50 : vector<1x128x32xbf16> to vector<128x32xbf16>
    %cst_28 = arith.constant dense<0.000000e+00> : vector<16x32xf32>
    %52 = tpu.matmul %49, %51, %cst_28 {dimension_numbers = #tpu.dot_dimension_numbers<[1], [0], [0], [1], [0, 0, 1, 1], [], []>} : vector<16x128xbf16>, vector<128x32xbf16>, vector<16x32xf32> -> vector<16x32xf32>
    %53 = arith.addf %46, %52 : vector<16x32xf32>
    %54 = vector.extract_strided_slice %10 {offsets = [2, 0, 0], sizes = [2, 8, 128], strides = [1, 1, 1]} : vector<4x10x128xf32> to vector<2x8x128xf32>
    %55 = vector.shape_cast %54 : vector<2x8x128xf32> to vector<16x128xf32>
    %56 = arith.truncf %55 : vector<16x128xf32> to vector<16x128xbf16>
    %c6 = arith.constant 6 : index
    %c0_29 = arith.constant 0 : index
    %c0_30 = arith.constant 0 : index
    %57 = vector.load %arg4[%c6, %c0_29, %c0_30] : memref<9x128x32xbf16, #tpu.memory_space<vmem>>, vector<1x128x32xbf16>
    %58 = vector.shape_cast %57 : vector<1x128x32xbf16> to vector<128x32xbf16>
    %cst_31 = arith.constant dense<0.000000e+00> : vector<16x32xf32>
    %59 = tpu.matmul %56, %58, %cst_31 {dimension_numbers = #tpu.dot_dimension_numbers<[1], [0], [0], [1], [0, 0, 1, 1], [], []>} : vector<16x128xbf16>, vector<128x32xbf16>, vector<16x32xf32> -> vector<16x32xf32>
    %60 = arith.addf %53, %59 : vector<16x32xf32>
    %61 = vector.extract_strided_slice %10 {offsets = [2, 1, 0], sizes = [2, 8, 128], strides = [1, 1, 1]} : vector<4x10x128xf32> to vector<2x8x128xf32>
    %62 = vector.shape_cast %61 : vector<2x8x128xf32> to vector<16x128xf32>
    %63 = arith.truncf %62 : vector<16x128xf32> to vector<16x128xbf16>
    %c7 = arith.constant 7 : index
    %c0_32 = arith.constant 0 : index
    %c0_33 = arith.constant 0 : index
    %64 = vector.load %arg4[%c7, %c0_32, %c0_33] : memref<9x128x32xbf16, #tpu.memory_space<vmem>>, vector<1x128x32xbf16>
    %65 = vector.shape_cast %64 : vector<1x128x32xbf16> to vector<128x32xbf16>
    %cst_34 = arith.constant dense<0.000000e+00> : vector<16x32xf32>
    %66 = tpu.matmul %63, %65, %cst_34 {dimension_numbers = #tpu.dot_dimension_numbers<[1], [0], [0], [1], [0, 0, 1, 1], [], []>} : vector<16x128xbf16>, vector<128x32xbf16>, vector<16x32xf32> -> vector<16x32xf32>
    %67 = arith.addf %60, %66 : vector<16x32xf32>
    %68 = vector.extract_strided_slice %10 {offsets = [2, 2, 0], sizes = [2, 8, 128], strides = [1, 1, 1]} : vector<4x10x128xf32> to vector<2x8x128xf32>
    %69 = vector.shape_cast %68 : vector<2x8x128xf32> to vector<16x128xf32>
    %70 = arith.truncf %69 : vector<16x128xf32> to vector<16x128xbf16>
    %c8 = arith.constant 8 : index
    %c0_35 = arith.constant 0 : index
    %c0_36 = arith.constant 0 : index
    %71 = vector.load %arg4[%c8, %c0_35, %c0_36] : memref<9x128x32xbf16, #tpu.memory_space<vmem>>, vector<1x128x32xbf16>
    %72 = vector.shape_cast %71 : vector<1x128x32xbf16> to vector<128x32xbf16>
    %cst_37 = arith.constant dense<0.000000e+00> : vector<16x32xf32>
    %73 = tpu.matmul %70, %72, %cst_37 {dimension_numbers = #tpu.dot_dimension_numbers<[1], [0], [0], [1], [0, 0, 1, 1], [], []>} : vector<16x128xbf16>, vector<128x32xbf16>, vector<16x32xf32> -> vector<16x32xf32>
    %74 = arith.addf %67, %73 : vector<16x32xf32>
    %75 = vector.shape_cast %74 : vector<16x32xf32> to vector<1x2x8x32xf32>
    %76 = arith.truncf %75 : vector<1x2x8x32xf32> to vector<1x2x8x32xbf16>
    %c0_38 = arith.constant 0 : index
    %c0_39 = arith.constant 0 : index
    %c0_40 = arith.constant 0 : index
    %c0_41 = arith.constant 0 : index
    %77 = vector.load %arg5[%c0_38, %c0_39, %c0_40, %c0_41] : memref<1x2x8x32xbf16, #tpu.memory_space<vmem>>, vector<1x2x8x32xbf16>
    tpu.vector_store %arg5[%c0_38, %c0_39, %c0_40, %c0_41], %76 {strides = array<i32>} : memref<1x2x8x32xbf16, #tpu.memory_space<vmem>>, vector<1x2x8x32xbf16>,
    return
  }
  func.func @transform_0(%arg0: i32) -> (i32, i32, i32, i32) {
    %c0_i32 = arith.constant 0 : i32
    %c0_i32_0 = arith.constant 0 : i32
    %c0_i32_1 = arith.constant 0 : i32
    %c0_i32_2 = arith.constant 0 : i32
    return %arg0, %c0_i32, %c0_i32_0, %c0_i32_1 : i32, i32, i32, i32
  }
  func.func @transform_1(%arg0: i32) -> (i32, i32, i32) {
    %c0_i32 = arith.constant 0 : i32
    %c0_i32_0 = arith.constant 0 : i32
    %c0_i32_1 = arith.constant 0 : i32
    %c0_i32_2 = arith.constant 0 : i32
    return %c0_i32, %c0_i32_0, %c0_i32_1 : i32, i32, i32
  }
  func.func @transform_2(%arg0: i32) -> (i32, i32, i32) {
    %c0_i32 = arith.constant 0 : i32
    %c0_i32_0 = arith.constant 0 : i32
    %c0_i32_1 = arith.constant 0 : i32
    %c0_i32_2 = arith.constant 0 : i32
    return %c0_i32, %c0_i32_0, %c0_i32_1 : i32, i32, i32
  }
  func.func @transform_3(%arg0: i32) -> (i32, i32, i32) {
    %c0_i32 = arith.constant 0 : i32
    %c0_i32_0 = arith.constant 0 : i32
    %c0_i32_1 = arith.constant 0 : i32
    %c0_i32_2 = arith.constant 0 : i32
    return %c0_i32, %c0_i32_0, %c0_i32_1 : i32, i32, i32
  }
  func.func @transform_4(%arg0: i32) -> (i32, i32, i32, i32) {
    %c0_i32 = arith.constant 0 : i32
    %c0_i32_0 = arith.constant 0 : i32
    %c0_i32_1 = arith.constant 0 : i32
    %c0_i32_2 = arith.constant 0 : i32
    return %arg0, %c0_i32, %c0_i32_0, %c0_i32_1 : i32, i32, i32, i32
  }
}

module attributes {stable_mosaic.version = 11 : i64} {
  func.func @_mm_bn_pre_kernel(%arg0: i32, %arg1: memref<8x96xbf16, #tpu.memory_space<vmem>>, %arg2: memref<1x96xf32, #tpu.memory_space<vmem>>, %arg3: memref<1x96xf32, #tpu.memory_space<vmem>>, %arg4: memref<96x128xbf16, #tpu.memory_space<vmem>>, %arg5: memref<8x128xbf16, #tpu.memory_space<vmem>>) attributes {dimension_semantics = [#tpu.dimension_semantics<parallel>], iteration_bounds = array<i64: 1>, scalar_prefetch = 0 : i64, scratch_operands = 0 : i64, tpu.core_type = #tpu.core_type<tc>, window_params = [{transform_indices = @transform_0, window_bounds = array<i64: 8, 96>}, {pipeline_mode = #tpu.pipeline_mode<synchronous>, transform_indices = @transform_1, window_bounds = array<i64: 1, 96>}, {pipeline_mode = #tpu.pipeline_mode<synchronous>, transform_indices = @transform_2, window_bounds = array<i64: 1, 96>}, {pipeline_mode = #tpu.pipeline_mode<synchronous>, transform_indices = @transform_3, window_bounds = array<i64: 96, 128>}, {transform_indices = @transform_4, window_bounds = array<i64: 8, 128>}]} {
    %c0 = arith.constant 0 : index
    %c0_0 = arith.constant 0 : index
    %0 = vector.load %arg1[%c0, %c0_0] : memref<8x96xbf16, #tpu.memory_space<vmem>>, vector<8x96xbf16>
    %1 = arith.extf %0 : vector<8x96xbf16> to vector<8x96xf32>
    %c0_1 = arith.constant 0 : index
    %c0_2 = arith.constant 0 : index
    %2 = vector.load %arg2[%c0_1, %c0_2] : memref<1x96xf32, #tpu.memory_space<vmem>>, vector<1x96xf32>
    %3 = vector.broadcast %2 : vector<1x96xf32> to vector<8x96xf32>
    %4 = arith.mulf %1, %3 : vector<8x96xf32>
    %c0_3 = arith.constant 0 : index
    %c0_4 = arith.constant 0 : index
    %5 = vector.load %arg3[%c0_3, %c0_4] : memref<1x96xf32, #tpu.memory_space<vmem>>, vector<1x96xf32>
    %6 = vector.broadcast %5 : vector<1x96xf32> to vector<8x96xf32>
    %7 = arith.addf %4, %6 : vector<8x96xf32>
    %cst = arith.constant 0.000000e+00 : f32
    %8 = vector.broadcast %cst : f32 to vector<8x96xf32>
    %9 = arith.maximumf %7, %8 : vector<8x96xf32>
    %10 = arith.truncf %9 : vector<8x96xf32> to vector<8x96xbf16>
    %c0_5 = arith.constant 0 : index
    %c0_6 = arith.constant 0 : index
    %11 = vector.load %arg4[%c0_5, %c0_6] : memref<96x128xbf16, #tpu.memory_space<vmem>>, vector<96x128xbf16>
    %cst_7 = arith.constant dense<0.000000e+00> : vector<8x128xf32>
    %12 = tpu.matmul %10, %11, %cst_7 {dimension_numbers = #tpu.dot_dimension_numbers<[1], [0], [0], [1], [0, 0, 1, 1], [], []>} : vector<8x96xbf16>, vector<96x128xbf16>, vector<8x128xf32> -> vector<8x128xf32>
    %13 = arith.truncf %12 : vector<8x128xf32> to vector<8x128xbf16>
    %c0_8 = arith.constant 0 : index
    %c0_9 = arith.constant 0 : index
    %14 = vector.load %arg5[%c0_8, %c0_9] : memref<8x128xbf16, #tpu.memory_space<vmem>>, vector<8x128xbf16>
    tpu.vector_store %arg5[%c0_8, %c0_9], %13 {strides = array<i32>} : memref<8x128xbf16, #tpu.memory_space<vmem>>, vector<8x128xbf16>,
    return
  }
  func.func @transform_0(%arg0: i32) -> (i32, i32) {
    %c0_i32 = arith.constant 0 : i32
    %c0_i32_0 = arith.constant 0 : i32
    return %arg0, %c0_i32 : i32, i32
  }
  func.func @transform_1(%arg0: i32) -> (i32, i32) {
    %c0_i32 = arith.constant 0 : i32
    %c0_i32_0 = arith.constant 0 : i32
    %c0_i32_1 = arith.constant 0 : i32
    return %c0_i32, %c0_i32_0 : i32, i32
  }
  func.func @transform_2(%arg0: i32) -> (i32, i32) {
    %c0_i32 = arith.constant 0 : i32
    %c0_i32_0 = arith.constant 0 : i32
    %c0_i32_1 = arith.constant 0 : i32
    return %c0_i32, %c0_i32_0 : i32, i32
  }
  func.func @transform_3(%arg0: i32) -> (i32, i32) {
    %c0_i32 = arith.constant 0 : i32
    %c0_i32_0 = arith.constant 0 : i32
    %c0_i32_1 = arith.constant 0 : i32
    return %c0_i32, %c0_i32_0 : i32, i32
  }
  func.func @transform_4(%arg0: i32) -> (i32, i32) {
    %c0_i32 = arith.constant 0 : i32
    %c0_i32_0 = arith.constant 0 : i32
    return %arg0, %c0_i32 : i32, i32
  }
}

module attributes {stable_mosaic.version = 11 : i64} {
  func.func @_mm_bn_pre_kernel(%arg0: i32, %arg1: memref<8x128xbf16, #tpu.memory_space<vmem>>, %arg2: memref<1x128xf32, #tpu.memory_space<vmem>>, %arg3: memref<1x128xf32, #tpu.memory_space<vmem>>, %arg4: memref<128x64xbf16, #tpu.memory_space<vmem>>, %arg5: memref<8x64xbf16, #tpu.memory_space<vmem>>) attributes {dimension_semantics = [#tpu.dimension_semantics<parallel>], iteration_bounds = array<i64: 1>, scalar_prefetch = 0 : i64, scratch_operands = 0 : i64, tpu.core_type = #tpu.core_type<tc>, window_params = [{transform_indices = @transform_0, window_bounds = array<i64: 8, 128>}, {pipeline_mode = #tpu.pipeline_mode<synchronous>, transform_indices = @transform_1, window_bounds = array<i64: 1, 128>}, {pipeline_mode = #tpu.pipeline_mode<synchronous>, transform_indices = @transform_2, window_bounds = array<i64: 1, 128>}, {pipeline_mode = #tpu.pipeline_mode<synchronous>, transform_indices = @transform_3, window_bounds = array<i64: 128, 64>}, {transform_indices = @transform_4, window_bounds = array<i64: 8, 64>}]} {
    %c0 = arith.constant 0 : index
    %c0_0 = arith.constant 0 : index
    %0 = vector.load %arg1[%c0, %c0_0] : memref<8x128xbf16, #tpu.memory_space<vmem>>, vector<8x128xbf16>
    %1 = arith.extf %0 : vector<8x128xbf16> to vector<8x128xf32>
    %c0_1 = arith.constant 0 : index
    %c0_2 = arith.constant 0 : index
    %2 = vector.load %arg2[%c0_1, %c0_2] : memref<1x128xf32, #tpu.memory_space<vmem>>, vector<1x128xf32>
    %3 = vector.broadcast %2 : vector<1x128xf32> to vector<8x128xf32>
    %4 = arith.mulf %1, %3 : vector<8x128xf32>
    %c0_3 = arith.constant 0 : index
    %c0_4 = arith.constant 0 : index
    %5 = vector.load %arg3[%c0_3, %c0_4] : memref<1x128xf32, #tpu.memory_space<vmem>>, vector<1x128xf32>
    %6 = vector.broadcast %5 : vector<1x128xf32> to vector<8x128xf32>
    %7 = arith.addf %4, %6 : vector<8x128xf32>
    %cst = arith.constant 0.000000e+00 : f32
    %8 = vector.broadcast %cst : f32 to vector<8x128xf32>
    %9 = arith.maximumf %7, %8 : vector<8x128xf32>
    %10 = arith.truncf %9 : vector<8x128xf32> to vector<8x128xbf16>
    %c0_5 = arith.constant 0 : index
    %c0_6 = arith.constant 0 : index
    %11 = vector.load %arg4[%c0_5, %c0_6] : memref<128x64xbf16, #tpu.memory_space<vmem>>, vector<128x64xbf16>
    %cst_7 = arith.constant dense<0.000000e+00> : vector<8x64xf32>
    %12 = tpu.matmul %10, %11, %cst_7 {dimension_numbers = #tpu.dot_dimension_numbers<[1], [0], [0], [1], [0, 0, 1, 1], [], []>} : vector<8x128xbf16>, vector<128x64xbf16>, vector<8x64xf32> -> vector<8x64xf32>
    %13 = arith.truncf %12 : vector<8x64xf32> to vector<8x64xbf16>
    %c0_8 = arith.constant 0 : index
    %c0_9 = arith.constant 0 : index
    %14 = vector.load %arg5[%c0_8, %c0_9] : memref<8x64xbf16, #tpu.memory_space<vmem>>, vector<8x64xbf16>
    tpu.vector_store %arg5[%c0_8, %c0_9], %13 {strides = array<i32>} : memref<8x64xbf16, #tpu.memory_space<vmem>>, vector<8x64xbf16>,
    return
  }
  func.func @transform_0(%arg0: i32) -> (i32, i32) {
    %c0_i32 = arith.constant 0 : i32
    %c0_i32_0 = arith.constant 0 : i32
    return %arg0, %c0_i32 : i32, i32
  }
  func.func @transform_1(%arg0: i32) -> (i32, i32) {
    %c0_i32 = arith.constant 0 : i32
    %c0_i32_0 = arith.constant 0 : i32
    %c0_i32_1 = arith.constant 0 : i32
    return %c0_i32, %c0_i32_0 : i32, i32
  }
  func.func @transform_2(%arg0: i32) -> (i32, i32) {
    %c0_i32 = arith.constant 0 : i32
    %c0_i32_0 = arith.constant 0 : i32
    %c0_i32_1 = arith.constant 0 : i32
    return %c0_i32, %c0_i32_0 : i32, i32
  }
  func.func @transform_3(%arg0: i32) -> (i32, i32) {
    %c0_i32 = arith.constant 0 : i32
    %c0_i32_0 = arith.constant 0 : i32
    %c0_i32_1 = arith.constant 0 : i32
    return %c0_i32, %c0_i32_0 : i32, i32
  }
  func.func @transform_4(%arg0: i32) -> (i32, i32) {
    %c0_i32 = arith.constant 0 : i32
    %c0_i32_0 = arith.constant 0 : i32
    return %arg0, %c0_i32 : i32, i32
  }
}

module attributes {stable_mosaic.version = 11 : i64} {
  func.func @_conv3x3_kernel(%arg0: i32, %arg1: memref<1x3x10x128xbf16, #tpu.memory_space<vmem>>, %arg2: memref<1x1x128xf32, #tpu.memory_space<vmem>>, %arg3: memref<1x1x128xf32, #tpu.memory_space<vmem>>, %arg4: memref<9x128x32xbf16, #tpu.memory_space<vmem>>, %arg5: memref<1x1x8x32xbf16, #tpu.memory_space<vmem>>) attributes {dimension_semantics = [#tpu.dimension_semantics<parallel>], iteration_bounds = array<i64: 2>, scalar_prefetch = 0 : i64, scratch_operands = 0 : i64, tpu.core_type = #tpu.core_type<tc>, window_params = [{transform_indices = @transform_0, window_bounds = array<i64: 1, 3, 10, 128>}, {pipeline_mode = #tpu.pipeline_mode<synchronous>, transform_indices = @transform_1, window_bounds = array<i64: 1, 1, 128>}, {pipeline_mode = #tpu.pipeline_mode<synchronous>, transform_indices = @transform_2, window_bounds = array<i64: 1, 1, 128>}, {pipeline_mode = #tpu.pipeline_mode<synchronous>, transform_indices = @transform_3, window_bounds = array<i64: 9, 128, 32>}, {transform_indices = @transform_4, window_bounds = array<i64: 1, 1, 8, 32>}]} {
    %c0 = arith.constant 0 : index
    %c0_0 = arith.constant 0 : index
    %c0_1 = arith.constant 0 : index
    %c0_2 = arith.constant 0 : index
    %0 = vector.load %arg1[%c0, %c0_0, %c0_1, %c0_2] : memref<1x3x10x128xbf16, #tpu.memory_space<vmem>>, vector<1x3x10x128xbf16>
    %1 = vector.shape_cast %0 : vector<1x3x10x128xbf16> to vector<3x10x128xbf16>
    %2 = arith.extf %1 : vector<3x10x128xbf16> to vector<3x10x128xf32>
    %c0_3 = arith.constant 0 : index
    %c0_4 = arith.constant 0 : index
    %c0_5 = arith.constant 0 : index
    %3 = vector.load %arg2[%c0_3, %c0_4, %c0_5] : memref<1x1x128xf32, #tpu.memory_space<vmem>>, vector<1x1x128xf32>
    %4 = vector.broadcast %3 : vector<1x1x128xf32> to vector<3x10x128xf32>
    %5 = arith.mulf %2, %4 : vector<3x10x128xf32>
    %c0_6 = arith.constant 0 : index
    %c0_7 = arith.constant 0 : index
    %c0_8 = arith.constant 0 : index
    %6 = vector.load %arg3[%c0_6, %c0_7, %c0_8] : memref<1x1x128xf32, #tpu.memory_space<vmem>>, vector<1x1x128xf32>
    %7 = vector.broadcast %6 : vector<1x1x128xf32> to vector<3x10x128xf32>
    %8 = arith.addf %5, %7 : vector<3x10x128xf32>
    %cst = arith.constant 0.000000e+00 : f32
    %9 = vector.broadcast %cst : f32 to vector<3x10x128xf32>
    %10 = arith.maximumf %8, %9 : vector<3x10x128xf32>
    %cst_9 = arith.constant 0.000000e+00 : f32
    %11 = vector.broadcast %cst_9 : f32 to vector<8x32xf32>
    %12 = vector.extract_strided_slice %10 {offsets = [0, 0, 0], sizes = [1, 8, 128], strides = [1, 1, 1]} : vector<3x10x128xf32> to vector<1x8x128xf32>
    %13 = vector.shape_cast %12 : vector<1x8x128xf32> to vector<8x128xf32>
    %14 = arith.truncf %13 : vector<8x128xf32> to vector<8x128xbf16>
    %c0_10 = arith.constant 0 : index
    %c0_11 = arith.constant 0 : index
    %c0_12 = arith.constant 0 : index
    %15 = vector.load %arg4[%c0_10, %c0_11, %c0_12] : memref<9x128x32xbf16, #tpu.memory_space<vmem>>, vector<1x128x32xbf16>
    %16 = vector.shape_cast %15 : vector<1x128x32xbf16> to vector<128x32xbf16>
    %cst_13 = arith.constant dense<0.000000e+00> : vector<8x32xf32>
    %17 = tpu.matmul %14, %16, %cst_13 {dimension_numbers = #tpu.dot_dimension_numbers<[1], [0], [0], [1], [0, 0, 1, 1], [], []>} : vector<8x128xbf16>, vector<128x32xbf16>, vector<8x32xf32> -> vector<8x32xf32>
    %18 = arith.addf %11, %17 : vector<8x32xf32>
    %19 = vector.extract_strided_slice %10 {offsets = [0, 1, 0], sizes = [1, 8, 128], strides = [1, 1, 1]} : vector<3x10x128xf32> to vector<1x8x128xf32>
    %20 = vector.shape_cast %19 : vector<1x8x128xf32> to vector<8x128xf32>
    %21 = arith.truncf %20 : vector<8x128xf32> to vector<8x128xbf16>
    %c1 = arith.constant 1 : index
    %c0_14 = arith.constant 0 : index
    %c0_15 = arith.constant 0 : index
    %22 = vector.load %arg4[%c1, %c0_14, %c0_15] : memref<9x128x32xbf16, #tpu.memory_space<vmem>>, vector<1x128x32xbf16>
    %23 = vector.shape_cast %22 : vector<1x128x32xbf16> to vector<128x32xbf16>
    %cst_16 = arith.constant dense<0.000000e+00> : vector<8x32xf32>
    %24 = tpu.matmul %21, %23, %cst_16 {dimension_numbers = #tpu.dot_dimension_numbers<[1], [0], [0], [1], [0, 0, 1, 1], [], []>} : vector<8x128xbf16>, vector<128x32xbf16>, vector<8x32xf32> -> vector<8x32xf32>
    %25 = arith.addf %18, %24 : vector<8x32xf32>
    %26 = vector.extract_strided_slice %10 {offsets = [0, 2, 0], sizes = [1, 8, 128], strides = [1, 1, 1]} : vector<3x10x128xf32> to vector<1x8x128xf32>
    %27 = vector.shape_cast %26 : vector<1x8x128xf32> to vector<8x128xf32>
    %28 = arith.truncf %27 : vector<8x128xf32> to vector<8x128xbf16>
    %c2 = arith.constant 2 : index
    %c0_17 = arith.constant 0 : index
    %c0_18 = arith.constant 0 : index
    %29 = vector.load %arg4[%c2, %c0_17, %c0_18] : memref<9x128x32xbf16, #tpu.memory_space<vmem>>, vector<1x128x32xbf16>
    %30 = vector.shape_cast %29 : vector<1x128x32xbf16> to vector<128x32xbf16>
    %cst_19 = arith.constant dense<0.000000e+00> : vector<8x32xf32>
    %31 = tpu.matmul %28, %30, %cst_19 {dimension_numbers = #tpu.dot_dimension_numbers<[1], [0], [0], [1], [0, 0, 1, 1], [], []>} : vector<8x128xbf16>, vector<128x32xbf16>, vector<8x32xf32> -> vector<8x32xf32>
    %32 = arith.addf %25, %31 : vector<8x32xf32>
    %33 = vector.extract_strided_slice %10 {offsets = [1, 0, 0], sizes = [1, 8, 128], strides = [1, 1, 1]} : vector<3x10x128xf32> to vector<1x8x128xf32>
    %34 = vector.shape_cast %33 : vector<1x8x128xf32> to vector<8x128xf32>
    %35 = arith.truncf %34 : vector<8x128xf32> to vector<8x128xbf16>
    %c3 = arith.constant 3 : index
    %c0_20 = arith.constant 0 : index
    %c0_21 = arith.constant 0 : index
    %36 = vector.load %arg4[%c3, %c0_20, %c0_21] : memref<9x128x32xbf16, #tpu.memory_space<vmem>>, vector<1x128x32xbf16>
    %37 = vector.shape_cast %36 : vector<1x128x32xbf16> to vector<128x32xbf16>
    %cst_22 = arith.constant dense<0.000000e+00> : vector<8x32xf32>
    %38 = tpu.matmul %35, %37, %cst_22 {dimension_numbers = #tpu.dot_dimension_numbers<[1], [0], [0], [1], [0, 0, 1, 1], [], []>} : vector<8x128xbf16>, vector<128x32xbf16>, vector<8x32xf32> -> vector<8x32xf32>
    %39 = arith.addf %32, %38 : vector<8x32xf32>
    %40 = vector.extract_strided_slice %10 {offsets = [1, 1, 0], sizes = [1, 8, 128], strides = [1, 1, 1]} : vector<3x10x128xf32> to vector<1x8x128xf32>
    %41 = vector.shape_cast %40 : vector<1x8x128xf32> to vector<8x128xf32>
    %42 = arith.truncf %41 : vector<8x128xf32> to vector<8x128xbf16>
    %c4 = arith.constant 4 : index
    %c0_23 = arith.constant 0 : index
    %c0_24 = arith.constant 0 : index
    %43 = vector.load %arg4[%c4, %c0_23, %c0_24] : memref<9x128x32xbf16, #tpu.memory_space<vmem>>, vector<1x128x32xbf16>
    %44 = vector.shape_cast %43 : vector<1x128x32xbf16> to vector<128x32xbf16>
    %cst_25 = arith.constant dense<0.000000e+00> : vector<8x32xf32>
    %45 = tpu.matmul %42, %44, %cst_25 {dimension_numbers = #tpu.dot_dimension_numbers<[1], [0], [0], [1], [0, 0, 1, 1], [], []>} : vector<8x128xbf16>, vector<128x32xbf16>, vector<8x32xf32> -> vector<8x32xf32>
    %46 = arith.addf %39, %45 : vector<8x32xf32>
    %47 = vector.extract_strided_slice %10 {offsets = [1, 2, 0], sizes = [1, 8, 128], strides = [1, 1, 1]} : vector<3x10x128xf32> to vector<1x8x128xf32>
    %48 = vector.shape_cast %47 : vector<1x8x128xf32> to vector<8x128xf32>
    %49 = arith.truncf %48 : vector<8x128xf32> to vector<8x128xbf16>
    %c5 = arith.constant 5 : index
    %c0_26 = arith.constant 0 : index
    %c0_27 = arith.constant 0 : index
    %50 = vector.load %arg4[%c5, %c0_26, %c0_27] : memref<9x128x32xbf16, #tpu.memory_space<vmem>>, vector<1x128x32xbf16>
    %51 = vector.shape_cast %50 : vector<1x128x32xbf16> to vector<128x32xbf16>
    %cst_28 = arith.constant dense<0.000000e+00> : vector<8x32xf32>
    %52 = tpu.matmul %49, %51, %cst_28 {dimension_numbers = #tpu.dot_dimension_numbers<[1], [0], [0], [1], [0, 0, 1, 1], [], []>} : vector<8x128xbf16>, vector<128x32xbf16>, vector<8x32xf32> -> vector<8x32xf32>
    %53 = arith.addf %46, %52 : vector<8x32xf32>
    %54 = vector.extract_strided_slice %10 {offsets = [2, 0, 0], sizes = [1, 8, 128], strides = [1, 1, 1]} : vector<3x10x128xf32> to vector<1x8x128xf32>
    %55 = vector.shape_cast %54 : vector<1x8x128xf32> to vector<8x128xf32>
    %56 = arith.truncf %55 : vector<8x128xf32> to vector<8x128xbf16>
    %c6 = arith.constant 6 : index
    %c0_29 = arith.constant 0 : index
    %c0_30 = arith.constant 0 : index
    %57 = vector.load %arg4[%c6, %c0_29, %c0_30] : memref<9x128x32xbf16, #tpu.memory_space<vmem>>, vector<1x128x32xbf16>
    %58 = vector.shape_cast %57 : vector<1x128x32xbf16> to vector<128x32xbf16>
    %cst_31 = arith.constant dense<0.000000e+00> : vector<8x32xf32>
    %59 = tpu.matmul %56, %58, %cst_31 {dimension_numbers = #tpu.dot_dimension_numbers<[1], [0], [0], [1], [0, 0, 1, 1], [], []>} : vector<8x128xbf16>, vector<128x32xbf16>, vector<8x32xf32> -> vector<8x32xf32>
    %60 = arith.addf %53, %59 : vector<8x32xf32>
    %61 = vector.extract_strided_slice %10 {offsets = [2, 1, 0], sizes = [1, 8, 128], strides = [1, 1, 1]} : vector<3x10x128xf32> to vector<1x8x128xf32>
    %62 = vector.shape_cast %61 : vector<1x8x128xf32> to vector<8x128xf32>
    %63 = arith.truncf %62 : vector<8x128xf32> to vector<8x128xbf16>
    %c7 = arith.constant 7 : index
    %c0_32 = arith.constant 0 : index
    %c0_33 = arith.constant 0 : index
    %64 = vector.load %arg4[%c7, %c0_32, %c0_33] : memref<9x128x32xbf16, #tpu.memory_space<vmem>>, vector<1x128x32xbf16>
    %65 = vector.shape_cast %64 : vector<1x128x32xbf16> to vector<128x32xbf16>
    %cst_34 = arith.constant dense<0.000000e+00> : vector<8x32xf32>
    %66 = tpu.matmul %63, %65, %cst_34 {dimension_numbers = #tpu.dot_dimension_numbers<[1], [0], [0], [1], [0, 0, 1, 1], [], []>} : vector<8x128xbf16>, vector<128x32xbf16>, vector<8x32xf32> -> vector<8x32xf32>
    %67 = arith.addf %60, %66 : vector<8x32xf32>
    %68 = vector.extract_strided_slice %10 {offsets = [2, 2, 0], sizes = [1, 8, 128], strides = [1, 1, 1]} : vector<3x10x128xf32> to vector<1x8x128xf32>
    %69 = vector.shape_cast %68 : vector<1x8x128xf32> to vector<8x128xf32>
    %70 = arith.truncf %69 : vector<8x128xf32> to vector<8x128xbf16>
    %c8 = arith.constant 8 : index
    %c0_35 = arith.constant 0 : index
    %c0_36 = arith.constant 0 : index
    %71 = vector.load %arg4[%c8, %c0_35, %c0_36] : memref<9x128x32xbf16, #tpu.memory_space<vmem>>, vector<1x128x32xbf16>
    %72 = vector.shape_cast %71 : vector<1x128x32xbf16> to vector<128x32xbf16>
    %cst_37 = arith.constant dense<0.000000e+00> : vector<8x32xf32>
    %73 = tpu.matmul %70, %72, %cst_37 {dimension_numbers = #tpu.dot_dimension_numbers<[1], [0], [0], [1], [0, 0, 1, 1], [], []>} : vector<8x128xbf16>, vector<128x32xbf16>, vector<8x32xf32> -> vector<8x32xf32>
    %74 = arith.addf %67, %73 : vector<8x32xf32>
    %75 = vector.shape_cast %74 : vector<8x32xf32> to vector<1x1x8x32xf32>
    %76 = arith.truncf %75 : vector<1x1x8x32xf32> to vector<1x1x8x32xbf16>
    %c0_38 = arith.constant 0 : index
    %c0_39 = arith.constant 0 : index
    %c0_40 = arith.constant 0 : index
    %c0_41 = arith.constant 0 : index
    %77 = vector.load %arg5[%c0_38, %c0_39, %c0_40, %c0_41] : memref<1x1x8x32xbf16, #tpu.memory_space<vmem>>, vector<1x1x8x32xbf16>
    tpu.vector_store %arg5[%c0_38, %c0_39, %c0_40, %c0_41], %76 {strides = array<i32>} : memref<1x1x8x32xbf16, #tpu.memory_space<vmem>>, vector<1x1x8x32xbf16>,
    return
  }
  func.func @transform_0(%arg0: i32) -> (i32, i32, i32, i32) {
    %c0_i32 = arith.constant 0 : i32
    %c0_i32_0 = arith.constant 0 : i32
    %c0_i32_1 = arith.constant 0 : i32
    %c0_i32_2 = arith.constant 0 : i32
    return %arg0, %c0_i32, %c0_i32_0, %c0_i32_1 : i32, i32, i32, i32
  }
  func.func @transform_1(%arg0: i32) -> (i32, i32, i32) {
    %c0_i32 = arith.constant 0 : i32
    %c0_i32_0 = arith.constant 0 : i32
    %c0_i32_1 = arith.constant 0 : i32
    %c0_i32_2 = arith.constant 0 : i32
    return %c0_i32, %c0_i32_0, %c0_i32_1 : i32, i32, i32
  }
  func.func @transform_2(%arg0: i32) -> (i32, i32, i32) {
    %c0_i32 = arith.constant 0 : i32
    %c0_i32_0 = arith.constant 0 : i32
    %c0_i32_1 = arith.constant 0 : i32
    %c0_i32_2 = arith.constant 0 : i32
    return %c0_i32, %c0_i32_0, %c0_i32_1 : i32, i32, i32
  }
  func.func @transform_3(%arg0: i32) -> (i32, i32, i32) {
    %c0_i32 = arith.constant 0 : i32
    %c0_i32_0 = arith.constant 0 : i32
    %c0_i32_1 = arith.constant 0 : i32
    %c0_i32_2 = arith.constant 0 : i32
    return %c0_i32, %c0_i32_0, %c0_i32_1 : i32, i32, i32
  }
  func.func @transform_4(%arg0: i32) -> (i32, i32, i32, i32) {
    %c0_i32 = arith.constant 0 : i32
    %c0_i32_0 = arith.constant 0 : i32
    %c0_i32_1 = arith.constant 0 : i32
    %c0_i32_2 = arith.constant 0 : i32
    return %arg0, %c0_i32, %c0_i32_0, %c0_i32_1 : i32, i32, i32, i32
  }
}

module attributes {stable_mosaic.version = 11 : i64} {
  func.func @_head_kernel(%arg0: i32, %arg1: memref<2x1x128xbf16, #tpu.memory_space<vmem>>, %arg2: memref<1x1x128xf32, #tpu.memory_space<vmem>>, %arg3: memref<1x1x128xf32, #tpu.memory_space<vmem>>, %arg4: memref<128x128xbf16, #tpu.memory_space<vmem>>, %arg5: memref<1x128xf32, #tpu.memory_space<vmem>>, %arg6: memref<2x128xf32, #tpu.memory_space<vmem>>) attributes {dimension_semantics = [#tpu.dimension_semantics<parallel>], iteration_bounds = array<i64: 1>, scalar_prefetch = 0 : i64, scratch_operands = 0 : i64, tpu.core_type = #tpu.core_type<tc>, window_params = [{transform_indices = @transform_0, window_bounds = array<i64: 2, 1, 128>}, {pipeline_mode = #tpu.pipeline_mode<synchronous>, transform_indices = @transform_1, window_bounds = array<i64: 1, 1, 128>}, {pipeline_mode = #tpu.pipeline_mode<synchronous>, transform_indices = @transform_2, window_bounds = array<i64: 1, 1, 128>}, {pipeline_mode = #tpu.pipeline_mode<synchronous>, transform_indices = @transform_3, window_bounds = array<i64: 128, 128>}, {pipeline_mode = #tpu.pipeline_mode<synchronous>, transform_indices = @transform_4, window_bounds = array<i64: 1, 128>}, {transform_indices = @transform_5, window_bounds = array<i64: 2, 128>}]} {
    %c0 = arith.constant 0 : index
    %c0_0 = arith.constant 0 : index
    %c0_1 = arith.constant 0 : index
    %0 = vector.load %arg1[%c0, %c0_0, %c0_1] : memref<2x1x128xbf16, #tpu.memory_space<vmem>>, vector<2x1x128xbf16>
    %1 = arith.extf %0 : vector<2x1x128xbf16> to vector<2x1x128xf32>
    %c0_2 = arith.constant 0 : index
    %c0_3 = arith.constant 0 : index
    %c0_4 = arith.constant 0 : index
    %2 = vector.load %arg2[%c0_2, %c0_3, %c0_4] : memref<1x1x128xf32, #tpu.memory_space<vmem>>, vector<1x1x128xf32>
    %3 = vector.broadcast %2 : vector<1x1x128xf32> to vector<2x1x128xf32>
    %4 = arith.mulf %1, %3 : vector<2x1x128xf32>
    %c0_5 = arith.constant 0 : index
    %c0_6 = arith.constant 0 : index
    %c0_7 = arith.constant 0 : index
    %5 = vector.load %arg3[%c0_5, %c0_6, %c0_7] : memref<1x1x128xf32, #tpu.memory_space<vmem>>, vector<1x1x128xf32>
    %6 = vector.broadcast %5 : vector<1x1x128xf32> to vector<2x1x128xf32>
    %7 = arith.addf %4, %6 : vector<2x1x128xf32>
    %cst = arith.constant 0.000000e+00 : f32
    %8 = vector.broadcast %cst : f32 to vector<2x1x128xf32>
    %9 = arith.maximumf %7, %8 : vector<2x1x128xf32>
    %cst_8 = arith.constant dense<0.000000e+00> : vector<2x128xf32>
    %10 = vector.multi_reduction <add>, %9, %cst_8 [1] : vector<2x1x128xf32> to vector<2x128xf32>
    %cst_9 = arith.constant 1.000000e+00 : f32
    %11 = vector.broadcast %cst_9 : f32 to vector<2x128xf32>
    %12 = arith.divf %10, %11 : vector<2x128xf32>
    %13 = arith.truncf %12 : vector<2x128xf32> to vector<2x128xbf16>
    %c0_10 = arith.constant 0 : index
    %c0_11 = arith.constant 0 : index
    %14 = vector.load %arg4[%c0_10, %c0_11] : memref<128x128xbf16, #tpu.memory_space<vmem>>, vector<128x128xbf16>
    %cst_12 = arith.constant dense<0.000000e+00> : vector<2x128xf32>
    %15 = tpu.matmul %13, %14, %cst_12 {dimension_numbers = #tpu.dot_dimension_numbers<[1], [0], [0], [1], [0, 0, 1, 1], [], []>} : vector<2x128xbf16>, vector<128x128xbf16>, vector<2x128xf32> -> vector<2x128xf32>
    %c0_13 = arith.constant 0 : index
    %c0_14 = arith.constant 0 : index
    %16 = vector.load %arg5[%c0_13, %c0_14] : memref<1x128xf32, #tpu.memory_space<vmem>>, vector<1x128xf32>
    %17 = vector.broadcast %16 : vector<1x128xf32> to vector<2x128xf32>
    %18 = arith.addf %15, %17 : vector<2x128xf32>
    %19 = arith.mulf %18, %18 : vector<2x128xf32>
    %cst_15 = arith.constant dense<0.000000e+00> : vector<2xf32>
    %20 = vector.multi_reduction <add>, %19, %cst_15 [1] : vector<2x128xf32> to vector<2xf32>
    %21 = vector.shape_cast %20 : vector<2xf32> to vector<2x1xf32>
    %cst_16 = arith.constant 1.000000e-24 : f32
    %22 = vector.broadcast %cst_16 : f32 to vector<2x1xf32>
    %23 = arith.maximumf %21, %22 : vector<2x1xf32>
    %24 = math.rsqrt %23 : vector<2x1xf32>
    %25 = vector.broadcast %24 : vector<2x1xf32> to vector<2x128xf32>
    %26 = arith.mulf %18, %25 : vector<2x128xf32>
    %c0_17 = arith.constant 0 : index
    %c0_18 = arith.constant 0 : index
    %27 = vector.load %arg6[%c0_17, %c0_18] : memref<2x128xf32, #tpu.memory_space<vmem>>, vector<2x128xf32>
    tpu.vector_store %arg6[%c0_17, %c0_18], %26 {strides = array<i32>} : memref<2x128xf32, #tpu.memory_space<vmem>>, vector<2x128xf32>,
    return
  }
  func.func @transform_0(%arg0: i32) -> (i32, i32, i32) {
    %c0_i32 = arith.constant 0 : i32
    %c0_i32_0 = arith.constant 0 : i32
    %c0_i32_1 = arith.constant 0 : i32
    return %arg0, %c0_i32, %c0_i32_0 : i32, i32, i32
  }
  func.func @transform_1(%arg0: i32) -> (i32, i32, i32) {
    %c0_i32 = arith.constant 0 : i32
    %c0_i32_0 = arith.constant 0 : i32
    %c0_i32_1 = arith.constant 0 : i32
    %c0_i32_2 = arith.constant 0 : i32
    return %c0_i32, %c0_i32_0, %c0_i32_1 : i32, i32, i32
  }
  func.func @transform_2(%arg0: i32) -> (i32, i32, i32) {
    %c0_i32 = arith.constant 0 : i32
    %c0_i32_0 = arith.constant 0 : i32
    %c0_i32_1 = arith.constant 0 : i32
    %c0_i32_2 = arith.constant 0 : i32
    return %c0_i32, %c0_i32_0, %c0_i32_1 : i32, i32, i32
  }
  func.func @transform_3(%arg0: i32) -> (i32, i32) {
    %c0_i32 = arith.constant 0 : i32
    %c0_i32_0 = arith.constant 0 : i32
    %c0_i32_1 = arith.constant 0 : i32
    return %c0_i32, %c0_i32_0 : i32, i32
  }
  func.func @transform_4(%arg0: i32) -> (i32, i32) {
    %c0_i32 = arith.constant 0 : i32
    %c0_i32_0 = arith.constant 0 : i32
    %c0_i32_1 = arith.constant 0 : i32
    return %c0_i32, %c0_i32_0 : i32, i32
  }
  func.func @transform_5(%arg0: i32) -> (i32, i32) {
    %c0_i32 = arith.constant 0 : i32
    %c0_i32_0 = arith.constant 0 : i32
    return %arg0, %c0_i32 : i32, i32
  }
}

</mosaic_0001>

<bundles_post_ra>
// kernel: _lambda_.22
= control target key start
LH: loop header
LB: loop body
LE: loop exit
PB: predicated region body
PF: predicated region fallthrough
CT: control target
= control target key end

     0   :  { %vm152_vm0 = vcmask 523264   ;;  %s673_s3 = inlined_call_operand.vmem [shape: bf16[64,128], index: 3, kind: input, shape index: {}]   ;;  %s674_s0 = inlined_call_operand.vmem [shape: bf16[128,64], index: 0, kind: input, shape index: {}]   ;;  %s675_s1 = inlined_call_operand.vmem [shape: f32[1,64], index: 1, kind: input, shape index: {}]   ;;  %s676_s2 = inlined_call_operand.vmem [shape: f32[1,64], index: 2, kind: input, shape index: {}]   ;;  %s677_s4 = inlined_call_operand.vmem [shape: bf16[128,128], index: 4, kind: output, shape index: {}]  }
   0x1   :  { %v534_v0 = vld [vmem:[%s673_s3] sm:$0xff]   ;;  %v535_v1 = vld [vmem:[%s673_s3 + $0x8] sm:$0xff]   ;;  %v536_v2 = vld [vmem:[%s673_s3 + $0x10] sm:$0xff]  }
   0x2   :  { %502 = vmatprep.subr.bf16.mxu0 %v534_v0  ;;  %526 = vmatprep.subr.bf16.mxu1 %v534_v0  ;;  %v405_v3 = vld [vmem:[%s674_s0] sm:$0xff]   ;;  %v476_v8 = vld [vmem:[%s674_s0 + $0x8] sm:$0xff]   ;;  %v477_v15 = vld [vmem:[%s674_s0 + $0x10] sm:$0xff]  }
   0x3   :  { %503 = vmatpush3.bf16.msra.mxu0 %v534_v0  ;;  %530 = vmatpush3.bf16.msra.mxu1 %v534_v0  ;;  %v578_v4 = vld [vmem:[%s675_s1] ss:$0 sm:$0xff]  ;;  %v406_v5 = vunpack.c.l.bf16 %v405_v3  ;;  %v407_v6 = vunpack.c.h.bf16 %v405_v3  ;;  %v480_v9 = vld [vmem:[%s674_s0 + $0x28] sm:$0xff]   ;;  %v410_v13 = vunpack.c.l.bf16 %v476_v8  ;;  %v411_v14 = vunpack.c.h.bf16 %v476_v8  ;;  %v537_v20 = vld [vmem:[%s673_s3 + $0x18] sm:$0xff]  }
   0x4   :  { %504 = vmatprep.subr.bf16.mxu0 %v535_v1  ;;  %527 = vmatprep.subr.bf16.mxu1 %v535_v1  ;;  %v479_v7 = vld [vmem:[%s674_s0 + $0x20] sm:$0xff]   ;;  %v426_v18 = vunpack.c.l.bf16 %v480_v9  ;;  %v427_v19 = vunpack.c.h.bf16 %v480_v9  ;;  %v414_v24 = vunpack.c.l.bf16 %v477_v15  ;;  %v481_v37 = vld [vmem:[%s674_s0 + $0x30] sm:$0xff]   ;;  %v478_v42 = vld [vmem:[%s674_s0 + $0x18] sm:$0xff]   ;;  %v415_v46 = vunpack.c.h.bf16 %v477_v15 }
   0x5   :  { %v592_v10 = vld [vmem:[%s676_s2] ss:$0 sm:$0xff]  ;;  %v422_v11 = vunpack.c.l.bf16 %v479_v7  ;;  %v423_v12 = vunpack.c.h.bf16 %v479_v7  ;;  %v57_v16 = vmul.f32 %v406_v5, %v578_v4  ;;  %v58_v17 = vmul.f32 %v407_v6, %v578_v4  ;;  %v482_v51 = vld [vmem:[%s674_s0 + $0x38] sm:$0xff]  }
   0x6   :  { %v59_v23 = vmul.f32 %v410_v13, %v578_v4  ;;  %v60_v27 = vmul.f32 %v411_v14, %v578_v4  ;;  %v67_v28 = vmul.f32 %v426_v18, %v578_v4  ;;  %v68_v32 = vmul.f32 %v427_v19, %v578_v4 }
   0x7   :  { %505 = vmatpush3.bf16.msra.mxu0 %v535_v1  ;;  %531 = vmatpush3.bf16.msra.mxu1 %v535_v1  ;;  %v65_v21 = vmul.f32 %v422_v11, %v578_v4  ;;  %v66_v22 = vmul.f32 %v423_v12, %v578_v4  ;;  %v80_v25 = vadd.f32 %v592_v10, %v57_v16  ;;  %v430_v50 = vunpack.c.l.bf16 %v481_v37 }
   0x8   :  { %506 = vmatprep.subr.bf16.mxu0 %v536_v2  ;;  %528 = vmatprep.subr.bf16.mxu1 %v536_v2  ;;  %v81_v26 = vadd.f32 %v592_v10, %v58_v17  ;;  %v82_v31 = vadd.f32 %v592_v10, %v59_v23  ;;  %v83_v35 = vadd.f32 %v592_v10, %v60_v27  ;;  %v431_v54 = vunpack.c.h.bf16 %v481_v37 }
   0x9   :  { %v88_v29 = vadd.f32 %v592_v10, %v65_v21  ;;  %v89_v30 = vadd.f32 %v592_v10, %v66_v22  ;;  %v96_v33 = vmax.f32 %v80_v25, 0.0  ;;  %v90_v36 = vadd.f32 %v592_v10, %v67_v28 }
   0xa   :  { %v97_v34 = vmax.f32 %v81_v26, 0.0  ;;  %v98_v40 = vmax.f32 %v82_v31, 0.0  ;;  %v91_v41 = vadd.f32 %v592_v10, %v68_v32  ;;  %v99_v44 = vmax.f32 %v83_v35, 0.0 }
   0xb   :  { %507 = vmatpush3.bf16.msra.mxu0 %v536_v2  ;;  %532 = vmatpush3.bf16.msra.mxu1 %v536_v2  ;;  %v104_v38 = vmax.f32 %v88_v29, 0.0  ;;  %v105_v39 = vmax.f32 %v89_v30, 0.0  ;;  %v106_v45 = vmax.f32 %v90_v36, 0.0  ;;  %v61_v49 = vmul.f32 %v414_v24, %v578_v4 }
   0xc   :  { %508 = vmatprep.subr.bf16.mxu0 %v537_v20  ;;  %529 = vmatprep.subr.bf16.mxu1 %v537_v20  ;;  %v112_v43 = vpack.c.bf16 %v97_v34, %v96_v33  ;;  %v107_v48 = vmax.f32 %v91_v41, 0.0  ;;  %v113_v52 = vpack.c.bf16 %v99_v44, %v98_v40  ;;  %v62_v53 = vmul.f32 %v415_v46, %v578_v4 }
   0xd   :  { %v116_v47 = vpack.c.bf16 %v105_v39, %v104_v38  ;;  %v418_v55 = vunpack.c.l.bf16 %v478_v42  ;;  %v84_v57 = vadd.f32 %v592_v10, %v61_v49  ;;  %v69_v58 = vmul.f32 %v430_v50, %v578_v4 }
   0xe   :  { %510 = vmatprep.mubr.msk.bf16.mxu0 %vm152_vm0, %v112_v43  ;;  %v117_v56 = vpack.c.bf16 %v107_v48, %v106_v45  ;;  %v419_v59 = vunpack.c.h.bf16 %v478_v42  ;;  %v85_v60 = vadd.f32 %v592_v10, %v62_v53  ;;  %v70_v61 = vmul.f32 %v431_v54, %v578_v4 }
   0xf   :  { %509 = vmatpush3.bf16.msra.mxu0 %v537_v20  ;;  %533 = vmatpush3.bf16.msra.mxu1 %v537_v20  ;;  %v63_v62 = vmul.f32 %v418_v55, %v578_v4  ;;  %v434_v63 = vunpack.c.l.bf16 %v482_v51  ;;  %v100_v0 = vmax.f32 %v84_v57, 0.0  ;;  %v92_v1 = vadd.f32 %v592_v10, %v69_v58 }
  0x10   :  { %518 = vmatprep.mubr.msk.bf16.mxu1 %vm152_vm0, %v116_v47  ;;  %v64_v2 = vmul.f32 %v419_v59, %v578_v4  ;;  %v435_v3 = vunpack.c.h.bf16 %v482_v51  ;;  %v101_v5 = vmax.f32 %v85_v60, 0.0  ;;  %v93_v6 = vadd.f32 %v592_v10, %v70_v61 }
  0x11   :  { %v86_v7 = vadd.f32 %v592_v10, %v63_v62  ;;  %v71_v8 = vmul.f32 %v434_v63, %v578_v4  ;;  %v108_v9 = vmax.f32 %v92_v1, 0.0 }
  0x12   :  { %511 = vmatmul.mubr.msk.bf16.vlgmr.msra.gmra.mrb[0].mxu0 %vm152_vm0, %v113_v52  ;;  %519 = vmatmul.mubr.msk.bf16.vlgmr.msra.gmra.mrb[0].mxu1 %vm152_vm0, %v117_v56  ;;  %v87_v11 = vadd.f32 %v592_v10, %v64_v2  ;;  %v72_v12 = vmul.f32 %v435_v3, %v578_v4  ;;  %v114_v13 = vpack.c.bf16 %v101_v5, %v100_v0  ;;  %v109_v14 = vmax.f32 %v93_v6, 0.0 }
  0x13   :  { %v102_v15 = vmax.f32 %v86_v7, 0.0  ;;  %v94_v16 = vadd.f32 %v592_v10, %v71_v8 }
  0x14   :  { %v103_v17 = vmax.f32 %v87_v11, 0.0  ;;  %v95_v18 = vadd.f32 %v592_v10, %v72_v12  ;;  %514 = vmatprep.mubr.msk.bf16.mxu0 %vm152_vm0, %v114_v13  ;;  %v118_v19 = vpack.c.bf16 %v109_v14, %v108_v9 }
  0x15   :  { %v110_v20 = vmax.f32 %v94_v16, 0.0 }
  0x16   :  { %v115_v21 = vpack.c.bf16 %v103_v17, %v102_v15  ;;  %v111_v22 = vmax.f32 %v95_v18, 0.0  ;;  %522 = vmatprep.mubr.msk.bf16.mxu1 %vm152_vm0, %v118_v19 }
  0x18   :  { %v119_v23 = vpack.c.bf16 %v111_v22, %v110_v20 }
  0x1a   :  { %515 = vmatmul.mubr.msk.bf16.gmra.mrb[4].mxu0 %vm152_vm0, %v115_v21  ;;  %523 = vmatmul.mubr.msk.bf16.gmra.mrb[4].mxu1 %vm152_vm0, %v119_v23 }
  0xe5   :  { %v512_v4 = vpop.f32.mrb[0].mxu0  ;;  %v520_v24 = vpop.f32.mrb[0].mxu1 }
  0xe6   :  { %v211_v25 = vpop.f32.mrb[1].mxu0  ;;  %v243_v26 = vpop.f32.mrb[1].mxu1 }
  0xe7   :  { %v513_v27 = vpop.f32.mrb[2].mxu0  ;;  %v521_v28 = vpop.f32.mrb[2].mxu1 }
  0xe8   :  { %v444_v10 = vpack.c.bf16 %v513_v27, %v512_v4  ;;  %v464_v29 = vpack.c.bf16 %v521_v28, %v520_v24  ;;  %v214_v30 = vpop.f32.mrb[3].mxu0  ;;  %v246_v31 = vpop.f32.mrb[3].mxu1 }
  0xe9   :  { %v439_v32 = vpack.c.bf16 %v214_v30, %v211_v25  ;;  %v459_v33 = vpack.c.bf16 %v246_v31, %v243_v26 }
  0xea   :  { %483 = vst [vmem:[%s677_s4 + $0x8] sm:$0xff] %v444_v10   ;;  %487 = vst [vmem:[%s677_s4 + $0x28] sm:$0xff] %v464_v29  }
  0xeb   :  { %440 = vst [vmem:[%s677_s4] sm:$0xff] %v439_v32   ;;  %486 = vst [vmem:[%s677_s4 + $0x20] sm:$0xff] %v459_v33  }
  0xed   :  { %v516_v34 = vpop.f32.mrb[4].mxu0  ;;  %v524_v36 = vpop.f32.mrb[4].mxu1 }
  0xee   :  { %v227_v35 = vpop.f32.mrb[5].mxu0  ;;  %v259_v38 = vpop.f32.mrb[5].mxu1 }
  0xef   :  { %v517_v37 = vpop.f32.mrb[6].mxu0  ;;  %v525_v41 = vpop.f32.mrb[6].mxu1 }
  0xf0   :  { %v454_v39 = vpack.c.bf16 %v517_v37, %v516_v34  ;;  %v230_v40 = vpop.f32.mrb[7].mxu0  ;;  %v474_v43 = vpack.c.bf16 %v525_v41, %v524_v36  ;;  %v262_v44 = vpop.f32.mrb[7].mxu1 }
  0xf1   :  { %v449_v42 = vpack.c.bf16 %v230_v40, %v227_v35  ;;  %v469_v45 = vpack.c.bf16 %v262_v44, %v259_v38 }
  0xf2   :  { %485 = vst [vmem:[%s677_s4 + $0x18] sm:$0xff] %v454_v39   ;;  %489 = vst [vmem:[%s677_s4 + $0x38] sm:$0xff] %v474_v43  }
  0xf3   :  { %484 = vst [vmem:[%s677_s4 + $0x10] sm:$0xff] %v449_v42   ;;  %488 = vst [vmem:[%s677_s4 + $0x30] sm:$0xff] %v469_v45  }

// kernel: _lambda_.21
= control target key start
LH: loop header
LB: loop body
LE: loop exit
PB: predicated region body
PF: predicated region fallthrough
CT: control target
= control target key end

     0   :  { %v1734_v0 = vmov 0   ;;  %vm446_vm0 = vcmask 154624   ;;  %vm543_vm1 = vcmask 1040384   ;;  %vm544_vm2 = vcmask 1041408   ;;  %s2409_s1 = inlined_call_operand.vmem [shape: bf16[147,64], index: 1, kind: input, shape index: {}]   ;;  %s2410_s0 = inlined_call_operand.vmem [shape: bf16[512,147], index: 0, kind: input, shape index: {}]   ;;  %s2411_s2 = inlined_call_operand.vmem [shape: f32[1,64], index: 2, kind: input, shape index: {}]   ;;  %s2412_s3 = inlined_call_operand.vmem [shape: f32[1,64], index: 3, kind: input, shape index: {}]   ;;  %s2413_s4 = inlined_call_operand.vmem [shape: bf16[512,64], index: 4, kind: output, shape index: {}]  }
   0x1   :  { %550 = vmatprep.subr.bf16.mxu0 %v1734_v0  ;;  %1606 = vmatprep.subr.bf16.mxu1 %v1734_v0  ;;  %v1628_v1 = vld [vmem:[%s2409_s1] sm:$0xff]   ;;  %v1629_v2 = vld [vmem:[%s2409_s1 + $0x8] sm:$0xff]   ;;  %v1630_v3 = vld [vmem:[%s2409_s1 + $0x10] sm:$0xff]   ;;  %v1735_v11 = vmov 65535   ;;  %vm1301_vm3 = vcmask 519168  }
   0x2   :  { %551 = vmatpush1.bf16.msra.mxu0 %v1628_v1  ;;  %1616 = vmatpush1.bf16.msra.mxu1 %v1628_v1  ;;  %v1631_v4 = vld [vmem:[%s2409_s1 + $0x18] sm:$0xff]   ;;  %v1640_v5 = vld [vmem:[%s2410_s0 + $0x4] ss:$8 sps:$4 sm:$0xff]   ;;  %v1634_v9 = vld [vmem:[%s2409_s1 + $0x30] sm:$0xff]   ;;  %v545_v12 = vsel %vm543_vm1, 4294967295, %v1735_v11 }
   0x3   :  { %552 = vmatprep.subr.bf16.mxu0 %v1734_v0  ;;  %1607 = vmatprep.subr.bf16.mxu1 %v1734_v0  ;;  %v1643_v6 = vld [vmem:[%s2410_s0 + $0x104] ss:$8 sps:$4 sm:$0xff]   ;;  %v1635_v10 = vld [vmem:[%s2409_s1 + $0x38] sm:$0xff]   ;;  %v1637_v14 = vld [vmem:[%s2409_s1 + $0x48] ss:$0 sps:$4 sm:$0x33]  }
   0x4   :  { %1444 = vmatprep.mubr.msk.bf16.mxu0 %vm446_vm0, %v1640_v5  ;;  %v1632_v7 = vld [vmem:[%s2409_s1 + $0x20] sm:$0xff]   ;;  %1460 = vmatprep.mubr.msk.bf16.mxu1 %vm446_vm0, %v1643_v6  ;;  %v1633_v8 = vld [vmem:[%s2409_s1 + $0x28] sm:$0xff]   ;;  %v546_v15 = vsel %vm544_vm2, %v545_v12, 0  ;;  %v1644_v19 = vld [vmem:[%s2410_s0 + $0x14] ss:$8 sps:$4 sm:$0xff]  }
   0x5   :  { %v1636_v13 = vld [vmem:[%s2409_s1 + $0x40] sm:$0xff]   ;;  %v548_v16 = vand.u32 %v1637_v14, %v546_v15  ;;  %v1646_v20 = vld [vmem:[%s2410_s0 + $0x114] ss:$8 sps:$4 sm:$0xff]   ;;  %v1648_v21 = vld [vmem:[%s2410_s0 + $0x10] ss:$8 sps:$4 sm:$0xff]  }
   0x6   :  { %553 = vmatpush1.bf16.msra.mxu0 %v1629_v2  ;;  %1617 = vmatpush1.bf16.msra.mxu1 %v1629_v2  ;;  %v1638_v17 = vld [vmem:[%s2410_s0] ss:$8 sps:$4 sm:$0xff]   ;;  %v1649_v22 = vld [vmem:[%s2410_s0 + $0x110] ss:$8 sps:$4 sm:$0xff]   ;;  %v1650_v23 = vld [vmem:[%s2410_s0 + $0x24] ss:$8 sps:$4 sm:$0xff]  }
   0x7   :  { %554 = vmatprep.subr.bf16.mxu0 %v1734_v0  ;;  %1608 = vmatprep.subr.bf16.mxu1 %v1734_v0  ;;  %v1641_v18 = vld [vmem:[%s2410_s0 + $0x100] ss:$8 sps:$4 sm:$0xff]   ;;  %v1652_v24 = vld [vmem:[%s2410_s0 + $0x124] ss:$8 sps:$4 sm:$0xff]   ;;  %v1656_v27 = vld [vmem:[%s2410_s0 + $0x34] ss:$8 sps:$4 sm:$0xff]  }
   0x8   :  { %v1654_v25 = vld [vmem:[%s2410_s0 + $0x20] ss:$8 sps:$4 sm:$0xff]   ;;  %v1658_v28 = vld [vmem:[%s2410_s0 + $0x134] ss:$8 sps:$4 sm:$0xff]   ;;  %v1660_v29 = vld [vmem:[%s2410_s0 + $0x30] ss:$8 sps:$4 sm:$0xff]  }
   0x9   :  { %v1655_v26 = vld [vmem:[%s2410_s0 + $0x120] ss:$8 sps:$4 sm:$0xff]   ;;  %v1661_v30 = vld [vmem:[%s2410_s0 + $0x130] ss:$8 sps:$4 sm:$0xff]   ;;  %v1662_v31 = vld [vmem:[%s2410_s0 + $0x44] ss:$8 sps:$4 sm:$0xff]  }
   0xa   :  { %555 = vmatpush1.bf16.msra.mxu0 %v1630_v3  ;;  %1618 = vmatpush1.bf16.msra.mxu1 %v1630_v3  ;;  %v1664_v32 = vld [vmem:[%s2410_s0 + $0x144] ss:$8 sps:$4 sm:$0xff]   ;;  %v1666_v33 = vld [vmem:[%s2410_s0 + $0x40] ss:$8 sps:$4 sm:$0xff]   ;;  %v1668_v35 = vld [vmem:[%s2410_s0 + $0x54] ss:$8 sps:$4 sm:$0xff]  }
   0xb   :  { %556 = vmatprep.subr.bf16.mxu0 %v1734_v0  ;;  %1609 = vmatprep.subr.bf16.mxu1 %v1734_v0  ;;  %v1667_v34 = vld [vmem:[%s2410_s0 + $0x140] ss:$8 sps:$4 sm:$0xff]   ;;  %v1670_v36 = vld [vmem:[%s2410_s0 + $0x154] ss:$8 sps:$4 sm:$0xff]   ;;  %v1672_v37 = vld [vmem:[%s2410_s0 + $0x50] ss:$8 sps:$4 sm:$0xff]  }
   0xc   :  { %v1673_v38 = vld [vmem:[%s2410_s0 + $0x150] ss:$8 sps:$4 sm:$0xff]   ;;  %v1674_v39 = vld [vmem:[%s2410_s0 + $0x64] ss:$8 sps:$4 sm:$0xff]   ;;  %v1678_v41 = vld [vmem:[%s2410_s0 + $0x60] ss:$8 sps:$4 sm:$0xff]  }
   0xd   :  { %v1676_v40 = vld [vmem:[%s2410_s0 + $0x164] ss:$8 sps:$4 sm:$0xff]   ;;  %v1679_v42 = vld [vmem:[%s2410_s0 + $0x160] ss:$8 sps:$4 sm:$0xff]   ;;  %v1680_v43 = vld [vmem:[%s2410_s0 + $0x74] ss:$8 sps:$4 sm:$0xff]  }
   0xe   :  { %557 = vmatpush1.bf16.msra.mxu0 %v1631_v4  ;;  %1619 = vmatpush1.bf16.msra.mxu1 %v1631_v4  ;;  %v1682_v44 = vld [vmem:[%s2410_s0 + $0x174] ss:$8 sps:$4 sm:$0xff]   ;;  %v1684_v45 = vld [vmem:[%s2410_s0 + $0x70] ss:$8 sps:$4 sm:$0xff]   ;;  %v1686_v47 = vld [vmem:[%s2410_s0 + $0x84] ss:$8 sps:$4 sm:$0xff]  }
   0xf   :  { %558 = vmatprep.subr.bf16.mxu0 %v1734_v0  ;;  %1610 = vmatprep.subr.bf16.mxu1 %v1734_v0  ;;  %v1685_v46 = vld [vmem:[%s2410_s0 + $0x170] ss:$8 sps:$4 sm:$0xff]   ;;  %v1688_v48 = vld [vmem:[%s2410_s0 + $0x184] ss:$8 sps:$4 sm:$0xff]   ;;  %v1690_v49 = vld [vmem:[%s2410_s0 + $0x80] ss:$8 sps:$4 sm:$0xff]  }
  0x10   :  { %v1691_v50 = vld [vmem:[%s2410_s0 + $0x180] ss:$8 sps:$4 sm:$0xff]   ;;  %v1692_v51 = vld [vmem:[%s2410_s0 + $0x94] ss:$8 sps:$4 sm:$0xff]   ;;  %v1696_v53 = vld [vmem:[%s2410_s0 + $0x90] ss:$8 sps:$4 sm:$0xff]  }
  0x11   :  { %v1694_v52 = vld [vmem:[%s2410_s0 + $0x194] ss:$8 sps:$4 sm:$0xff]   ;;  %v1697_v54 = vld [vmem:[%s2410_s0 + $0x190] ss:$8 sps:$4 sm:$0xff]   ;;  %v1698_v55 = vld [vmem:[%s2410_s0 + $0xa4] ss:$8 sps:$4 sm:$0xff]  }
  0x12   :  { %559 = vmatpush1.bf16.msra.mxu0 %v1632_v7  ;;  %1620 = vmatpush1.bf16.msra.mxu1 %v1632_v7  ;;  %v1700_v56 = vld [vmem:[%s2410_s0 + $0x1a4] ss:$8 sps:$4 sm:$0xff]   ;;  %v1702_v57 = vld [vmem:[%s2410_s0 + $0xa0] ss:$8 sps:$4 sm:$0xff]   ;;  %v1704_v59 = vld [vmem:[%s2410_s0 + $0xb4] ss:$8 sps:$4 sm:$0xff]  }
  0x13   :  { %560 = vmatprep.subr.bf16.mxu0 %v1734_v0  ;;  %1611 = vmatprep.subr.bf16.mxu1 %v1734_v0  ;;  %v1703_v58 = vld [vmem:[%s2410_s0 + $0x1a0] ss:$8 sps:$4 sm:$0xff]   ;;  %v1706_v60 = vld [vmem:[%s2410_s0 + $0x1b4] ss:$8 sps:$4 sm:$0xff]   ;;  %v1708_v61 = vld [vmem:[%s2410_s0 + $0xb0] ss:$8 sps:$4 sm:$0xff]  }
  0x14   :  { %v1709_v62 = vld [vmem:[%s2410_s0 + $0x1b0] ss:$8 sps:$4 sm:$0xff]   ;;  %v1710_v63 = vld [vmem:[%s2410_s0 + $0xc4] ss:$8 sps:$4 sm:$0xff]   ;;  %v1714_v1 = vld [vmem:[%s2410_s0 + $0xc0] ss:$8 sps:$4 sm:$0xff]  }
  0x15   :  { %v1715_v2 = vld [vmem:[%s2410_s0 + $0x1c0] ss:$8 sps:$4 sm:$0xff]   ;;  %v1716_v3 = vld [vmem:[%s2410_s0 + $0xd4] ss:$8 sps:$4 sm:$0xff]   ;;  %v1720_v5 = vld [vmem:[%s2410_s0 + $0xd0] ss:$8 sps:$4 sm:$0xff]  }
  0x16   :  { %561 = vmatpush1.bf16.msra.mxu0 %v1633_v8  ;;  %1621 = vmatpush1.bf16.msra.mxu1 %v1633_v8  ;;  %v1718_v4 = vld [vmem:[%s2410_s0 + $0x1d4] ss:$8 sps:$4 sm:$0xff]   ;;  %v1721_v6 = vld [vmem:[%s2410_s0 + $0x1d0] ss:$8 sps:$4 sm:$0xff]   ;;  %v1722_v7 = vld [vmem:[%s2410_s0 + $0xe4] ss:$8 sps:$4 sm:$0xff]  }
  0x17   :  { %562 = vmatprep.subr.bf16.mxu0 %v1734_v0  ;;  %1612 = vmatprep.subr.bf16.mxu1 %v1734_v0  ;;  %v1724_v8 = vld [vmem:[%s2410_s0 + $0x1e4] ss:$8 sps:$4 sm:$0xff]   ;;  %v1728_v11 = vld [vmem:[%s2410_s0 + $0xf4] ss:$8 sps:$4 sm:$0xff]   ;;  %v1733_v14 = vld [vmem:[%s2410_s0 + $0x1f0] ss:$8 sps:$4 sm:$0xff]  }
  0x18   :  { %v1730_v12 = vld [vmem:[%s2410_s0 + $0x1f4] ss:$8 sps:$4 sm:$0xff]   ;;  %v2018_v15 = vld [vmem:[%s2411_s2] ss:$0 sm:$0xff] }
  0x1a   :  { %563 = vmatpush1.bf16.msra.mxu0 %v1634_v9  ;;  %1622 = vmatpush1.bf16.msra.mxu1 %v1634_v9  ;;  %v1726_v9 = vld [vmem:[%s2410_s0 + $0xe0] ss:$8 sps:$4 sm:$0xff]  }
  0x1b   :  { %564 = vmatprep.subr.bf16.mxu0 %v1734_v0  ;;  %1613 = vmatprep.subr.bf16.mxu1 %v1734_v0 }
  0x1e   :  { %565 = vmatpush1.bf16.msra.mxu0 %v1635_v10  ;;  %1623 = vmatpush1.bf16.msra.mxu1 %v1635_v10  ;;  %v1727_v10 = vld [vmem:[%s2410_s0 + $0x1e0] ss:$8 sps:$4 sm:$0xff]  }
  0x1f   :  { %566 = vmatprep.subr.bf16.mxu0 %v1734_v0  ;;  %1614 = vmatprep.subr.bf16.mxu1 %v1734_v0 }
  0x22   :  { %567 = vmatpush1.bf16.msra.mxu0 %v1636_v13  ;;  %1624 = vmatpush1.bf16.msra.mxu1 %v1636_v13  ;;  %v1732_v13 = vld [vmem:[%s2410_s0 + $0xf0] ss:$8 sps:$4 sm:$0xff]  }
  0x23   :  { %568 = vmatprep.subr.bf16.mxu0 %v1734_v0  ;;  %1615 = vmatprep.subr.bf16.mxu1 %v1734_v0  ;;  %v1712_v0 = vld [vmem:[%s2410_s0 + $0x1c4] ss:$8 sps:$4 sm:$0xff]  }
  0x26   :  { %569 = vmatpush1.bf16.msra.mxu0 %v548_v16  ;;  %1625 = vmatpush1.bf16.msra.mxu1 %v548_v16 }
  0x29   :  { %583 = vmatmul.mubr.bf16.vlgmr.msra.gmra.mrb[0].mxu0 %v1638_v17  ;;  %711 = vmatmul.mubr.bf16.vlgmr.msra.gmra.mrb[0].mxu1 %v1641_v18  ;;  %v2023_v17 = vld [vmem:[%s2412_s3] ss:$0 sm:$0xff] }
  0x2a   :  { %1445 = vmatprep.mubr.msk.bf16.mxu0 %vm446_vm0, %v1644_v19  ;;  %1461 = vmatprep.mubr.msk.bf16.mxu1 %vm446_vm0, %v1646_v20 }
  0x31   :  { %591 = vmatmul.mubr.bf16.gmra.mrb[4].mxu0 %v1648_v21  ;;  %719 = vmatmul.mubr.bf16.gmra.mrb[4].mxu1 %v1649_v22 }
  0x32   :  { %1446 = vmatprep.mubr.msk.bf16.mxu0 %vm446_vm0, %v1650_v23  ;;  %1462 = vmatprep.mubr.msk.bf16.mxu1 %vm446_vm0, %v1652_v24 }
  0x39   :  { %599 = vmatmul.mubr.bf16.gmra.mrb[8].mxu0 %v1654_v25  ;;  %727 = vmatmul.mubr.bf16.gmra.mrb[8].mxu1 %v1655_v26 }
  0x3a   :  { %1447 = vmatprep.mubr.msk.bf16.mxu0 %vm446_vm0, %v1656_v27  ;;  %1463 = vmatprep.mubr.msk.bf16.mxu1 %vm446_vm0, %v1658_v28 }
  0x41   :  { %607 = vmatmul.mubr.bf16.gmra.mrb[12].mxu0 %v1660_v29  ;;  %735 = vmatmul.mubr.bf16.gmra.mrb[12].mxu1 %v1661_v30 }
  0x42   :  { %1448 = vmatprep.mubr.msk.bf16.mxu0 %vm446_vm0, %v1662_v31  ;;  %1464 = vmatprep.mubr.msk.bf16.mxu1 %vm446_vm0, %v1664_v32 }
  0x49   :  { %615 = vmatmul.mubr.bf16.gmra.mrb[16].mxu0 %v1666_v33  ;;  %743 = vmatmul.mubr.bf16.gmra.mrb[16].mxu1 %v1667_v34 }
  0x4a   :  { %1449 = vmatprep.mubr.msk.bf16.mxu0 %vm446_vm0, %v1668_v35  ;;  %1465 = vmatprep.mubr.msk.bf16.mxu1 %vm446_vm0, %v1670_v36 }
  0x51   :  { %623 = vmatmul.mubr.bf16.gmra.mrb[20].mxu0 %v1672_v37  ;;  %751 = vmatmul.mubr.bf16.gmra.mrb[20].mxu1 %v1673_v38 }
  0x52   :  { %1450 = vmatprep.mubr.msk.bf16.mxu0 %vm446_vm0, %v1674_v39  ;;  %1466 = vmatprep.mubr.msk.bf16.mxu1 %vm446_vm0, %v1676_v40 }
  0x59   :  { %631 = vmatmul.mubr.bf16.gmra.mrb[24].mxu0 %v1678_v41  ;;  %759 = vmatmul.mubr.bf16.gmra.mrb[24].mxu1 %v1679_v42 }
  0x5a   :  { %1451 = vmatprep.mubr.msk.bf16.mxu0 %vm446_vm0, %v1680_v43  ;;  %1467 = vmatprep.mubr.msk.bf16.mxu1 %vm446_vm0, %v1682_v44 }
  0x61   :  { %639 = vmatmul.mubr.bf16.gmra.mrb[28].mxu0 %v1684_v45  ;;  %767 = vmatmul.mubr.bf16.gmra.mrb[28].mxu1 %v1685_v46 }
  0x62   :  { %1452 = vmatprep.mubr.msk.bf16.mxu0 %vm446_vm0, %v1686_v47  ;;  %1468 = vmatprep.mubr.msk.bf16.mxu1 %vm446_vm0, %v1688_v48 }
  0x69   :  { %647 = vmatmul.mubr.bf16.gmra.mrb[32].mxu0 %v1690_v49  ;;  %775 = vmatmul.mubr.bf16.gmra.mrb[32].mxu1 %v1691_v50 }
  0x6a   :  { %1453 = vmatprep.mubr.msk.bf16.mxu0 %vm446_vm0, %v1692_v51  ;;  %1469 = vmatprep.mubr.msk.bf16.mxu1 %vm446_vm0, %v1694_v52 }
  0x71   :  { %655 = vmatmul.mubr.bf16.gmra.mrb[36].mxu0 %v1696_v53  ;;  %783 = vmatmul.mubr.bf16.gmra.mrb[36].mxu1 %v1697_v54 }
  0x72   :  { %1454 = vmatprep.mubr.msk.bf16.mxu0 %vm446_vm0, %v1698_v55  ;;  %1470 = vmatprep.mubr.msk.bf16.mxu1 %vm446_vm0, %v1700_v56 }
  0x79   :  { %663 = vmatmul.mubr.bf16.gmra.mrb[40].mxu0 %v1702_v57  ;;  %791 = vmatmul.mubr.bf16.gmra.mrb[40].mxu1 %v1703_v58 }
  0x7a   :  { %1455 = vmatprep.mubr.msk.bf16.mxu0 %vm446_vm0, %v1704_v59  ;;  %1471 = vmatprep.mubr.msk.bf16.mxu1 %vm446_vm0, %v1706_v60 }
  0x81   :  { %671 = vmatmul.mubr.bf16.gmra.mrb[44].mxu0 %v1708_v61  ;;  %799 = vmatmul.mubr.bf16.gmra.mrb[44].mxu1 %v1709_v62 }
  0x82   :  { %1456 = vmatprep.mubr.msk.bf16.mxu0 %vm446_vm0, %v1710_v63  ;;  %1472 = vmatprep.mubr.msk.bf16.mxu1 %vm446_vm0, %v1712_v0 }
  0x89   :  { %679 = vmatmul.mubr.bf16.gmra.mrb[48].mxu0 %v1714_v1  ;;  %807 = vmatmul.mubr.bf16.gmra.mrb[48].mxu1 %v1715_v2 }
  0x8a   :  { %1457 = vmatprep.mubr.msk.bf16.mxu0 %vm446_vm0, %v1716_v3  ;;  %1473 = vmatprep.mubr.msk.bf16.mxu1 %vm446_vm0, %v1718_v4 }
  0x91   :  { %687 = vmatmul.mubr.bf16.gmra.mrb[52].mxu0 %v1720_v5  ;;  %815 = vmatmul.mubr.bf16.gmra.mrb[52].mxu1 %v1721_v6 }
  0x92   :  { %1458 = vmatprep.mubr.msk.bf16.mxu0 %vm446_vm0, %v1722_v7  ;;  %1474 = vmatprep.mubr.msk.bf16.mxu1 %vm446_vm0, %v1724_v8 }
  0x99   :  { %695 = vmatmul.mubr.bf16.gmra.mrb[56].mxu0 %v1726_v9  ;;  %823 = vmatmul.mubr.bf16.gmra.mrb[56].mxu1 %v1727_v10 }
  0x9a   :  { %1459 = vmatprep.mubr.msk.bf16.mxu0 %vm446_vm0, %v1728_v11  ;;  %1475 = vmatprep.mubr.msk.bf16.mxu1 %vm446_vm0, %v1730_v12 }
  0xa1   :  { %703 = vmatmul.mubr.bf16.gmra.mrb[60].mxu0 %v1732_v13  ;;  %831 = vmatmul.mubr.bf16.gmra.mrb[60].mxu1 %v1733_v14 }
  0xfc   :  { %v584_v16 = vpop.f32.mrb[0].mxu0  ;;  %v712_v18 = vpop.f32.mrb[0].mxu1 }
  0xfd   :  { %v846_v19 = vmul.f32 %v2018_v15, %v584_v16  ;;  %v878_v20 = vmul.f32 %v2018_v15, %v712_v18  ;;  %v586_v21 = vpop.f32.mrb[1].mxu0  ;;  %v714_v22 = vpop.f32.mrb[1].mxu1 }
  0xfe   :  { %v587_v23 = vpop.f32.mrb[2].mxu0  ;;  %v715_v24 = vpop.f32.mrb[2].mxu1 }
  0xff   :  { %v917_v25 = vadd.f32 %v2023_v17, %v846_v19  ;;  %v949_v26 = vadd.f32 %v2023_v17, %v878_v20  ;;  %v847_v27 = vmul.f32 %v2018_v15, %v587_v23  ;;  %v879_v28 = vmul.f32 %v2018_v15, %v715_v24  ;;  %v589_v29 = vpop.f32.mrb[3].mxu0  ;;  %v717_v30 = vpop.f32.mrb[3].mxu1 }
 0x101   :  { %v981_v31 = vmax.f32 %v917_v25, 0.0  ;;  %v1013_v32 = vmax.f32 %v949_v26, 0.0  ;;  %v918_v33 = vadd.f32 %v2023_v17, %v847_v27  ;;  %v950_v34 = vadd.f32 %v2023_v17, %v879_v28 }
 0x103   :  { %v1542_v35 = vpack.c.bf16 %v981_v31, %v981_v31  ;;  %v1574_v36 = vpack.c.bf16 %v1013_v32, %v1013_v32  ;;  %v982_v37 = vmax.f32 %v918_v33, 0.0  ;;  %v1014_v38 = vmax.f32 %v950_v34, 0.0 }
 0x104   :  { %v592_v39 = vpop.f32.mrb[4].mxu0  ;;  %v720_v40 = vpop.f32.mrb[4].mxu1 }
 0x105   :  { %1302 = vst.msk [vmem:[%s2413_s4] sm:$0xf] %vm1301_vm3, %v1542_v35  ;;  %1334 = vst.msk [vmem:[%s2413_s4 + $0x80] sm:$0xf] %vm1301_vm3, %v1574_v36  ;;  %v1543_v41 = vpack.c.bf16 %v982_v37, %v982_v37  ;;  %v1575_v42 = vpack.c.bf16 %v1014_v38, %v1014_v38  ;;  %v848_v43 = vmul.f32 %v2018_v15, %v592_v39  ;;  %v594_v45 = vpop.f32.mrb[5].mxu0  ;;  %v722_v46 = vpop.f32.mrb[5].mxu1 }
 0x106   :  { %v880_v44 = vmul.f32 %v2018_v15, %v720_v40  ;;  %v595_v47 = vpop.f32.mrb[6].mxu0  ;;  %v723_v48 = vpop.f32.mrb[6].mxu1 }
 0x107   :  { %1303 = vst.msk [vmem:[%s2413_s4 + $0x4] sm:$0xf] %vm1301_vm3, %v1543_v41  ;;  %1335 = vst.msk [vmem:[%s2413_s4 + $0x84] sm:$0xf] %vm1301_vm3, %v1575_v42  ;;  %v919_v49 = vadd.f32 %v2023_v17, %v848_v43  ;;  %v849_v51 = vmul.f32 %v2018_v15, %v595_v47  ;;  %v881_v52 = vmul.f32 %v2018_v15, %v723_v48  ;;  %v597_v53 = vpop.f32.mrb[7].mxu0  ;;  %v725_v54 = vpop.f32.mrb[7].mxu1 }
 0x108   :  { %v951_v50 = vadd.f32 %v2023_v17, %v880_v44 }
 0x109   :  { %v983_v55 = vmax.f32 %v919_v49, 0.0  ;;  %v920_v57 = vadd.f32 %v2023_v17, %v849_v51  ;;  %v952_v58 = vadd.f32 %v2023_v17, %v881_v52 }
 0x10a   :  { %v1015_v56 = vmax.f32 %v951_v50, 0.0 }
 0x10b   :  { %v1544_v59 = vpack.c.bf16 %v983_v55, %v983_v55  ;;  %v984_v61 = vmax.f32 %v920_v57, 0.0  ;;  %v1016_v62 = vmax.f32 %v952_v58, 0.0 }
 0x10c   :  { %v1576_v60 = vpack.c.bf16 %v1015_v56, %v1015_v56  ;;  %v600_v63 = vpop.f32.mrb[8].mxu0  ;;  %v728_v0 = vpop.f32.mrb[8].mxu1 }
 0x10d   :  { %1304 = vst.msk [vmem:[%s2413_s4 + $0x8] sm:$0xf] %vm1301_vm3, %v1544_v59  ;;  %v1545_v1 = vpack.c.bf16 %v984_v61, %v984_v61  ;;  %v1577_v2 = vpack.c.bf16 %v1016_v62, %v1016_v62  ;;  %v850_v3 = vmul.f32 %v2018_v15, %v600_v63  ;;  %v882_v4 = vmul.f32 %v2018_v15, %v728_v0  ;;  %v602_v5 = vpop.f32.mrb[9].mxu0  ;;  %v730_v6 = vpop.f32.mrb[9].mxu1 }
 0x10e   :  { %1336 = vst.msk [vmem:[%s2413_s4 + $0x88] sm:$0xf] %vm1301_vm3, %v1576_v60  ;;  %v603_v7 = vpop.f32.mrb[10].mxu0  ;;  %v731_v8 = vpop.f32.mrb[10].mxu1 }
 0x10f   :  { %1305 = vst.msk [vmem:[%s2413_s4 + $0xc] sm:$0xf] %vm1301_vm3, %v1545_v1  ;;  %1337 = vst.msk [vmem:[%s2413_s4 + $0x8c] sm:$0xf] %vm1301_vm3, %v1577_v2  ;;  %v921_v9 = vadd.f32 %v2023_v17, %v850_v3  ;;  %v953_v10 = vadd.f32 %v2023_v17, %v882_v4  ;;  %v851_v11 = vmul.f32 %v2018_v15, %v603_v7  ;;  %v605_v13 = vpop.f32.mrb[11].mxu0  ;;  %v733_v14 = vpop.f32.mrb[11].mxu1 }
 0x110   :  { %v883_v12 = vmul.f32 %v2018_v15, %v731_v8 }
 0x111   :  { %v985_v16 = vmax.f32 %v921_v9, 0.0  ;;  %v1017_v18 = vmax.f32 %v953_v10, 0.0  ;;  %v922_v19 = vadd.f32 %v2023_v17, %v851_v11 }
 0x112   :  { %v954_v20 = vadd.f32 %v2023_v17, %v883_v12 }
 0x113   :  { %v1546_v21 = vpack.c.bf16 %v985_v16, %v985_v16  ;;  %v1578_v22 = vpack.c.bf16 %v1017_v18, %v1017_v18  ;;  %v986_v23 = vmax.f32 %v922_v19, 0.0 }
 0x114   :  { %v1018_v24 = vmax.f32 %v954_v20, 0.0  ;;  %v608_v25 = vpop.f32.mrb[12].mxu0  ;;  %v736_v26 = vpop.f32.mrb[12].mxu1 }
 0x115   :  { %1306 = vst.msk [vmem:[%s2413_s4 + $0x10] sm:$0xf] %vm1301_vm3, %v1546_v21  ;;  %1338 = vst.msk [vmem:[%s2413_s4 + $0x90] sm:$0xf] %vm1301_vm3, %v1578_v22  ;;  %v1547_v27 = vpack.c.bf16 %v986_v23, %v986_v23  ;;  %v852_v29 = vmul.f32 %v2018_v15, %v608_v25  ;;  %v884_v30 = vmul.f32 %v2018_v15, %v736_v26  ;;  %v610_v31 = vpop.f32.mrb[13].mxu0  ;;  %v738_v32 = vpop.f32.mrb[13].mxu1 }
 0x116   :  { %v1579_v28 = vpack.c.bf16 %v1018_v24, %v1018_v24  ;;  %v611_v33 = vpop.f32.mrb[14].mxu0  ;;  %v739_v34 = vpop.f32.mrb[14].mxu1 }
 0x117   :  { %1307 = vst.msk [vmem:[%s2413_s4 + $0x14] sm:$0xf] %vm1301_vm3, %v1547_v27  ;;  %v923_v35 = vadd.f32 %v2023_v17, %v852_v29  ;;  %v955_v36 = vadd.f32 %v2023_v17, %v884_v30  ;;  %v853_v37 = vmul.f32 %v2018_v15, %v611_v33  ;;  %v885_v38 = vmul.f32 %v2018_v15, %v739_v34  ;;  %v613_v39 = vpop.f32.mrb[15].mxu0  ;;  %v741_v40 = vpop.f32.mrb[15].mxu1 }
 0x118   :  { %1339 = vst.msk [vmem:[%s2413_s4 + $0x94] sm:$0xf] %vm1301_vm3, %v1579_v28 }
 0x119   :  { %v987_v41 = vmax.f32 %v923_v35, 0.0  ;;  %v1019_v42 = vmax.f32 %v955_v36, 0.0  ;;  %v924_v43 = vadd.f32 %v2023_v17, %v853_v37  ;;  %v956_v44 = vadd.f32 %v2023_v17, %v885_v38 }
 0x11b   :  { %v1548_v45 = vpack.c.bf16 %v987_v41, %v987_v41  ;;  %v1580_v46 = vpack.c.bf16 %v1019_v42, %v1019_v42  ;;  %v988_v47 = vmax.f32 %v924_v43, 0.0  ;;  %v1020_v48 = vmax.f32 %v956_v44, 0.0 }
 0x11c   :  { %v616_v49 = vpop.f32.mrb[16].mxu0  ;;  %v744_v50 = vpop.f32.mrb[16].mxu1 }
 0x11d   :  { %1308 = vst.msk [vmem:[%s2413_s4 + $0x18] sm:$0xf] %vm1301_vm3, %v1548_v45  ;;  %1340 = vst.msk [vmem:[%s2413_s4 + $0x98] sm:$0xf] %vm1301_vm3, %v1580_v46  ;;  %v1549_v51 = vpack.c.bf16 %v988_v47, %v988_v47  ;;  %v1581_v52 = vpack.c.bf16 %v1020_v48, %v1020_v48  ;;  %v854_v53 = vmul.f32 %v2018_v15, %v616_v49  ;;  %v618_v55 = vpop.f32.mrb[17].mxu0  ;;  %v746_v56 = vpop.f32.mrb[17].mxu1 }
 0x11e   :  { %v886_v54 = vmul.f32 %v2018_v15, %v744_v50  ;;  %v619_v57 = vpop.f32.mrb[18].mxu0  ;;  %v747_v58 = vpop.f32.mrb[18].mxu1 }
 0x11f   :  { %1309 = vst.msk [vmem:[%s2413_s4 + $0x1c] sm:$0xf] %vm1301_vm3, %v1549_v51  ;;  %1341 = vst.msk [vmem:[%s2413_s4 + $0x9c] sm:$0xf] %vm1301_vm3, %v1581_v52  ;;  %v925_v59 = vadd.f32 %v2023_v17, %v854_v53  ;;  %v855_v61 = vmul.f32 %v2018_v15, %v619_v57  ;;  %v887_v62 = vmul.f32 %v2018_v15, %v747_v58  ;;  %v621_v63 = vpop.f32.mrb[19].mxu0  ;;  %v749_v0 = vpop.f32.mrb[19].mxu1 }
 0x120   :  { %v957_v60 = vadd.f32 %v2023_v17, %v886_v54 }
 0x121   :  { %v989_v1 = vmax.f32 %v925_v59, 0.0  ;;  %v926_v3 = vadd.f32 %v2023_v17, %v855_v61  ;;  %v958_v4 = vadd.f32 %v2023_v17, %v887_v62 }
 0x122   :  { %v1021_v2 = vmax.f32 %v957_v60, 0.0 }
 0x123   :  { %v1550_v5 = vpack.c.bf16 %v989_v1, %v989_v1  ;;  %v990_v7 = vmax.f32 %v926_v3, 0.0  ;;  %v1022_v8 = vmax.f32 %v958_v4, 0.0 }
 0x124   :  { %v1582_v6 = vpack.c.bf16 %v1021_v2, %v1021_v2  ;;  %v624_v9 = vpop.f32.mrb[20].mxu0  ;;  %v752_v10 = vpop.f32.mrb[20].mxu1 }
 0x125   :  { %1310 = vst.msk [vmem:[%s2413_s4 + $0x20] sm:$0xf] %vm1301_vm3, %v1550_v5  ;;  %v1551_v11 = vpack.c.bf16 %v990_v7, %v990_v7  ;;  %v1583_v12 = vpack.c.bf16 %v1022_v8, %v1022_v8  ;;  %v856_v13 = vmul.f32 %v2018_v15, %v624_v9  ;;  %v888_v14 = vmul.f32 %v2018_v15, %v752_v10  ;;  %v626_v16 = vpop.f32.mrb[21].mxu0  ;;  %v754_v18 = vpop.f32.mrb[21].mxu1 }
 0x126   :  { %1342 = vst.msk [vmem:[%s2413_s4 + $0xa0] sm:$0xf] %vm1301_vm3, %v1582_v6  ;;  %v627_v19 = vpop.f32.mrb[22].mxu0  ;;  %v755_v20 = vpop.f32.mrb[22].mxu1 }
 0x127   :  { %1311 = vst.msk [vmem:[%s2413_s4 + $0x24] sm:$0xf] %vm1301_vm3, %v1551_v11  ;;  %1343 = vst.msk [vmem:[%s2413_s4 + $0xa4] sm:$0xf] %vm1301_vm3, %v1583_v12  ;;  %v927_v21 = vadd.f32 %v2023_v17, %v856_v13  ;;  %v959_v22 = vadd.f32 %v2023_v17, %v888_v14  ;;  %v857_v23 = vmul.f32 %v2018_v15, %v627_v19  ;;  %v629_v25 = vpop.f32.mrb[23].mxu0  ;;  %v757_v26 = vpop.f32.mrb[23].mxu1 }
 0x128   :  { %v889_v24 = vmul.f32 %v2018_v15, %v755_v20 }
 0x129   :  { %v991_v27 = vmax.f32 %v927_v21, 0.0  ;;  %v1023_v28 = vmax.f32 %v959_v22, 0.0  ;;  %v928_v29 = vadd.f32 %v2023_v17, %v857_v23 }
 0x12a   :  { %v960_v30 = vadd.f32 %v2023_v17, %v889_v24 }
 0x12b   :  { %v1552_v31 = vpack.c.bf16 %v991_v27, %v991_v27  ;;  %v1584_v32 = vpack.c.bf16 %v1023_v28, %v1023_v28  ;;  %v992_v33 = vmax.f32 %v928_v29, 0.0 }
 0x12c   :  { %v1024_v34 = vmax.f32 %v960_v30, 0.0  ;;  %v632_v35 = vpop.f32.mrb[24].mxu0  ;;  %v760_v36 = vpop.f32.mrb[24].mxu1 }
 0x12d   :  { %1312 = vst.msk [vmem:[%s2413_s4 + $0x28] sm:$0xf] %vm1301_vm3, %v1552_v31  ;;  %1344 = vst.msk [vmem:[%s2413_s4 + $0xa8] sm:$0xf] %vm1301_vm3, %v1584_v32  ;;  %v1553_v37 = vpack.c.bf16 %v992_v33, %v992_v33  ;;  %v858_v39 = vmul.f32 %v2018_v15, %v632_v35  ;;  %v890_v40 = vmul.f32 %v2018_v15, %v760_v36  ;;  %v634_v41 = vpop.f32.mrb[25].mxu0  ;;  %v762_v42 = vpop.f32.mrb[25].mxu1 }
 0x12e   :  { %v1585_v38 = vpack.c.bf16 %v1024_v34, %v1024_v34  ;;  %v635_v43 = vpop.f32.mrb[26].mxu0  ;;  %v763_v44 = vpop.f32.mrb[26].mxu1 }
 0x12f   :  { %1313 = vst.msk [vmem:[%s2413_s4 + $0x2c] sm:$0xf] %vm1301_vm3, %v1553_v37  ;;  %v929_v45 = vadd.f32 %v2023_v17, %v858_v39  ;;  %v961_v46 = vadd.f32 %v2023_v17, %v890_v40  ;;  %v859_v47 = vmul.f32 %v2018_v15, %v635_v43  ;;  %v891_v48 = vmul.f32 %v2018_v15, %v763_v44  ;;  %v637_v49 = vpop.f32.mrb[27].mxu0  ;;  %v765_v50 = vpop.f32.mrb[27].mxu1 }
 0x130   :  { %1345 = vst.msk [vmem:[%s2413_s4 + $0xac] sm:$0xf] %vm1301_vm3, %v1585_v38 }
 0x131   :  { %v993_v51 = vmax.f32 %v929_v45, 0.0  ;;  %v1025_v52 = vmax.f32 %v961_v46, 0.0  ;;  %v930_v53 = vadd.f32 %v2023_v17, %v859_v47  ;;  %v962_v54 = vadd.f32 %v2023_v17, %v891_v48 }
 0x133   :  { %v1554_v55 = vpack.c.bf16 %v993_v51, %v993_v51  ;;  %v1586_v56 = vpack.c.bf16 %v1025_v52, %v1025_v52  ;;  %v994_v57 = vmax.f32 %v930_v53, 0.0  ;;  %v1026_v58 = vmax.f32 %v962_v54, 0.0 }
 0x134   :  { %v640_v59 = vpop.f32.mrb[28].mxu0  ;;  %v768_v60 = vpop.f32.mrb[28].mxu1 }
 0x135   :  { %1314 = vst.msk [vmem:[%s2413_s4 + $0x30] sm:$0xf] %vm1301_vm3, %v1554_v55  ;;  %1346 = vst.msk [vmem:[%s2413_s4 + $0xb0] sm:$0xf] %vm1301_vm3, %v1586_v56  ;;  %v1555_v61 = vpack.c.bf16 %v994_v57, %v994_v57  ;;  %v1587_v62 = vpack.c.bf16 %v1026_v58, %v1026_v58  ;;  %v860_v63 = vmul.f32 %v2018_v15, %v640_v59  ;;  %v642_v1 = vpop.f32.mrb[29].mxu0  ;;  %v770_v2 = vpop.f32.mrb[29].mxu1 }
 0x136   :  { %v892_v0 = vmul.f32 %v2018_v15, %v768_v60  ;;  %v643_v3 = vpop.f32.mrb[30].mxu0  ;;  %v771_v4 = vpop.f32.mrb[30].mxu1 }
 0x137   :  { %1315 = vst.msk [vmem:[%s2413_s4 + $0x34] sm:$0xf] %vm1301_vm3, %v1555_v61  ;;  %1347 = vst.msk [vmem:[%s2413_s4 + $0xb4] sm:$0xf] %vm1301_vm3, %v1587_v62  ;;  %v931_v5 = vadd.f32 %v2023_v17, %v860_v63  ;;  %v861_v7 = vmul.f32 %v2018_v15, %v643_v3  ;;  %v893_v8 = vmul.f32 %v2018_v15, %v771_v4  ;;  %v645_v9 = vpop.f32.mrb[31].mxu0  ;;  %v773_v10 = vpop.f32.mrb[31].mxu1 }
 0x138   :  { %v963_v6 = vadd.f32 %v2023_v17, %v892_v0 }
 0x139   :  { %v995_v11 = vmax.f32 %v931_v5, 0.0  ;;  %v932_v13 = vadd.f32 %v2023_v17, %v861_v7  ;;  %v964_v14 = vadd.f32 %v2023_v17, %v893_v8 }
 0x13a   :  { %v1027_v12 = vmax.f32 %v963_v6, 0.0 }
 0x13b   :  { %v1556_v16 = vpack.c.bf16 %v995_v11, %v995_v11  ;;  %v996_v19 = vmax.f32 %v932_v13, 0.0  ;;  %v1028_v20 = vmax.f32 %v964_v14, 0.0 }
 0x13c   :  { %v1588_v18 = vpack.c.bf16 %v1027_v12, %v1027_v12  ;;  %v648_v21 = vpop.f32.mrb[32].mxu0  ;;  %v776_v22 = vpop.f32.mrb[32].mxu1 }
 0x13d   :  { %1316 = vst.msk [vmem:[%s2413_s4 + $0x38] sm:$0xf] %vm1301_vm3, %v1556_v16  ;;  %v1557_v23 = vpack.c.bf16 %v996_v19, %v996_v19  ;;  %v1589_v24 = vpack.c.bf16 %v1028_v20, %v1028_v20  ;;  %v862_v25 = vmul.f32 %v2018_v15, %v648_v21  ;;  %v894_v26 = vmul.f32 %v2018_v15, %v776_v22  ;;  %v650_v27 = vpop.f32.mrb[33].mxu0  ;;  %v778_v28 = vpop.f32.mrb[33].mxu1 }
 0x13e   :  { %1348 = vst.msk [vmem:[%s2413_s4 + $0xb8] sm:$0xf] %vm1301_vm3, %v1588_v18  ;;  %v651_v29 = vpop.f32.mrb[34].mxu0  ;;  %v779_v30 = vpop.f32.mrb[34].mxu1 }
 0x13f   :  { %1317 = vst.msk [vmem:[%s2413_s4 + $0x3c] sm:$0xf] %vm1301_vm3, %v1557_v23  ;;  %1349 = vst.msk [vmem:[%s2413_s4 + $0xbc] sm:$0xf] %vm1301_vm3, %v1589_v24  ;;  %v933_v31 = vadd.f32 %v2023_v17, %v862_v25  ;;  %v965_v32 = vadd.f32 %v2023_v17, %v894_v26  ;;  %v863_v33 = vmul.f32 %v2018_v15, %v651_v29  ;;  %v653_v35 = vpop.f32.mrb[35].mxu0  ;;  %v781_v36 = vpop.f32.mrb[35].mxu1 }
 0x140   :  { %v895_v34 = vmul.f32 %v2018_v15, %v779_v30 }
 0x141   :  { %v997_v37 = vmax.f32 %v933_v31, 0.0  ;;  %v1029_v38 = vmax.f32 %v965_v32, 0.0  ;;  %v934_v39 = vadd.f32 %v2023_v17, %v863_v33 }
 0x142   :  { %v966_v40 = vadd.f32 %v2023_v17, %v895_v34 }
 0x143   :  { %v1558_v41 = vpack.c.bf16 %v997_v37, %v997_v37  ;;  %v1590_v42 = vpack.c.bf16 %v1029_v38, %v1029_v38  ;;  %v998_v43 = vmax.f32 %v934_v39, 0.0 }
 0x144   :  { %v1030_v44 = vmax.f32 %v966_v40, 0.0  ;;  %v656_v45 = vpop.f32.mrb[36].mxu0  ;;  %v784_v46 = vpop.f32.mrb[36].mxu1 }
 0x145   :  { %1318 = vst.msk [vmem:[%s2413_s4 + $0x40] sm:$0xf] %vm1301_vm3, %v1558_v41  ;;  %1350 = vst.msk [vmem:[%s2413_s4 + $0xc0] sm:$0xf] %vm1301_vm3, %v1590_v42  ;;  %v1559_v47 = vpack.c.bf16 %v998_v43, %v998_v43  ;;  %v864_v49 = vmul.f32 %v2018_v15, %v656_v45  ;;  %v896_v50 = vmul.f32 %v2018_v15, %v784_v46  ;;  %v658_v51 = vpop.f32.mrb[37].mxu0  ;;  %v786_v52 = vpop.f32.mrb[37].mxu1 }
 0x146   :  { %v1591_v48 = vpack.c.bf16 %v1030_v44, %v1030_v44  ;;  %v659_v53 = vpop.f32.mrb[38].mxu0  ;;  %v787_v54 = vpop.f32.mrb[38].mxu1 }
 0x147   :  { %1319 = vst.msk [vmem:[%s2413_s4 + $0x44] sm:$0xf] %vm1301_vm3, %v1559_v47  ;;  %v935_v55 = vadd.f32 %v2023_v17, %v864_v49  ;;  %v967_v56 = vadd.f32 %v2023_v17, %v896_v50  ;;  %v865_v57 = vmul.f32 %v2018_v15, %v659_v53  ;;  %v897_v58 = vmul.f32 %v2018_v15, %v787_v54  ;;  %v661_v59 = vpop.f32.mrb[39].mxu0  ;;  %v789_v60 = vpop.f32.mrb[39].mxu1 }
 0x148   :  { %1351 = vst.msk [vmem:[%s2413_s4 + $0xc4] sm:$0xf] %vm1301_vm3, %v1591_v48 }
 0x149   :  { %v999_v61 = vmax.f32 %v935_v55, 0.0  ;;  %v1031_v62 = vmax.f32 %v967_v56, 0.0  ;;  %v936_v63 = vadd.f32 %v2023_v17, %v865_v57  ;;  %v968_v0 = vadd.f32 %v2023_v17, %v897_v58 }
 0x14b   :  { %v1560_v1 = vpack.c.bf16 %v999_v61, %v999_v61  ;;  %v1592_v2 = vpack.c.bf16 %v1031_v62, %v1031_v62  ;;  %v1000_v3 = vmax.f32 %v936_v63, 0.0  ;;  %v1032_v4 = vmax.f32 %v968_v0, 0.0 }
 0x14c   :  { %v664_v5 = vpop.f32.mrb[40].mxu0  ;;  %v792_v6 = vpop.f32.mrb[40].mxu1 }
 0x14d   :  { %1320 = vst.msk [vmem:[%s2413_s4 + $0x48] sm:$0xf] %vm1301_vm3, %v1560_v1  ;;  %1352 = vst.msk [vmem:[%s2413_s4 + $0xc8] sm:$0xf] %vm1301_vm3, %v1592_v2  ;;  %v1561_v7 = vpack.c.bf16 %v1000_v3, %v1000_v3  ;;  %v1593_v8 = vpack.c.bf16 %v1032_v4, %v1032_v4  ;;  %v866_v9 = vmul.f32 %v2018_v15, %v664_v5  ;;  %v666_v11 = vpop.f32.mrb[41].mxu0  ;;  %v794_v12 = vpop.f32.mrb[41].mxu1 }
 0x14e   :  { %v898_v10 = vmul.f32 %v2018_v15, %v792_v6  ;;  %v667_v13 = vpop.f32.mrb[42].mxu0  ;;  %v795_v14 = vpop.f32.mrb[42].mxu1 }
 0x14f   :  { %1321 = vst.msk [vmem:[%s2413_s4 + $0x4c] sm:$0xf] %vm1301_vm3, %v1561_v7  ;;  %1353 = vst.msk [vmem:[%s2413_s4 + $0xcc] sm:$0xf] %vm1301_vm3, %v1593_v8  ;;  %v937_v16 = vadd.f32 %v2023_v17, %v866_v9  ;;  %v867_v19 = vmul.f32 %v2018_v15, %v667_v13  ;;  %v899_v20 = vmul.f32 %v2018_v15, %v795_v14  ;;  %v669_v21 = vpop.f32.mrb[43].mxu0  ;;  %v797_v22 = vpop.f32.mrb[43].mxu1 }
 0x150   :  { %v969_v18 = vadd.f32 %v2023_v17, %v898_v10 }
 0x151   :  { %v1001_v23 = vmax.f32 %v937_v16, 0.0  ;;  %v938_v25 = vadd.f32 %v2023_v17, %v867_v19  ;;  %v970_v26 = vadd.f32 %v2023_v17, %v899_v20 }
 0x152   :  { %v1033_v24 = vmax.f32 %v969_v18, 0.0 }
 0x153   :  { %v1562_v27 = vpack.c.bf16 %v1001_v23, %v1001_v23  ;;  %v1002_v29 = vmax.f32 %v938_v25, 0.0  ;;  %v1034_v30 = vmax.f32 %v970_v26, 0.0 }
 0x154   :  { %v1594_v28 = vpack.c.bf16 %v1033_v24, %v1033_v24  ;;  %v672_v31 = vpop.f32.mrb[44].mxu0  ;;  %v800_v32 = vpop.f32.mrb[44].mxu1 }
 0x155   :  { %1322 = vst.msk [vmem:[%s2413_s4 + $0x50] sm:$0xf] %vm1301_vm3, %v1562_v27  ;;  %v1563_v33 = vpack.c.bf16 %v1002_v29, %v1002_v29  ;;  %v1595_v34 = vpack.c.bf16 %v1034_v30, %v1034_v30  ;;  %v868_v35 = vmul.f32 %v2018_v15, %v672_v31  ;;  %v900_v36 = vmul.f32 %v2018_v15, %v800_v32  ;;  %v674_v37 = vpop.f32.mrb[45].mxu0  ;;  %v802_v38 = vpop.f32.mrb[45].mxu1 }
 0x156   :  { %1354 = vst.msk [vmem:[%s2413_s4 + $0xd0] sm:$0xf] %vm1301_vm3, %v1594_v28  ;;  %v675_v39 = vpop.f32.mrb[46].mxu0  ;;  %v803_v40 = vpop.f32.mrb[46].mxu1 }
 0x157   :  { %1323 = vst.msk [vmem:[%s2413_s4 + $0x54] sm:$0xf] %vm1301_vm3, %v1563_v33  ;;  %1355 = vst.msk [vmem:[%s2413_s4 + $0xd4] sm:$0xf] %vm1301_vm3, %v1595_v34  ;;  %v939_v41 = vadd.f32 %v2023_v17, %v868_v35  ;;  %v971_v42 = vadd.f32 %v2023_v17, %v900_v36  ;;  %v869_v43 = vmul.f32 %v2018_v15, %v675_v39  ;;  %v677_v45 = vpop.f32.mrb[47].mxu0  ;;  %v805_v46 = vpop.f32.mrb[47].mxu1 }
 0x158   :  { %v901_v44 = vmul.f32 %v2018_v15, %v803_v40 }
 0x159   :  { %v1003_v47 = vmax.f32 %v939_v41, 0.0  ;;  %v1035_v48 = vmax.f32 %v971_v42, 0.0  ;;  %v940_v49 = vadd.f32 %v2023_v17, %v869_v43 }
 0x15a   :  { %v972_v50 = vadd.f32 %v2023_v17, %v901_v44 }
 0x15b   :  { %v1564_v51 = vpack.c.bf16 %v1003_v47, %v1003_v47  ;;  %v1596_v52 = vpack.c.bf16 %v1035_v48, %v1035_v48  ;;  %v1004_v53 = vmax.f32 %v940_v49, 0.0 }
 0x15c   :  { %v1036_v54 = vmax.f32 %v972_v50, 0.0  ;;  %v680_v55 = vpop.f32.mrb[48].mxu0  ;;  %v808_v56 = vpop.f32.mrb[48].mxu1 }
 0x15d   :  { %1324 = vst.msk [vmem:[%s2413_s4 + $0x58] sm:$0xf] %vm1301_vm3, %v1564_v51  ;;  %1356 = vst.msk [vmem:[%s2413_s4 + $0xd8] sm:$0xf] %vm1301_vm3, %v1596_v52  ;;  %v1565_v57 = vpack.c.bf16 %v1004_v53, %v1004_v53  ;;  %v870_v59 = vmul.f32 %v2018_v15, %v680_v55  ;;  %v902_v60 = vmul.f32 %v2018_v15, %v808_v56  ;;  %v682_v61 = vpop.f32.mrb[49].mxu0  ;;  %v810_v62 = vpop.f32.mrb[49].mxu1 }
 0x15e   :  { %v1597_v58 = vpack.c.bf16 %v1036_v54, %v1036_v54  ;;  %v683_v63 = vpop.f32.mrb[50].mxu0  ;;  %v811_v0 = vpop.f32.mrb[50].mxu1 }
 0x15f   :  { %1325 = vst.msk [vmem:[%s2413_s4 + $0x5c] sm:$0xf] %vm1301_vm3, %v1565_v57  ;;  %v941_v1 = vadd.f32 %v2023_v17, %v870_v59  ;;  %v973_v2 = vadd.f32 %v2023_v17, %v902_v60  ;;  %v871_v3 = vmul.f32 %v2018_v15, %v683_v63  ;;  %v903_v4 = vmul.f32 %v2018_v15, %v811_v0  ;;  %v685_v5 = vpop.f32.mrb[51].mxu0  ;;  %v813_v6 = vpop.f32.mrb[51].mxu1 }
 0x160   :  { %1357 = vst.msk [vmem:[%s2413_s4 + $0xdc] sm:$0xf] %vm1301_vm3, %v1597_v58 }
 0x161   :  { %v1005_v7 = vmax.f32 %v941_v1, 0.0  ;;  %v1037_v8 = vmax.f32 %v973_v2, 0.0  ;;  %v942_v9 = vadd.f32 %v2023_v17, %v871_v3  ;;  %v974_v10 = vadd.f32 %v2023_v17, %v903_v4 }
 0x163   :  { %v1566_v11 = vpack.c.bf16 %v1005_v7, %v1005_v7  ;;  %v1598_v12 = vpack.c.bf16 %v1037_v8, %v1037_v8  ;;  %v1006_v13 = vmax.f32 %v942_v9, 0.0  ;;  %v1038_v14 = vmax.f32 %v974_v10, 0.0 }
 0x164   :  { %v688_v16 = vpop.f32.mrb[52].mxu0  ;;  %v816_v18 = vpop.f32.mrb[52].mxu1 }
 0x165   :  { %1326 = vst.msk [vmem:[%s2413_s4 + $0x60] sm:$0xf] %vm1301_vm3, %v1566_v11  ;;  %1358 = vst.msk [vmem:[%s2413_s4 + $0xe0] sm:$0xf] %vm1301_vm3, %v1598_v12  ;;  %v1567_v19 = vpack.c.bf16 %v1006_v13, %v1006_v13  ;;  %v1599_v20 = vpack.c.bf16 %v1038_v14, %v1038_v14  ;;  %v872_v21 = vmul.f32 %v2018_v15, %v688_v16  ;;  %v690_v23 = vpop.f32.mrb[53].mxu0  ;;  %v818_v24 = vpop.f32.mrb[53].mxu1 }
 0x166   :  { %v904_v22 = vmul.f32 %v2018_v15, %v816_v18  ;;  %v691_v25 = vpop.f32.mrb[54].mxu0  ;;  %v819_v26 = vpop.f32.mrb[54].mxu1 }
 0x167   :  { %1327 = vst.msk [vmem:[%s2413_s4 + $0x64] sm:$0xf] %vm1301_vm3, %v1567_v19  ;;  %1359 = vst.msk [vmem:[%s2413_s4 + $0xe4] sm:$0xf] %vm1301_vm3, %v1599_v20  ;;  %v943_v27 = vadd.f32 %v2023_v17, %v872_v21  ;;  %v873_v29 = vmul.f32 %v2018_v15, %v691_v25  ;;  %v905_v30 = vmul.f32 %v2018_v15, %v819_v26  ;;  %v693_v31 = vpop.f32.mrb[55].mxu0  ;;  %v821_v32 = vpop.f32.mrb[55].mxu1 }
 0x168   :  { %v975_v28 = vadd.f32 %v2023_v17, %v904_v22 }
 0x169   :  { %v1007_v33 = vmax.f32 %v943_v27, 0.0  ;;  %v944_v35 = vadd.f32 %v2023_v17, %v873_v29  ;;  %v976_v36 = vadd.f32 %v2023_v17, %v905_v30 }
 0x16a   :  { %v1039_v34 = vmax.f32 %v975_v28, 0.0 }
 0x16b   :  { %v1568_v37 = vpack.c.bf16 %v1007_v33, %v1007_v33  ;;  %v1008_v39 = vmax.f32 %v944_v35, 0.0  ;;  %v1040_v40 = vmax.f32 %v976_v36, 0.0 }
 0x16c   :  { %v1600_v38 = vpack.c.bf16 %v1039_v34, %v1039_v34  ;;  %v696_v41 = vpop.f32.mrb[56].mxu0  ;;  %v824_v42 = vpop.f32.mrb[56].mxu1 }
 0x16d   :  { %1328 = vst.msk [vmem:[%s2413_s4 + $0x68] sm:$0xf] %vm1301_vm3, %v1568_v37  ;;  %v1569_v43 = vpack.c.bf16 %v1008_v39, %v1008_v39  ;;  %v1601_v44 = vpack.c.bf16 %v1040_v40, %v1040_v40  ;;  %v874_v45 = vmul.f32 %v2018_v15, %v696_v41  ;;  %v906_v46 = vmul.f32 %v2018_v15, %v824_v42  ;;  %v698_v47 = vpop.f32.mrb[57].mxu0  ;;  %v826_v48 = vpop.f32.mrb[57].mxu1 }
 0x16e   :  { %1360 = vst.msk [vmem:[%s2413_s4 + $0xe8] sm:$0xf] %vm1301_vm3, %v1600_v38  ;;  %v699_v49 = vpop.f32.mrb[58].mxu0  ;;  %v827_v50 = vpop.f32.mrb[58].mxu1 }
 0x16f   :  { %1329 = vst.msk [vmem:[%s2413_s4 + $0x6c] sm:$0xf] %vm1301_vm3, %v1569_v43  ;;  %1361 = vst.msk [vmem:[%s2413_s4 + $0xec] sm:$0xf] %vm1301_vm3, %v1601_v44  ;;  %v945_v51 = vadd.f32 %v2023_v17, %v874_v45  ;;  %v977_v52 = vadd.f32 %v2023_v17, %v906_v46  ;;  %v875_v53 = vmul.f32 %v2018_v15, %v699_v49  ;;  %v701_v55 = vpop.f32.mrb[59].mxu0  ;;  %v829_v56 = vpop.f32.mrb[59].mxu1 }
 0x170   :  { %v907_v54 = vmul.f32 %v2018_v15, %v827_v50 }
 0x171   :  { %v1009_v57 = vmax.f32 %v945_v51, 0.0  ;;  %v1041_v58 = vmax.f32 %v977_v52, 0.0  ;;  %v946_v59 = vadd.f32 %v2023_v17, %v875_v53 }
 0x172   :  { %v978_v60 = vadd.f32 %v2023_v17, %v907_v54 }
 0x173   :  { %v1570_v61 = vpack.c.bf16 %v1009_v57, %v1009_v57  ;;  %v1602_v62 = vpack.c.bf16 %v1041_v58, %v1041_v58  ;;  %v1010_v63 = vmax.f32 %v946_v59, 0.0 }
 0x174   :  { %v1042_v0 = vmax.f32 %v978_v60, 0.0  ;;  %v704_v1 = vpop.f32.mrb[60].mxu0  ;;  %v832_v2 = vpop.f32.mrb[60].mxu1 }
 0x175   :  { %1330 = vst.msk [vmem:[%s2413_s4 + $0x70] sm:$0xf] %vm1301_vm3, %v1570_v61  ;;  %1362 = vst.msk [vmem:[%s2413_s4 + $0xf0] sm:$0xf] %vm1301_vm3, %v1602_v62  ;;  %v1571_v3 = vpack.c.bf16 %v1010_v63, %v1010_v63  ;;  %v876_v5 = vmul.f32 %v2018_v15, %v704_v1  ;;  %v908_v6 = vmul.f32 %v2018_v15, %v832_v2  ;;  %v706_v7 = vpop.f32.mrb[61].mxu0  ;;  %v834_v8 = vpop.f32.mrb[61].mxu1 }
 0x176   :  { %v1603_v4 = vpack.c.bf16 %v1042_v0, %v1042_v0  ;;  %v707_v9 = vpop.f32.mrb[62].mxu0  ;;  %v835_v10 = vpop.f32.mrb[62].mxu1 }
 0x177   :  { %1331 = vst.msk [vmem:[%s2413_s4 + $0x74] sm:$0xf] %vm1301_vm3, %v1571_v3  ;;  %v947_v11 = vadd.f32 %v2023_v17, %v876_v5  ;;  %v979_v12 = vadd.f32 %v2023_v17, %v908_v6  ;;  %v877_v13 = vmul.f32 %v2018_v15, %v707_v9  ;;  %v909_v14 = vmul.f32 %v2018_v15, %v835_v10  ;;  %v709_v16 = vpop.f32.mrb[63].mxu0  ;;  %v837_v18 = vpop.f32.mrb[63].mxu1 }
 0x178   :  { %1363 = vst.msk [vmem:[%s2413_s4 + $0xf4] sm:$0xf] %vm1301_vm3, %v1603_v4 }
 0x179   :  { %v1011_v19 = vmax.f32 %v947_v11, 0.0  ;;  %v1043_v20 = vmax.f32 %v979_v12, 0.0  ;;  %v948_v21 = vadd.f32 %v2023_v17, %v877_v13  ;;  %v980_v22 = vadd.f32 %v2023_v17, %v909_v14 }
 0x17b   :  { %v1572_v23 = vpack.c.bf16 %v1011_v19, %v1011_v19  ;;  %v1604_v24 = vpack.c.bf16 %v1043_v20, %v1043_v20  ;;  %v1012_v25 = vmax.f32 %v948_v21, 0.0  ;;  %v1044_v26 = vmax.f32 %v980_v22, 0.0 }
 0x17d   :  { %1332 = vst.msk [vmem:[%s2413_s4 + $0x78] sm:$0xf] %vm1301_vm3, %v1572_v23  ;;  %1364 = vst.msk [vmem:[%s2413_s4 + $0xf8] sm:$0xf] %vm1301_vm3, %v1604_v24  ;;  %v1573_v15 = vpack.c.bf16 %v1012_v25, %v1012_v25  ;;  %v1605_v27 = vpack.c.bf16 %v1044_v26, %v1044_v26 }
 0x17f   :  { %1333 = vst.msk [vmem:[%s2413_s4 + $0x7c] sm:$0xf] %vm1301_vm3, %v1573_v15  ;;  %1365 = vst.msk [vmem:[%s2413_s4 + $0xfc] sm:$0xf] %vm1301_vm3, %v1605_v27 }

// kernel: _lambda_.23
= control target key start
LH: loop header
LB: loop body
LE: loop exit
PB: predicated region body
PF: predicated region fallthrough
CT: control target
= control target key end

     0   :  { %s2470_s15 = smov 0   ;;  %s3020_s0 = inlined_call_operand.vmem [shape: bf16[2,10,10,128], index: 0, kind: input, shape index: {}]   ;;  %s3021_s1 = inlined_call_operand.vmem [shape: f32[1,1,128], index: 1, kind: input, shape index: {}]   ;;  %s3022_s2 = inlined_call_operand.vmem [shape: f32[1,1,128], index: 2, kind: input, shape index: {}]   ;;  %s3023_s3 = inlined_call_operand.vmem [shape: bf16[9,128,32], index: 3, kind: input, shape index: {}]   ;;  %s3024_s4 = inlined_call_operand.vmem [shape: bf16[2,8,8,32], index: 4, kind: output, shape index: {}]  }
   0x1 LB: > { %s1739_s16 = sadd.s32 4294967295, %s2443_s15   ;;  %p1743_p0 = scmp.ge.s32.totalorder %s2443_s15, 1  ;;  %s2443_s15 = sphi %s2470_s15, %s14_s15  }
   0x2   : > { %p162_p1 = scmp.lt.s32.totalorder %s2443_s15, 3 }
   0x4   : > { %p163_p2 = pnand %p1743_p0, %p162_p1 }
   0x5   : > { %v2365_v0 = vld [vmem:[%s3023_s3 + $0x40] sm:$0xff] (!%p163_p2)   ;;  %p188_p3 = scmp.lt.s32.totalorder (!%p163_p2), %s1739_s16, 1  ;;  %v2367_v2 = vld [vmem:[%s3023_s3 + $0x48] sm:$0xff] (!%p163_p2)   ;;  %v2369_v4 = vld [vmem:[%s3023_s3 + $0x50] sm:$0xff] (!%p163_p2)   ;;  %vm349_vm0 = vcmask (!%p163_p2), 1046528   ;;  %vm629_vm1 = vcmask (!%p163_p2), 1045504  }
   0x6   : > { %166 = sbr.rel (%p163_p2) target bundleno = 388 (0x184), region = 36  ;;  %v2366_v1 = vld [vmem:[%s3023_s3 + $0x100] sm:$0xff] (!%p163_p2)   ;;  %2060 = vmatprep.subr.bf16.mxu1 (!%p163_p2), %v2365_v0  ;;  %v2368_v3 = vld [vmem:[%s3023_s3 + $0x108] sm:$0xff] (!%p163_p2)   ;;  %v2370_v5 = vld [vmem:[%s3023_s3 + $0x110] sm:$0xff] (!%p163_p2)   ;;  %vm1675_vm2 = vcmask (!%p163_p2), 257024  }
   0x7   : > { %2156 = vmatprep.subr.bf16.mxu0 (!%p163_p2), %v2366_v1  ;;  %2061 = vmatpush3.bf16.msra.mxu1 (!%p163_p2), %v2365_v0  ;;  %v2371_v6 = vld [vmem:[%s3023_s3 + $0x58] sm:$0xff] (!%p163_p2)   ;;  %v2373_v8 = vld [vmem:[%s3023_s3 + $0x60] sm:$0xff] (!%p163_p2)   ;;  %v2375_v10 = vld [vmem:[%s3023_s3 + $0x68] sm:$0xff] (!%p163_p2)  }
   0x8   : > { %2157 = vmatpush3.bf16.msra.mxu0 (!%p163_p2), %v2366_v1  ;;  %2062 = vmatprep.subr.bf16.mxu1 (!%p163_p2), %v2367_v2  ;;  %v2372_v7 = vld [vmem:[%s3023_s3 + $0x118] sm:$0xff] (!%p163_p2)   ;;  %v2374_v9 = vld [vmem:[%s3023_s3 + $0x120] sm:$0xff] (!%p163_p2)   ;;  %v2376_v14 = vld [vmem:[%s3023_s3 + $0x128] sm:$0xff] (!%p163_p2)  }
   0x9   : > { %2158 = vmatprep.subr.bf16.mxu0 (!%p163_p2), %v2368_v3  ;;  %v2528_v19 = vld [vmem:[%s3021_s1] ss:$0 sm:$0xff] (!%p163_p2)  ;;  %v2377_v28 = vld [vmem:[%s3023_s3 + $0x70] sm:$0xff] (!%p163_p2)   ;;  %v2379_v39 = vld [vmem:[%s3023_s3 + $0x78] sm:$0xff] (!%p163_p2)  }
   0xa   : > { %v2533_v20 = vld [vmem:[%s3022_s2] ss:$0 sm:$0xff] (!%p163_p2)  ;;  %v2378_v29 = vld [vmem:[%s3023_s3 + $0x130] sm:$0xff] (!%p163_p2)   ;;  %v2380_v44 = vld [vmem:[%s3023_s3 + $0x138] sm:$0xff] (!%p163_p2)  }
   0xb   : > { %2063 = vmatpush3.bf16.msra.mxu1 (!%p163_p2), %v2367_v2 }
   0xc   : > { %2159 = vmatpush3.bf16.msra.mxu0 (!%p163_p2), %v2368_v3  ;;  %2064 = vmatprep.subr.bf16.mxu1 (!%p163_p2), %v2369_v4  ;;  %v2381_v3 = vld [vmem:[%s3023_s3] sm:$0xff] (!%p163_p2)  }
   0xd   : > { %s3026_s16 = smov (!%p188_p3, %s1739_s16), 1  ;;  %2160 = vmatprep.subr.bf16.mxu0 %v2370_v5 }
   0xe   : > { %s2356_s7 = smul.u32 80, %s3026_s16  ;;  %s1951_s26 = sshll.u32 %s3026_s16, 5 }
   0xf   : > { %2065 = vmatpush3.bf16.msra.mxu1 %v2369_v4  ;;  %s197_s29 = scalar_lea.vmem %s3024_s4, %s1951_s26 }
  0x10   : > { %2161 = vmatpush3.bf16.msra.mxu0 %v2370_v5  ;;  %2066 = vmatprep.subr.bf16.mxu1 %v2371_v6  ;;  %s2514_s14 = scalar_lea.vmem %s3020_s0, %s2356_s7 }
  0x11   : > { %2162 = vmatprep.subr.bf16.mxu0 %v2372_v7  ;;  %v199_v11 = vld [vmem:[%s2514_s14] ss:$8 sps:$4 sm:$0xff]   ;;  %v200_v12 = vld [vmem:[%s2514_s14 + $0x4] sm:$0x1]  ;;  %v202_v13 = vld [vmem:[%s2514_s14 + $0xc] sm:$0x1] }
  0x12   : > { %v219_v15 = vunpack.c.l.bf16 %v199_v11  ;;  %v220_v16 = vunpack.c.l.bf16 %v200_v12  ;;  %v221_v17 = vunpack.c.h.bf16 %v199_v11  ;;  %v222_v18 = vunpack.c.l.bf16 %v202_v13  ;;  %v203_v21 = vld [vmem:[%s2514_s14 + $0x10] ss:$8 sps:$4 sm:$0xff]   ;;  %v204_v26 = vld [vmem:[%s2514_s14 + $0x14] sm:$0x1]  ;;  %v206_v27 = vld [vmem:[%s2514_s14 + $0x1c] sm:$0x1] }
  0x13   : > { %2067 = vmatpush3.bf16.msra.mxu1 %v2371_v6  ;;  %v223_v30 = vunpack.c.l.bf16 %v203_v21  ;;  %v224_v31 = vunpack.c.l.bf16 %v204_v26  ;;  %v225_v32 = vunpack.c.h.bf16 %v203_v21  ;;  %v226_v33 = vunpack.c.l.bf16 %v206_v27  ;;  %v207_v38 = vld [vmem:[%s2514_s14 + $0x20] ss:$8 sps:$4 sm:$0xff]   ;;  %v208_v49 = vld [vmem:[%s2514_s14 + $0x24] sm:$0x1]  ;;  %v210_v26 = vld [vmem:[%s2514_s14 + $0x2c] sm:$0x1] }
  0x14   : > { %2163 = vmatpush3.bf16.msra.mxu0 %v2372_v7  ;;  %2068 = vmatprep.subr.bf16.mxu1 %v2373_v8  ;;  %v246_v22 = vmul.f32 %v2528_v19, %v219_v15  ;;  %v247_v23 = vmul.f32 %v2528_v19, %v220_v16  ;;  %v248_v24 = vmul.f32 %v2528_v19, %v221_v17  ;;  %v227_v53 = vunpack.c.l.bf16 %v207_v38  ;;  %v2383_v21 = vld [vmem:[%s3023_s3 + $0x8] sm:$0xff]  }
  0x15   : > { %2164 = vmatprep.subr.bf16.mxu0 %v2374_v9  ;;  %v249_v25 = vmul.f32 %v2528_v19, %v222_v18  ;;  %v250_v40 = vmul.f32 %v2528_v19, %v223_v30  ;;  %v251_v41 = vmul.f32 %v2528_v19, %v224_v31  ;;  %v252_v42 = vmul.f32 %v2528_v19, %v225_v32  ;;  %v212_v32 = vld [vmem:[%s2514_s14 + $0x34] sm:$0x1] }
  0x16   : > { %v273_v34 = vadd.f32 %v2533_v20, %v246_v22  ;;  %v2550_v35 = vadd.f32 %v2533_v20, %v247_v23  ;;  %v275_v36 = vadd.f32 %v2533_v20, %v248_v24  ;;  %v253_v43 = vmul.f32 %v2528_v19, %v226_v33 }
  0x17   : > { %2069 = vmatpush3.bf16.msra.mxu1 %v2373_v8  ;;  %v2554_v37 = vadd.f32 %v2533_v20, %v249_v25  ;;  %v277_v50 = vadd.f32 %v2533_v20, %v250_v40  ;;  %v2576_v51 = vadd.f32 %v2533_v20, %v251_v41  ;;  %v279_v52 = vadd.f32 %v2533_v20, %v252_v42  ;;  %v2607_v8 = vld [vmem:[%s3023_s3 + $0x140] sm:$0xff]   ;;  %v214_v41 = vld [vmem:[%s2514_s14 + $0x3c] sm:$0x1] }
  0x18   : > { %2165 = vmatpush3.bf16.msra.mxu0 %v2374_v9  ;;  %2070 = vmatprep.subr.bf16.mxu1 %v2375_v10  ;;  %v2567_v45 = vmax.f32 %v273_v34, 0.0  ;;  %v294_v46 = vmax.f32 %v2550_v35, 0.0  ;;  %v2570_v47 = vmax.f32 %v275_v36, 0.0  ;;  %v2586_v58 = vadd.f32 %v2533_v20, %v253_v43  ;;  %v2384_v36 = vld [vmem:[%s3023_s3 + $0x148] sm:$0xff]  }
  0x19   : > { %2166 = vmatprep.subr.bf16.mxu0 %v2376_v14  ;;  %v296_v48 = vmax.f32 %v2554_v37, 0.0  ;;  %v2588_v59 = vmax.f32 %v277_v50, 0.0  ;;  %v298_v60 = vmax.f32 %v2576_v51, 0.0  ;;  %v2591_v61 = vmax.f32 %v279_v52, 0.0  ;;  %v2654_v52 = vld [vmem:[%s2514_s14 + $0x40] ss:$8 sps:$4 sm:$0xff]  }
  0x1a   : > { %v350_v54 = vrot.slane %v2567_v45, 1  ;;  %v351_v55 = vrot.slane %v294_v46, 1  ;;  %v353_v56 = vrot.slane %v2570_v47, 1  ;;  %v228_v0 = vunpack.c.l.bf16 %v208_v49  ;;  %v2386_v37 = vld [vmem:[%s3023_s3 + $0x150] sm:$0xff]   ;;  %v2388_v51 = vld [vmem:[%s3023_s3 + $0x158] sm:$0xff]  }
  0x1b   : > { %2071 = vmatpush3.bf16.msra.mxu1 %v2375_v10  ;;  %v354_v57 = vrot.slane %v296_v48, 1  ;;  %v254_v1 = vmul.f32 %v2528_v19, %v227_v53  ;;  %v300_v4 = vmax.f32 %v2586_v58, 0.0  ;;  %v356_v5 = vrot.slane %v2588_v59, 1  ;;  %v216_v53 = vld [vmem:[%s2514_s14 + $0x44] sm:$0x1]  ;;  %v2396_v58 = vld [vmem:[%s3023_s3 + $0x178] sm:$0xff]  }
  0x1c   : > { %2167 = vmatpush3.bf16.msra.mxu0 %v2376_v14  ;;  %2072 = vmatprep.subr.bf16.mxu1 %v2377_v28  ;;  %v352_v62 = vsel %vm349_vm0, %v350_v54, %v351_v55  ;;  %v357_v6 = vrot.slane %v298_v60, 1  ;;  %v359_v7 = vrot.slane %v2591_v61, 1  ;;  %v255_v9 = vmul.f32 %v2528_v19, %v228_v0 }
  0x1d   : > { %2168 = vmatprep.subr.bf16.mxu0 %v2378_v29  ;;  %v355_v63 = vsel %vm349_vm0, %v353_v56, %v354_v57  ;;  %v281_v10 = vadd.f32 %v2533_v20, %v254_v1  ;;  %v229_v11 = vunpack.c.h.bf16 %v207_v38  ;;  %v360_v13 = vrot.slane %v300_v4, 1 }
  0x1e   : > { %v382_v2 = vpack.c.bf16 %v355_v63, %v352_v62  ;;  %v358_v12 = vsel %vm349_vm0, %v356_v5, %v357_v6  ;;  %v2615_v15 = vadd.f32 %v2533_v20, %v255_v9  ;;  %v804_v22 = vpack.c.bf16 %v2588_v59, %v2570_v47 }
  0x1f   : > { %2073 = vmatpush3.bf16.msra.mxu1 %v2377_v28  ;;  %v952_v14 = vpack.c.bf16 %v358_v12, %v355_v63  ;;  %v2617_v16 = vmax.f32 %v281_v10, 0.0  ;;  %v256_v17 = vmul.f32 %v2528_v19, %v229_v11  ;;  %v361_v18 = vsel %vm349_vm0, %v359_v7, %v360_v13  ;;  %v2387_v7 = vld [vmem:[%s3023_s3 + $0x18] sm:$0xff]  }
  0x20   : > { %2169 = vmatpush3.bf16.msra.mxu0 %v2378_v29  ;;  %2074 = vmatprep.subr.bf16.mxu1 %v2379_v39  ;;  %v2626_v23 = vpack.c.bf16 %v361_v18, %v358_v12  ;;  %v302_v24 = vmax.f32 %v2615_v15, 0.0  ;;  %v230_v28 = vunpack.c.l.bf16 %v210_v26  ;;  %v211_v29 = vld [vmem:[%s2514_s14 + $0x30] ss:$8 sps:$4 sm:$0xff]   ;;  %v232_v40 = vunpack.c.l.bf16 %v212_v32  ;;  %v2389_v32 = vld [vmem:[%s3023_s3 + $0x20] sm:$0xff]  }
  0x21   : > { %2170 = vmatprep.subr.bf16.mxu0 %v2380_v44  ;;  %2076 = vmatprep.mubr.bf16.mxu1 %v382_v2  ;;  %v362_v25 = vrot.slane %v2617_v16, 1  ;;  %v283_v27 = vadd.f32 %v2533_v20, %v256_v17  ;;  %v805_v30 = vpack.c.bf16 %v2617_v16, %v2591_v61  ;;  %v231_v33 = vunpack.c.l.bf16 %v211_v29 }
  0x22   : > { %2172 = vmatprep.mubr.bf16.mxu0 %v952_v14  ;;  %v363_v31 = vrot.slane %v302_v24, 1  ;;  %v233_v34 = vunpack.c.h.bf16 %v211_v29  ;;  %v257_v38 = vmul.f32 %v2528_v19, %v230_v28  ;;  %v633_v42 = vrot.slane %v2570_v47, 2 }
  0x23   : > { %2075 = vmatpush3.bf16.msra.mxu1 %v2379_v39  ;;  %v2644_v39 = vmax.f32 %v283_v27, 0.0  ;;  %v258_v49 = vmul.f32 %v2528_v19, %v231_v33  ;;  %v234_v50 = vunpack.c.l.bf16 %v214_v41  ;;  %v634_v54 = vrot.slane %v296_v48, 2 }
  0x24   : > { %2171 = vmatpush3.bf16.msra.mxu0 %v2380_v44  ;;  %2084 = vmatprep.subr.bf16.mxu1 %v2381_v3  ;;  %v364_v43 = vsel %vm349_vm0, %v362_v25, %v363_v31  ;;  %v2385_v44 = vld [vmem:[%s3023_s3 + $0x10] sm:$0xff]   ;;  %v2660_v56 = vadd.f32 %v2533_v20, %v257_v38  ;;  %v259_v57 = vmul.f32 %v2528_v19, %v232_v40  ;;  %v235_v1 = vunpack.c.l.bf16 %v2654_v52 }
  0x25   : > { %2180 = vmatprep.subr.bf16.mxu0 %v2607_v8  ;;  %v953_v55 = vpack.c.bf16 %v364_v43, %v361_v18  ;;  %v260_v62 = vmul.f32 %v2528_v19, %v233_v34  ;;  %v285_v63 = vadd.f32 %v2533_v20, %v258_v49  ;;  %v261_v0 = vmul.f32 %v2528_v19, %v234_v50 }
  0x26   : > { %2077 = vmatmul.mubr.bf16.vlgmr.msra.gmra.mrb[0].mxu1 %v2626_v23  ;;  %v236_v2 = vunpack.c.l.bf16 %v216_v53  ;;  %v304_v48 = vmax.f32 %v2660_v56, 0.0  ;;  %v2673_v5 = vadd.f32 %v2533_v20, %v259_v57  ;;  %v262_v11 = vmul.f32 %v2528_v19, %v235_v1  ;;  %v2399_v56 = vld [vmem:[%s3023_s3 + $0x88] sm:$0xff]  }
  0x27   : > { %2085 = vmatpush3.bf16.msra.mxu1 %v2381_v3  ;;  %2173 = vmatmul.mubr.bf16.vlgmr.msra.gmra.mrb[0].mxu0 %v953_v55  ;;  %v365_v3 = vrot.slane %v2644_v39, 1  ;;  %v287_v6 = vadd.f32 %v2533_v20, %v260_v62  ;;  %v2680_v9 = vmax.f32 %v285_v63, 0.0  ;;  %v2683_v10 = vadd.f32 %v2533_v20, %v261_v0  ;;  %v2391_v55 = vld [vmem:[%s3023_s3 + $0x28] sm:$0xff]   ;;  %v2390_v62 = vld [vmem:[%s3023_s3 + $0x160] sm:$0xff]  }
  0x28   : > { %2086 = vmatprep.subr.bf16.mxu1 %v2383_v21  ;;  %2181 = vmatpush3.bf16.msra.mxu0 %v2607_v8  ;;  %v263_v12 = vmul.f32 %v2528_v19, %v236_v2  ;;  %v366_v13 = vrot.slane %v304_v48, 1  ;;  %v306_v8 = vmax.f32 %v2673_v5, 0.0  ;;  %v636_v17 = vrot.slane %v2588_v59, 2 }
  0x29   : > { %2182 = vmatprep.subr.bf16.mxu0 %v2384_v36  ;;  %v2690_v14 = vmax.f32 %v287_v6, 0.0  ;;  %v368_v18 = vrot.slane %v2680_v9, 1  ;;  %v289_v25 = vadd.f32 %v2533_v20, %v262_v11  ;;  %v637_v31 = vrot.slane %v298_v60, 2  ;;  %v218_v6 = vld [vmem:[%s2514_s14 + $0x4c] sm:$0x1]  ;;  %v2394_v11 = vld [vmem:[%s3023_s3 + $0x170] sm:$0xff]  }
  0x2a   : > { %v2697_v26 = vadd.f32 %v2533_v20, %v263_v12  ;;  %v367_v27 = vsel %vm349_vm0, %v365_v3, %v366_v13  ;;  %v369_v28 = vrot.slane %v306_v8, 1  ;;  %v2727_v50 = vsel %vm629_vm1, %v633_v42, %v634_v54  ;;  %v2395_v12 = vld [vmem:[%s3023_s3 + $0x38] sm:$0xff]  }
  0x2b   : > { %2087 = vmatpush3.bf16.msra.mxu1 %v2383_v21  ;;  %v308_v21 = vmax.f32 %v2683_v10, 0.0  ;;  %v371_v29 = vrot.slane %v2690_v14, 1  ;;  %v2708_v33 = vpack.c.bf16 %v367_v27, %v364_v43  ;;  %v2712_v38 = vmax.f32 %v289_v25, 0.0  ;;  %v2403_v10 = vld [vmem:[%s3023_s3 + $0x98] sm:$0xff]  }
  0x2c   : > { %2088 = vmatprep.subr.bf16.mxu1 %v2385_v44  ;;  %2183 = vmatpush3.bf16.msra.mxu0 %v2384_v36  ;;  %v310_v40 = vmax.f32 %v2697_v26, 0.0  ;;  %v370_v60 = vsel %vm349_vm0, %v368_v18, %v369_v28  ;;  %v2730_v53 = vsel %vm629_vm1, %v636_v17, %v637_v31  ;;  %v313_v54 = vpack.c.bf16 %v2570_v47, %v2567_v45  ;;  %v2397_v28 = vld [vmem:[%s3023_s3 + $0x80] sm:$0xff]   ;;  %v2423_v47 = vld [vmem:[%s3023_s3 + $0xe8] sm:$0xff]  }
  0x2d   : > { %v372_v34 = vrot.slane %v308_v21, 1  ;;  %2184 = vmatprep.subr.bf16.mxu0 %v2386_v37  ;;  %2080 = vmatprep.mubr.bf16.mxu1 %v2708_v33  ;;  %v954_v36 = vpack.c.bf16 %v370_v60, %v367_v27  ;;  %v948_v43 = vrot.slane %v2712_v38, 1  ;;  %v1098_v63 = vpack.c.bf16 %v2730_v53, %v2727_v50 }
  0x2e   : > { %v237_v0 = vunpack.c.h.bf16 %v2654_v52  ;;  %v806_v1 = vpack.c.bf16 %v2680_v9, %v2644_v39  ;;  %v807_v2 = vpack.c.bf16 %v2712_v38, %v2690_v14  ;;  %v2392_v52 = vld [vmem:[%s3023_s3 + $0x168] sm:$0xff]   ;;  %v238_v13 = vunpack.c.l.bf16 %v218_v6 }
  0x2f   : > { %2089 = vmatpush3.bf16.msra.mxu1 %v2385_v44  ;;  %v373_v41 = vsel %vm349_vm0, %v371_v29, %v372_v34  ;;  %v949_v44 = vrot.slane %v310_v40, 1  ;;  %2176 = vmatprep.mubr.bf16.mxu0 %v954_v36  ;;  %v639_v17 = vrot.slane %v2591_v61, 2  ;;  %v640_v25 = vrot.slane %v300_v4, 2 }
  0x30   : > { %2090 = vmatprep.subr.bf16.mxu1 %v2387_v7  ;;  %v2722_v49 = vpack.c.bf16 %v373_v41, %v370_v60  ;;  %2185 = vmatpush3.bf16.msra.mxu0 %v2386_v37  ;;  %v2393_v37 = vld [vmem:[%s3023_s3 + $0x30] sm:$0xff]   ;;  %v264_v3 = vmul.f32 %v2528_v19, %v237_v0  ;;  %v642_v26 = vrot.slane %v2617_v16, 2  ;;  %v265_v27 = vmul.f32 %v2528_v19, %v238_v13 }
  0x31   : > { %v2736_v57 = vsel %vm349_vm0, %v948_v43, %v949_v44  ;;  %2186 = vmatprep.subr.bf16.mxu0 %v2388_v51  ;;  %v643_v29 = vrot.slane %v302_v24, 2  ;;  %v645_v31 = vrot.slane %v2644_v39, 2  ;;  %v646_v19 = vrot.slane %v304_v48, 2 }
  0x32   : > { %v955_v42 = vpack.c.bf16 %v2736_v57, %v373_v41  ;;  %2081 = vmatmul.mubr.bf16.gmra.mrb[4].mxu1 %v2722_v49  ;;  %v648_v4 = vrot.slane %v2680_v9, 2  ;;  %v292_v34 = vadd.f32 %v2533_v20, %v265_v27  ;;  %v1094_v15 = vrot.slane %v2712_v38, 2  ;;  %v2404_v27 = vld [vmem:[%s3023_s3 + $0x198] sm:$0xff]  }
  0x33   : > { %2091 = vmatpush3.bf16.msra.mxu1 %v2387_v7  ;;  %2100 = vmatprep.mubr.bf16.mxu1 %v313_v54  ;;  %v291_v7 = vadd.f32 %v2533_v20, %v264_v3  ;;  %v1095_v24 = vrot.slane %v310_v40, 2  ;;  %v314_v36 = vpack.c.bf16 %v2591_v61, %v2588_v59  ;;  %v649_v48 = vrot.slane %v306_v8, 2  ;;  %v2422_v59 = vld [vmem:[%s3023_s3 + $0x1e0] sm:$0xff]   ;;  %v2432_v61 = vld [vmem:[%s3023_s3 + $0x218] sm:$0xff]  }
  0x34   : > { %2092 = vmatprep.subr.bf16.mxu1 %v2389_v32  ;;  %2177 = vmatmul.mubr.bf16.gmra.mrb[4].mxu0 %v955_v42  ;;  %v2801_v40 = vpack.c.bf16 %v2644_v39, %v2617_v16  ;;  %v630_v43 = vrot.slane %v2567_v45, 2  ;;  %v2805_v44 = vsel %vm629_vm1, %v639_v17, %v640_v25  ;;  %v631_v5 = vrot.slane %v294_v46, 2  ;;  %v2402_v25 = vld [vmem:[%s3023_s3 + $0x190] sm:$0xff]   ;;  %v2433_v16 = vld [vmem:[%s3023_s3 + $0x220] sm:$0xff]  }
  0x35   : > { %2187 = vmatpush3.bf16.msra.mxu0 %v2388_v51  ;;  %2196 = vmatprep.mubr.bf16.mxu0 %v1098_v63  ;;  %v2768_v18 = vmax.f32 %v291_v7, 0.0  ;;  %v312_v51 = vmax.f32 %v292_v34, 0.0  ;;  %v2816_v42 = vsel %vm629_vm1, %v1094_v15, %v1095_v24  ;;  %v2822_v54 = vsel %vm629_vm1, %v645_v31, %v646_v19  ;;  %v2409_v31 = vld [vmem:[%s3023_s3 + $0xb0] sm:$0xff]   ;;  %v2411_v19 = vld [vmem:[%s3023_s3 + $0xb8] sm:$0xff]   ;;  %v2413_v34 = vld [vmem:[%s3023_s3 + $0xc0] sm:$0xff]  }
  0x36   : > { %2188 = vmatprep.subr.bf16.mxu0 %v2390_v62  ;;  %v2825_v63 = vsel %vm629_vm1, %v648_v4, %v649_v48  ;;  %v652_v6 = vrot.slane %v308_v21, 2  ;;  %v632_v7 = vsel %vm629_vm1, %v630_v43, %v631_v5  ;;  %v2851_v13 = vpack.c.bf16 %v2690_v14, %v2680_v9  ;;  %v2410_v4 = vld [vmem:[%s3023_s3 + $0x1b0] sm:$0xff]   ;;  %v2412_v15 = vld [vmem:[%s3023_s3 + $0x1b8] sm:$0xff]   ;;  %v2430_v5 = vld [vmem:[%s3023_s3 + $0x208] sm:$0xff]  }
  0x37   : > { %2093 = vmatpush3.bf16.msra.mxu1 %v2389_v32  ;;  %v1240_v32 = vpack.c.bf16 %v2768_v18, %v2712_v38  ;;  %v1524_v60 = vrot.slane %v2768_v18, 2  ;;  %v1381_v20 = vrot.slane %v2768_v18, 1  ;;  %v1525_v41 = vrot.slane %v312_v51, 2  ;;  %v2420_v43 = vld [vmem:[%s3023_s3 + $0x1d8] sm:$0xff]   ;;  %v2424_v18 = vld [vmem:[%s3023_s3 + $0x1e8] sm:$0xff]   ;;  %v2435_v39 = vld [vmem:[%s3023_s3 + $0x230] sm:$0xff]  }
  0x38   : > { %2094 = vmatprep.subr.bf16.mxu1 %v2391_v55  ;;  %v1382_v8 = vrot.slane %v312_v51, 1  ;;  %v662_v17 = vpack.c.bf16 %v2727_v50, %v632_v7  ;;  %v2405_v50 = vld [vmem:[%s3023_s3 + $0xa0] sm:$0xff]   ;;  %v2895_v24 = vpack.c.bf16 %v2805_v44, %v2730_v53  ;;  %v2417_v53 = vld [vmem:[%s3023_s3 + $0xd0] sm:$0xff]   ;;  %v2436_v9 = vld [vmem:[%s3023_s3 + $0x238] sm:$0xff]  }
  0x39   : > { %2189 = vmatpush3.bf16.msra.mxu0 %v2390_v62  ;;  %v2398_v62 = vld [vmem:[%s3023_s3 + $0x180] sm:$0xff]   ;;  %v2819_v45 = vsel %vm629_vm1, %v1524_v60, %v1525_v41  ;;  %v2415_v60 = vld [vmem:[%s3023_s3 + $0xc8] sm:$0xff]   ;;  %v2418_v41 = vld [vmem:[%s3023_s3 + $0x1d0] sm:$0xff]  }
  0x3a   : > { %2190 = vmatprep.subr.bf16.mxu0 %v2392_v52  ;;  %v1528_v35 = vpack.c.bf16 %v2819_v45, %v2816_v42  ;;  %v2830_v46 = vsel %vm349_vm0, %v1381_v20, %v1382_v8  ;;  %v2419_v20 = vld [vmem:[%s3023_s3 + $0xd8] sm:$0xff]   ;;  %v2431_v8 = vld [vmem:[%s3023_s3 + $0x210] sm:$0xff]  }
  0x3b   : > { %2095 = vmatpush3.bf16.msra.mxu1 %v2391_v55  ;;  %v2808_v55 = vsel %vm629_vm1, %v642_v26, %v643_v29  ;;  %v1385_v3 = vpack.c.bf16 %v2830_v46, %v2736_v57  ;;  %v2406_v29 = vld [vmem:[%s3023_s3 + $0x1a0] sm:$0xff]  }
  0x3c   : > { %2096 = vmatprep.subr.bf16.mxu1 %v2393_v37  ;;  %v1099_v0 = vpack.c.bf16 %v2808_v55, %v2805_v44  ;;  %v2899_v51 = vpack.c.bf16 %v2822_v54, %v2808_v55  ;;  %v2429_v44 = vld [vmem:[%s3023_s3 + $0x200] sm:$0xff]   ;;  %v2428_v55 = vld [vmem:[%s3023_s3 + $0x1f8] sm:$0xff]  }
  0x3d   : > { %2191 = vmatpush3.bf16.msra.mxu0 %v2392_v52  ;;  %v651_v52 = vrot.slane %v2690_v14, 2 }
  0x3e   : > { %2192 = vmatprep.subr.bf16.mxu0 %v2394_v11 }
  0x3f   : > { %2097 = vmatpush3.bf16.msra.mxu1 %v2393_v37  ;;  %v2401_v37 = vld [vmem:[%s3023_s3 + $0x90] sm:$0xff]   ;;  %v653_v21 = vsel %vm629_vm1, %v651_v52, %v652_v6 }
  0x40   : > { %2098 = vmatprep.subr.bf16.mxu1 %v2395_v12  ;;  %v1101_v26 = vpack.c.bf16 %v2816_v42, %v653_v21  ;;  %v2916_v48 = vpack.c.bf16 %v653_v21, %v2825_v63 }
  0x41   : > { %2193 = vmatpush3.bf16.msra.mxu0 %v2394_v11  ;;  %v2400_v11 = vld [vmem:[%s3023_s3 + $0x188] sm:$0xff]  }
  0x42   : > { %2194 = vmatprep.subr.bf16.mxu0 %v2396_v58 }
  0x43   : > { %2099 = vmatpush3.bf16.msra.mxu1 %v2395_v12  ;;  %v1100_v12 = vpack.c.bf16 %v2825_v63, %v2822_v54 }
  0x44   : > { %2108 = vmatprep.subr.bf16.mxu1 %v2397_v28 }
  0x45   : > { %2195 = vmatpush3.bf16.msra.mxu0 %v2396_v58  ;;  %v2408_v58 = vld [vmem:[%s3023_s3 + $0x1a8] sm:$0xff]  }
  0x46   : > { %2101 = vmatmul.mubr.bf16.vlgmr.msra.gmra.mrb[0].mxu1 %v314_v36  ;;  %2204 = vmatprep.subr.bf16.mxu0 %v2398_v62 }
  0x47   : > { %2109 = vmatpush3.bf16.msra.mxu1 %v2397_v28  ;;  %2104 = vmatprep.mubr.bf16.mxu1 %v2801_v40  ;;  %v2407_v28 = vld [vmem:[%s3023_s3 + $0xa8] sm:$0xff]  }
  0x48   : > { %2110 = vmatprep.subr.bf16.mxu1 %v2399_v56  ;;  %2197 = vmatmul.mubr.bf16.vlgmr.msra.gmra.mrb[0].mxu0 %v1099_v0 }
  0x49   : > { %2205 = vmatpush3.bf16.msra.mxu0 %v2398_v62  ;;  %2200 = vmatprep.mubr.bf16.mxu0 %v1100_v12 }
  0x4a   : > { %2206 = vmatprep.subr.bf16.mxu0 %v2400_v11 }
  0x4b   : > { %2111 = vmatpush3.bf16.msra.mxu1 %v2399_v56  ;;  %v2416_v56 = vld [vmem:[%s3023_s3 + $0x1c8] sm:$0xff]  }
  0x4c   : > { %2112 = vmatprep.subr.bf16.mxu1 %v2401_v37 }
  0x4d   : > { %2207 = vmatpush3.bf16.msra.mxu0 %v2400_v11 }
  0x4e   : > { %2105 = vmatmul.mubr.bf16.gmra.mrb[4].mxu1 %v2851_v13  ;;  %2208 = vmatprep.subr.bf16.mxu0 %v2402_v25 }
  0x4f   : > { %2113 = vmatpush3.bf16.msra.mxu1 %v2401_v37  ;;  %2124 = vmatprep.mubr.bf16.mxu1 %v662_v17 }
  0x50   : > { %2114 = vmatprep.subr.bf16.mxu1 %v2403_v10  ;;  %2201 = vmatmul.mubr.bf16.gmra.mrb[4].mxu0 %v1101_v26 }
  0x51   : > { %2209 = vmatpush3.bf16.msra.mxu0 %v2402_v25  ;;  %2220 = vmatprep.mubr.bf16.mxu0 %v314_v36  ;;  %v2414_v36 = vld [vmem:[%s3023_s3 + $0x1c0] sm:$0xff]  }
  0x52   : > { %2210 = vmatprep.subr.bf16.mxu0 %v2404_v27 }
  0x53   : > { %2115 = vmatpush3.bf16.msra.mxu1 %v2403_v10 }
  0x54   : > { %2116 = vmatprep.subr.bf16.mxu1 %v2405_v50 }
  0x55   : > { %2211 = vmatpush3.bf16.msra.mxu0 %v2404_v27 }
  0x56   : > { %2212 = vmatprep.subr.bf16.mxu0 %v2406_v29 }
  0x57   : > { %2117 = vmatpush3.bf16.msra.mxu1 %v2405_v50 }
  0x58   : > { %2118 = vmatprep.subr.bf16.mxu1 %v2407_v28 }
  0x59   : > { %2213 = vmatpush3.bf16.msra.mxu0 %v2406_v29 }
  0x5a   : > { %2214 = vmatprep.subr.bf16.mxu0 %v2408_v58 }
  0x5b   : > { %2119 = vmatpush3.bf16.msra.mxu1 %v2407_v28 }
  0x5c   : > { %2120 = vmatprep.subr.bf16.mxu1 %v2409_v31 }
  0x5d   : > { %2215 = vmatpush3.bf16.msra.mxu0 %v2408_v58 }
  0x5e   : > { %2216 = vmatprep.subr.bf16.mxu0 %v2410_v4 }
  0x5f   : > { %2121 = vmatpush3.bf16.msra.mxu1 %v2409_v31 }
  0x60   : > { %2122 = vmatprep.subr.bf16.mxu1 %v2411_v19 }
  0x61   : > { %2217 = vmatpush3.bf16.msra.mxu0 %v2410_v4 }
  0x62   : > { %2218 = vmatprep.subr.bf16.mxu0 %v2412_v15 }
  0x63   : > { %2123 = vmatpush3.bf16.msra.mxu1 %v2411_v19 }
  0x64   : > { %2132 = vmatprep.subr.bf16.mxu1 %v2413_v34 }
  0x65   : > { %2219 = vmatpush3.bf16.msra.mxu0 %v2412_v15 }
  0x66   : > { %2125 = vmatmul.mubr.bf16.vlgmr.msra.gmra.mrb[0].mxu1 %v2895_v24  ;;  %2228 = vmatprep.subr.bf16.mxu0 %v2414_v36 }
  0x67   : > { %2133 = vmatpush3.bf16.msra.mxu1 %v2413_v34  ;;  %2128 = vmatprep.mubr.bf16.mxu1 %v2899_v51 }
  0x68   : > { %2134 = vmatprep.subr.bf16.mxu1 %v2415_v60  ;;  %2221 = vmatmul.mubr.bf16.vlgmr.msra.gmra.mrb[0].mxu0 %v2801_v40  ;;  %v2421_v40 = vld [vmem:[%s3023_s3 + $0xe0] sm:$0xff]  }
  0x69   : > { %2229 = vmatpush3.bf16.msra.mxu0 %v2414_v36  ;;  %2224 = vmatprep.mubr.bf16.mxu0 %v2851_v13 }
  0x6a   : > { %2230 = vmatprep.subr.bf16.mxu0 %v2416_v56 }
  0x6b   : > { %2135 = vmatpush3.bf16.msra.mxu1 %v2415_v60 }
  0x6c   : > { %2136 = vmatprep.subr.bf16.mxu1 %v2417_v53 }
  0x6d   : > { %2231 = vmatpush3.bf16.msra.mxu0 %v2416_v56 }
  0x6e   : > { %2129 = vmatmul.mubr.bf16.gmra.mrb[4].mxu1 %v2916_v48  ;;  %2232 = vmatprep.subr.bf16.mxu0 %v2418_v41 }
  0x6f   : > { %2137 = vmatpush3.bf16.msra.mxu1 %v2417_v53  ;;  %2148 = vmatprep.mubr.bf16.mxu1 %v804_v22  ;;  %v2425_v22 = vld [vmem:[%s3023_s3 + $0xf0] sm:$0xff]  }
  0x70   : > { %2138 = vmatprep.subr.bf16.mxu1 %v2419_v20  ;;  %2225 = vmatmul.mubr.bf16.gmra.mrb[4].mxu0 %v1240_v32  ;;  %v2427_v32 = vld [vmem:[%s3023_s3 + $0xf8] sm:$0xff]  }
  0x71   : > { %2233 = vmatpush3.bf16.msra.mxu0 %v2418_v41  ;;  %2244 = vmatprep.mubr.bf16.mxu0 %v2626_v23  ;;  %v2426_v23 = vld [vmem:[%s3023_s3 + $0x1f0] sm:$0xff]  }
  0x72   : > { %2234 = vmatprep.subr.bf16.mxu0 %v2420_v43 }
  0x73   : > { %2139 = vmatpush3.bf16.msra.mxu1 %v2419_v20 }
  0x74   : > { %2140 = vmatprep.subr.bf16.mxu1 %v2421_v40 }
  0x75   : > { %2235 = vmatpush3.bf16.msra.mxu0 %v2420_v43 }
  0x76   : > { %2236 = vmatprep.subr.bf16.mxu0 %v2422_v59 }
  0x77   : > { %2141 = vmatpush3.bf16.msra.mxu1 %v2421_v40 }
  0x78   : > { %2142 = vmatprep.subr.bf16.mxu1 %v2423_v47 }
  0x79   : > { %2237 = vmatpush3.bf16.msra.mxu0 %v2422_v59 }
  0x7a   : > { %2238 = vmatprep.subr.bf16.mxu0 %v2424_v18 }
  0x7b   : > { %2143 = vmatpush3.bf16.msra.mxu1 %v2423_v47 }
  0x7c   : > { %2144 = vmatprep.subr.bf16.mxu1 %v2425_v22 }
  0x7d   : > { %2239 = vmatpush3.bf16.msra.mxu0 %v2424_v18 }
  0x7e   : > { %2240 = vmatprep.subr.bf16.mxu0 %v2426_v23 }
  0x7f   : > { %2145 = vmatpush3.bf16.msra.mxu1 %v2425_v22 }
  0x80   : > { %2146 = vmatprep.subr.bf16.mxu1 %v2427_v32 }
  0x81   : > { %2241 = vmatpush3.bf16.msra.mxu0 %v2426_v23 }
  0x82   : > { %2242 = vmatprep.subr.bf16.mxu0 %v2428_v55 }
  0x83   : > { %2147 = vmatpush3.bf16.msra.mxu1 %v2427_v32 }
  0x84   : > { %2276 = vmatprep.subr.bf16.mxu1 %v2429_v44 }
  0x85   : > { %2243 = vmatpush3.bf16.msra.mxu0 %v2428_v55 }
  0x86   : > { %2149 = vmatmul.mubr.bf16.vlgmr.msra.gmra.mrb[0].mxu1 %v805_v30  ;;  %2252 = vmatprep.subr.bf16.mxu0 %v2429_v44  ;;  %v2434_v30 = vld [vmem:[%s3023_s3 + $0x228] sm:$0xff]  }
  0x87   : > { %2284 = vmatpush3.bf16.msra.mxu1 %v2429_v44  ;;  %2152 = vmatprep.mubr.bf16.mxu1 %v806_v1 }
  0x88   : > { %2277 = vmatprep.subr.bf16.mxu1 %v2430_v5  ;;  %2245 = vmatmul.mubr.bf16.vlgmr.msra.gmra.mrb[0].mxu0 %v2708_v33 }
  0x89   : > { %2253 = vmatpush3.bf16.msra.mxu0 %v2429_v44  ;;  %2248 = vmatprep.mubr.bf16.mxu0 %v2722_v49 }
  0x8a   : > { %2254 = vmatprep.subr.bf16.mxu0 %v2430_v5 }
  0x8b   : > { %2285 = vmatpush3.bf16.msra.mxu1 %v2430_v5 }
  0x8c   : > { %2278 = vmatprep.subr.bf16.mxu1 %v2431_v8 }
  0x8d   : > { %2255 = vmatpush3.bf16.msra.mxu0 %v2430_v5 }
  0x8e   : > { %2153 = vmatmul.mubr.bf16.gmra.mrb[4].mxu1 %v807_v2  ;;  %2256 = vmatprep.subr.bf16.mxu0 %v2431_v8 }
  0x8f   : > { %2286 = vmatpush3.bf16.msra.mxu1 %v2431_v8  ;;  %2272 = vmatprep.mubr.bf16.mxu1 %v2916_v48 }
  0x90   : > { %2279 = vmatprep.subr.bf16.mxu1 %v2432_v61  ;;  %2249 = vmatmul.mubr.bf16.gmra.mrb[4].mxu0 %v1385_v3 }
  0x91   : > { %2257 = vmatpush3.bf16.msra.mxu0 %v2431_v8  ;;  %2268 = vmatprep.mubr.bf16.mxu0 %v2895_v24 }
  0x92   : > { %2258 = vmatprep.subr.bf16.mxu0 %v2432_v61 }
  0x93   : > { %2287 = vmatpush3.bf16.msra.mxu1 %v2432_v61 }
  0x94   : > { %2280 = vmatprep.subr.bf16.mxu1 %v2433_v16 }
  0x95   : > { %2259 = vmatpush3.bf16.msra.mxu0 %v2432_v61 }
  0x96   : > { %2260 = vmatprep.subr.bf16.mxu0 %v2433_v16 }
  0x97   : > { %2288 = vmatpush3.bf16.msra.mxu1 %v2433_v16 }
  0x98   : > { %2281 = vmatprep.subr.bf16.mxu1 %v2434_v30 }
  0x99   : > { %2261 = vmatpush3.bf16.msra.mxu0 %v2433_v16 }
  0x9a   : > { %2262 = vmatprep.subr.bf16.mxu0 %v2434_v30 }
  0x9b   : > { %2289 = vmatpush3.bf16.msra.mxu1 %v2434_v30 }
  0x9c   : > { %2282 = vmatprep.subr.bf16.mxu1 %v2435_v39 }
  0x9d   : > { %2263 = vmatpush3.bf16.msra.mxu0 %v2434_v30 }
  0x9e   : > { %2264 = vmatprep.subr.bf16.mxu0 %v2435_v39 }
  0x9f   : > { %2290 = vmatpush3.bf16.msra.mxu1 %v2435_v39 }
  0xa0   : > { %2283 = vmatprep.subr.bf16.mxu1 %v2436_v9 }
  0xa1   : > { %2265 = vmatpush3.bf16.msra.mxu0 %v2435_v39 }
  0xa2   : > { %2266 = vmatprep.subr.bf16.mxu0 %v2436_v9 }
  0xa3   : > { %2291 = vmatpush3.bf16.msra.mxu1 %v2436_v9 }
  0xa5   : > { %2267 = vmatpush3.bf16.msra.mxu0 %v2436_v9 }
  0xa6   : > { %2273 = vmatmul.mubr.bf16.vlgmr.msra.gmra.mrb[8].mxu1 %v1528_v35 }
  0xa8   : > { %2269 = vmatmul.mubr.bf16.vlgmr.msra.gmra.mrb[0].mxu0 %v2899_v51 }
 0x159   : > { %v2150_v14 = vpop.f32.mrb[0].mxu1 }
 0x15a   : > { %v907_v33 = vpop.f32.mrb[1].mxu1 }
 0x15b   : > { %v2151_v38 = vpop.f32.mrb[2].mxu1 }
 0x15c   : > { %v910_v49 = vpop.f32.mrb[3].mxu1 }
 0x161   : > { %v2154_v57 = vpop.f32.mrb[4].mxu1 }
 0x162   : > { %v923_v1 = vpop.f32.mrb[5].mxu1 }
 0x163   : > { %v2155_v2 = vpop.f32.mrb[6].mxu1  ;;  %v2250_v54 = vpop.f32.mrb[4].mxu0 }
 0x164   : > { %v926_v62 = vpop.f32.mrb[7].mxu1  ;;  %v2296_v63 = vadd.f32 %v2250_v54, %v2154_v57  ;;  %v1501_v46 = vpop.f32.mrb[5].mxu0 }
 0x165   : > { %v2298_v0 = vadd.f32 %v1501_v46, %v923_v1  ;;  %v2251_v37 = vpop.f32.mrb[6].mxu0 }
 0x166   : > { %v2300_v3 = vadd.f32 %v2251_v37, %v2155_v2  ;;  %v1504_v42 = vpop.f32.mrb[7].mxu0 }
 0x167   : > { %v2302_v45 = vadd.f32 %v1504_v42, %v926_v62 }
 0x179   : > { %v2274_v35 = vpop.f32.mrb[8].mxu1 }
 0x17a   : > { %v2297_v52 = vadd.f32 %v2296_v63, %v2274_v35  ;;  %v1644_v6 = vpop.f32.mrb[9].mxu1 }
 0x17b   : > { %v2299_v7 = vadd.f32 %v2298_v0, %v1644_v6  ;;  %v2275_v11 = vpop.f32.mrb[10].mxu1  ;;  %v2270_v25 = vpop.f32.mrb[0].mxu0 }
 0x17c   : > { %v1673_v12 = vpack.c.bf16 %v2297_v52, %v2297_v52  ;;  %v2301_v13 = vadd.f32 %v2300_v3, %v2275_v11  ;;  %v1647_v17 = vpop.f32.mrb[11].mxu1  ;;  %v2292_v50 = vadd.f32 %v2270_v25, %v2150_v14  ;;  %v1628_v27 = vpop.f32.mrb[1].mxu0 }
 0x17d   : > { %v1671_v10 = vpack.c.bf16 %v2299_v7, %v2299_v7  ;;  %v2303_v21 = vadd.f32 %v2302_v45, %v1647_v17  ;;  %v2293_v29 = vadd.f32 %v1628_v27, %v907_v33  ;;  %v2271_v31 = vpop.f32.mrb[2].mxu0 }
 0x17e   : > { %1682 = vst.msk [vmem:[%s197_s29 + $0x18] sm:$0xf] %vm1675_vm2, %v1673_v12  ;;  %v1674_v26 = vpack.c.bf16 %v2301_v13, %v2301_v13  ;;  %v1669_v58 = vpack.c.bf16 %v2292_v50, %v2292_v50  ;;  %v2294_v19 = vadd.f32 %v2271_v31, %v2151_v38  ;;  %v1631_v4 = vpop.f32.mrb[3].mxu0 }
 0x17f   : > { %1680 = vst.msk [vmem:[%s197_s29 + $0x10] sm:$0xf] %vm1675_vm2, %v1671_v10  ;;  %v1672_v28 = vpack.c.bf16 %v2303_v21, %v2303_v21  ;;  %v1667_v34 = vpack.c.bf16 %v2293_v29, %v2293_v29  ;;  %v2295_v15 = vadd.f32 %v1631_v4, %v910_v49 }
 0x180   : > { %1683 = vst.msk [vmem:[%s197_s29 + $0x1c] sm:$0xf] %vm1675_vm2, %v1674_v26  ;;  %1678 = vst.msk [vmem:[%s197_s29 + $0x8] sm:$0xf] %vm1675_vm2, %v1669_v58  ;;  %v1670_v24 = vpack.c.bf16 %v2294_v19, %v2294_v19 }
 0x181   : > { %1681 = vst.msk [vmem:[%s197_s29 + $0x14] sm:$0xf] %vm1675_vm2, %v1672_v28  ;;  %1676 = vst.msk [vmem:[%s197_s29] sm:$0xf] %vm1675_vm2, %v1667_v34  ;;  %v1668_v51 = vpack.c.bf16 %v2295_v15, %v2295_v15 }
 0x182   : > { %1679 = vst.msk [vmem:[%s197_s29 + $0xc] sm:$0xf] %vm1675_vm2, %v1670_v24 }
 0x183   : > { %1677 = vst.msk [vmem:[%s197_s29 + $0x4] sm:$0xf] %vm1675_vm2, %v1668_v51 }
 0x184 PF: > { %s14_s15 = sadd.s32 1, %s2443_s15  }
 0x185   : > { %p11_p4 = scmp.ge.s32.totalorder %s14_s15, 4  }
 0x187   :  { %13 = sbr.rel (!%p11_p4) target bundleno = 1 (0x1), region = 74 }

// kernel: _lambda_.24
= control target key start
LH: loop header
LB: loop body
LE: loop exit
PB: predicated region body
PF: predicated region fallthrough
CT: control target
= control target key end

     0   :  { %vm168_vm0 = vcmask 785408   ;;  %s709_s3 = inlined_call_operand.vmem [shape: bf16[96,128], index: 3, kind: input, shape index: {}]   ;;  %s710_s0 = inlined_call_operand.vmem [shape: bf16[128,96], index: 0, kind: input, shape index: {}]   ;;  %s711_s1 = inlined_call_operand.vmem [shape: f32[1,96], index: 1, kind: input, shape index: {}]   ;;  %s712_s2 = inlined_call_operand.vmem [shape: f32[1,96], index: 2, kind: input, shape index: {}]   ;;  %s713_s4 = inlined_call_operand.vmem [shape: bf16[128,128], index: 4, kind: output, shape index: {}]  }
   0x1   :  { %v562_v0 = vld [vmem:[%s709_s3] sm:$0xff]   ;;  %v563_v1 = vld [vmem:[%s709_s3 + $0x8] sm:$0xff]   ;;  %v564_v2 = vld [vmem:[%s709_s3 + $0x10] sm:$0xff]  }
   0x2   :  { %522 = vmatprep.subr.bf16.mxu0 %v562_v0  ;;  %550 = vmatprep.subr.bf16.mxu1 %v562_v0  ;;  %v423_v3 = vld [vmem:[%s710_s0] sm:$0xff]   ;;  %v494_v8 = vld [vmem:[%s710_s0 + $0x8] sm:$0xff]   ;;  %v565_v10 = vld [vmem:[%s709_s3 + $0x18] sm:$0xff]  }
   0x3   :  { %523 = vmatpush3.bf16.msra.mxu0 %v562_v0  ;;  %556 = vmatpush3.bf16.msra.mxu1 %v562_v0  ;;  %v608_v4 = vld [vmem:[%s711_s1] ss:$0 sm:$0xff]  ;;  %v424_v5 = vunpack.c.l.bf16 %v423_v3  ;;  %v425_v6 = vunpack.c.h.bf16 %v423_v3  ;;  %v498_v9 = vld [vmem:[%s710_s0 + $0x28] sm:$0xff]   ;;  %v428_v14 = vunpack.c.l.bf16 %v494_v8  ;;  %v429_v15 = vunpack.c.h.bf16 %v494_v8  ;;  %v495_v16 = vld [vmem:[%s710_s0 + $0x10] sm:$0xff]  }
   0x4   :  { %524 = vmatprep.subr.bf16.mxu0 %v563_v1  ;;  %551 = vmatprep.subr.bf16.mxu1 %v563_v1  ;;  %v497_v7 = vld [vmem:[%s710_s0 + $0x20] sm:$0xff]   ;;  %v444_v19 = vunpack.c.l.bf16 %v498_v9  ;;  %v445_v20 = vunpack.c.h.bf16 %v498_v9  ;;  %v432_v28 = vunpack.c.l.bf16 %v495_v16  ;;  %v433_v33 = vunpack.c.h.bf16 %v495_v16  ;;  %v499_v38 = vld [vmem:[%s710_s0 + $0x30] sm:$0xff]   ;;  %v496_v46 = vld [vmem:[%s710_s0 + $0x18] sm:$0xff]  }
   0x5   :  { %v625_v11 = vld [vmem:[%s712_s2] ss:$0 sm:$0xff]  ;;  %v440_v12 = vunpack.c.l.bf16 %v497_v7  ;;  %v441_v13 = vunpack.c.h.bf16 %v497_v7  ;;  %v57_v17 = vmul.f32 %v424_v5, %v608_v4  ;;  %v58_v18 = vmul.f32 %v425_v6, %v608_v4  ;;  %v567_v47 = vld [vmem:[%s709_s3 + $0x28] sm:$0xff]   ;;  %v500_v52 = vld [vmem:[%s710_s0 + $0x38] sm:$0xff]  }
   0x6   :  { %v59_v23 = vmul.f32 %v428_v14, %v608_v4  ;;  %v60_v24 = vmul.f32 %v429_v15, %v608_v4  ;;  %v67_v27 = vmul.f32 %v444_v19, %v608_v4  ;;  %v566_v29 = vld [vmem:[%s709_s3 + $0x20] sm:$0xff]   ;;  %v68_v37 = vmul.f32 %v445_v20, %v608_v4 }
   0x7   :  { %525 = vmatpush3.bf16.msra.mxu0 %v563_v1  ;;  %557 = vmatpush3.bf16.msra.mxu1 %v563_v1  ;;  %v65_v21 = vmul.f32 %v440_v12, %v608_v4  ;;  %v66_v22 = vmul.f32 %v441_v13, %v608_v4  ;;  %v80_v25 = vadd.f32 %v625_v11, %v57_v17  ;;  %v448_v51 = vunpack.c.l.bf16 %v499_v38 }
   0x8   :  { %526 = vmatprep.subr.bf16.mxu0 %v564_v2  ;;  %552 = vmatprep.subr.bf16.mxu1 %v564_v2  ;;  %v81_v26 = vadd.f32 %v625_v11, %v58_v18  ;;  %v82_v32 = vadd.f32 %v625_v11, %v59_v23  ;;  %v83_v36 = vadd.f32 %v625_v11, %v60_v24  ;;  %v449_v56 = vunpack.c.h.bf16 %v499_v38 }
   0x9   :  { %v88_v30 = vadd.f32 %v625_v11, %v65_v21  ;;  %v89_v31 = vadd.f32 %v625_v11, %v66_v22  ;;  %v96_v34 = vmax.f32 %v80_v25, 0.0  ;;  %v90_v41 = vadd.f32 %v625_v11, %v67_v27 }
   0xa   :  { %v97_v35 = vmax.f32 %v81_v26, 0.0  ;;  %v98_v43 = vmax.f32 %v82_v32, 0.0  ;;  %v91_v44 = vadd.f32 %v625_v11, %v68_v37  ;;  %v61_v45 = vmul.f32 %v432_v28, %v608_v4 }
   0xb   :  { %527 = vmatpush3.bf16.msra.mxu0 %v564_v2  ;;  %558 = vmatpush3.bf16.msra.mxu1 %v564_v2  ;;  %v104_v39 = vmax.f32 %v88_v30, 0.0  ;;  %v105_v40 = vmax.f32 %v89_v31, 0.0  ;;  %v99_v49 = vmax.f32 %v83_v36, 0.0  ;;  %v62_v50 = vmul.f32 %v433_v33, %v608_v4 }
   0xc   :  { %528 = vmatprep.subr.bf16.mxu0 %v565_v10  ;;  %553 = vmatprep.subr.bf16.mxu1 %v565_v10  ;;  %v112_v42 = vpack.c.bf16 %v97_v35, %v96_v34  ;;  %v106_v53 = vmax.f32 %v90_v41, 0.0  ;;  %v107_v54 = vmax.f32 %v91_v44, 0.0  ;;  %v84_v55 = vadd.f32 %v625_v11, %v61_v45 }
   0xd   :  { %v116_v48 = vpack.c.bf16 %v105_v40, %v104_v39  ;;  %v85_v57 = vadd.f32 %v625_v11, %v62_v50  ;;  %v69_v58 = vmul.f32 %v448_v51, %v608_v4  ;;  %v436_v59 = vunpack.c.l.bf16 %v496_v46 }
   0xe   :  { %534 = vmatprep.mubr.msk.bf16.mxu0 %vm168_vm0, %v112_v42  ;;  %v437_v60 = vunpack.c.h.bf16 %v496_v46  ;;  %v100_v61 = vmax.f32 %v84_v55, 0.0  ;;  %v70_v62 = vmul.f32 %v449_v56, %v608_v4  ;;  %v452_v63 = vunpack.c.l.bf16 %v500_v52 }
   0xf   :  { %529 = vmatpush3.bf16.msra.mxu0 %v565_v10  ;;  %559 = vmatpush3.bf16.msra.mxu1 %v565_v10  ;;  %v101_v0 = vmax.f32 %v85_v57, 0.0  ;;  %v92_v1 = vadd.f32 %v625_v11, %v69_v58  ;;  %v63_v2 = vmul.f32 %v436_v59, %v608_v4  ;;  %v113_v5 = vpack.c.bf16 %v99_v49, %v98_v43 }
  0x10   :  { %530 = vmatprep.subr.bf16.mxu0 %v566_v29  ;;  %554 = vmatprep.subr.bf16.mxu1 %v566_v29  ;;  %v64_v3 = vmul.f32 %v437_v60, %v608_v4  ;;  %v93_v6 = vadd.f32 %v625_v11, %v70_v62  ;;  %v453_v7 = vunpack.c.h.bf16 %v500_v52  ;;  %v71_v8 = vmul.f32 %v452_v63, %v608_v4 }
  0x11   :  { %542 = vmatprep.mubr.msk.bf16.mxu1 %vm168_vm0, %v116_v48  ;;  %v117_v9 = vpack.c.bf16 %v107_v54, %v106_v53  ;;  %v108_v10 = vmax.f32 %v92_v1, 0.0  ;;  %v86_v12 = vadd.f32 %v625_v11, %v63_v2  ;;  %v114_v14 = vpack.c.bf16 %v101_v0, %v100_v61 }
  0x12   :  { %v87_v13 = vadd.f32 %v625_v11, %v64_v3  ;;  %v109_v15 = vmax.f32 %v93_v6, 0.0  ;;  %v72_v16 = vmul.f32 %v453_v7, %v608_v4  ;;  %v94_v17 = vadd.f32 %v625_v11, %v71_v8 }
  0x13   :  { %531 = vmatpush3.bf16.msra.mxu0 %v566_v29  ;;  %560 = vmatpush3.bf16.msra.mxu1 %v566_v29  ;;  %v102_v20 = vmax.f32 %v86_v12, 0.0 }
  0x14   :  { %532 = vmatprep.subr.bf16.mxu0 %v567_v47  ;;  %555 = vmatprep.subr.bf16.mxu1 %v567_v47  ;;  %v118_v18 = vpack.c.bf16 %v109_v15, %v108_v10  ;;  %v95_v19 = vadd.f32 %v625_v11, %v72_v16  ;;  %v103_v21 = vmax.f32 %v87_v13, 0.0  ;;  %v110_v22 = vmax.f32 %v94_v17, 0.0 }
  0x16   :  { %v111_v23 = vmax.f32 %v95_v19, 0.0  ;;  %v115_v24 = vpack.c.bf16 %v103_v21, %v102_v20 }
  0x17   :  { %533 = vmatpush3.bf16.msra.mxu0 %v567_v47  ;;  %561 = vmatpush3.bf16.msra.mxu1 %v567_v47 }
  0x18   :  { %v119_v25 = vpack.c.bf16 %v111_v23, %v110_v22 }
  0x1a   :  { %535 = vmatmul.mubr.msk.bf16.vlgmr.msra.gmra.mrb[0].mxu0 %vm168_vm0, %v113_v5  ;;  %543 = vmatmul.mubr.msk.bf16.vlgmr.msra.gmra.mrb[0].mxu1 %vm168_vm0, %v117_v9 }
  0x1b   :  { %538 = vmatprep.mubr.msk.bf16.mxu0 %vm168_vm0, %v114_v14  ;;  %546 = vmatprep.mubr.msk.bf16.mxu1 %vm168_vm0, %v118_v18 }
  0x22   :  { %539 = vmatmul.mubr.msk.bf16.gmra.mrb[4].mxu0 %vm168_vm0, %v115_v24  ;;  %547 = vmatmul.mubr.msk.bf16.gmra.mrb[4].mxu1 %vm168_vm0, %v119_v25 }
  0xed   :  { %v536_v4 = vpop.f32.mrb[0].mxu0  ;;  %v544_v11 = vpop.f32.mrb[0].mxu1 }
  0xee   :  { %v227_v26 = vpop.f32.mrb[1].mxu0  ;;  %v259_v27 = vpop.f32.mrb[1].mxu1 }
  0xef   :  { %v537_v28 = vpop.f32.mrb[2].mxu0  ;;  %v545_v29 = vpop.f32.mrb[2].mxu1 }
  0xf0   :  { %v462_v30 = vpack.c.bf16 %v537_v28, %v536_v4  ;;  %v482_v31 = vpack.c.bf16 %v545_v29, %v544_v11  ;;  %v230_v32 = vpop.f32.mrb[3].mxu0  ;;  %v262_v33 = vpop.f32.mrb[3].mxu1 }
  0xf1   :  { %v457_v34 = vpack.c.bf16 %v230_v32, %v227_v26  ;;  %v477_v35 = vpack.c.bf16 %v262_v33, %v259_v27 }
  0xf2   :  { %501 = vst [vmem:[%s713_s4 + $0x8] sm:$0xff] %v462_v30   ;;  %505 = vst [vmem:[%s713_s4 + $0x28] sm:$0xff] %v482_v31  }
  0xf3   :  { %458 = vst [vmem:[%s713_s4] sm:$0xff] %v457_v34   ;;  %504 = vst [vmem:[%s713_s4 + $0x20] sm:$0xff] %v477_v35  }
  0xf5   :  { %v540_v36 = vpop.f32.mrb[4].mxu0  ;;  %v548_v37 = vpop.f32.mrb[4].mxu1 }
  0xf6   :  { %v243_v38 = vpop.f32.mrb[5].mxu0  ;;  %v275_v39 = vpop.f32.mrb[5].mxu1 }
  0xf7   :  { %v541_v40 = vpop.f32.mrb[6].mxu0  ;;  %v549_v41 = vpop.f32.mrb[6].mxu1 }
  0xf8   :  { %v472_v42 = vpack.c.bf16 %v541_v40, %v540_v36  ;;  %v492_v43 = vpack.c.bf16 %v549_v41, %v548_v37  ;;  %v246_v44 = vpop.f32.mrb[7].mxu0  ;;  %v278_v45 = vpop.f32.mrb[7].mxu1 }
  0xf9   :  { %v467_v46 = vpack.c.bf16 %v246_v44, %v243_v38  ;;  %v487_v47 = vpack.c.bf16 %v278_v45, %v275_v39 }
  0xfa   :  { %503 = vst [vmem:[%s713_s4 + $0x18] sm:$0xff] %v472_v42   ;;  %507 = vst [vmem:[%s713_s4 + $0x38] sm:$0xff] %v492_v43  }
  0xfb   :  { %502 = vst [vmem:[%s713_s4 + $0x10] sm:$0xff] %v467_v46   ;;  %506 = vst [vmem:[%s713_s4 + $0x30] sm:$0xff] %v487_v47  }

// kernel: _lambda_.26
= control target key start
LH: loop header
LB: loop body
LE: loop exit
PB: predicated region body
PF: predicated region fallthrough
CT: control target
= control target key end

     0   :  { %vm345_vm0 = vcmask 519168   ;;  %s698_s3 = inlined_call_operand.vmem [shape: bf16[128,64], index: 3, kind: input, shape index: {}]   ;;  %s699_s0 = inlined_call_operand.vmem [shape: bf16[128,128], index: 0, kind: input, shape index: {}]   ;;  %s700_s1 = inlined_call_operand.vmem [shape: f32[1,128], index: 1, kind: input, shape index: {}]   ;;  %s701_s2 = inlined_call_operand.vmem [shape: f32[1,128], index: 2, kind: input, shape index: {}]   ;;  %s702_s4 = inlined_call_operand.vmem [shape: bf16[128,64], index: 4, kind: output, shape index: {}]  }
   0x1   :  { %v511_v0 = vld [vmem:[%s698_s3] sm:$0xff]   ;;  %v512_v1 = vld [vmem:[%s698_s3 + $0x8] sm:$0xff]   ;;  %v513_v2 = vld [vmem:[%s698_s3 + $0x10] sm:$0xff]  }
   0x2   :  { %463 = vmatprep.subr.bf16.mxu0 %v511_v0  ;;  %495 = vmatprep.subr.bf16.mxu1 %v511_v0  ;;  %v514_v3 = vld [vmem:[%s698_s3 + $0x18] sm:$0xff]   ;;  %v409_v4 = vld [vmem:[%s699_s0] sm:$0xff]   ;;  %v440_v9 = vld [vmem:[%s699_s0 + $0x8] sm:$0xff]  }
   0x3   :  { %464 = vmatpush3.bf16.msra.mxu0 %v511_v0  ;;  %503 = vmatpush3.bf16.msra.mxu1 %v511_v0  ;;  %v562_v5 = vld [vmem:[%s700_s1] ss:$0 sm:$0xff]  ;;  %v410_v6 = vunpack.c.l.bf16 %v409_v4  ;;  %v411_v7 = vunpack.c.h.bf16 %v409_v4  ;;  %v444_v13 = vld [vmem:[%s699_s0 + $0x28] sm:$0xff]   ;;  %v441_v16 = vld [vmem:[%s699_s0 + $0x10] sm:$0xff]   ;;  %v414_v20 = vunpack.c.l.bf16 %v440_v9  ;;  %v415_v21 = vunpack.c.h.bf16 %v440_v9 }
   0x4   :  { %465 = vmatprep.subr.bf16.mxu0 %v512_v1  ;;  %496 = vmatprep.subr.bf16.mxu1 %v512_v1  ;;  %v443_v8 = vld [vmem:[%s699_s0 + $0x20] sm:$0xff]   ;;  %v430_v24 = vunpack.c.l.bf16 %v444_v13  ;;  %v431_v25 = vunpack.c.h.bf16 %v444_v13  ;;  %v418_v28 = vunpack.c.l.bf16 %v441_v16  ;;  %v445_v31 = vld [vmem:[%s699_s0 + $0x30] sm:$0xff]   ;;  %v516_v32 = vld [vmem:[%s698_s3 + $0x28] sm:$0xff]   ;;  %v419_v40 = vunpack.c.h.bf16 %v441_v16 }
   0x5   :  { %v573_v10 = vld [vmem:[%s701_s2] ss:$0 sm:$0xff]  ;;  %v426_v11 = vunpack.c.l.bf16 %v443_v8  ;;  %v427_v12 = vunpack.c.h.bf16 %v443_v8  ;;  %v57_v14 = vmul.f32 %v410_v6, %v562_v5  ;;  %v58_v15 = vmul.f32 %v411_v7, %v562_v5  ;;  %v442_v44 = vld [vmem:[%s699_s0 + $0x18] sm:$0xff]   ;;  %v517_v48 = vld [vmem:[%s698_s3 + $0x30] sm:$0xff]  }
   0x6   :  { %v515_v17 = vld [vmem:[%s698_s3 + $0x20] sm:$0xff]   ;;  %v59_v35 = vmul.f32 %v414_v20, %v562_v5  ;;  %v60_v36 = vmul.f32 %v415_v21, %v562_v5  ;;  %v67_v38 = vmul.f32 %v430_v24, %v562_v5  ;;  %v68_v39 = vmul.f32 %v431_v25, %v562_v5  ;;  %v446_v47 = vld [vmem:[%s699_s0 + $0x38] sm:$0xff]  }
   0x7   :  { %466 = vmatpush3.bf16.msra.mxu0 %v512_v1  ;;  %504 = vmatpush3.bf16.msra.mxu1 %v512_v1  ;;  %v65_v18 = vmul.f32 %v426_v11, %v562_v5  ;;  %v66_v19 = vmul.f32 %v427_v12, %v562_v5  ;;  %v80_v22 = vadd.f32 %v573_v10, %v57_v14  ;;  %v434_v43 = vunpack.c.l.bf16 %v445_v31  ;;  %v518_v63 = vld [vmem:[%s698_s3 + $0x38] sm:$0xff]  }
   0x8   :  { %467 = vmatprep.subr.bf16.mxu0 %v513_v2  ;;  %497 = vmatprep.subr.bf16.mxu1 %v513_v2  ;;  %v81_v23 = vadd.f32 %v573_v10, %v58_v15  ;;  %v61_v42 = vmul.f32 %v418_v28, %v562_v5  ;;  %v62_v45 = vmul.f32 %v419_v40, %v562_v5  ;;  %v435_v46 = vunpack.c.h.bf16 %v445_v31 }
   0x9   :  { %v88_v26 = vadd.f32 %v573_v10, %v65_v18  ;;  %v89_v27 = vadd.f32 %v573_v10, %v66_v19  ;;  %v96_v29 = vmax.f32 %v80_v22, 0.0  ;;  %v82_v49 = vadd.f32 %v573_v10, %v59_v35 }
   0xa   :  { %v97_v30 = vmax.f32 %v81_v23, 0.0  ;;  %v83_v50 = vadd.f32 %v573_v10, %v60_v36  ;;  %v69_v51 = vmul.f32 %v434_v43, %v562_v5  ;;  %v90_v52 = vadd.f32 %v573_v10, %v67_v38 }
   0xb   :  { %468 = vmatpush3.bf16.msra.mxu0 %v513_v2  ;;  %505 = vmatpush3.bf16.msra.mxu1 %v513_v2  ;;  %v104_v33 = vmax.f32 %v88_v26, 0.0  ;;  %v105_v34 = vmax.f32 %v89_v27, 0.0  ;;  %v91_v53 = vadd.f32 %v573_v10, %v68_v39  ;;  %v70_v54 = vmul.f32 %v435_v46, %v562_v5 }
   0xc   :  { %469 = vmatprep.subr.bf16.mxu0 %v514_v3  ;;  %498 = vmatprep.subr.bf16.mxu1 %v514_v3  ;;  %v112_v37 = vpack.c.bf16 %v97_v30, %v96_v29  ;;  %v422_v55 = vunpack.c.l.bf16 %v442_v44  ;;  %v84_v56 = vadd.f32 %v573_v10, %v61_v42  ;;  %v423_v57 = vunpack.c.h.bf16 %v442_v44 }
   0xd   :  { %v116_v41 = vpack.c.bf16 %v105_v34, %v104_v33  ;;  %v438_v58 = vunpack.c.l.bf16 %v446_v47  ;;  %v439_v59 = vunpack.c.h.bf16 %v446_v47  ;;  %v85_v60 = vadd.f32 %v573_v10, %v62_v45 }
   0xe   :  { %479 = vmatprep.mubr.bf16.mxu0 %v112_v37  ;;  %v92_v61 = vadd.f32 %v573_v10, %v69_v51  ;;  %v93_v62 = vadd.f32 %v573_v10, %v70_v54  ;;  %v98_v0 = vmax.f32 %v82_v49, 0.0  ;;  %v99_v1 = vmax.f32 %v83_v50, 0.0 }
   0xf   :  { %470 = vmatpush3.bf16.msra.mxu0 %v514_v3  ;;  %506 = vmatpush3.bf16.msra.mxu1 %v514_v3  ;;  %v106_v2 = vmax.f32 %v90_v52, 0.0  ;;  %v107_v3 = vmax.f32 %v91_v53, 0.0  ;;  %v63_v4 = vmul.f32 %v422_v55, %v562_v5  ;;  %v64_v6 = vmul.f32 %v423_v57, %v562_v5 }
  0x10   :  { %471 = vmatprep.subr.bf16.mxu0 %v515_v17  ;;  %499 = vmatprep.subr.bf16.mxu1 %v515_v17  ;;  %v71_v7 = vmul.f32 %v438_v58, %v562_v5  ;;  %v72_v8 = vmul.f32 %v439_v59, %v562_v5  ;;  %v100_v9 = vmax.f32 %v84_v56, 0.0  ;;  %v101_v11 = vmax.f32 %v85_v60, 0.0 }
  0x11   :  { %487 = vmatprep.mubr.bf16.mxu1 %v116_v41  ;;  %v108_v12 = vmax.f32 %v92_v61, 0.0  ;;  %v109_v13 = vmax.f32 %v93_v62, 0.0  ;;  %v113_v14 = vpack.c.bf16 %v99_v1, %v98_v0  ;;  %v117_v15 = vpack.c.bf16 %v107_v3, %v106_v2 }
  0x12   :  { %v86_v16 = vadd.f32 %v573_v10, %v63_v4  ;;  %v94_v18 = vadd.f32 %v573_v10, %v71_v7  ;;  %v95_v19 = vadd.f32 %v573_v10, %v72_v8  ;;  %v114_v5 = vpack.c.bf16 %v101_v11, %v100_v9 }
  0x13   :  { %472 = vmatpush3.bf16.msra.mxu0 %v515_v17  ;;  %507 = vmatpush3.bf16.msra.mxu1 %v515_v17  ;;  %v87_v17 = vadd.f32 %v573_v10, %v64_v6  ;;  %v118_v20 = vpack.c.bf16 %v109_v13, %v108_v12 }
  0x14   :  { %473 = vmatprep.subr.bf16.mxu0 %v516_v32  ;;  %500 = vmatprep.subr.bf16.mxu1 %v516_v32  ;;  %v102_v21 = vmax.f32 %v86_v16, 0.0  ;;  %v110_v23 = vmax.f32 %v94_v18, 0.0  ;;  %v111_v24 = vmax.f32 %v95_v19, 0.0 }
  0x15   :  { %v103_v22 = vmax.f32 %v87_v17, 0.0 }
  0x16   :  { %v119_v26 = vpack.c.bf16 %v111_v24, %v110_v23 }
  0x17   :  { %474 = vmatpush3.bf16.msra.mxu0 %v516_v32  ;;  %508 = vmatpush3.bf16.msra.mxu1 %v516_v32  ;;  %v115_v25 = vpack.c.bf16 %v103_v22, %v102_v21 }
  0x18   :  { %475 = vmatprep.subr.bf16.mxu0 %v517_v48  ;;  %501 = vmatprep.subr.bf16.mxu1 %v517_v48 }
  0x1b   :  { %476 = vmatpush3.bf16.msra.mxu0 %v517_v48  ;;  %509 = vmatpush3.bf16.msra.mxu1 %v517_v48 }
  0x1c   :  { %477 = vmatprep.subr.bf16.mxu0 %v518_v63  ;;  %502 = vmatprep.subr.bf16.mxu1 %v518_v63 }
  0x1f   :  { %478 = vmatpush3.bf16.msra.mxu0 %v518_v63  ;;  %510 = vmatpush3.bf16.msra.mxu1 %v518_v63 }
  0x22   :  { %480 = vmatmul.mubr.bf16.vlgmr.msra.gmra.mrb[0].mxu0 %v113_v14  ;;  %488 = vmatmul.mubr.bf16.vlgmr.msra.gmra.mrb[0].mxu1 %v117_v15 }
  0x23   :  { %483 = vmatprep.mubr.bf16.mxu0 %v114_v5  ;;  %491 = vmatprep.mubr.bf16.mxu1 %v118_v20 }
  0x2a   :  { %484 = vmatmul.mubr.bf16.gmra.mrb[4].mxu0 %v115_v25  ;;  %492 = vmatmul.mubr.bf16.gmra.mrb[4].mxu1 %v119_v26 }
  0xf5   :  { %v481_v27 = vpop.f32.mrb[0].mxu0  ;;  %v489_v28 = vpop.f32.mrb[0].mxu1 }
  0xf6   :  { %v394_v10 = vpack.c.bf16 %v481_v27, %v481_v27  ;;  %v402_v29 = vpack.c.bf16 %v489_v28, %v489_v28  ;;  %v218_v30 = vpop.f32.mrb[1].mxu0  ;;  %v250_v31 = vpop.f32.mrb[1].mxu1 }
  0xf7   :  { %v392_v32 = vpack.c.bf16 %v218_v30, %v218_v30  ;;  %v400_v33 = vpack.c.bf16 %v250_v31, %v250_v31  ;;  %v482_v34 = vpop.f32.mrb[2].mxu0  ;;  %v490_v35 = vpop.f32.mrb[2].mxu1 }
  0xf8   :  { %348 = vst.msk [vmem:[%s702_s4 + $0x8] sm:$0xf] %vm345_vm0, %v394_v10  ;;  %356 = vst.msk [vmem:[%s702_s4 + $0x28] sm:$0xf] %vm345_vm0, %v402_v29  ;;  %v395_v36 = vpack.c.bf16 %v482_v34, %v482_v34  ;;  %v403_v37 = vpack.c.bf16 %v490_v35, %v490_v35  ;;  %v221_v38 = vpop.f32.mrb[3].mxu0  ;;  %v253_v39 = vpop.f32.mrb[3].mxu1 }
  0xf9   :  { %346 = vst.msk [vmem:[%s702_s4] sm:$0xf] %vm345_vm0, %v392_v32  ;;  %354 = vst.msk [vmem:[%s702_s4 + $0x20] sm:$0xf] %vm345_vm0, %v400_v33  ;;  %v393_v40 = vpack.c.bf16 %v221_v38, %v221_v38  ;;  %v401_v41 = vpack.c.bf16 %v253_v39, %v253_v39 }
  0xfa   :  { %349 = vst.msk [vmem:[%s702_s4 + $0xc] sm:$0xf] %vm345_vm0, %v395_v36  ;;  %357 = vst.msk [vmem:[%s702_s4 + $0x2c] sm:$0xf] %vm345_vm0, %v403_v37 }
  0xfb   :  { %347 = vst.msk [vmem:[%s702_s4 + $0x4] sm:$0xf] %vm345_vm0, %v393_v40  ;;  %355 = vst.msk [vmem:[%s702_s4 + $0x24] sm:$0xf] %vm345_vm0, %v401_v41 }
  0xfd   :  { %v485_v42 = vpop.f32.mrb[4].mxu0  ;;  %v493_v43 = vpop.f32.mrb[4].mxu1 }
  0xfe   :  { %v398_v44 = vpack.c.bf16 %v485_v42, %v485_v42  ;;  %v406_v45 = vpack.c.bf16 %v493_v43, %v493_v43  ;;  %v234_v46 = vpop.f32.mrb[5].mxu0  ;;  %v266_v47 = vpop.f32.mrb[5].mxu1 }
  0xff   :  { %v396_v48 = vpack.c.bf16 %v234_v46, %v234_v46  ;;  %v404_v49 = vpack.c.bf16 %v266_v47, %v266_v47  ;;  %v486_v50 = vpop.f32.mrb[6].mxu0  ;;  %v494_v51 = vpop.f32.mrb[6].mxu1 }
 0x100   :  { %352 = vst.msk [vmem:[%s702_s4 + $0x18] sm:$0xf] %vm345_vm0, %v398_v44  ;;  %360 = vst.msk [vmem:[%s702_s4 + $0x38] sm:$0xf] %vm345_vm0, %v406_v45  ;;  %v399_v52 = vpack.c.bf16 %v486_v50, %v486_v50  ;;  %v407_v53 = vpack.c.bf16 %v494_v51, %v494_v51  ;;  %v237_v54 = vpop.f32.mrb[7].mxu0  ;;  %v269_v55 = vpop.f32.mrb[7].mxu1 }
 0x101   :  { %350 = vst.msk [vmem:[%s702_s4 + $0x10] sm:$0xf] %vm345_vm0, %v396_v48  ;;  %358 = vst.msk [vmem:[%s702_s4 + $0x30] sm:$0xf] %vm345_vm0, %v404_v49  ;;  %v397_v56 = vpack.c.bf16 %v237_v54, %v237_v54  ;;  %v405_v57 = vpack.c.bf16 %v269_v55, %v269_v55 }
 0x102   :  { %353 = vst.msk [vmem:[%s702_s4 + $0x1c] sm:$0xf] %vm345_vm0, %v399_v52  ;;  %361 = vst.msk [vmem:[%s702_s4 + $0x3c] sm:$0xf] %vm345_vm0, %v407_v53 }
 0x103   :  { %351 = vst.msk [vmem:[%s702_s4 + $0x14] sm:$0xf] %vm345_vm0, %v397_v56  ;;  %359 = vst.msk [vmem:[%s702_s4 + $0x34] sm:$0xf] %vm345_vm0, %v405_v57 }

// kernel: _lambda_.27
= control target key start
LH: loop header
LB: loop body
LE: loop exit
PB: predicated region body
PF: predicated region fallthrough
CT: control target
= control target key end

     0   :  { %vm86_vm0 = vcmask 523264   ;;  %s279_s3 = inlined_call_operand.vmem [shape: bf16[64,128], index: 3, kind: input, shape index: {}]   ;;  %s280_s0 = inlined_call_operand.vmem [shape: bf16[32,64], index: 0, kind: input, shape index: {}]   ;;  %s281_s1 = inlined_call_operand.vmem [shape: f32[1,64], index: 1, kind: input, shape index: {}]   ;;  %s282_s2 = inlined_call_operand.vmem [shape: f32[1,64], index: 2, kind: input, shape index: {}]   ;;  %s283_s4 = inlined_call_operand.vmem [shape: bf16[32,128], index: 4, kind: output, shape index: {}]  }
   0x1   :  { %v220_v0 = vld [vmem:[%s279_s3] sm:$0xff]   ;;  %v221_v1 = vld [vmem:[%s279_s3 + $0x8] sm:$0xff]   ;;  %v222_v2 = vld [vmem:[%s279_s3 + $0x10] sm:$0xff]  }
   0x2   :  { %208 = vmatprep.subr.bf16.mxu0 %v220_v0  ;;  %v183_v3 = vld [vmem:[%s280_s0] sm:$0xff]   ;;  %v200_v4 = vld [vmem:[%s280_s0 + $0x8] sm:$0xff]   ;;  %v223_v15 = vld [vmem:[%s279_s3 + $0x18] sm:$0xff]  }
   0x3   :  { %209 = vmatpush3.bf16.msra.mxu0 %v220_v0  ;;  %v166_v5 = vld [vmem:[%s281_s1] ss:$0 sm:$0xff]  ;;  %v184_v6 = vunpack.c.l.bf16 %v183_v3  ;;  %v185_v7 = vunpack.c.h.bf16 %v183_v3  ;;  %v188_v8 = vunpack.c.l.bf16 %v200_v4  ;;  %v189_v9 = vunpack.c.h.bf16 %v200_v4 }
   0x4   :  { %210 = vmatprep.subr.bf16.mxu0 %v221_v1  ;;  %v167_v10 = vld [vmem:[%s282_s2] ss:$0 sm:$0xff] }
   0x5   :  { %v33_v11 = vmul.f32 %v184_v6, %v166_v5  ;;  %v34_v12 = vmul.f32 %v185_v7, %v166_v5  ;;  %v35_v13 = vmul.f32 %v188_v8, %v166_v5  ;;  %v36_v14 = vmul.f32 %v189_v9, %v166_v5 }
   0x7   :  { %211 = vmatpush3.bf16.msra.mxu0 %v221_v1  ;;  %v44_v16 = vadd.f32 %v167_v10, %v33_v11  ;;  %v45_v17 = vadd.f32 %v167_v10, %v34_v12  ;;  %v46_v18 = vadd.f32 %v167_v10, %v35_v13  ;;  %v47_v19 = vadd.f32 %v167_v10, %v36_v14 }
   0x8   :  { %212 = vmatprep.subr.bf16.mxu0 %v222_v2 }
   0x9   :  { %v48_v20 = vmax.f32 %v44_v16, 0.0  ;;  %v49_v21 = vmax.f32 %v45_v17, 0.0  ;;  %v50_v22 = vmax.f32 %v46_v18, 0.0  ;;  %v51_v23 = vmax.f32 %v47_v19, 0.0 }
   0xb   :  { %213 = vmatpush3.bf16.msra.mxu0 %v222_v2  ;;  %v52_v24 = vpack.c.bf16 %v49_v21, %v48_v20  ;;  %v53_v25 = vpack.c.bf16 %v51_v23, %v50_v22 }
   0xc   :  { %214 = vmatprep.subr.bf16.mxu0 %v223_v15 }
   0xd   :  { %216 = vmatprep.mubr.msk.bf16.mxu0 %vm86_vm0, %v52_v24 }
   0xf   :  { %215 = vmatpush3.bf16.msra.mxu0 %v223_v15 }
  0x12   :  { %217 = vmatmul.mubr.msk.bf16.vlgmr.msra.gmra.mrb[0].mxu0 %vm86_vm0, %v53_v25 }
  0xe5   :  { %v218_v26 = vpop.f32.mrb[0].mxu0 }
  0xe6   :  { %v127_v27 = vpop.f32.mrb[1].mxu0 }
  0xe7   :  { %v219_v28 = vpop.f32.mrb[2].mxu0 }
  0xe8   :  { %v198_v29 = vpack.c.bf16 %v219_v28, %v218_v26  ;;  %v130_v30 = vpop.f32.mrb[3].mxu0 }
  0xe9   :  { %v193_v31 = vpack.c.bf16 %v130_v30, %v127_v27 }
  0xea   :  { %201 = vst [vmem:[%s283_s4 + $0x8] sm:$0xff] %v198_v29  }
  0xeb   :  { %194 = vst [vmem:[%s283_s4] sm:$0xff] %v193_v31  }

// kernel: _lambda_.29
= control target key start
LH: loop header
LB: loop body
LE: loop exit
PB: predicated region body
PF: predicated region fallthrough
CT: control target
= control target key end

     0   :  { %vm102_vm0 = vcmask 785408   ;;  %s311_s3 = inlined_call_operand.vmem [shape: bf16[96,128], index: 3, kind: input, shape index: {}]   ;;  %s312_s0 = inlined_call_operand.vmem [shape: bf16[32,96], index: 0, kind: input, shape index: {}]   ;;  %s313_s1 = inlined_call_operand.vmem [shape: f32[1,96], index: 1, kind: input, shape index: {}]   ;;  %s314_s2 = inlined_call_operand.vmem [shape: f32[1,96], index: 2, kind: input, shape index: {}]   ;;  %s315_s4 = inlined_call_operand.vmem [shape: bf16[32,128], index: 4, kind: output, shape index: {}]  }
   0x1   :  { %v244_v0 = vld [vmem:[%s311_s3] sm:$0xff]   ;;  %v245_v1 = vld [vmem:[%s311_s3 + $0x8] sm:$0xff]   ;;  %v246_v2 = vld [vmem:[%s311_s3 + $0x10] sm:$0xff]  }
   0x2   :  { %228 = vmatprep.subr.bf16.mxu0 %v244_v0  ;;  %v201_v3 = vld [vmem:[%s312_s0] sm:$0xff]   ;;  %v218_v4 = vld [vmem:[%s312_s0 + $0x8] sm:$0xff]   ;;  %v247_v10 = vld [vmem:[%s311_s3 + $0x18] sm:$0xff]  }
   0x3   :  { %229 = vmatpush3.bf16.msra.mxu0 %v244_v0  ;;  %v182_v5 = vld [vmem:[%s313_s1] ss:$0 sm:$0xff]  ;;  %v202_v6 = vunpack.c.l.bf16 %v201_v3  ;;  %v203_v7 = vunpack.c.h.bf16 %v201_v3  ;;  %v206_v8 = vunpack.c.l.bf16 %v218_v4  ;;  %v207_v9 = vunpack.c.h.bf16 %v218_v4  ;;  %v249_v24 = vld [vmem:[%s311_s3 + $0x28] sm:$0xff]  }
   0x4   :  { %230 = vmatprep.subr.bf16.mxu0 %v245_v1  ;;  %v183_v11 = vld [vmem:[%s314_s2] ss:$0 sm:$0xff] }
   0x5   :  { %v33_v12 = vmul.f32 %v202_v6, %v182_v5  ;;  %v34_v13 = vmul.f32 %v203_v7, %v182_v5  ;;  %v35_v14 = vmul.f32 %v206_v8, %v182_v5  ;;  %v36_v15 = vmul.f32 %v207_v9, %v182_v5  ;;  %v248_v18 = vld [vmem:[%s311_s3 + $0x20] sm:$0xff]  }
   0x7   :  { %231 = vmatpush3.bf16.msra.mxu0 %v245_v1  ;;  %v44_v16 = vadd.f32 %v183_v11, %v33_v12  ;;  %v45_v17 = vadd.f32 %v183_v11, %v34_v13  ;;  %v46_v21 = vadd.f32 %v183_v11, %v35_v14  ;;  %v47_v22 = vadd.f32 %v183_v11, %v36_v15 }
   0x8   :  { %232 = vmatprep.subr.bf16.mxu0 %v246_v2 }
   0x9   :  { %v48_v19 = vmax.f32 %v44_v16, 0.0  ;;  %v49_v20 = vmax.f32 %v45_v17, 0.0  ;;  %v50_v25 = vmax.f32 %v46_v21, 0.0  ;;  %v51_v26 = vmax.f32 %v47_v22, 0.0 }
   0xb   :  { %233 = vmatpush3.bf16.msra.mxu0 %v246_v2  ;;  %v52_v23 = vpack.c.bf16 %v49_v20, %v48_v19  ;;  %v53_v27 = vpack.c.bf16 %v51_v26, %v50_v25 }
   0xc   :  { %234 = vmatprep.subr.bf16.mxu0 %v247_v10 }
   0xd   :  { %240 = vmatprep.mubr.msk.bf16.mxu0 %vm102_vm0, %v52_v23 }
   0xf   :  { %235 = vmatpush3.bf16.msra.mxu0 %v247_v10 }
  0x10   :  { %236 = vmatprep.subr.bf16.mxu0 %v248_v18 }
  0x13   :  { %237 = vmatpush3.bf16.msra.mxu0 %v248_v18 }
  0x14   :  { %238 = vmatprep.subr.bf16.mxu0 %v249_v24 }
  0x17   :  { %239 = vmatpush3.bf16.msra.mxu0 %v249_v24 }
  0x1a   :  { %241 = vmatmul.mubr.msk.bf16.vlgmr.msra.gmra.mrb[0].mxu0 %vm102_vm0, %v53_v27 }
  0xed   :  { %v242_v28 = vpop.f32.mrb[0].mxu0 }
  0xee   :  { %v143_v29 = vpop.f32.mrb[1].mxu0 }
  0xef   :  { %v243_v30 = vpop.f32.mrb[2].mxu0 }
  0xf0   :  { %v216_v31 = vpack.c.bf16 %v243_v30, %v242_v28  ;;  %v146_v32 = vpop.f32.mrb[3].mxu0 }
  0xf1   :  { %v211_v33 = vpack.c.bf16 %v146_v32, %v143_v29 }
  0xf2   :  { %219 = vst [vmem:[%s315_s4 + $0x8] sm:$0xff] %v216_v31  }
  0xf3   :  { %212 = vst [vmem:[%s315_s4] sm:$0xff] %v211_v33  }

// kernel: _lambda_.31
= control target key start
LH: loop header
LB: loop body
LE: loop exit
PB: predicated region body
PF: predicated region fallthrough
CT: control target
= control target key end

     0   :  { %vm183_vm0 = vcmask 519168   ;;  %s330_s3 = inlined_call_operand.vmem [shape: bf16[128,64], index: 3, kind: input, shape index: {}]   ;;  %s331_s0 = inlined_call_operand.vmem [shape: bf16[32,128], index: 0, kind: input, shape index: {}]   ;;  %s332_s1 = inlined_call_operand.vmem [shape: f32[1,128], index: 1, kind: input, shape index: {}]   ;;  %s333_s2 = inlined_call_operand.vmem [shape: f32[1,128], index: 2, kind: input, shape index: {}]   ;;  %s334_s4 = inlined_call_operand.vmem [shape: bf16[32,64], index: 4, kind: output, shape index: {}]  }
   0x1   :  { %v249_v0 = vld [vmem:[%s330_s3] sm:$0xff]   ;;  %v250_v1 = vld [vmem:[%s330_s3 + $0x8] sm:$0xff]   ;;  %v251_v2 = vld [vmem:[%s330_s3 + $0x10] sm:$0xff]  }
   0x2   :  { %229 = vmatprep.subr.bf16.mxu0 %v249_v0  ;;  %v252_v3 = vld [vmem:[%s330_s3 + $0x18] sm:$0xff]   ;;  %v211_v4 = vld [vmem:[%s331_s0] sm:$0xff]   ;;  %v218_v9 = vld [vmem:[%s331_s0 + $0x8] sm:$0xff]  }
   0x3   :  { %230 = vmatpush3.bf16.msra.mxu0 %v249_v0  ;;  %v192_v5 = vld [vmem:[%s332_s1] ss:$0 sm:$0xff]  ;;  %v212_v6 = vunpack.c.l.bf16 %v211_v4  ;;  %v213_v7 = vunpack.c.h.bf16 %v211_v4  ;;  %v216_v15 = vunpack.c.l.bf16 %v218_v9  ;;  %v217_v16 = vunpack.c.h.bf16 %v218_v9  ;;  %v254_v19 = vld [vmem:[%s330_s3 + $0x28] sm:$0xff]   ;;  %v255_v23 = vld [vmem:[%s330_s3 + $0x30] sm:$0xff]  }
   0x4   :  { %231 = vmatprep.subr.bf16.mxu0 %v250_v1  ;;  %v193_v8 = vld [vmem:[%s333_s2] ss:$0 sm:$0xff]  ;;  %v256_v26 = vld [vmem:[%s330_s3 + $0x38] sm:$0xff]  }
   0x5   :  { %v33_v10 = vmul.f32 %v212_v6, %v192_v5  ;;  %v34_v11 = vmul.f32 %v213_v7, %v192_v5  ;;  %v253_v12 = vld [vmem:[%s330_s3 + $0x20] sm:$0xff]   ;;  %v35_v21 = vmul.f32 %v216_v15, %v192_v5  ;;  %v36_v22 = vmul.f32 %v217_v16, %v192_v5 }
   0x7   :  { %232 = vmatpush3.bf16.msra.mxu0 %v250_v1  ;;  %v44_v13 = vadd.f32 %v193_v8, %v33_v10  ;;  %v45_v14 = vadd.f32 %v193_v8, %v34_v11  ;;  %v46_v24 = vadd.f32 %v193_v8, %v35_v21  ;;  %v47_v25 = vadd.f32 %v193_v8, %v36_v22 }
   0x8   :  { %233 = vmatprep.subr.bf16.mxu0 %v251_v2 }
   0x9   :  { %v48_v17 = vmax.f32 %v44_v13, 0.0  ;;  %v49_v18 = vmax.f32 %v45_v14, 0.0  ;;  %v50_v27 = vmax.f32 %v46_v24, 0.0  ;;  %v51_v28 = vmax.f32 %v47_v25, 0.0 }
   0xb   :  { %234 = vmatpush3.bf16.msra.mxu0 %v251_v2  ;;  %v52_v20 = vpack.c.bf16 %v49_v18, %v48_v17  ;;  %v53_v29 = vpack.c.bf16 %v51_v28, %v50_v27 }
   0xc   :  { %235 = vmatprep.subr.bf16.mxu0 %v252_v3 }
   0xd   :  { %245 = vmatprep.mubr.bf16.mxu0 %v52_v20 }
   0xf   :  { %236 = vmatpush3.bf16.msra.mxu0 %v252_v3 }
  0x10   :  { %237 = vmatprep.subr.bf16.mxu0 %v253_v12 }
  0x13   :  { %238 = vmatpush3.bf16.msra.mxu0 %v253_v12 }
  0x14   :  { %239 = vmatprep.subr.bf16.mxu0 %v254_v19 }
  0x17   :  { %240 = vmatpush3.bf16.msra.mxu0 %v254_v19 }
  0x18   :  { %241 = vmatprep.subr.bf16.mxu0 %v255_v23 }
  0x1b   :  { %242 = vmatpush3.bf16.msra.mxu0 %v255_v23 }
  0x1c   :  { %243 = vmatprep.subr.bf16.mxu0 %v256_v26 }
  0x1f   :  { %244 = vmatpush3.bf16.msra.mxu0 %v256_v26 }
  0x22   :  { %246 = vmatmul.mubr.bf16.vlgmr.msra.gmra.mrb[0].mxu0 %v53_v29 }
  0xf5   :  { %v247_v30 = vpop.f32.mrb[0].mxu0 }
  0xf6   :  { %v208_v31 = vpack.c.bf16 %v247_v30, %v247_v30  ;;  %v152_v32 = vpop.f32.mrb[1].mxu0 }
  0xf7   :  { %v206_v33 = vpack.c.bf16 %v152_v32, %v152_v32  ;;  %v248_v34 = vpop.f32.mrb[2].mxu0 }
  0xf8   :  { %186 = vst.msk [vmem:[%s334_s4 + $0x8] sm:$0xf] %vm183_vm0, %v208_v31  ;;  %v209_v35 = vpack.c.bf16 %v248_v34, %v248_v34  ;;  %v155_v36 = vpop.f32.mrb[3].mxu0 }
  0xf9   :  { %184 = vst.msk [vmem:[%s334_s4] sm:$0xf] %vm183_vm0, %v206_v33  ;;  %v207_v37 = vpack.c.bf16 %v155_v36, %v155_v36 }
  0xfa   :  { %187 = vst.msk [vmem:[%s334_s4 + $0xc] sm:$0xf] %vm183_vm0, %v209_v35 }
  0xfb   :  { %185 = vst.msk [vmem:[%s334_s4 + $0x4] sm:$0xf] %vm183_vm0, %v207_v37 }

// kernel: _lambda_.32
= control target key start
LH: loop header
LB: loop body
LE: loop exit
PB: predicated region body
PF: predicated region fallthrough
CT: control target
= control target key end

     0   :  { %v150_v0 = vmov 0.0   ;;  %vm151_vm0 = vmmov 0   ;;  %vm70_vm1 = vcmask 523264   ;;  %s201_s3 = inlined_call_operand.vmem [shape: bf16[64,128], index: 3, kind: input, shape index: {}]   ;;  %s202_s0 = inlined_call_operand.vmem [shape: bf16[8,64], index: 0, kind: input, shape index: {}]   ;;  %s203_s1 = inlined_call_operand.vmem [shape: f32[1,64], index: 1, kind: input, shape index: {}]   ;;  %s204_s2 = inlined_call_operand.vmem [shape: f32[1,64], index: 2, kind: input, shape index: {}]   ;;  %s205_s4 = inlined_call_operand.vmem [shape: bf16[8,128], index: 4, kind: output, shape index: {}]  }
   0x1   :  { %132 = vmatprep.subr.bf16.mxu0 %v150_v0  ;;  %v146_v1 = vld [vmem:[%s201_s3] sm:$0xff]   ;;  %140 = vmatprep.mubr.msk.bf16.mxu0 %vm151_vm0, %v150_v0  ;;  %v147_v2 = vld [vmem:[%s201_s3 + $0x8] sm:$0xff]   ;;  %v148_v6 = vld [vmem:[%s201_s3 + $0x10] sm:$0xff]  }
   0x2   :  { %133 = vmatpush3.bf16.msra.mxu0 %v146_v1  ;;  %v18_v3 = vld [vmem:[%s202_s0] sm:$0xf]  ;;  %v149_v10 = vld [vmem:[%s201_s3 + $0x18] sm:$0xff]  }
   0x3   :  { %134 = vmatprep.subr.bf16.mxu0 %v150_v0  ;;  %v120_v4 = vld [vmem:[%s203_s1] ss:$0 sm:$0xff]  ;;  %v19_v5 = vunpack.c.l.bf16 %v18_v3 }
   0x4   :  { %v121_v7 = vld [vmem:[%s204_s2] ss:$0 sm:$0xff] }
   0x5   :  { %v27_v8 = vmul.f32 %v120_v4, %v19_v5 }
   0x6   :  { %135 = vmatpush3.bf16.msra.mxu0 %v147_v2 }
   0x7   :  { %136 = vmatprep.subr.bf16.mxu0 %v150_v0  ;;  %v35_v9 = vadd.f32 %v121_v7, %v27_v8 }
   0x9   :  { %v36_v11 = vmax.f32 %v35_v9, 0.0 }
   0xa   :  { %137 = vmatpush3.bf16.msra.mxu0 %v148_v6 }
   0xb   :  { %138 = vmatprep.subr.bf16.mxu0 %v150_v0  ;;  %v37_v12 = vpack.c.bf16 %v36_v11, %v36_v11 }
   0xe   :  { %139 = vmatpush3.bf16.msra.mxu0 %v149_v10 }
  0x11   :  { %141 = vmatmul.mubr.msk.bf16.vlgmr.msra.gmra.mrb[0].mxu0 %vm70_vm1, %v37_v12 }
  0xe4   :  { %v108_v13 = vpop.f32.mrb[0].mxu0 }
  0xe5   :  { %v114_v14 = vpack.c.bf16 %v108_v13, %v108_v13  ;;  %v142_v15 = vpop.f32.mrb[1].mxu0 }
  0xe6   :  { %v111_v16 = vpop.f32.mrb[2].mxu0 }
  0xe7   :  { %115 = vst [vmem:[%s205_s4] sm:$0xf] %v114_v14  ;;  %v143_v17 = vpop.f32.mrb[3].mxu0 }

// kernel: _lambda_.28
= control target key start
LH: loop header
LB: loop body
LE: loop exit
PB: predicated region body
PF: predicated region fallthrough
CT: control target
= control target key end

     0   :  { %s2096_s15 = smov 0   ;;  %s2489_s0 = inlined_call_operand.vmem [shape: bf16[2,6,10,128], index: 0, kind: input, shape index: {}]   ;;  %s2490_s1 = inlined_call_operand.vmem [shape: f32[1,1,128], index: 1, kind: input, shape index: {}]   ;;  %s2491_s2 = inlined_call_operand.vmem [shape: f32[1,1,128], index: 2, kind: input, shape index: {}]   ;;  %s2492_s3 = inlined_call_operand.vmem [shape: bf16[9,128,32], index: 3, kind: input, shape index: {}]   ;;  %s2493_s4 = inlined_call_operand.vmem [shape: bf16[2,4,8,32], index: 4, kind: output, shape index: {}]  }
   0x1 LB: > { %s1467_s16 = sadd.s32 4294967295, %s2069_s15   ;;  %p1471_p0 = scmp.ge.s32.totalorder %s2069_s15, 1  ;;  %s2069_s15 = sphi %s2096_s15, %s14_s15  }
   0x2   : > { %p162_p1 = scmp.lt.s32.totalorder %s2069_s15, 3 }
   0x4   : > { %p163_p2 = pnand %p1471_p0, %p162_p1 }
   0x5   : > { %v1991_v0 = vld [vmem:[%s2492_s3 + $0x40] sm:$0xff] (!%p163_p2)   ;;  %p188_p3 = scmp.lt.s32.totalorder (!%p163_p2), %s1467_s16, 1  ;;  %v1993_v2 = vld [vmem:[%s2492_s3 + $0x48] sm:$0xff] (!%p163_p2)   ;;  %v1995_v4 = vld [vmem:[%s2492_s3 + $0x50] sm:$0xff] (!%p163_p2)   ;;  %vm299_vm0 = vcmask (!%p163_p2), 1046528   ;;  %vm529_vm1 = vcmask (!%p163_p2), 1045504  }
   0x6   : > { %166 = sbr.rel (%p163_p2) target bundleno = 388 (0x184), region = 36  ;;  %v1992_v1 = vld [vmem:[%s2492_s3 + $0x100] sm:$0xff] (!%p163_p2)   ;;  %1770 = vmatprep.subr.bf16.mxu1 (!%p163_p2), %v1991_v0  ;;  %v1994_v3 = vld [vmem:[%s2492_s3 + $0x108] sm:$0xff] (!%p163_p2)   ;;  %v1996_v5 = vld [vmem:[%s2492_s3 + $0x110] sm:$0xff] (!%p163_p2)   ;;  %vm1407_vm2 = vcmask (!%p163_p2), 257024  }
   0x7   : > { %1850 = vmatprep.subr.bf16.mxu0 (!%p163_p2), %v1992_v1  ;;  %1771 = vmatpush3.bf16.msra.mxu1 (!%p163_p2), %v1991_v0  ;;  %v1997_v6 = vld [vmem:[%s2492_s3 + $0x58] sm:$0xff] (!%p163_p2)   ;;  %v1999_v8 = vld [vmem:[%s2492_s3 + $0x60] sm:$0xff] (!%p163_p2)   ;;  %v2001_v10 = vld [vmem:[%s2492_s3 + $0x68] sm:$0xff] (!%p163_p2)  }
   0x8   : > { %1851 = vmatpush3.bf16.msra.mxu0 (!%p163_p2), %v1992_v1  ;;  %1772 = vmatprep.subr.bf16.mxu1 (!%p163_p2), %v1993_v2  ;;  %v1998_v7 = vld [vmem:[%s2492_s3 + $0x118] sm:$0xff] (!%p163_p2)   ;;  %v2000_v9 = vld [vmem:[%s2492_s3 + $0x120] sm:$0xff] (!%p163_p2)   ;;  %v2002_v14 = vld [vmem:[%s2492_s3 + $0x128] sm:$0xff] (!%p163_p2)  }
   0x9   : > { %1852 = vmatprep.subr.bf16.mxu0 (!%p163_p2), %v1994_v3  ;;  %v2154_v19 = vld [vmem:[%s2490_s1] ss:$0 sm:$0xff] (!%p163_p2)  ;;  %v2003_v28 = vld [vmem:[%s2492_s3 + $0x70] sm:$0xff] (!%p163_p2)   ;;  %v2005_v39 = vld [vmem:[%s2492_s3 + $0x78] sm:$0xff] (!%p163_p2)  }
   0xa   : > { %v2159_v20 = vld [vmem:[%s2491_s2] ss:$0 sm:$0xff] (!%p163_p2)  ;;  %v2004_v33 = vld [vmem:[%s2492_s3 + $0x130] sm:$0xff] (!%p163_p2)   ;;  %v2006_v44 = vld [vmem:[%s2492_s3 + $0x138] sm:$0xff] (!%p163_p2)  }
   0xb   : > { %1773 = vmatpush3.bf16.msra.mxu1 (!%p163_p2), %v1993_v2 }
   0xc   : > { %1853 = vmatpush3.bf16.msra.mxu0 (!%p163_p2), %v1994_v3  ;;  %1774 = vmatprep.subr.bf16.mxu1 (!%p163_p2), %v1995_v4 }
   0xd   : > { %s2495_s16 = smov (!%p188_p3, %s1467_s16), 1  ;;  %1854 = vmatprep.subr.bf16.mxu0 %v1996_v5 }
   0xe   : > { %s1982_s7 = smul.u32 48, %s2495_s16  ;;  %s1679_s25 = sshll.u32 %s2495_s16, 4 }
   0xf   : > { %1775 = vmatpush3.bf16.msra.mxu1 %v1995_v4  ;;  %v2007_v4 = vld [vmem:[%s2492_s3] sm:$0xff]   ;;  %s197_s28 = scalar_lea.vmem %s2493_s4, %s1679_s25 }
  0x10   : > { %1855 = vmatpush3.bf16.msra.mxu0 %v1996_v5  ;;  %1776 = vmatprep.subr.bf16.mxu1 %v1997_v6  ;;  %s2140_s14 = scalar_lea.vmem %s2489_s0, %s1982_s7 }
  0x11   : > { %1856 = vmatprep.subr.bf16.mxu0 %v1998_v7  ;;  %v199_v11 = vld [vmem:[%s2140_s14] ss:$8 sps:$4 sm:$0xff]   ;;  %v200_v12 = vld [vmem:[%s2140_s14 + $0x4] sm:$0x1]  ;;  %v202_v13 = vld [vmem:[%s2140_s14 + $0xc] sm:$0x1] }
  0x12   : > { %v211_v15 = vunpack.c.l.bf16 %v199_v11  ;;  %v212_v16 = vunpack.c.l.bf16 %v200_v12  ;;  %v213_v17 = vunpack.c.h.bf16 %v199_v11  ;;  %v214_v18 = vunpack.c.l.bf16 %v202_v13  ;;  %v203_v21 = vld [vmem:[%s2140_s14 + $0x10] ss:$8 sps:$4 sm:$0xff]   ;;  %v204_v26 = vld [vmem:[%s2140_s14 + $0x14] sm:$0x1]  ;;  %v206_v27 = vld [vmem:[%s2140_s14 + $0x1c] sm:$0x1] }
  0x13   : > { %1777 = vmatpush3.bf16.msra.mxu1 %v1997_v6  ;;  %v215_v29 = vunpack.c.l.bf16 %v203_v21  ;;  %v216_v30 = vunpack.c.l.bf16 %v204_v26  ;;  %v217_v31 = vunpack.c.h.bf16 %v203_v21  ;;  %v218_v32 = vunpack.c.l.bf16 %v206_v27  ;;  %v207_v38 = vld [vmem:[%s2140_s14 + $0x20] ss:$8 sps:$4 sm:$0xff]   ;;  %v208_v52 = vld [vmem:[%s2140_s14 + $0x24] sm:$0x1]  ;;  %v210_v58 = vld [vmem:[%s2140_s14 + $0x2c] sm:$0x1] }
  0x14   : > { %1857 = vmatpush3.bf16.msra.mxu0 %v1998_v7  ;;  %1778 = vmatprep.subr.bf16.mxu1 %v1999_v8  ;;  %v230_v22 = vmul.f32 %v2154_v19, %v211_v15  ;;  %v231_v23 = vmul.f32 %v2154_v19, %v212_v16  ;;  %v232_v24 = vmul.f32 %v2154_v19, %v213_v17  ;;  %v219_v53 = vunpack.c.l.bf16 %v207_v38 }
  0x15   : > { %1858 = vmatprep.subr.bf16.mxu0 %v2000_v9  ;;  %v233_v25 = vmul.f32 %v2154_v19, %v214_v18  ;;  %v234_v40 = vmul.f32 %v2154_v19, %v215_v29  ;;  %v235_v41 = vmul.f32 %v2154_v19, %v216_v30  ;;  %v236_v42 = vmul.f32 %v2154_v19, %v217_v31 }
  0x16   : > { %v249_v34 = vadd.f32 %v2159_v20, %v230_v22  ;;  %v2176_v35 = vadd.f32 %v2159_v20, %v231_v23  ;;  %v251_v36 = vadd.f32 %v2159_v20, %v232_v24  ;;  %v237_v43 = vmul.f32 %v2154_v19, %v218_v32 }
  0x17   : > { %1779 = vmatpush3.bf16.msra.mxu1 %v1999_v8  ;;  %v2180_v37 = vadd.f32 %v2159_v20, %v233_v25  ;;  %v253_v49 = vadd.f32 %v2159_v20, %v234_v40  ;;  %v2201_v50 = vadd.f32 %v2159_v20, %v235_v41  ;;  %v255_v51 = vadd.f32 %v2159_v20, %v236_v42  ;;  %v2011_v42 = vld [vmem:[%s2492_s3 + $0x10] sm:$0xff]  }
  0x18   : > { %1859 = vmatpush3.bf16.msra.mxu0 %v2000_v9  ;;  %1780 = vmatprep.subr.bf16.mxu1 %v2001_v10  ;;  %v2193_v45 = vmax.f32 %v249_v34, 0.0  ;;  %v262_v46 = vmax.f32 %v2176_v35, 0.0  ;;  %v2196_v47 = vmax.f32 %v251_v36, 0.0  ;;  %v2213_v59 = vadd.f32 %v2159_v20, %v237_v43  ;;  %v2008_v9 = vld [vmem:[%s2492_s3 + $0x140] sm:$0xff]   ;;  %v2010_v36 = vld [vmem:[%s2492_s3 + $0x148] sm:$0xff]  }
  0x19   : > { %1860 = vmatprep.subr.bf16.mxu0 %v2002_v14  ;;  %v264_v48 = vmax.f32 %v2180_v37, 0.0  ;;  %v2215_v60 = vmax.f32 %v253_v49, 0.0  ;;  %v266_v61 = vmax.f32 %v2201_v50, 0.0  ;;  %v2218_v62 = vmax.f32 %v255_v51, 0.0 }
  0x1a   : > { %v300_v54 = vrot.slane %v2193_v45, 1  ;;  %v301_v55 = vrot.slane %v262_v46, 1  ;;  %v303_v56 = vrot.slane %v2196_v47, 1  ;;  %v220_v1 = vunpack.c.l.bf16 %v208_v52 }
  0x1b   : > { %1781 = vmatpush3.bf16.msra.mxu1 %v2001_v10  ;;  %v304_v57 = vrot.slane %v264_v48, 1  ;;  %v221_v2 = vunpack.c.h.bf16 %v207_v38  ;;  %v268_v5 = vmax.f32 %v2213_v59, 0.0  ;;  %v306_v6 = vrot.slane %v2215_v60, 1  ;;  %v2025_v59 = vld [vmem:[%s2492_s3 + $0x88] sm:$0xff]  }
  0x1c   : > { %1861 = vmatpush3.bf16.msra.mxu0 %v2002_v14  ;;  %1782 = vmatprep.subr.bf16.mxu1 %v2003_v28  ;;  %v302_v63 = vsel %vm299_vm0, %v300_v54, %v301_v55  ;;  %v307_v7 = vrot.slane %v266_v61, 1  ;;  %v309_v8 = vrot.slane %v2218_v62, 1  ;;  %v222_v10 = vunpack.c.l.bf16 %v210_v58  ;;  %v2012_v54 = vld [vmem:[%s2492_s3 + $0x150] sm:$0xff]  }
  0x1d   : > { %1862 = vmatprep.subr.bf16.mxu0 %v2004_v33  ;;  %v305_v0 = vsel %vm299_vm0, %v303_v56, %v304_v57  ;;  %v238_v11 = vmul.f32 %v2154_v19, %v219_v53  ;;  %v239_v12 = vmul.f32 %v2154_v19, %v220_v1  ;;  %v310_v14 = vrot.slane %v268_v5, 1 }
  0x1e   : > { %v316_v3 = vpack.c.bf16 %v305_v0, %v302_v63  ;;  %v308_v13 = vsel %vm299_vm0, %v306_v6, %v307_v7  ;;  %v240_v15 = vmul.f32 %v2154_v19, %v221_v2  ;;  %v241_v17 = vmul.f32 %v2154_v19, %v222_v10  ;;  %v2015_v63 = vld [vmem:[%s2492_s3 + $0x20] sm:$0xff]   ;;  %v2019_v7 = vld [vmem:[%s2492_s3 + $0x30] sm:$0xff]  }
  0x1f   : > { %1783 = vmatpush3.bf16.msra.mxu1 %v2003_v28  ;;  %v792_v16 = vpack.c.bf16 %v308_v13, %v305_v0  ;;  %v257_v18 = vadd.f32 %v2159_v20, %v238_v11  ;;  %v258_v21 = vadd.f32 %v2159_v20, %v239_v12  ;;  %v311_v22 = vsel %vm299_vm0, %v309_v8, %v310_v14  ;;  %v2009_v28 = vld [vmem:[%s2492_s3 + $0x8] sm:$0xff]   ;;  %v2014_v0 = vld [vmem:[%s2492_s3 + $0x158] sm:$0xff]   ;;  %v2016_v6 = vld [vmem:[%s2492_s3 + $0x160] sm:$0xff]  }
  0x20   : > { %1863 = vmatpush3.bf16.msra.mxu0 %v2004_v33  ;;  %1784 = vmatprep.subr.bf16.mxu1 %v2005_v39  ;;  %v259_v23 = vadd.f32 %v2159_v20, %v240_v15  ;;  %v273_v24 = vpack.c.bf16 %v2196_v47, %v2193_v45  ;;  %v2246_v25 = vpack.c.bf16 %v311_v22, %v308_v13  ;;  %v533_v38 = vrot.slane %v2196_v47, 2  ;;  %v2018_v8 = vld [vmem:[%s2492_s3 + $0x168] sm:$0xff]   ;;  %v2020_v12 = vld [vmem:[%s2492_s3 + $0x170] sm:$0xff]   ;;  %v2023_v13 = vld [vmem:[%s2492_s3 + $0x80] sm:$0xff]  }
  0x21   : > { %1864 = vmatprep.subr.bf16.mxu0 %v2006_v44  ;;  %1786 = vmatprep.mubr.bf16.mxu1 %v316_v3  ;;  %v260_v26 = vadd.f32 %v2159_v20, %v241_v17  ;;  %v2249_v19 = vmax.f32 %v257_v18, 0.0  ;;  %v270_v27 = vmax.f32 %v258_v21, 0.0  ;;  %v666_v30 = vpack.c.bf16 %v2215_v60, %v2196_v47  ;;  %v2027_v21 = vld [vmem:[%s2492_s3 + $0x90] sm:$0xff]   ;;  %v2045_v47 = vld [vmem:[%s2492_s3 + $0xd8] sm:$0xff]  }
  0x22   : > { %1866 = vmatprep.mubr.bf16.mxu0 %v792_v16  ;;  %v2254_v29 = vmax.f32 %v259_v23, 0.0  ;;  %v536_v49 = vrot.slane %v2215_v60, 2  ;;  %v537_v52 = vrot.slane %v266_v61, 2  ;;  %v530_v10 = vrot.slane %v2193_v45, 2  ;;  %v2029_v23 = vld [vmem:[%s2492_s3 + $0x98] sm:$0xff]  }
  0x23   : > { %1785 = vmatpush3.bf16.msra.mxu1 %v2005_v39  ;;  %v272_v31 = vmax.f32 %v260_v26, 0.0  ;;  %v788_v32 = vrot.slane %v2249_v19, 1  ;;  %v789_v33 = vrot.slane %v270_v27, 1  ;;  %v667_v20 = vpack.c.bf16 %v2249_v19, %v2218_v62  ;;  %v2031_v26 = vld [vmem:[%s2492_s3 + $0xa0] sm:$0xff]  }
  0x24   : > { %1865 = vmatpush3.bf16.msra.mxu0 %v2006_v44  ;;  %1790 = vmatprep.subr.bf16.mxu1 %v2007_v4  ;;  %v1157_v34 = vrot.slane %v2254_v29, 1  ;;  %v1036_v39 = vpack.c.bf16 %v2254_v29, %v2249_v19  ;;  %v534_v44 = vrot.slane %v264_v48, 2  ;;  %v2013_v48 = vld [vmem:[%s2492_s3 + $0x18] sm:$0xff]   ;;  %v2294_v50 = vsel %vm529_vm1, %v536_v49, %v537_v52  ;;  %v2043_v49 = vld [vmem:[%s2492_s3 + $0xd0] sm:$0xff]   ;;  %v2042_v52 = vld [vmem:[%s2492_s3 + $0x1c8] sm:$0xff]  }
  0x25   : > { %1870 = vmatprep.subr.bf16.mxu0 %v2008_v9  ;;  %v2270_v40 = vsel %vm299_vm0, %v788_v32, %v789_v33  ;;  %v1158_v41 = vrot.slane %v272_v31, 1  ;;  %v912_v56 = vrot.slane %v2249_v19, 2  ;;  %v913_v57 = vrot.slane %v270_v27, 2  ;;  %v2030_v27 = vld [vmem:[%s2492_s3 + $0x198] sm:$0xff]   ;;  %v2035_v32 = vld [vmem:[%s2492_s3 + $0xb0] sm:$0xff]   ;;  %v2034_v33 = vld [vmem:[%s2492_s3 + $0x1a8] sm:$0xff]  }
  0x26   : > { %1787 = vmatmul.mubr.bf16.vlgmr.msra.gmra.mrb[0].mxu1 %v2246_v25  ;;  %v793_v43 = vpack.c.bf16 %v2270_v40, %v311_v22  ;;  %v535_v37 = vsel %vm529_vm1, %v533_v38, %v534_v44  ;;  %v1280_v58 = vrot.slane %v2254_v29, 2  ;;  %v1281_v61 = vrot.slane %v272_v31, 2  ;;  %v2026_v22 = vld [vmem:[%s2492_s3 + $0x188] sm:$0xff]   ;;  %v2032_v31 = vld [vmem:[%s2492_s3 + $0x1a0] sm:$0xff]  }
  0x27   : > { %1791 = vmatpush3.bf16.msra.mxu1 %v2007_v4  ;;  %1806 = vmatprep.mubr.bf16.mxu1 %v273_v24  ;;  %v2280_v51 = vsel %vm299_vm0, %v1157_v34, %v1158_v41  ;;  %v916_v55 = vpack.c.bf16 %v2294_v50, %v535_v37  ;;  %v2306_v1 = vsel %vm529_vm1, %v912_v56, %v913_v57  ;;  %v2017_v4 = vld [vmem:[%s2492_s3 + $0x28] sm:$0xff]   ;;  %v531_v11 = vrot.slane %v262_v46, 2  ;;  %v2022_v46 = vld [vmem:[%s2492_s3 + $0x178] sm:$0xff]   ;;  %v2028_v24 = vld [vmem:[%s2492_s3 + $0x190] sm:$0xff]  }
  0x28   : > { %1792 = vmatprep.subr.bf16.mxu1 %v2009_v28  ;;  %1867 = vmatmul.mubr.bf16.vlgmr.msra.gmra.mrb[0].mxu0 %v793_v43  ;;  %v1161_v53 = vpack.c.bf16 %v2280_v51, %v2270_v40  ;;  %v2309_v2 = vsel %vm529_vm1, %v1280_v58, %v1281_v61  ;;  %v539_v14 = vrot.slane %v2218_v62, 2  ;;  %v540_v45 = vrot.slane %v268_v5, 2  ;;  %v2024_v5 = vld [vmem:[%s2492_s3 + $0x180] sm:$0xff]   ;;  %v2037_v34 = vld [vmem:[%s2492_s3 + $0xb8] sm:$0xff]   ;;  %v2041_v43 = vld [vmem:[%s2492_s3 + $0xc8] sm:$0xff]  }
  0x29   : > { %1871 = vmatpush3.bf16.msra.mxu0 %v2008_v9  ;;  %1886 = vmatprep.mubr.bf16.mxu0 %v916_v55  ;;  %v1284_v3 = vpack.c.bf16 %v2309_v2, %v2306_v1  ;;  %v2021_v9 = vld [vmem:[%s2492_s3 + $0x38] sm:$0xff]   ;;  %v532_v35 = vsel %vm529_vm1, %v530_v10, %v531_v11  ;;  %v274_v15 = vpack.c.bf16 %v2218_v62, %v2215_v60  ;;  %v2039_v38 = vld [vmem:[%s2492_s3 + $0xc0] sm:$0xff]   ;;  %v2044_v60 = vld [vmem:[%s2492_s3 + $0x1d0] sm:$0xff]  }
  0x2a   : > { %1872 = vmatprep.subr.bf16.mxu0 %v2010_v36  ;;  %v546_v16 = vpack.c.bf16 %v535_v37, %v532_v35  ;;  %v541_v17 = vsel %vm529_vm1, %v539_v14, %v540_v45  ;;  %v2038_v41 = vld [vmem:[%s2492_s3 + $0x1b8] sm:$0xff]   ;;  %v2040_v44 = vld [vmem:[%s2492_s3 + $0x1c0] sm:$0xff]   ;;  %v2050_v37 = vld [vmem:[%s2492_s3 + $0x1e8] sm:$0xff]  }
  0x2b   : > { %1793 = vmatpush3.bf16.msra.mxu1 %v2009_v28  ;;  %v917_v18 = vpack.c.bf16 %v2306_v1, %v541_v17  ;;  %v2033_v28 = vld [vmem:[%s2492_s3 + $0xa8] sm:$0xff]   ;;  %v2047_v29 = vld [vmem:[%s2492_s3 + $0xe0] sm:$0xff]   ;;  %v2054_v55 = vld [vmem:[%s2492_s3 + $0x1f8] sm:$0xff]  }
  0x2c   : > { %1794 = vmatprep.subr.bf16.mxu1 %v2011_v42  ;;  %v2055_v56 = vld [vmem:[%s2492_s3 + $0x200] sm:$0xff]   ;;  %v2056_v57 = vld [vmem:[%s2492_s3 + $0x208] sm:$0xff]   ;;  %v2057_v58 = vld [vmem:[%s2492_s3 + $0x210] sm:$0xff]  }
  0x2d   : > { %1873 = vmatpush3.bf16.msra.mxu0 %v2010_v36  ;;  %v2036_v36 = vld [vmem:[%s2492_s3 + $0x1b0] sm:$0xff]   ;;  %v2058_v62 = vld [vmem:[%s2492_s3 + $0x218] sm:$0xff]   ;;  %v2059_v19 = vld [vmem:[%s2492_s3 + $0x220] sm:$0xff]  }
  0x2e   : > { %1874 = vmatprep.subr.bf16.mxu0 %v2012_v54  ;;  %v2061_v40 = vld [vmem:[%s2492_s3 + $0x230] sm:$0xff]   ;;  %v2062_v51 = vld [vmem:[%s2492_s3 + $0x238] sm:$0xff]  }
  0x2f   : > { %1795 = vmatpush3.bf16.msra.mxu1 %v2011_v42  ;;  %v547_v42 = vpack.c.bf16 %v541_v17, %v2294_v50  ;;  %v2052_v50 = vld [vmem:[%s2492_s3 + $0x1f0] sm:$0xff]  }
  0x30   : > { %1796 = vmatprep.subr.bf16.mxu1 %v2013_v48 }
  0x31   : > { %1875 = vmatpush3.bf16.msra.mxu0 %v2012_v54  ;;  %v2051_v54 = vld [vmem:[%s2492_s3 + $0xf0] sm:$0xff]  }
  0x32   : > { %1876 = vmatprep.subr.bf16.mxu0 %v2014_v0 }
  0x33   : > { %1797 = vmatpush3.bf16.msra.mxu1 %v2013_v48  ;;  %v2053_v48 = vld [vmem:[%s2492_s3 + $0xf8] sm:$0xff]  }
  0x34   : > { %1798 = vmatprep.subr.bf16.mxu1 %v2015_v63 }
  0x35   : > { %1877 = vmatpush3.bf16.msra.mxu0 %v2014_v0 }
  0x36   : > { %1878 = vmatprep.subr.bf16.mxu0 %v2016_v6 }
  0x37   : > { %1799 = vmatpush3.bf16.msra.mxu1 %v2015_v63 }
  0x38   : > { %1800 = vmatprep.subr.bf16.mxu1 %v2017_v4 }
  0x39   : > { %1879 = vmatpush3.bf16.msra.mxu0 %v2016_v6 }
  0x3a   : > { %1880 = vmatprep.subr.bf16.mxu0 %v2018_v8 }
  0x3b   : > { %1801 = vmatpush3.bf16.msra.mxu1 %v2017_v4 }
  0x3c   : > { %1802 = vmatprep.subr.bf16.mxu1 %v2019_v7 }
  0x3d   : > { %1881 = vmatpush3.bf16.msra.mxu0 %v2018_v8 }
  0x3e   : > { %1882 = vmatprep.subr.bf16.mxu0 %v2020_v12 }
  0x3f   : > { %1803 = vmatpush3.bf16.msra.mxu1 %v2019_v7 }
  0x40   : > { %1804 = vmatprep.subr.bf16.mxu1 %v2021_v9 }
  0x41   : > { %1883 = vmatpush3.bf16.msra.mxu0 %v2020_v12 }
  0x42   : > { %1884 = vmatprep.subr.bf16.mxu0 %v2022_v46 }
  0x43   : > { %1805 = vmatpush3.bf16.msra.mxu1 %v2021_v9 }
  0x44   : > { %1810 = vmatprep.subr.bf16.mxu1 %v2023_v13 }
  0x45   : > { %1885 = vmatpush3.bf16.msra.mxu0 %v2022_v46 }
  0x46   : > { %1807 = vmatmul.mubr.bf16.vlgmr.msra.gmra.mrb[0].mxu1 %v274_v15  ;;  %1890 = vmatprep.subr.bf16.mxu0 %v2024_v5 }
  0x47   : > { %1811 = vmatpush3.bf16.msra.mxu1 %v2023_v13  ;;  %1826 = vmatprep.mubr.bf16.mxu1 %v546_v16 }
  0x48   : > { %1812 = vmatprep.subr.bf16.mxu1 %v2025_v59  ;;  %1887 = vmatmul.mubr.bf16.vlgmr.msra.gmra.mrb[0].mxu0 %v917_v18 }
  0x49   : > { %1891 = vmatpush3.bf16.msra.mxu0 %v2024_v5  ;;  %1906 = vmatprep.mubr.bf16.mxu0 %v274_v15 }
  0x4a   : > { %1892 = vmatprep.subr.bf16.mxu0 %v2026_v22 }
  0x4b   : > { %1813 = vmatpush3.bf16.msra.mxu1 %v2025_v59 }
  0x4c   : > { %1814 = vmatprep.subr.bf16.mxu1 %v2027_v21 }
  0x4d   : > { %1893 = vmatpush3.bf16.msra.mxu0 %v2026_v22 }
  0x4e   : > { %1894 = vmatprep.subr.bf16.mxu0 %v2028_v24 }
  0x4f   : > { %1815 = vmatpush3.bf16.msra.mxu1 %v2027_v21 }
  0x50   : > { %1816 = vmatprep.subr.bf16.mxu1 %v2029_v23 }
  0x51   : > { %1895 = vmatpush3.bf16.msra.mxu0 %v2028_v24 }
  0x52   : > { %1896 = vmatprep.subr.bf16.mxu0 %v2030_v27 }
  0x53   : > { %1817 = vmatpush3.bf16.msra.mxu1 %v2029_v23 }
  0x54   : > { %1818 = vmatprep.subr.bf16.mxu1 %v2031_v26 }
  0x55   : > { %1897 = vmatpush3.bf16.msra.mxu0 %v2030_v27 }
  0x56   : > { %1898 = vmatprep.subr.bf16.mxu0 %v2032_v31 }
  0x57   : > { %1819 = vmatpush3.bf16.msra.mxu1 %v2031_v26 }
  0x58   : > { %1820 = vmatprep.subr.bf16.mxu1 %v2033_v28 }
  0x59   : > { %1899 = vmatpush3.bf16.msra.mxu0 %v2032_v31 }
  0x5a   : > { %1900 = vmatprep.subr.bf16.mxu0 %v2034_v33 }
  0x5b   : > { %1821 = vmatpush3.bf16.msra.mxu1 %v2033_v28 }
  0x5c   : > { %1822 = vmatprep.subr.bf16.mxu1 %v2035_v32 }
  0x5d   : > { %1901 = vmatpush3.bf16.msra.mxu0 %v2034_v33 }
  0x5e   : > { %1902 = vmatprep.subr.bf16.mxu0 %v2036_v36 }
  0x5f   : > { %1823 = vmatpush3.bf16.msra.mxu1 %v2035_v32 }
  0x60   : > { %1824 = vmatprep.subr.bf16.mxu1 %v2037_v34 }
  0x61   : > { %1903 = vmatpush3.bf16.msra.mxu0 %v2036_v36 }
  0x62   : > { %1904 = vmatprep.subr.bf16.mxu0 %v2038_v41 }
  0x63   : > { %1825 = vmatpush3.bf16.msra.mxu1 %v2037_v34 }
  0x64   : > { %1830 = vmatprep.subr.bf16.mxu1 %v2039_v38 }
  0x65   : > { %1905 = vmatpush3.bf16.msra.mxu0 %v2038_v41 }
  0x66   : > { %1827 = vmatmul.mubr.bf16.vlgmr.msra.gmra.mrb[0].mxu1 %v547_v42  ;;  %1910 = vmatprep.subr.bf16.mxu0 %v2040_v44 }
  0x67   : > { %1831 = vmatpush3.bf16.msra.mxu1 %v2039_v38  ;;  %1846 = vmatprep.mubr.bf16.mxu1 %v666_v30  ;;  %v2046_v30 = vld [vmem:[%s2492_s3 + $0x1d8] sm:$0xff]  }
  0x68   : > { %1832 = vmatprep.subr.bf16.mxu1 %v2041_v43  ;;  %1907 = vmatmul.mubr.bf16.vlgmr.msra.gmra.mrb[0].mxu0 %v1036_v39  ;;  %v2049_v39 = vld [vmem:[%s2492_s3 + $0xe8] sm:$0xff]  }
  0x69   : > { %1911 = vmatpush3.bf16.msra.mxu0 %v2040_v44  ;;  %1926 = vmatprep.mubr.bf16.mxu0 %v2246_v25  ;;  %v2048_v25 = vld [vmem:[%s2492_s3 + $0x1e0] sm:$0xff]  }
  0x6a   : > { %1912 = vmatprep.subr.bf16.mxu0 %v2042_v52 }
  0x6b   : > { %1833 = vmatpush3.bf16.msra.mxu1 %v2041_v43 }
  0x6c   : > { %1834 = vmatprep.subr.bf16.mxu1 %v2043_v49 }
  0x6d   : > { %1913 = vmatpush3.bf16.msra.mxu0 %v2042_v52 }
  0x6e   : > { %1914 = vmatprep.subr.bf16.mxu0 %v2044_v60 }
  0x6f   : > { %1835 = vmatpush3.bf16.msra.mxu1 %v2043_v49 }
  0x70   : > { %1836 = vmatprep.subr.bf16.mxu1 %v2045_v47 }
  0x71   : > { %1915 = vmatpush3.bf16.msra.mxu0 %v2044_v60 }
  0x72   : > { %1916 = vmatprep.subr.bf16.mxu0 %v2046_v30 }
  0x73   : > { %1837 = vmatpush3.bf16.msra.mxu1 %v2045_v47 }
  0x74   : > { %1838 = vmatprep.subr.bf16.mxu1 %v2047_v29 }
  0x75   : > { %1917 = vmatpush3.bf16.msra.mxu0 %v2046_v30 }
  0x76   : > { %1918 = vmatprep.subr.bf16.mxu0 %v2048_v25 }
  0x77   : > { %1839 = vmatpush3.bf16.msra.mxu1 %v2047_v29 }
  0x78   : > { %1840 = vmatprep.subr.bf16.mxu1 %v2049_v39 }
  0x79   : > { %1919 = vmatpush3.bf16.msra.mxu0 %v2048_v25 }
  0x7a   : > { %1920 = vmatprep.subr.bf16.mxu0 %v2050_v37 }
  0x7b   : > { %1841 = vmatpush3.bf16.msra.mxu1 %v2049_v39 }
  0x7c   : > { %1842 = vmatprep.subr.bf16.mxu1 %v2051_v54 }
  0x7d   : > { %1921 = vmatpush3.bf16.msra.mxu0 %v2050_v37 }
  0x7e   : > { %1922 = vmatprep.subr.bf16.mxu0 %v2052_v50 }
  0x7f   : > { %1843 = vmatpush3.bf16.msra.mxu1 %v2051_v54 }
  0x80   : > { %1844 = vmatprep.subr.bf16.mxu1 %v2053_v48 }
  0x81   : > { %1923 = vmatpush3.bf16.msra.mxu0 %v2052_v50 }
  0x82   : > { %1924 = vmatprep.subr.bf16.mxu0 %v2054_v55 }
  0x83   : > { %1845 = vmatpush3.bf16.msra.mxu1 %v2053_v48 }
  0x85   : > { %1925 = vmatpush3.bf16.msra.mxu0 %v2054_v55 }
  0x86   : > { %1847 = vmatmul.mubr.bf16.vlgmr.msra.gmra.mrb[0].mxu1 %v667_v20  ;;  %1930 = vmatprep.subr.bf16.mxu0 %v2055_v56  ;;  %v2060_v20 = vld [vmem:[%s2492_s3 + $0x228] sm:$0xff]  }
  0x88   : > { %1927 = vmatmul.mubr.bf16.vlgmr.msra.gmra.mrb[0].mxu0 %v1161_v53 }
  0x89   : > { %1931 = vmatpush3.bf16.msra.mxu0 %v2055_v56  ;;  %1946 = vmatprep.mubr.bf16.mxu0 %v547_v42 }
  0x8a   : > { %1932 = vmatprep.subr.bf16.mxu0 %v2056_v57 }
  0x8d   : > { %1933 = vmatpush3.bf16.msra.mxu0 %v2056_v57 }
  0x8e   : > { %1934 = vmatprep.subr.bf16.mxu0 %v2057_v58 }
  0x91   : > { %1935 = vmatpush3.bf16.msra.mxu0 %v2057_v58 }
  0x92   : > { %1936 = vmatprep.subr.bf16.mxu0 %v2058_v62 }
  0x95   : > { %1937 = vmatpush3.bf16.msra.mxu0 %v2058_v62 }
  0x96   : > { %1938 = vmatprep.subr.bf16.mxu0 %v2059_v19 }
  0x99   : > { %1939 = vmatpush3.bf16.msra.mxu0 %v2059_v19 }
  0x9a   : > { %1940 = vmatprep.subr.bf16.mxu0 %v2060_v20 }
  0x9d   : > { %1941 = vmatpush3.bf16.msra.mxu0 %v2060_v20 }
  0x9e   : > { %1942 = vmatprep.subr.bf16.mxu0 %v2061_v40 }
  0xa1   : > { %1943 = vmatpush3.bf16.msra.mxu0 %v2061_v40 }
  0xa2   : > { %1944 = vmatprep.subr.bf16.mxu0 %v2062_v51 }
  0xa5   : > { %1945 = vmatpush3.bf16.msra.mxu0 %v2062_v51 }
  0xa8   : > { %1947 = vmatmul.mubr.bf16.vlgmr.msra.gmra.mrb[0].mxu0 %v1284_v3 }
 0x159   : > { %v1848_v53 = vpop.f32.mrb[0].mxu1 }
 0x15a   : > { %v767_v61 = vpop.f32.mrb[1].mxu1 }
 0x15b   : > { %v1849_v63 = vpop.f32.mrb[2].mxu1 }
 0x15c   : > { %v770_v0 = vpop.f32.mrb[3].mxu1 }
 0x17b   : > { %v1948_v4 = vpop.f32.mrb[0].mxu0 }
 0x17c   : > { %v1950_v6 = vadd.f32 %v1948_v4, %v1848_v53  ;;  %v1384_v7 = vpop.f32.mrb[1].mxu0 }
 0x17d   : > { %v1951_v8 = vadd.f32 %v1384_v7, %v767_v61  ;;  %v1949_v9 = vpop.f32.mrb[2].mxu0 }
 0x17e   : > { %v1405_v10 = vpack.c.bf16 %v1950_v6, %v1950_v6  ;;  %v1952_v11 = vadd.f32 %v1949_v9, %v1849_v63  ;;  %v1387_v12 = vpop.f32.mrb[3].mxu0 }
 0x17f   : > { %v1403_v1 = vpack.c.bf16 %v1951_v8, %v1951_v8  ;;  %v1953_v2 = vadd.f32 %v1387_v12, %v770_v0 }
 0x180   : > { %1410 = vst.msk [vmem:[%s197_s28 + $0x8] sm:$0xf] %vm1407_vm2, %v1405_v10  ;;  %v1406_v3 = vpack.c.bf16 %v1952_v11, %v1952_v11 }
 0x181   : > { %1408 = vst.msk [vmem:[%s197_s28] sm:$0xf] %vm1407_vm2, %v1403_v1  ;;  %v1404_v13 = vpack.c.bf16 %v1953_v2, %v1953_v2 }
 0x182   : > { %1411 = vst.msk [vmem:[%s197_s28 + $0xc] sm:$0xf] %vm1407_vm2, %v1406_v3 }
 0x183   : > { %1409 = vst.msk [vmem:[%s197_s28 + $0x4] sm:$0xf] %vm1407_vm2, %v1404_v13 }
 0x184 PF: > { %s14_s15 = sadd.s32 1, %s2069_s15  }
 0x185   : > { %p11_p4 = scmp.ge.s32.totalorder %s14_s15, 4  }
 0x187   :  { %13 = sbr.rel (!%p11_p4) target bundleno = 1 (0x1), region = 74 }

// kernel: _lambda_.34
= control target key start
LH: loop header
LB: loop body
LE: loop exit
PB: predicated region body
PF: predicated region fallthrough
CT: control target
= control target key end

     0   :  { %v176_v0 = vmov 0.0   ;;  %vm177_vm0 = vmmov 0   ;;  %vm86_vm1 = vcmask 785408   ;;  %s233_s3 = inlined_call_operand.vmem [shape: bf16[96,128], index: 3, kind: input, shape index: {}]   ;;  %s234_s0 = inlined_call_operand.vmem [shape: bf16[8,96], index: 0, kind: input, shape index: {}]   ;;  %s235_s1 = inlined_call_operand.vmem [shape: f32[1,96], index: 1, kind: input, shape index: {}]   ;;  %s236_s2 = inlined_call_operand.vmem [shape: f32[1,96], index: 2, kind: input, shape index: {}]   ;;  %s237_s4 = inlined_call_operand.vmem [shape: bf16[8,128], index: 4, kind: output, shape index: {}]  }
   0x1   :  { %152 = vmatprep.subr.bf16.mxu0 %v176_v0  ;;  %v170_v1 = vld [vmem:[%s233_s3] sm:$0xff]   ;;  %164 = vmatprep.mubr.msk.bf16.mxu0 %vm177_vm0, %v176_v0  ;;  %v171_v2 = vld [vmem:[%s233_s3 + $0x8] sm:$0xff]   ;;  %v172_v3 = vld [vmem:[%s233_s3 + $0x10] sm:$0xff]  }
   0x2   :  { %153 = vmatpush3.bf16.msra.mxu0 %v170_v1  ;;  %v18_v4 = vld [vmem:[%s234_s0] sm:$0xf]  ;;  %v173_v8 = vld [vmem:[%s233_s3 + $0x18] sm:$0xff]   ;;  %v175_v13 = vld [vmem:[%s233_s3 + $0x28] sm:$0xff]  }
   0x3   :  { %154 = vmatprep.subr.bf16.mxu0 %v176_v0  ;;  %v136_v5 = vld [vmem:[%s235_s1] ss:$0 sm:$0xff]  ;;  %v19_v6 = vunpack.c.l.bf16 %v18_v4 }
   0x4   :  { %v137_v9 = vld [vmem:[%s236_s2] ss:$0 sm:$0xff] }
   0x5   :  { %v27_v7 = vmul.f32 %v136_v5, %v19_v6  ;;  %v174_v11 = vld [vmem:[%s233_s3 + $0x20] sm:$0xff]  }
   0x6   :  { %155 = vmatpush3.bf16.msra.mxu0 %v171_v2 }
   0x7   :  { %156 = vmatprep.subr.bf16.mxu0 %v176_v0  ;;  %v35_v10 = vadd.f32 %v137_v9, %v27_v7 }
   0x9   :  { %v36_v12 = vmax.f32 %v35_v10, 0.0 }
   0xa   :  { %157 = vmatpush3.bf16.msra.mxu0 %v172_v3 }
   0xb   :  { %158 = vmatprep.subr.bf16.mxu0 %v176_v0  ;;  %v37_v14 = vpack.c.bf16 %v36_v12, %v36_v12 }
   0xe   :  { %159 = vmatpush3.bf16.msra.mxu0 %v173_v8 }
   0xf   :  { %160 = vmatprep.subr.bf16.mxu0 %v176_v0 }
  0x12   :  { %161 = vmatpush3.bf16.msra.mxu0 %v174_v11 }
  0x13   :  { %162 = vmatprep.subr.bf16.mxu0 %v176_v0 }
  0x16   :  { %163 = vmatpush3.bf16.msra.mxu0 %v175_v13 }
  0x19   :  { %165 = vmatmul.mubr.msk.bf16.vlgmr.msra.gmra.mrb[0].mxu0 %vm86_vm1, %v37_v14 }
  0xec   :  { %v124_v15 = vpop.f32.mrb[0].mxu0 }
  0xed   :  { %v130_v16 = vpack.c.bf16 %v124_v15, %v124_v15  ;;  %v166_v17 = vpop.f32.mrb[1].mxu0 }
  0xee   :  { %v127_v18 = vpop.f32.mrb[2].mxu0 }
  0xef   :  { %131 = vst [vmem:[%s237_s4] sm:$0xf] %v130_v16  ;;  %v167_v19 = vpop.f32.mrb[3].mxu0 }

// kernel: _lambda_.36
= control target key start
LH: loop header
LB: loop body
LE: loop exit
PB: predicated region body
PF: predicated region fallthrough
CT: control target
= control target key end

     0   :  { %v198_v0 = vmov 0.0   ;;  %vm199_vm0 = vmmov 0   ;;  %vm143_vm1 = vcmask 519168   ;;  %s261_s3 = inlined_call_operand.vmem [shape: bf16[128,64], index: 3, kind: input, shape index: {}]   ;;  %s262_s0 = inlined_call_operand.vmem [shape: bf16[8,128], index: 0, kind: input, shape index: {}]   ;;  %s263_s1 = inlined_call_operand.vmem [shape: f32[1,128], index: 1, kind: input, shape index: {}]   ;;  %s264_s2 = inlined_call_operand.vmem [shape: f32[1,128], index: 2, kind: input, shape index: {}]   ;;  %s265_s4 = inlined_call_operand.vmem [shape: bf16[8,64], index: 4, kind: output, shape index: {}]  }
   0x1   :  { %168 = vmatprep.subr.bf16.mxu0 %v198_v0  ;;  %v190_v1 = vld [vmem:[%s261_s3] sm:$0xff]   ;;  %184 = vmatprep.mubr.msk.bf16.mxu0 %vm199_vm0, %v198_v0  ;;  %v191_v2 = vld [vmem:[%s261_s3 + $0x8] sm:$0xff]   ;;  %v192_v3 = vld [vmem:[%s261_s3 + $0x10] sm:$0xff]  }
   0x2   :  { %169 = vmatpush3.bf16.msra.mxu0 %v190_v1  ;;  %v193_v4 = vld [vmem:[%s261_s3 + $0x18] sm:$0xff]   ;;  %v18_v5 = vld [vmem:[%s262_s0] sm:$0xf]  ;;  %v195_v10 = vld [vmem:[%s261_s3 + $0x28] sm:$0xff]  }
   0x3   :  { %170 = vmatprep.subr.bf16.mxu0 %v198_v0  ;;  %v19_v6 = vunpack.c.l.bf16 %v18_v5  ;;  %v194_v7 = vld [vmem:[%s261_s3 + $0x20] sm:$0xff]   ;;  %v196_v13 = vld [vmem:[%s261_s3 + $0x30] sm:$0xff]   ;;  %v197_v15 = vld [vmem:[%s261_s3 + $0x38] sm:$0xff]  }
   0x4   :  { %v149_v8 = vld [vmem:[%s263_s1] ss:$0 sm:$0xff] }
   0x5   :  { %v27_v9 = vmul.f32 %v149_v8, %v19_v6  ;;  %v150_v11 = vld [vmem:[%s264_s2] ss:$0 sm:$0xff] }
   0x6   :  { %171 = vmatpush3.bf16.msra.mxu0 %v191_v2 }
   0x7   :  { %172 = vmatprep.subr.bf16.mxu0 %v198_v0  ;;  %v35_v12 = vadd.f32 %v150_v11, %v27_v9 }
   0x9   :  { %v36_v14 = vmax.f32 %v35_v12, 0.0 }
   0xa   :  { %173 = vmatpush3.bf16.msra.mxu0 %v192_v3 }
   0xb   :  { %174 = vmatprep.subr.bf16.mxu0 %v198_v0  ;;  %v37_v16 = vpack.c.bf16 %v36_v14, %v36_v14 }
   0xe   :  { %175 = vmatpush3.bf16.msra.mxu0 %v193_v4 }
   0xf   :  { %176 = vmatprep.subr.bf16.mxu0 %v198_v0 }
  0x12   :  { %177 = vmatpush3.bf16.msra.mxu0 %v194_v7 }
  0x13   :  { %178 = vmatprep.subr.bf16.mxu0 %v198_v0 }
  0x16   :  { %179 = vmatpush3.bf16.msra.mxu0 %v195_v10 }
  0x17   :  { %180 = vmatprep.subr.bf16.mxu0 %v198_v0 }
  0x1a   :  { %181 = vmatpush3.bf16.msra.mxu0 %v196_v13 }
  0x1b   :  { %182 = vmatprep.subr.bf16.mxu0 %v198_v0 }
  0x1e   :  { %183 = vmatpush3.bf16.msra.mxu0 %v197_v15 }
  0x21   :  { %185 = vmatmul.mubr.bf16.vlgmr.msra.gmra.mrb[0].mxu0 %v37_v16 }
  0xf4   :  { %v136_v17 = vpop.f32.mrb[0].mxu0 }
  0xf5   :  { %v142_v18 = vpack.c.bf16 %v136_v17, %v136_v17  ;;  %v186_v19 = vpop.f32.mrb[1].mxu0 }
  0xf6   :  { %v139_v20 = vpop.f32.mrb[2].mxu0 }
  0xf7   :  { %144 = vst.msk [vmem:[%s265_s4] sm:$0xf] %vm143_vm1, %v142_v18  ;;  %v187_v21 = vpop.f32.mrb[3].mxu0 }

// kernel: _lambda_.33
= control target key start
LH: loop header
LB: loop body
LE: loop exit
PB: predicated region body
PF: predicated region fallthrough
CT: control target
= control target key end

     0   :  { %s1954_s15 = smov 0   ;;  %s2357_s0 = inlined_call_operand.vmem [shape: bf16[2,4,10,128], index: 0, kind: input, shape index: {}]   ;;  %s2358_s1 = inlined_call_operand.vmem [shape: f32[1,1,128], index: 1, kind: input, shape index: {}]   ;;  %s2359_s2 = inlined_call_operand.vmem [shape: f32[1,1,128], index: 2, kind: input, shape index: {}]   ;;  %s2360_s3 = inlined_call_operand.vmem [shape: bf16[9,128,32], index: 3, kind: input, shape index: {}]   ;;  %s2361_s4 = inlined_call_operand.vmem [shape: bf16[2,2,8,32], index: 4, kind: output, shape index: {}]  }
   0x1 LB: > { %s1331_s16 = sadd.s32 4294967295, %s1925_s15   ;;  %p1335_p0 = scmp.ge.s32.totalorder %s1925_s15, 1  ;;  %s1925_s15 = sphi %s1954_s15, %s14_s15  }
   0x2   : > { %p162_p1 = scmp.lt.s32.totalorder %s1925_s15, 3 }
   0x4   : > { %p163_p2 = pnand %p1335_p0, %p162_p1 }
   0x5   : > { %v1847_v0 = vld [vmem:[%s2360_s3 + $0x40] sm:$0xff] (!%p163_p2)   ;;  %v1927_v1 = vmov (!%p163_p2), 0.0   ;;  %v1849_v3 = vld [vmem:[%s2360_s3 + $0x48] sm:$0xff] (!%p163_p2)   ;;  %vm1928_vm0 = vmmov (!%p163_p2), 0   ;;  %p188_p3 = scmp.lt.s32.totalorder (!%p163_p2), %s1331_s16, 1  ;;  %v1851_v5 = vld [vmem:[%s2360_s3 + $0x50] sm:$0xff] (!%p163_p2)  }
   0x6   : > { %166 = sbr.rel (%p163_p2) target bundleno = 386 (0x182), region = 36  ;;  %1627 = vmatprep.subr.bf16.mxu1 (!%p163_p2), %v1927_v1  ;;  %1707 = vmatprep.subr.bf16.mxu0 (!%p163_p2), %v1927_v1  ;;  %v1848_v2 = vld [vmem:[%s2360_s3 + $0x100] sm:$0xff] (!%p163_p2)   ;;  %v1850_v4 = vld [vmem:[%s2360_s3 + $0x108] sm:$0xff] (!%p163_p2)   ;;  %v1852_v6 = vld [vmem:[%s2360_s3 + $0x110] sm:$0xff] (!%p163_p2)   ;;  %vm274_vm1 = vcmask (!%p163_p2), 1046528   ;;  %vm479_vm2 = vcmask (!%p163_p2), 1045504  }
   0x7   : > { %1628 = vmatpush3.bf16.msra.mxu1 (!%p163_p2), %v1847_v0  ;;  %1643 = vmatprep.mubr.msk.bf16.mxu1 (!%p163_p2), %vm1928_vm0, %v1927_v1  ;;  %v1853_v7 = vld [vmem:[%s2360_s3 + $0x58] sm:$0xff] (!%p163_p2)   ;;  %v1855_v9 = vld [vmem:[%s2360_s3 + $0x60] sm:$0xff] (!%p163_p2)   ;;  %v1857_v11 = vld [vmem:[%s2360_s3 + $0x68] sm:$0xff] (!%p163_p2)   ;;  %vm1273_vm3 = vcmask (!%p163_p2), 257024  }
   0x8   : > { %1708 = vmatpush3.bf16.msra.mxu0 (!%p163_p2), %v1848_v2  ;;  %1629 = vmatprep.subr.bf16.mxu1 (!%p163_p2), %v1927_v1  ;;  %v1854_v8 = vld [vmem:[%s2360_s3 + $0x118] sm:$0xff] (!%p163_p2)   ;;  %v1856_v10 = vld [vmem:[%s2360_s3 + $0x120] sm:$0xff] (!%p163_p2)   ;;  %v1858_v15 = vld [vmem:[%s2360_s3 + $0x128] sm:$0xff] (!%p163_p2)  }
   0x9   : > { %1709 = vmatprep.subr.bf16.mxu0 (!%p163_p2), %v1927_v1  ;;  %1723 = vmatprep.mubr.msk.bf16.mxu0 (!%p163_p2), %vm1928_vm0, %v1927_v1  ;;  %v1340_v20 = vld [vmem:[%s2358_s1] ss:$0 sm:$0xff] (!%p163_p2)  ;;  %v1859_v37 = vld [vmem:[%s2360_s3 + $0x70] sm:$0xff] (!%p163_p2)   ;;  %v1861_v47 = vld [vmem:[%s2360_s3 + $0x78] sm:$0xff] (!%p163_p2)  }
   0xa   : > { %v1341_v21 = vld [vmem:[%s2359_s2] ss:$0 sm:$0xff] (!%p163_p2)  ;;  %v1860_v42 = vld [vmem:[%s2360_s3 + $0x130] sm:$0xff] (!%p163_p2)   ;;  %v1862_v60 = vld [vmem:[%s2360_s3 + $0x138] sm:$0xff] (!%p163_p2)  }
   0xb   : > { %1630 = vmatpush3.bf16.msra.mxu1 (!%p163_p2), %v1849_v3 }
   0xc   : > { %1710 = vmatpush3.bf16.msra.mxu0 (!%p163_p2), %v1850_v4  ;;  %1631 = vmatprep.subr.bf16.mxu1 (!%p163_p2), %v1927_v1 }
   0xd   : > { %s2363_s16 = smov (!%p188_p3, %s1331_s16), 1  ;;  %1711 = vmatprep.subr.bf16.mxu0 %v1927_v1 }
   0xe   : > { %s1544_s5 = sshll.u32 %s2363_s16, 5  ;;  %s1545_s25 = sshll.u32 %s2363_s16, 3 }
   0xf   : > { %1632 = vmatpush3.bf16.msra.mxu1 %v1851_v5  ;;  %s192_s10 = scalar_lea.vmem %s2357_s0, %s1544_s5  ;;  %s197_s28 = scalar_lea.vmem %s2361_s4, %s1545_s25 }
  0x10   : > { %1712 = vmatpush3.bf16.msra.mxu0 %v1852_v6  ;;  %1633 = vmatprep.subr.bf16.mxu1 %v1927_v1  ;;  %v199_v12 = vld [vmem:[%s192_s10] ss:$8 sps:$4 sm:$0xff]   ;;  %v200_v13 = vld [vmem:[%s192_s10 + $0x4] sm:$0x1]  ;;  %v202_v14 = vld [vmem:[%s192_s10 + $0xc] sm:$0x1] }
  0x11   : > { %1713 = vmatprep.subr.bf16.mxu0 %v1927_v1  ;;  %v207_v16 = vunpack.c.l.bf16 %v199_v12  ;;  %v208_v17 = vunpack.c.l.bf16 %v200_v13  ;;  %v209_v18 = vunpack.c.h.bf16 %v199_v12  ;;  %v210_v19 = vunpack.c.l.bf16 %v202_v14  ;;  %v203_v22 = vld [vmem:[%s192_s10 + $0x10] ss:$8 sps:$4 sm:$0xff]   ;;  %v204_v26 = vld [vmem:[%s192_s10 + $0x14] sm:$0x1]  ;;  %v206_v27 = vld [vmem:[%s192_s10 + $0x1c] sm:$0x1] }
  0x12   : > { %v211_v28 = vunpack.c.l.bf16 %v203_v22  ;;  %v212_v30 = vunpack.c.l.bf16 %v204_v26  ;;  %v213_v31 = vunpack.c.h.bf16 %v203_v22  ;;  %v214_v32 = vunpack.c.l.bf16 %v206_v27  ;;  %v1864_v12 = vld [vmem:[%s2360_s3 + $0x140] sm:$0xff]   ;;  %v1865_v13 = vld [vmem:[%s2360_s3 + $0x8] sm:$0xff]   ;;  %v1867_v22 = vld [vmem:[%s2360_s3 + $0x10] sm:$0xff]  }
  0x13   : > { %1634 = vmatpush3.bf16.msra.mxu1 %v1853_v7  ;;  %v222_v23 = vmul.f32 %v1340_v20, %v207_v16  ;;  %v223_v24 = vmul.f32 %v1340_v20, %v208_v17  ;;  %v224_v25 = vmul.f32 %v1340_v20, %v209_v18  ;;  %v225_v29 = vmul.f32 %v1340_v20, %v210_v19  ;;  %v1863_v7 = vld [vmem:[%s2360_s3] sm:$0xff]   ;;  %v1866_v18 = vld [vmem:[%s2360_s3 + $0x148] sm:$0xff]   ;;  %v1869_v27 = vld [vmem:[%s2360_s3 + $0x18] sm:$0xff]  }
  0x14   : > { %1714 = vmatpush3.bf16.msra.mxu0 %v1854_v8  ;;  %1635 = vmatprep.subr.bf16.mxu1 %v1927_v1  ;;  %v226_v36 = vmul.f32 %v1340_v20, %v211_v28  ;;  %v227_v39 = vmul.f32 %v1340_v20, %v212_v30  ;;  %v228_v40 = vmul.f32 %v1340_v20, %v213_v31  ;;  %v1870_v28 = vld [vmem:[%s2360_s3 + $0x158] sm:$0xff]   ;;  %v1872_v30 = vld [vmem:[%s2360_s3 + $0x160] sm:$0xff]   ;;  %v1873_v31 = vld [vmem:[%s2360_s3 + $0x28] sm:$0xff]  }
  0x15   : > { %1715 = vmatprep.subr.bf16.mxu0 %v1927_v1  ;;  %v237_v33 = vadd.f32 %v1341_v21, %v222_v23  ;;  %v238_v34 = vadd.f32 %v1341_v21, %v223_v24  ;;  %v239_v35 = vadd.f32 %v1341_v21, %v224_v25  ;;  %v2029_v38 = vadd.f32 %v1341_v21, %v225_v29  ;;  %v1868_v25 = vld [vmem:[%s2360_s3 + $0x150] sm:$0xff]   ;;  %v1871_v29 = vld [vmem:[%s2360_s3 + $0x20] sm:$0xff]  }
  0x16   : > { %v229_v41 = vmul.f32 %v1340_v20, %v214_v32  ;;  %v241_v46 = vadd.f32 %v1341_v21, %v226_v36  ;;  %v242_v49 = vadd.f32 %v1341_v21, %v227_v39  ;;  %v243_v50 = vadd.f32 %v1341_v21, %v228_v40  ;;  %v1874_v32 = vld [vmem:[%s2360_s3 + $0x168] sm:$0xff]   ;;  %v1878_v39 = vld [vmem:[%s2360_s3 + $0x178] sm:$0xff]  }
  0x17   : > { %1636 = vmatpush3.bf16.msra.mxu1 %v1855_v9  ;;  %v2035_v43 = vmax.f32 %v237_v33, 0.0  ;;  %v246_v44 = vmax.f32 %v238_v34, 0.0  ;;  %v2037_v45 = vmax.f32 %v239_v35, 0.0  ;;  %v248_v48 = vmax.f32 %v2029_v38, 0.0  ;;  %v1875_v33 = vld [vmem:[%s2360_s3 + $0x30] sm:$0xff]  }
  0x18   : > { %1716 = vmatpush3.bf16.msra.mxu0 %v1856_v10  ;;  %1637 = vmatprep.subr.bf16.mxu1 %v1927_v1  ;;  %v244_v51 = vadd.f32 %v1341_v21, %v229_v41  ;;  %v2046_v55 = vmax.f32 %v241_v46, 0.0  ;;  %v250_v57 = vmax.f32 %v242_v49, 0.0  ;;  %v2050_v58 = vmax.f32 %v243_v50, 0.0  ;;  %v1876_v35 = vld [vmem:[%s2360_s3 + $0x170] sm:$0xff]   ;;  %v1879_v41 = vld [vmem:[%s2360_s3 + $0x80] sm:$0xff]   ;;  %v1882_v46 = vld [vmem:[%s2360_s3 + $0x188] sm:$0xff]  }
  0x19   : > { %1717 = vmatprep.subr.bf16.mxu0 %v1927_v1  ;;  %v275_v52 = vrot.slane %v2035_v43, 1  ;;  %v276_v53 = vrot.slane %v246_v44, 1  ;;  %v278_v54 = vrot.slane %v2037_v45, 1  ;;  %v279_v56 = vrot.slane %v248_v48, 1  ;;  %v1885_v49 = vld [vmem:[%s2360_s3 + $0x98] sm:$0xff]  }
  0x1a   : > { %v252_v59 = vmax.f32 %v244_v51, 0.0  ;;  %v708_v62 = vrot.slane %v2046_v55, 1  ;;  %v597_v63 = vpack.c.bf16 %v2046_v55, %v2037_v45  ;;  %v709_v2 = vrot.slane %v250_v57, 1  ;;  %v1886_v50 = vld [vmem:[%s2360_s3 + $0x198] sm:$0xff]   ;;  %v1887_v51 = vld [vmem:[%s2360_s3 + $0xa0] sm:$0xff]  }
  0x1b   : > { %1638 = vmatpush3.bf16.msra.mxu1 %v1857_v11  ;;  %v277_v61 = vsel %vm274_vm1, %v275_v52, %v276_v53  ;;  %v280_v0 = vsel %vm274_vm1, %v278_v54, %v279_v56  ;;  %v1045_v3 = vrot.slane %v2050_v58, 1  ;;  %v934_v6 = vpack.c.bf16 %v2050_v58, %v2046_v55  ;;  %v1888_v52 = vld [vmem:[%s2360_s3 + $0x1a0] sm:$0xff]   ;;  %v1889_v53 = vld [vmem:[%s2360_s3 + $0xa8] sm:$0xff]   ;;  %v1891_v56 = vld [vmem:[%s2360_s3 + $0xb0] sm:$0xff]  }
  0x1c   : > { %1718 = vmatpush3.bf16.msra.mxu0 %v1858_v15  ;;  %1639 = vmatprep.subr.bf16.mxu1 %v1927_v1  ;;  %v1046_v4 = vrot.slane %v252_v59, 1  ;;  %v283_v5 = vpack.c.bf16 %v280_v0, %v277_v61  ;;  %v2069_v8 = vsel %vm274_vm1, %v708_v62, %v709_v2  ;;  %v821_v14 = vrot.slane %v2046_v55, 2  ;;  %v1890_v54 = vld [vmem:[%s2360_s3 + $0x1a8] sm:$0xff]   ;;  %v1895_v62 = vld [vmem:[%s2360_s3 + $0xc0] sm:$0xff]   ;;  %v1914_v55 = vld [vmem:[%s2360_s3 + $0x218] sm:$0xff]  }
  0x1d   : > { %1719 = vmatprep.subr.bf16.mxu0 %v1927_v1  ;;  %v712_v10 = vpack.c.bf16 %v2069_v8, %v280_v0  ;;  %v480_v15 = vrot.slane %v2035_v43, 2  ;;  %v822_v16 = vrot.slane %v250_v57, 2  ;;  %v481_v17 = vrot.slane %v246_v44, 2  ;;  %v1880_v44 = vld [vmem:[%s2360_s3 + $0x180] sm:$0xff]   ;;  %v1892_v57 = vld [vmem:[%s2360_s3 + $0x1b0] sm:$0xff]   ;;  %v1897_v2 = vld [vmem:[%s2360_s3 + $0xc8] sm:$0xff]  }
  0x1e   : > { %v2072_v9 = vsel %vm274_vm1, %v1045_v3, %v1046_v4  ;;  %v1158_v19 = vrot.slane %v2050_v58, 2  ;;  %v1159_v21 = vrot.slane %v252_v59, 2  ;;  %v483_v34 = vrot.slane %v2037_v45, 2  ;;  %v1893_v59 = vld [vmem:[%s2360_s3 + $0xb8] sm:$0xff]   ;;  %v1896_v0 = vld [vmem:[%s2360_s3 + $0x1c0] sm:$0xff]   ;;  %v1898_v3 = vld [vmem:[%s2360_s3 + $0x1c8] sm:$0xff]  }
  0x1f   : > { %1640 = vmatpush3.bf16.msra.mxu1 %v1859_v37  ;;  %v1049_v11 = vpack.c.bf16 %v2072_v9, %v2069_v8  ;;  %v2096_v20 = vsel %vm479_vm2, %v480_v15, %v481_v17  ;;  %v2104_v23 = vsel %vm479_vm2, %v821_v14, %v822_v16  ;;  %v484_v36 = vrot.slane %v248_v48, 2  ;;  %v1877_v37 = vld [vmem:[%s2360_s3 + $0x38] sm:$0xff]   ;;  %v1884_v48 = vld [vmem:[%s2360_s3 + $0x190] sm:$0xff]   ;;  %v1916_v8 = vld [vmem:[%s2360_s3 + $0x228] sm:$0xff]  }
  0x20   : > { %1720 = vmatpush3.bf16.msra.mxu0 %v1860_v42  ;;  %1641 = vmatprep.subr.bf16.mxu1 %v1927_v1  ;;  %v2107_v24 = vsel %vm479_vm2, %v1158_v19, %v1159_v21  ;;  %v253_v38 = vpack.c.bf16 %v2037_v45, %v2035_v43  ;;  %v1881_v43 = vld [vmem:[%s2360_s3 + $0x88] sm:$0xff]   ;;  %v1899_v58 = vld [vmem:[%s2360_s3 + $0xd0] sm:$0xff]   ;;  %v1909_v16 = vld [vmem:[%s2360_s3 + $0xf8] sm:$0xff]  }
  0x21   : > { %1721 = vmatprep.subr.bf16.mxu0 %v1927_v1  ;;  %v1162_v26 = vpack.c.bf16 %v2107_v24, %v2104_v23  ;;  %v2159_v40 = vsel %vm479_vm2, %v483_v34, %v484_v36  ;;  %v1900_v4 = vld [vmem:[%s2360_s3 + $0x1d0] sm:$0xff]   ;;  %v1910_v17 = vld [vmem:[%s2360_s3 + $0x1f8] sm:$0xff]   ;;  %v1912_v19 = vld [vmem:[%s2360_s3 + $0x208] sm:$0xff]  }
  0x22   : > { %v825_v42 = vpack.c.bf16 %v2104_v23, %v2159_v40  ;;  %v488_v61 = vpack.c.bf16 %v2159_v40, %v2096_v20  ;;  %v1907_v14 = vld [vmem:[%s2360_s3 + $0xf0] sm:$0xff]  }
  0x23   : > { %1642 = vmatpush3.bf16.msra.mxu1 %v1861_v47  ;;  %v1883_v47 = vld [vmem:[%s2360_s3 + $0x90] sm:$0xff]  }
  0x24   : > { %1722 = vmatpush3.bf16.msra.mxu0 %v1862_v60  ;;  %1647 = vmatprep.subr.bf16.mxu1 %v1927_v1  ;;  %v1894_v60 = vld [vmem:[%s2360_s3 + $0x1b8] sm:$0xff]   ;;  %v1908_v15 = vld [vmem:[%s2360_s3 + $0x1f0] sm:$0xff]  }
  0x25   : > { %1727 = vmatprep.subr.bf16.mxu0 %v1927_v1  ;;  %v1913_v45 = vld [vmem:[%s2360_s3 + $0x210] sm:$0xff]  }
  0x26   : > { %1644 = vmatmul.mubr.bf16.vlgmr.msra.gmra.mrb[0].mxu1 %v283_v5  ;;  %v1901_v5 = vld [vmem:[%s2360_s3 + $0xd8] sm:$0xff]   ;;  %v1917_v9 = vld [vmem:[%s2360_s3 + $0x230] sm:$0xff]  }
  0x27   : > { %1648 = vmatpush3.bf16.msra.mxu1 %v1863_v7  ;;  %1724 = vmatmul.mubr.bf16.vlgmr.msra.gmra.mrb[0].mxu0 %v712_v10  ;;  %v1903_v7 = vld [vmem:[%s2360_s3 + $0xe0] sm:$0xff]  }
  0x28   : > { %1728 = vmatpush3.bf16.msra.mxu0 %v1864_v12  ;;  %1649 = vmatprep.subr.bf16.mxu1 %v1927_v1  ;;  %v1904_v10 = vld [vmem:[%s2360_s3 + $0x1e0] sm:$0xff]   ;;  %v1905_v12 = vld [vmem:[%s2360_s3 + $0xe8] sm:$0xff]  }
  0x29   : > { %1729 = vmatprep.subr.bf16.mxu0 %v1927_v1  ;;  %1663 = vmatprep.mubr.msk.bf16.mxu1 %vm1928_vm0, %v1927_v1 }
  0x2a   : > { %1743 = vmatprep.mubr.msk.bf16.mxu0 %vm1928_vm0, %v1927_v1 }
  0x2b   : > { %1650 = vmatpush3.bf16.msra.mxu1 %v1865_v13  ;;  %v1906_v13 = vld [vmem:[%s2360_s3 + $0x1e8] sm:$0xff]  }
  0x2c   : > { %1730 = vmatpush3.bf16.msra.mxu0 %v1866_v18  ;;  %1651 = vmatprep.subr.bf16.mxu1 %v1927_v1  ;;  %v1911_v18 = vld [vmem:[%s2360_s3 + $0x200] sm:$0xff]  }
  0x2d   : > { %1731 = vmatprep.subr.bf16.mxu0 %v1927_v1 }
  0x2f   : > { %1652 = vmatpush3.bf16.msra.mxu1 %v1867_v22 }
  0x30   : > { %1732 = vmatpush3.bf16.msra.mxu0 %v1868_v25  ;;  %1653 = vmatprep.subr.bf16.mxu1 %v1927_v1 }
  0x31   : > { %1733 = vmatprep.subr.bf16.mxu0 %v1927_v1 }
  0x33   : > { %1654 = vmatpush3.bf16.msra.mxu1 %v1869_v27 }
  0x34   : > { %1734 = vmatpush3.bf16.msra.mxu0 %v1870_v28  ;;  %1655 = vmatprep.subr.bf16.mxu1 %v1927_v1 }
  0x35   : > { %1735 = vmatprep.subr.bf16.mxu0 %v1927_v1 }
  0x37   : > { %1656 = vmatpush3.bf16.msra.mxu1 %v1871_v29 }
  0x38   : > { %1736 = vmatpush3.bf16.msra.mxu0 %v1872_v30  ;;  %1657 = vmatprep.subr.bf16.mxu1 %v1927_v1 }
  0x39   : > { %1737 = vmatprep.subr.bf16.mxu0 %v1927_v1 }
  0x3b   : > { %1658 = vmatpush3.bf16.msra.mxu1 %v1873_v31 }
  0x3c   : > { %1738 = vmatpush3.bf16.msra.mxu0 %v1874_v32  ;;  %1659 = vmatprep.subr.bf16.mxu1 %v1927_v1 }
  0x3d   : > { %1739 = vmatprep.subr.bf16.mxu0 %v1927_v1 }
  0x3f   : > { %1660 = vmatpush3.bf16.msra.mxu1 %v1875_v33 }
  0x40   : > { %1740 = vmatpush3.bf16.msra.mxu0 %v1876_v35  ;;  %1661 = vmatprep.subr.bf16.mxu1 %v1927_v1 }
  0x41   : > { %1741 = vmatprep.subr.bf16.mxu0 %v1927_v1 }
  0x43   : > { %1662 = vmatpush3.bf16.msra.mxu1 %v1877_v37 }
  0x44   : > { %1742 = vmatpush3.bf16.msra.mxu0 %v1878_v39  ;;  %1667 = vmatprep.subr.bf16.mxu1 %v1927_v1 }
  0x45   : > { %1747 = vmatprep.subr.bf16.mxu0 %v1927_v1 }
  0x46   : > { %1664 = vmatmul.mubr.bf16.vlgmr.msra.gmra.mrb[0].mxu1 %v253_v38 }
  0x47   : > { %1668 = vmatpush3.bf16.msra.mxu1 %v1879_v41  ;;  %1744 = vmatmul.mubr.bf16.vlgmr.msra.gmra.mrb[0].mxu0 %v825_v42 }
  0x48   : > { %1748 = vmatpush3.bf16.msra.mxu0 %v1880_v44  ;;  %1669 = vmatprep.subr.bf16.mxu1 %v1927_v1 }
  0x49   : > { %1749 = vmatprep.subr.bf16.mxu0 %v1927_v1  ;;  %1683 = vmatprep.mubr.msk.bf16.mxu1 %vm1928_vm0, %v1927_v1 }
  0x4a   : > { %1763 = vmatprep.mubr.msk.bf16.mxu0 %vm1928_vm0, %v1927_v1 }
  0x4b   : > { %1670 = vmatpush3.bf16.msra.mxu1 %v1881_v43 }
  0x4c   : > { %1750 = vmatpush3.bf16.msra.mxu0 %v1882_v46  ;;  %1671 = vmatprep.subr.bf16.mxu1 %v1927_v1 }
  0x4d   : > { %1751 = vmatprep.subr.bf16.mxu0 %v1927_v1 }
  0x4f   : > { %1672 = vmatpush3.bf16.msra.mxu1 %v1883_v47 }
  0x50   : > { %1752 = vmatpush3.bf16.msra.mxu0 %v1884_v48  ;;  %1673 = vmatprep.subr.bf16.mxu1 %v1927_v1 }
  0x51   : > { %1753 = vmatprep.subr.bf16.mxu0 %v1927_v1 }
  0x53   : > { %1674 = vmatpush3.bf16.msra.mxu1 %v1885_v49 }
  0x54   : > { %1754 = vmatpush3.bf16.msra.mxu0 %v1886_v50  ;;  %1675 = vmatprep.subr.bf16.mxu1 %v1927_v1 }
  0x55   : > { %1755 = vmatprep.subr.bf16.mxu0 %v1927_v1 }
  0x57   : > { %1676 = vmatpush3.bf16.msra.mxu1 %v1887_v51 }
  0x58   : > { %1756 = vmatpush3.bf16.msra.mxu0 %v1888_v52  ;;  %1677 = vmatprep.subr.bf16.mxu1 %v1927_v1 }
  0x59   : > { %1757 = vmatprep.subr.bf16.mxu0 %v1927_v1 }
  0x5b   : > { %1678 = vmatpush3.bf16.msra.mxu1 %v1889_v53 }
  0x5c   : > { %1758 = vmatpush3.bf16.msra.mxu0 %v1890_v54  ;;  %1679 = vmatprep.subr.bf16.mxu1 %v1927_v1 }
  0x5d   : > { %1759 = vmatprep.subr.bf16.mxu0 %v1927_v1 }
  0x5f   : > { %1680 = vmatpush3.bf16.msra.mxu1 %v1891_v56 }
  0x60   : > { %1760 = vmatpush3.bf16.msra.mxu0 %v1892_v57  ;;  %1681 = vmatprep.subr.bf16.mxu1 %v1927_v1 }
  0x61   : > { %1761 = vmatprep.subr.bf16.mxu0 %v1927_v1 }
  0x63   : > { %1682 = vmatpush3.bf16.msra.mxu1 %v1893_v59 }
  0x64   : > { %1762 = vmatpush3.bf16.msra.mxu0 %v1894_v60  ;;  %1687 = vmatprep.subr.bf16.mxu1 %v1927_v1 }
  0x65   : > { %1767 = vmatprep.subr.bf16.mxu0 %v1927_v1 }
  0x66   : > { %1684 = vmatmul.mubr.bf16.vlgmr.msra.gmra.mrb[0].mxu1 %v488_v61 }
  0x67   : > { %1688 = vmatpush3.bf16.msra.mxu1 %v1895_v62  ;;  %1764 = vmatmul.mubr.bf16.vlgmr.msra.gmra.mrb[0].mxu0 %v934_v6  ;;  %v1902_v6 = vld [vmem:[%s2360_s3 + $0x1d8] sm:$0xff]  }
  0x68   : > { %1768 = vmatpush3.bf16.msra.mxu0 %v1896_v0  ;;  %1689 = vmatprep.subr.bf16.mxu1 %v1927_v1 }
  0x69   : > { %1769 = vmatprep.subr.bf16.mxu0 %v1927_v1  ;;  %1703 = vmatprep.mubr.msk.bf16.mxu1 %vm1928_vm0, %v1927_v1 }
  0x6a   : > { %1783 = vmatprep.mubr.msk.bf16.mxu0 %vm1928_vm0, %v1927_v1 }
  0x6b   : > { %1690 = vmatpush3.bf16.msra.mxu1 %v1897_v2 }
  0x6c   : > { %1770 = vmatpush3.bf16.msra.mxu0 %v1898_v3  ;;  %1691 = vmatprep.subr.bf16.mxu1 %v1927_v1 }
  0x6d   : > { %1771 = vmatprep.subr.bf16.mxu0 %v1927_v1 }
  0x6f   : > { %1692 = vmatpush3.bf16.msra.mxu1 %v1899_v58 }
  0x70   : > { %1772 = vmatpush3.bf16.msra.mxu0 %v1900_v4  ;;  %1693 = vmatprep.subr.bf16.mxu1 %v1927_v1 }
  0x71   : > { %1773 = vmatprep.subr.bf16.mxu0 %v1927_v1 }
  0x73   : > { %1694 = vmatpush3.bf16.msra.mxu1 %v1901_v5 }
  0x74   : > { %1774 = vmatpush3.bf16.msra.mxu0 %v1902_v6  ;;  %1695 = vmatprep.subr.bf16.mxu1 %v1927_v1 }
  0x75   : > { %1775 = vmatprep.subr.bf16.mxu0 %v1927_v1 }
  0x77   : > { %1696 = vmatpush3.bf16.msra.mxu1 %v1903_v7 }
  0x78   : > { %1776 = vmatpush3.bf16.msra.mxu0 %v1904_v10  ;;  %1697 = vmatprep.subr.bf16.mxu1 %v1927_v1 }
  0x79   : > { %1777 = vmatprep.subr.bf16.mxu0 %v1927_v1 }
  0x7b   : > { %1698 = vmatpush3.bf16.msra.mxu1 %v1905_v12 }
  0x7c   : > { %1778 = vmatpush3.bf16.msra.mxu0 %v1906_v13  ;;  %1699 = vmatprep.subr.bf16.mxu1 %v1927_v1 }
  0x7d   : > { %1779 = vmatprep.subr.bf16.mxu0 %v1927_v1 }
  0x7f   : > { %1700 = vmatpush3.bf16.msra.mxu1 %v1907_v14 }
  0x80   : > { %1780 = vmatpush3.bf16.msra.mxu0 %v1908_v15  ;;  %1701 = vmatprep.subr.bf16.mxu1 %v1927_v1 }
  0x81   : > { %1781 = vmatprep.subr.bf16.mxu0 %v1927_v1 }
  0x83   : > { %1702 = vmatpush3.bf16.msra.mxu1 %v1909_v16 }
  0x84   : > { %1782 = vmatpush3.bf16.msra.mxu0 %v1910_v17 }
  0x85   : > { %1787 = vmatprep.subr.bf16.mxu0 %v1927_v1 }
  0x86   : > { %1704 = vmatmul.mubr.bf16.vlgmr.msra.gmra.mrb[0].mxu1 %v597_v63  ;;  %v1915_v63 = vld [vmem:[%s2360_s3 + $0x220] sm:$0xff]  }
  0x87   : > { %1784 = vmatmul.mubr.bf16.vlgmr.msra.gmra.mrb[0].mxu0 %v1049_v11  ;;  %v1918_v11 = vld [vmem:[%s2360_s3 + $0x238] sm:$0xff]  }
  0x88   : > { %1788 = vmatpush3.bf16.msra.mxu0 %v1911_v18  ;;  %1803 = vmatprep.mubr.msk.bf16.mxu0 %vm1928_vm0, %v1927_v1 }
  0x89   : > { %1789 = vmatprep.subr.bf16.mxu0 %v1927_v1 }
  0x8c   : > { %1790 = vmatpush3.bf16.msra.mxu0 %v1912_v19 }
  0x8d   : > { %1791 = vmatprep.subr.bf16.mxu0 %v1927_v1 }
  0x90   : > { %1792 = vmatpush3.bf16.msra.mxu0 %v1913_v45 }
  0x91   : > { %1793 = vmatprep.subr.bf16.mxu0 %v1927_v1 }
  0x94   : > { %1794 = vmatpush3.bf16.msra.mxu0 %v1914_v55 }
  0x95   : > { %1795 = vmatprep.subr.bf16.mxu0 %v1927_v1 }
  0x98   : > { %1796 = vmatpush3.bf16.msra.mxu0 %v1915_v63 }
  0x99   : > { %1797 = vmatprep.subr.bf16.mxu0 %v1927_v1 }
  0x9c   : > { %1798 = vmatpush3.bf16.msra.mxu0 %v1916_v8 }
  0x9d   : > { %1799 = vmatprep.subr.bf16.mxu0 %v1927_v1 }
  0xa0   : > { %1800 = vmatpush3.bf16.msra.mxu0 %v1917_v9 }
  0xa1   : > { %1801 = vmatprep.subr.bf16.mxu0 %v1927_v1 }
  0xa4   : > { %1802 = vmatpush3.bf16.msra.mxu0 %v1918_v11 }
  0xa7   : > { %1804 = vmatmul.mubr.bf16.vlgmr.msra.gmra.mrb[0].mxu0 %v1162_v26 }
 0x159   : > { %v697_v20 = vpop.f32.mrb[0].mxu1 }
 0x15a   : > { %v1705_v21 = vpop.f32.mrb[1].mxu1 }
 0x15b   : > { %v700_v22 = vpop.f32.mrb[2].mxu1 }
 0x15c   : > { %v1706_v25 = vpop.f32.mrb[3].mxu1 }
 0x17a   : > { %v1262_v27 = vpop.f32.mrb[0].mxu0 }
 0x17b   : > { %v1807_v28 = vadd.f32 %v1262_v27, %v697_v20  ;;  %v1805_v29 = vpop.f32.mrb[1].mxu0 }
 0x17c   : > { %v1265_v30 = vpop.f32.mrb[2].mxu0 }
 0x17d   : > { %v1271_v1 = vpack.c.bf16 %v1807_v28, %v1807_v28  ;;  %v1808_v31 = vadd.f32 %v1265_v30, %v700_v22  ;;  %v1806_v32 = vpop.f32.mrb[3].mxu0 }
 0x17f   : > { %1274 = vst.msk [vmem:[%s197_s28] sm:$0xf] %vm1273_vm3, %v1271_v1  ;;  %v1272_v23 = vpack.c.bf16 %v1808_v31, %v1808_v31 }
 0x181   : > { %1275 = vst.msk [vmem:[%s197_s28 + $0x4] sm:$0xf] %vm1273_vm3, %v1272_v23 }
 0x182 PF: > { %s14_s15 = sadd.s32 1, %s1925_s15  }
 0x183   : > { %p11_p4 = scmp.ge.s32.totalorder %s14_s15, 4  }
 0x185   :  { %13 = sbr.rel (!%p11_p4) target bundleno = 1 (0x1), region = 74 }

// kernel: _lambda_.41
= control target key start
LH: loop header
LB: loop body
LE: loop exit
PB: predicated region body
PF: predicated region fallthrough
CT: control target
= control target key end

     0   :  { %v256_v1 = vmov 0.0   ;;  %vm257_vm0 = vmmov 0   ;;  %s340_s0 = inlined_call_operand.vmem [shape: bf16[2,1,128], index: 0, kind: input, shape index: {}]   ;;  %s341_s1 = inlined_call_operand.vmem [shape: f32[1,1,128], index: 1, kind: input, shape index: {}]   ;;  %s342_s2 = inlined_call_operand.vmem [shape: f32[1,1,128], index: 2, kind: input, shape index: {}]   ;;  %s343_s3 = inlined_call_operand.vmem [shape: bf16[128,128], index: 3, kind: input, shape index: {}]   ;;  %s344_s4 = inlined_call_operand.vmem [shape: f32[1,128], index: 4, kind: input, shape index: {}]   ;;  %s345_s5 = inlined_call_operand.hbm [shape: f32[2,128], index: 5, kind: output, shape index: {}]  }
   0x1   :  { %v222_v0 = vld [vmem:[%s343_s3] sm:$0xff]   ;;  %199 = vmatprep.subr.bf16.mxu0 %v256_v1  ;;  %v223_v2 = vld [vmem:[%s343_s3 + $0x8] sm:$0xff]   ;;  %215 = vmatprep.mubr.msk.bf16.mxu0 %vm257_vm0, %v256_v1  ;;  %v224_v3 = vld [vmem:[%s343_s3 + $0x10] sm:$0xff]  }
   0x2   :  { %200 = vmatpush3.bf16.msra.mxu0 %v222_v0  ;;  %v22_v4 = vld [vmem:[%s340_s0] sm:$0x1]  ;;  %v23_v5 = vld [vmem:[%s340_s0 + $0x1] sm:$0x1] }
   0x3   :  { %201 = vmatprep.subr.bf16.mxu0 %v256_v1  ;;  %v26_v6 = vld [vmem:[%s341_s1] sm:$0x1]  ;;  %v24_v7 = vunpack.c.l.bf16 %v22_v4  ;;  %v25_v8 = vunpack.c.l.bf16 %v23_v5 }
   0x6   :  { %202 = vmatpush3.bf16.msra.mxu0 %v223_v2 }
   0x7   :  { %203 = vmatprep.subr.bf16.mxu0 %v256_v1 }
   0x8   :  { %10 = vsyncpa [#allocation3], 0  ;;  %v225_v9 = vld [vmem:[%s343_s3 + $0x18] sm:$0xff]   ;;  %v29_v10 = vld [vmem:[%s342_s2] sm:$0x1]  ;;  %v27_v11 = vmul.f32 %v26_v6, %v24_v7  ;;  %v28_v12 = vmul.f32 %v26_v6, %v25_v8  ;;  %vm66_vm1 = vcmask 1041409  }
   0x9   :  { %v226_v15 = vld [vmem:[%s343_s3 + $0x20] sm:$0xff]   ;;  %v227_v19 = vld [vmem:[%s343_s3 + $0x28] sm:$0xff]   ;;  %v228_v22 = vld [vmem:[%s343_s3 + $0x30] sm:$0xff]   ;;  %vm159_vm2 = vcmask 1041408  }
   0xa   :  { %204 = vmatpush3.bf16.msra.mxu0 %v224_v3  ;;  %v30_v13 = vadd.f32 %v29_v10, %v27_v11  ;;  %v31_v14 = vadd.f32 %v29_v10, %v28_v12  ;;  %v229_v25 = vld [vmem:[%s343_s3 + $0x38] sm:$0xff]   ;;  %v181_v28 = vld [vmem:[%s344_s4] ss:$0 sm:$0xff]  ;;  %s258_s3 = smov [#allocation2]  }
   0xb   :  { %205 = vmatprep.subr.bf16.mxu0 %v256_v1  ;;  %s173_s16 = sshll.u32 %s258_s3, 4  ;;  %s174_s16 = int_to_ptr.vmem [resolvable:$true] %s173_s16 }
   0xc   :  { %v32_v16 = vmax.f32 %v30_v13, 0.0  ;;  %v33_v17 = vmax.f32 %v31_v14, 0.0  ;;  %s232_s17 = scalar_lea.vmem %s174_s16, 32  ;;  %p237_p1 = scmp.lt.s32.totalorder %s174_s16, %s174_s16 }
   0xd   :  { %p233_p0 = scmp.ne.s32.totalorder %s174_s16, %s232_s17  ;;  %p238_p2 = scmp.lt.s32.totalorder %s232_s17, %s232_s17 }
   0xe   :  { %206 = vmatpush3.bf16.msra.mxu0 %v225_v9  ;;  %v37_v18 = vpack.c.bf16 %v33_v17, %v33_v17  ;;  %v36_v20 = vpack.c.bf16 %v32_v16, %v32_v16 }
   0xf   :  { %207 = vmatprep.subr.bf16.mxu0 %v256_v1  ;;  %p239_p3 = por %p238_p2, %p237_p1 }
  0x10   :  { %v64_v21 = vunpack.c.l.b16 %v37_v18  ;;  %v63_v23 = vunpack.c.l.b16 %v36_v20 }
  0x11   :  { %p240_p4 = pnand %p239_p3, %p233_p0 }
  0x12   :  { %208 = vmatpush3.bf16.msra.mxu0 %v226_v15  ;;  %v65_v24 = vrot.slane %v64_v21, 7 }
  0x13   :  { %209 = vmatprep.subr.bf16.mxu0 %v256_v1 }
  0x14   :  { %v67_v26 = vsel %vm66_vm1, %v65_v24, %v63_v23 }
  0x15   :  { %v68_v27 = vpack.c.b16 %v67_v26, %v67_v26 }
  0x16   :  { %210 = vmatpush3.bf16.msra.mxu0 %v227_v19 }
  0x17   :  { %211 = vmatprep.subr.bf16.mxu0 %v256_v1 }
  0x1a   :  { %212 = vmatpush3.bf16.msra.mxu0 %v228_v22 }
  0x1b   :  { %213 = vmatprep.subr.bf16.mxu0 %v256_v1 }
  0x1e   :  { %214 = vmatpush3.bf16.msra.mxu0 %v229_v25 }
  0x21   :  { %216 = vmatmul.mubr.bf16.vlgmr.msra.gmra.mrb[0].mxu0 %v68_v27 }
  0xf4   :  { %v152_v29 = vpop.f32.mrb[0].mxu0 }
  0xf5   :  { %v153_v30 = vadd.f32 %v181_v28, %v152_v29  ;;  %v217_v31 = vpop.f32.mrb[1].mxu0 }
  0xf6   :  { %v155_v32 = vpop.f32.mrb[2].mxu0 }
  0xf7   :  { %v218_v33 = vpop.f32.mrb[3].mxu0  ;;  %v158_v34 = vmul.f32 %v153_v30, %v153_v30 }
  0xf9   :  { %v160_v35 = vsel %vm159_vm2, %v158_v34, 0.0 }
  0xfa   :  { %161 = vadd.xlane.f32.xlu0 %v160_v35 }
 0x187   :  { %v162_v36 = vpop.xlane.xlu0 %161 }
 0x188   :  { %v163_v37 = vmax.f32 %v162_v36, 1e-24 }
 0x18a   :  { %230 = vrsqrt.f32 %v163_v37 }
 0x194   :  { %v231_v38 = vpop.eup %230 }
 0x195   :  { %v165_v39 = vmul.f32 %v231_v38, %v153_v30 }
 0x197   :  { %166 = vst [vmem:[#allocation2] sm:$0x3] %v165_v39 }
 0x198   :  { %243 = shalt.err (!%p240_p4)
}
 0x199   :  { %s244_s19 = scalar_lea.hbm %s345_s5, 32 }
 0x19a   :  { %p245_p5 = scmp.ne.s32.totalorder %s345_s5, %s244_s19  ;;  %p248_p6 = scmp.lt.u32.totalorder %s244_s19, %s345_s5 }
 0x19c   :  { %p250_p7 = pnand %p248_p6, %p245_p5 }
 0x19e   :  { %253 = shalt.err (!%p250_p7)
}
 0x19f   :  { %176 = dma.vmem_to_hbm [thread:$0]  %s174_s16, 32, %s345_s5, [#allocation3]  }
 0x1a0   :  { %254 = dma.done.wait [#allocation3], 32  }
 0x1a1   :  { %255 = vsyncadd [#allocation3], 4294967264 }
 0x1a2   :  { %180 = vsyncpa [#allocation3], 1 }

// kernel: _lambda_.38
= control target key start
LH: loop header
LB: loop body
LE: loop exit
PB: predicated region body
PF: predicated region fallthrough
CT: control target
= control target key end

     0   :  { %s1906_s15 = smov 0   ;;  %s2292_s0 = inlined_call_operand.vmem [shape: bf16[2,3,10,128], index: 0, kind: input, shape index: {}]   ;;  %s2293_s1 = inlined_call_operand.vmem [shape: f32[1,1,128], index: 1, kind: input, shape index: {}]   ;;  %s2294_s2 = inlined_call_operand.vmem [shape: f32[1,1,128], index: 2, kind: input, shape index: {}]   ;;  %s2295_s3 = inlined_call_operand.vmem [shape: bf16[9,128,32], index: 3, kind: input, shape index: {}]   ;;  %s2296_s4 = inlined_call_operand.vmem [shape: bf16[2,1,8,32], index: 4, kind: output, shape index: {}]  }
   0x1 LB: > { %s1287_s16 = sadd.s32 4294967295, %s1877_s15   ;;  %p1291_p0 = scmp.ge.s32.totalorder %s1877_s15, 1  ;;  %s1877_s15 = sphi %s1906_s15, %s14_s15  }
   0x2   : > { %p162_p1 = scmp.lt.s32.totalorder %s1877_s15, 3 }
   0x4   : > { %p163_p2 = pnand %p1291_p0, %p162_p1 }
   0x5   : > { %v1799_v0 = vld [vmem:[%s2295_s3 + $0x40] sm:$0xff] (!%p163_p2)   ;;  %v1879_v1 = vmov (!%p163_p2), 0.0   ;;  %v1801_v3 = vld [vmem:[%s2295_s3 + $0x48] sm:$0xff] (!%p163_p2)   ;;  %vm1880_vm0 = vmmov (!%p163_p2), 0   ;;  %p187_p3 = scmp.lt.s32.totalorder (!%p163_p2), %s1287_s16, 1  ;;  %v1803_v5 = vld [vmem:[%s2295_s3 + $0x50] sm:$0xff] (!%p163_p2)  }
   0x6   : > { %166 = sbr.rel (%p163_p2) target bundleno = 385 (0x181), region = 36  ;;  %1579 = vmatprep.subr.bf16.mxu1 (!%p163_p2), %v1879_v1  ;;  %1659 = vmatprep.subr.bf16.mxu0 (!%p163_p2), %v1879_v1  ;;  %v1800_v2 = vld [vmem:[%s2295_s3 + $0x100] sm:$0xff] (!%p163_p2)   ;;  %v1802_v4 = vld [vmem:[%s2295_s3 + $0x108] sm:$0xff] (!%p163_p2)   ;;  %v1804_v6 = vld [vmem:[%s2295_s3 + $0x110] sm:$0xff] (!%p163_p2)   ;;  %vm1232_vm1 = vcmask (!%p163_p2), 257024  }
   0x7   : > { %1580 = vmatpush3.bf16.msra.mxu1 (!%p163_p2), %v1799_v0  ;;  %1595 = vmatprep.mubr.msk.bf16.mxu1 (!%p163_p2), %vm1880_vm0, %v1879_v1  ;;  %v1805_v7 = vld [vmem:[%s2295_s3 + $0x58] sm:$0xff] (!%p163_p2)   ;;  %v1807_v9 = vld [vmem:[%s2295_s3 + $0x60] sm:$0xff] (!%p163_p2)   ;;  %v1809_v14 = vld [vmem:[%s2295_s3 + $0x68] sm:$0xff] (!%p163_p2)  }
   0x8   : > { %1660 = vmatpush3.bf16.msra.mxu0 (!%p163_p2), %v1800_v2  ;;  %1581 = vmatprep.subr.bf16.mxu1 (!%p163_p2), %v1879_v1  ;;  %v1806_v8 = vld [vmem:[%s2295_s3 + $0x118] sm:$0xff] (!%p163_p2)   ;;  %v1808_v10 = vld [vmem:[%s2295_s3 + $0x120] sm:$0xff] (!%p163_p2)   ;;  %v1810_v20 = vld [vmem:[%s2295_s3 + $0x128] sm:$0xff] (!%p163_p2)  }
   0x9   : > { %1661 = vmatprep.subr.bf16.mxu0 (!%p163_p2), %v1879_v1  ;;  %1675 = vmatprep.mubr.msk.bf16.mxu0 (!%p163_p2), %vm1880_vm0, %v1879_v1  ;;  %v1971_v13 = vld [vmem:[%s2293_s1] ss:$0 sm:$0xff] (!%p163_p2)  ;;  %v1811_v29 = vld [vmem:[%s2295_s3 + $0x70] sm:$0xff] (!%p163_p2)   ;;  %v1813_v35 = vld [vmem:[%s2295_s3 + $0x78] sm:$0xff] (!%p163_p2)  }
   0xa   : > { %v1979_v18 = vld [vmem:[%s2294_s2] ss:$0 sm:$0xff] (!%p163_p2)  ;;  %v1812_v30 = vld [vmem:[%s2295_s3 + $0x130] sm:$0xff] (!%p163_p2)   ;;  %v1814_v38 = vld [vmem:[%s2295_s3 + $0x138] sm:$0xff] (!%p163_p2)  }
   0xb   : > { %1582 = vmatpush3.bf16.msra.mxu1 (!%p163_p2), %v1801_v3  ;;  %v1815_v45 = vld [vmem:[%s2295_s3] sm:$0xff] (!%p163_p2)   ;;  %v1817_v50 = vld [vmem:[%s2295_s3 + $0x8] sm:$0xff] (!%p163_p2)   ;;  %v1819_v52 = vld [vmem:[%s2295_s3 + $0x10] sm:$0xff] (!%p163_p2)  }
   0xc   : > { %1662 = vmatpush3.bf16.msra.mxu0 (!%p163_p2), %v1802_v4  ;;  %1583 = vmatprep.subr.bf16.mxu1 (!%p163_p2), %v1879_v1  ;;  %v1816_v48 = vld [vmem:[%s2295_s3 + $0x140] sm:$0xff] (!%p163_p2)   ;;  %v1818_v51 = vld [vmem:[%s2295_s3 + $0x148] sm:$0xff] (!%p163_p2)   ;;  %v1820_v53 = vld [vmem:[%s2295_s3 + $0x150] sm:$0xff] (!%p163_p2)  }
   0xd   : > { %s2298_s16 = smov (!%p187_p3, %s1287_s16), 1  ;;  %1663 = vmatprep.subr.bf16.mxu0 %v1879_v1  ;;  %v1821_v54 = vld [vmem:[%s2295_s3 + $0x18] sm:$0xff]   ;;  %v1823_v56 = vld [vmem:[%s2295_s3 + $0x20] sm:$0xff]   ;;  %v1825_v58 = vld [vmem:[%s2295_s3 + $0x28] sm:$0xff]  }
   0xe   : > { %s1788_s29 = smul.u32 24, %s2298_s16  ;;  %v1822_v55 = vld [vmem:[%s2295_s3 + $0x158] sm:$0xff]   ;;  %v1824_v57 = vld [vmem:[%s2295_s3 + $0x160] sm:$0xff]   ;;  %v1826_v59 = vld [vmem:[%s2295_s3 + $0x168] sm:$0xff]   ;;  %s1293_s26 = sshll.u32 %s2298_s16, 2 }
   0xf   : > { %1584 = vmatpush3.bf16.msra.mxu1 %v1803_v5  ;;  %v1827_v0 = vld [vmem:[%s2295_s3 + $0x30] sm:$0xff]  }
  0x10   : > { %1664 = vmatpush3.bf16.msra.mxu0 %v1804_v6  ;;  %1585 = vmatprep.subr.bf16.mxu1 %v1879_v1  ;;  %s1956_s10 = scalar_lea.vmem %s2292_s0, %s1788_s29  ;;  %v1828_v4 = vld [vmem:[%s2295_s3 + $0x170] sm:$0xff]   ;;  %s195_s29 = scalar_lea.vmem %s2296_s4, %s1293_s26 }
  0x11   : > { %1665 = vmatprep.subr.bf16.mxu0 %v1879_v1  ;;  %v197_v11 = vld [vmem:[%s1956_s10] ss:$8 sps:$4 sm:$0xff]   ;;  %v198_v12 = vld [vmem:[%s1956_s10 + $0x4] sm:$0x1]  ;;  %v200_v19 = vld [vmem:[%s1956_s10 + $0xc] sm:$0x1] }
  0x12   : > { %v203_v15 = vunpack.c.l.bf16 %v197_v11  ;;  %v204_v16 = vunpack.c.l.bf16 %v198_v12  ;;  %v205_v17 = vunpack.c.h.bf16 %v197_v11  ;;  %v206_v23 = vunpack.c.l.bf16 %v200_v19  ;;  %v201_v60 = vld [vmem:[%s1956_s10 + $0x10] sm:$0xf]  ;;  %v202_v61 = vld [vmem:[%s1956_s10 + $0x14] sm:$0x1] }
  0x13   : > { %1586 = vmatpush3.bf16.msra.mxu1 %v1805_v7  ;;  %v207_v62 = vunpack.c.l.bf16 %v201_v60  ;;  %v208_v63 = vunpack.c.l.bf16 %v202_v61  ;;  %v1829_v7 = vld [vmem:[%s2295_s3 + $0x38] sm:$0xff]   ;;  %v1836_v19 = vld [vmem:[%s2295_s3 + $0x190] sm:$0xff]  }
  0x14   : > { %1666 = vmatpush3.bf16.msra.mxu0 %v1806_v8  ;;  %1587 = vmatprep.subr.bf16.mxu1 %v1879_v1  ;;  %v216_v21 = vmul.f32 %v1971_v13, %v203_v15  ;;  %v217_v22 = vmul.f32 %v1971_v13, %v204_v16  ;;  %v218_v24 = vmul.f32 %v1971_v13, %v205_v17  ;;  %v1832_v15 = vld [vmem:[%s2295_s3 + $0x180] sm:$0xff]   ;;  %v1833_v16 = vld [vmem:[%s2295_s3 + $0x88] sm:$0xff]   ;;  %v1870_v60 = vld [vmem:[%s2295_s3 + $0x238] sm:$0xff]  }
  0x15   : > { %1667 = vmatprep.subr.bf16.mxu0 %v1879_v1  ;;  %v219_v27 = vmul.f32 %v1971_v13, %v206_v23  ;;  %v220_v2 = vmul.f32 %v1971_v13, %v207_v62  ;;  %v221_v3 = vmul.f32 %v1971_v13, %v208_v63  ;;  %v1831_v13 = vld [vmem:[%s2295_s3 + $0x80] sm:$0xff]   ;;  %v1834_v17 = vld [vmem:[%s2295_s3 + $0x188] sm:$0xff]  }
  0x16   : > { %v229_v25 = vadd.f32 %v1979_v18, %v216_v21  ;;  %v230_v26 = vadd.f32 %v1979_v18, %v217_v22  ;;  %v231_v28 = vadd.f32 %v1979_v18, %v218_v24  ;;  %v1838_v21 = vld [vmem:[%s2295_s3 + $0x198] sm:$0xff]   ;;  %v1839_v22 = vld [vmem:[%s2295_s3 + $0xa0] sm:$0xff]   ;;  %v1841_v24 = vld [vmem:[%s2295_s3 + $0xa8] sm:$0xff]  }
  0x17   : > { %1588 = vmatpush3.bf16.msra.mxu1 %v1807_v9  ;;  %v232_v33 = vadd.f32 %v1979_v18, %v219_v27  ;;  %v233_v5 = vadd.f32 %v1979_v18, %v220_v2  ;;  %v234_v6 = vadd.f32 %v1979_v18, %v221_v3  ;;  %v1835_v18 = vld [vmem:[%s2295_s3 + $0x90] sm:$0xff]   ;;  %v1840_v23 = vld [vmem:[%s2295_s3 + $0x1a0] sm:$0xff]  }
  0x18   : > { %1668 = vmatpush3.bf16.msra.mxu0 %v1808_v10  ;;  %1589 = vmatprep.subr.bf16.mxu1 %v1879_v1  ;;  %v2001_v31 = vmax.f32 %v229_v25, 0.0  ;;  %v236_v32 = vmax.f32 %v230_v26, 0.0  ;;  %v2004_v34 = vmax.f32 %v231_v28, 0.0  ;;  %v1830_v10 = vld [vmem:[%s2295_s3 + $0x178] sm:$0xff]   ;;  %v1842_v25 = vld [vmem:[%s2295_s3 + $0x1a8] sm:$0xff]   ;;  %v1843_v26 = vld [vmem:[%s2295_s3 + $0xb0] sm:$0xff]  }
  0x19   : > { %1669 = vmatprep.subr.bf16.mxu0 %v1879_v1  ;;  %v238_v37 = vmax.f32 %v232_v33, 0.0  ;;  %v2095_v8 = vmax.f32 %v233_v5, 0.0  ;;  %v240_v9 = vmax.f32 %v234_v6, 0.0  ;;  %v1844_v27 = vld [vmem:[%s2295_s3 + $0x1b0] sm:$0xff]   ;;  %v1845_v28 = vld [vmem:[%s2295_s3 + $0xb8] sm:$0xff]   ;;  %v1848_v33 = vld [vmem:[%s2295_s3 + $0x1c0] sm:$0xff]  }
  0x1a   : > { %v2011_v36 = vpack.c.bf16 %v236_v32, %v2001_v31  ;;  %v241_v11 = vpack.c.bf16 %v2001_v31, %v2001_v31  ;;  %v1847_v31 = vld [vmem:[%s2295_s3 + $0xc0] sm:$0xff]  }
  0x1b   : > { %1590 = vmatpush3.bf16.msra.mxu1 %v1809_v14  ;;  %v2020_v41 = vpack.c.bf16 %v238_v37, %v2004_v34  ;;  %v2104_v12 = vpack.c.bf16 %v240_v9, %v2095_v8  ;;  %v900_v32 = vpack.c.bf16 %v2095_v8, %v2095_v8  ;;  %v1851_v37 = vld [vmem:[%s2295_s3 + $0xd0] sm:$0xff]  }
  0x1c   : > { %1670 = vmatpush3.bf16.msra.mxu0 %v1810_v20  ;;  %1591 = vmatprep.subr.bf16.mxu1 %v1879_v1  ;;  %v277_v39 = vshrl.u32 %v2011_v36, 16  ;;  %v279_v40 = vshll.u32 %v2011_v36, 16  ;;  %v1837_v20 = vld [vmem:[%s2295_s3 + $0x98] sm:$0xff]  }
  0x1d   : > { %1671 = vmatprep.subr.bf16.mxu0 %v1879_v1  ;;  %v695_v43 = vshrl.u32 %v2020_v41, 16  ;;  %v697_v44 = vshll.u32 %v2020_v41, 16  ;;  %v809_v14 = vrot.slane %v2020_v41, 1  ;;  %v1855_v41 = vld [vmem:[%s2295_s3 + $0xe0] sm:$0xff]   ;;  %v1140_v61 = vrot.slane %v2104_v12, 1 }
  0x1e   : > { %v281_v42 = vrot.slane %v279_v40, 1  ;;  %v1854_v40 = vld [vmem:[%s2295_s3 + $0x1d8] sm:$0xff]  }
  0x1f   : > { %1592 = vmatpush3.bf16.msra.mxu1 %v1811_v29  ;;  %v699_v47 = vrot.slane %v697_v44, 1  ;;  %v1846_v29 = vld [vmem:[%s2295_s3 + $0x1b8] sm:$0xff]   ;;  %v1858_v44 = vld [vmem:[%s2295_s3 + $0x1e8] sm:$0xff]  }
  0x20   : > { %1672 = vmatpush3.bf16.msra.mxu0 %v1812_v30  ;;  %1593 = vmatprep.subr.bf16.mxu1 %v1879_v1  ;;  %v282_v46 = vor.u32 %v281_v42, %v277_v39  ;;  %v478_v30 = vrot.slane %v2011_v36, 1  ;;  %v1850_v36 = vld [vmem:[%s2295_s3 + $0x1c8] sm:$0xff]   ;;  %v1853_v39 = vld [vmem:[%s2295_s3 + $0xd8] sm:$0xff]   ;;  %v1856_v42 = vld [vmem:[%s2295_s3 + $0x1e0] sm:$0xff]  }
  0x21   : > { %1673 = vmatprep.subr.bf16.mxu0 %v1879_v1  ;;  %v700_v49 = vor.u32 %v699_v47, %v695_v43  ;;  %v1857_v43 = vld [vmem:[%s2295_s3 + $0xe8] sm:$0xff]   ;;  %v1860_v47 = vld [vmem:[%s2295_s3 + $0x1f0] sm:$0xff]  }
  0x23   : > { %1594 = vmatpush3.bf16.msra.mxu1 %v1813_v35  ;;  %v1849_v35 = vld [vmem:[%s2295_s3 + $0xc8] sm:$0xff]  }
  0x24   : > { %1674 = vmatpush3.bf16.msra.mxu0 %v1814_v38  ;;  %1599 = vmatprep.subr.bf16.mxu1 %v1879_v1  ;;  %v1852_v38 = vld [vmem:[%s2295_s3 + $0x1d0] sm:$0xff]  }
  0x25   : > { %1679 = vmatprep.subr.bf16.mxu0 %v1879_v1 }
  0x26   : > { %1596 = vmatmul.mubr.bf16.vlgmr.msra.gmra.mrb[0].mxu1 %v282_v46  ;;  %v1028_v46 = vshll.u32 %v2104_v12, 16 }
  0x27   : > { %1600 = vmatpush3.bf16.msra.mxu1 %v1815_v45  ;;  %1615 = vmatprep.mubr.msk.bf16.mxu1 %vm1880_vm0, %v1879_v1  ;;  %v1859_v45 = vld [vmem:[%s2295_s3 + $0xf0] sm:$0xff]  }
  0x28   : > { %1676 = vmatmul.mubr.bf16.vlgmr.msra.gmra.mrb[0].mxu0 %v700_v49  ;;  %1601 = vmatprep.subr.bf16.mxu1 %v1879_v1  ;;  %v1026_v49 = vshrl.u32 %v2104_v12, 16 }
  0x29   : > { %1680 = vmatpush3.bf16.msra.mxu0 %v1816_v48  ;;  %1695 = vmatprep.mubr.msk.bf16.mxu0 %vm1880_vm0, %v1879_v1  ;;  %v1861_v48 = vld [vmem:[%s2295_s3 + $0xf8] sm:$0xff]  }
  0x2a   : > { %1681 = vmatprep.subr.bf16.mxu0 %v1879_v1 }
  0x2b   : > { %1602 = vmatpush3.bf16.msra.mxu1 %v1817_v50  ;;  %v1030_v50 = vrot.slane %v1028_v46, 1 }
  0x2c   : > { %1603 = vmatprep.subr.bf16.mxu1 %v1879_v1 }
  0x2d   : > { %1682 = vmatpush3.bf16.msra.mxu0 %v1818_v51  ;;  %v1862_v51 = vld [vmem:[%s2295_s3 + $0x1f8] sm:$0xff]  }
  0x2e   : > { %1683 = vmatprep.subr.bf16.mxu0 %v1879_v1 }
  0x2f   : > { %1604 = vmatpush3.bf16.msra.mxu1 %v1819_v52  ;;  %v569_v52 = vpack.c.bf16 %v2004_v34, %v2004_v34  ;;  %v1865_v34 = vld [vmem:[%s2295_s3 + $0x210] sm:$0xff]  }
  0x30   : > { %1605 = vmatprep.subr.bf16.mxu1 %v1879_v1 }
  0x31   : > { %1684 = vmatpush3.bf16.msra.mxu0 %v1820_v53  ;;  %v1031_v53 = vor.u32 %v1030_v50, %v1026_v49 }
  0x32   : > { %1685 = vmatprep.subr.bf16.mxu0 %v1879_v1 }
  0x33   : > { %1606 = vmatpush3.bf16.msra.mxu1 %v1821_v54  ;;  %v1863_v54 = vld [vmem:[%s2295_s3 + $0x200] sm:$0xff]  }
  0x34   : > { %1607 = vmatprep.subr.bf16.mxu1 %v1879_v1 }
  0x35   : > { %1686 = vmatpush3.bf16.msra.mxu0 %v1822_v55  ;;  %v1864_v55 = vld [vmem:[%s2295_s3 + $0x208] sm:$0xff]  }
  0x36   : > { %1687 = vmatprep.subr.bf16.mxu0 %v1879_v1 }
  0x37   : > { %1608 = vmatpush3.bf16.msra.mxu1 %v1823_v56  ;;  %v1866_v56 = vld [vmem:[%s2295_s3 + $0x218] sm:$0xff]  }
  0x38   : > { %1609 = vmatprep.subr.bf16.mxu1 %v1879_v1 }
  0x39   : > { %1688 = vmatpush3.bf16.msra.mxu0 %v1824_v57  ;;  %v1867_v57 = vld [vmem:[%s2295_s3 + $0x220] sm:$0xff]  }
  0x3a   : > { %1689 = vmatprep.subr.bf16.mxu0 %v1879_v1 }
  0x3b   : > { %1610 = vmatpush3.bf16.msra.mxu1 %v1825_v58  ;;  %v1868_v58 = vld [vmem:[%s2295_s3 + $0x228] sm:$0xff]  }
  0x3c   : > { %1611 = vmatprep.subr.bf16.mxu1 %v1879_v1 }
  0x3d   : > { %1690 = vmatpush3.bf16.msra.mxu0 %v1826_v59  ;;  %v1869_v59 = vld [vmem:[%s2295_s3 + $0x230] sm:$0xff]  }
  0x3e   : > { %1691 = vmatprep.subr.bf16.mxu0 %v1879_v1 }
  0x3f   : > { %1612 = vmatpush3.bf16.msra.mxu1 %v1827_v0 }
  0x40   : > { %1613 = vmatprep.subr.bf16.mxu1 %v1879_v1 }
  0x41   : > { %1692 = vmatpush3.bf16.msra.mxu0 %v1828_v4 }
  0x42   : > { %1693 = vmatprep.subr.bf16.mxu0 %v1879_v1 }
  0x43   : > { %1614 = vmatpush3.bf16.msra.mxu1 %v1829_v7 }
  0x44   : > { %1619 = vmatprep.subr.bf16.mxu1 %v1879_v1 }
  0x45   : > { %1694 = vmatpush3.bf16.msra.mxu0 %v1830_v10 }
  0x46   : > { %1699 = vmatprep.subr.bf16.mxu0 %v1879_v1  ;;  %1616 = vmatmul.mubr.bf16.vlgmr.msra.gmra.mrb[0].mxu1 %v241_v11 }
  0x47   : > { %1620 = vmatpush3.bf16.msra.mxu1 %v1831_v13  ;;  %1635 = vmatprep.mubr.msk.bf16.mxu1 %vm1880_vm0, %v1879_v1 }
  0x48   : > { %1696 = vmatmul.mubr.bf16.vlgmr.msra.gmra.mrb[0].mxu0 %v809_v14  ;;  %1621 = vmatprep.subr.bf16.mxu1 %v1879_v1 }
  0x49   : > { %1700 = vmatpush3.bf16.msra.mxu0 %v1832_v15  ;;  %1715 = vmatprep.mubr.msk.bf16.mxu0 %vm1880_vm0, %v1879_v1 }
  0x4a   : > { %1701 = vmatprep.subr.bf16.mxu0 %v1879_v1 }
  0x4b   : > { %1622 = vmatpush3.bf16.msra.mxu1 %v1833_v16 }
  0x4c   : > { %1623 = vmatprep.subr.bf16.mxu1 %v1879_v1 }
  0x4d   : > { %1702 = vmatpush3.bf16.msra.mxu0 %v1834_v17 }
  0x4e   : > { %1703 = vmatprep.subr.bf16.mxu0 %v1879_v1 }
  0x4f   : > { %1624 = vmatpush3.bf16.msra.mxu1 %v1835_v18 }
  0x50   : > { %1625 = vmatprep.subr.bf16.mxu1 %v1879_v1 }
  0x51   : > { %1704 = vmatpush3.bf16.msra.mxu0 %v1836_v19 }
  0x52   : > { %1705 = vmatprep.subr.bf16.mxu0 %v1879_v1 }
  0x53   : > { %1626 = vmatpush3.bf16.msra.mxu1 %v1837_v20 }
  0x54   : > { %1627 = vmatprep.subr.bf16.mxu1 %v1879_v1 }
  0x55   : > { %1706 = vmatpush3.bf16.msra.mxu0 %v1838_v21 }
  0x56   : > { %1707 = vmatprep.subr.bf16.mxu0 %v1879_v1 }
  0x57   : > { %1628 = vmatpush3.bf16.msra.mxu1 %v1839_v22 }
  0x58   : > { %1629 = vmatprep.subr.bf16.mxu1 %v1879_v1 }
  0x59   : > { %1708 = vmatpush3.bf16.msra.mxu0 %v1840_v23 }
  0x5a   : > { %1709 = vmatprep.subr.bf16.mxu0 %v1879_v1 }
  0x5b   : > { %1630 = vmatpush3.bf16.msra.mxu1 %v1841_v24 }
  0x5c   : > { %1631 = vmatprep.subr.bf16.mxu1 %v1879_v1 }
  0x5d   : > { %1710 = vmatpush3.bf16.msra.mxu0 %v1842_v25 }
  0x5e   : > { %1711 = vmatprep.subr.bf16.mxu0 %v1879_v1 }
  0x5f   : > { %1632 = vmatpush3.bf16.msra.mxu1 %v1843_v26 }
  0x60   : > { %1633 = vmatprep.subr.bf16.mxu1 %v1879_v1 }
  0x61   : > { %1712 = vmatpush3.bf16.msra.mxu0 %v1844_v27 }
  0x62   : > { %1713 = vmatprep.subr.bf16.mxu0 %v1879_v1 }
  0x63   : > { %1634 = vmatpush3.bf16.msra.mxu1 %v1845_v28 }
  0x64   : > { %1639 = vmatprep.subr.bf16.mxu1 %v1879_v1 }
  0x65   : > { %1714 = vmatpush3.bf16.msra.mxu0 %v1846_v29 }
  0x66   : > { %1719 = vmatprep.subr.bf16.mxu0 %v1879_v1  ;;  %1636 = vmatmul.mubr.bf16.vlgmr.msra.gmra.mrb[0].mxu1 %v478_v30 }
  0x67   : > { %1640 = vmatpush3.bf16.msra.mxu1 %v1847_v31  ;;  %1655 = vmatprep.mubr.msk.bf16.mxu1 %vm1880_vm0, %v1879_v1 }
  0x68   : > { %1716 = vmatmul.mubr.bf16.vlgmr.msra.gmra.mrb[0].mxu0 %v900_v32  ;;  %1641 = vmatprep.subr.bf16.mxu1 %v1879_v1 }
  0x69   : > { %1720 = vmatpush3.bf16.msra.mxu0 %v1848_v33  ;;  %1735 = vmatprep.mubr.msk.bf16.mxu0 %vm1880_vm0, %v1879_v1 }
  0x6a   : > { %1721 = vmatprep.subr.bf16.mxu0 %v1879_v1 }
  0x6b   : > { %1642 = vmatpush3.bf16.msra.mxu1 %v1849_v35 }
  0x6c   : > { %1643 = vmatprep.subr.bf16.mxu1 %v1879_v1 }
  0x6d   : > { %1722 = vmatpush3.bf16.msra.mxu0 %v1850_v36 }
  0x6e   : > { %1723 = vmatprep.subr.bf16.mxu0 %v1879_v1 }
  0x6f   : > { %1644 = vmatpush3.bf16.msra.mxu1 %v1851_v37 }
  0x70   : > { %1645 = vmatprep.subr.bf16.mxu1 %v1879_v1 }
  0x71   : > { %1724 = vmatpush3.bf16.msra.mxu0 %v1852_v38 }
  0x72   : > { %1725 = vmatprep.subr.bf16.mxu0 %v1879_v1 }
  0x73   : > { %1646 = vmatpush3.bf16.msra.mxu1 %v1853_v39 }
  0x74   : > { %1647 = vmatprep.subr.bf16.mxu1 %v1879_v1 }
  0x75   : > { %1726 = vmatpush3.bf16.msra.mxu0 %v1854_v40 }
  0x76   : > { %1727 = vmatprep.subr.bf16.mxu0 %v1879_v1 }
  0x77   : > { %1648 = vmatpush3.bf16.msra.mxu1 %v1855_v41 }
  0x78   : > { %1649 = vmatprep.subr.bf16.mxu1 %v1879_v1 }
  0x79   : > { %1728 = vmatpush3.bf16.msra.mxu0 %v1856_v42 }
  0x7a   : > { %1729 = vmatprep.subr.bf16.mxu0 %v1879_v1 }
  0x7b   : > { %1650 = vmatpush3.bf16.msra.mxu1 %v1857_v43 }
  0x7c   : > { %1651 = vmatprep.subr.bf16.mxu1 %v1879_v1 }
  0x7d   : > { %1730 = vmatpush3.bf16.msra.mxu0 %v1858_v44 }
  0x7e   : > { %1731 = vmatprep.subr.bf16.mxu0 %v1879_v1 }
  0x7f   : > { %1652 = vmatpush3.bf16.msra.mxu1 %v1859_v45 }
  0x80   : > { %1653 = vmatprep.subr.bf16.mxu1 %v1879_v1 }
  0x81   : > { %1732 = vmatpush3.bf16.msra.mxu0 %v1860_v47 }
  0x82   : > { %1733 = vmatprep.subr.bf16.mxu0 %v1879_v1 }
  0x83   : > { %1654 = vmatpush3.bf16.msra.mxu1 %v1861_v48 }
  0x85   : > { %1734 = vmatpush3.bf16.msra.mxu0 %v1862_v51 }
  0x86   : > { %1656 = vmatmul.mubr.bf16.vlgmr.msra.gmra.mrb[0].mxu1 %v569_v52  ;;  %1739 = vmatprep.subr.bf16.mxu0 %v1879_v1 }
  0x88   : > { %1736 = vmatmul.mubr.bf16.vlgmr.msra.gmra.mrb[0].mxu0 %v1031_v53 }
  0x89   : > { %1740 = vmatpush3.bf16.msra.mxu0 %v1863_v54  ;;  %1755 = vmatprep.mubr.msk.bf16.mxu0 %vm1880_vm0, %v1879_v1 }
  0x8a   : > { %1741 = vmatprep.subr.bf16.mxu0 %v1879_v1 }
  0x8d   : > { %1742 = vmatpush3.bf16.msra.mxu0 %v1864_v55 }
  0x8e   : > { %1743 = vmatprep.subr.bf16.mxu0 %v1879_v1 }
  0x91   : > { %1744 = vmatpush3.bf16.msra.mxu0 %v1865_v34 }
  0x92   : > { %1745 = vmatprep.subr.bf16.mxu0 %v1879_v1 }
  0x95   : > { %1746 = vmatpush3.bf16.msra.mxu0 %v1866_v56 }
  0x96   : > { %1747 = vmatprep.subr.bf16.mxu0 %v1879_v1 }
  0x99   : > { %1748 = vmatpush3.bf16.msra.mxu0 %v1867_v57 }
  0x9a   : > { %1749 = vmatprep.subr.bf16.mxu0 %v1879_v1 }
  0x9d   : > { %1750 = vmatpush3.bf16.msra.mxu0 %v1868_v58 }
  0x9e   : > { %1751 = vmatprep.subr.bf16.mxu0 %v1879_v1 }
  0xa1   : > { %1752 = vmatpush3.bf16.msra.mxu0 %v1869_v59 }
  0xa2   : > { %1753 = vmatprep.subr.bf16.mxu0 %v1879_v1 }
  0xa5   : > { %1754 = vmatpush3.bf16.msra.mxu0 %v1870_v60 }
  0xa8   : > { %1756 = vmatmul.mubr.bf16.vlgmr.msra.gmra.mrb[0].mxu0 %v1140_v61 }
 0x159   : > { %v669_v62 = vpop.f32.mrb[0].mxu1 }
 0x15a   : > { %v1657_v63 = vpop.f32.mrb[1].mxu1 }
 0x15b   : > { %v672_v0 = vpop.f32.mrb[2].mxu1 }
 0x15c   : > { %v1658_v2 = vpop.f32.mrb[3].mxu1 }
 0x17b   : > { %v1224_v3 = vpop.f32.mrb[0].mxu0 }
 0x17c   : > { %v1759_v4 = vadd.f32 %v1224_v3, %v669_v62  ;;  %v1757_v5 = vpop.f32.mrb[1].mxu0 }
 0x17d   : > { %v1227_v6 = vpop.f32.mrb[2].mxu0 }
 0x17e   : > { %v1231_v7 = vpack.c.bf16 %v1759_v4, %v1759_v4  ;;  %v1758_v1 = vpop.f32.mrb[3].mxu0 }
 0x180   : > { %1233 = vst.msk [vmem:[%s195_s29] sm:$0xf] %vm1232_vm1, %v1231_v7 }
 0x181 PF: > { %s14_s15 = sadd.s32 1, %s1877_s15  }
 0x182   : > { %p11_p4 = scmp.ge.s32.totalorder %s14_s15, 4  }
 0x184   :  { %13 = sbr.rel (!%p11_p4) target bundleno = 1 (0x1), region = 74 }

</bundles_post_ra>
